<compile_context>
chip_gen: v5e
topology: v5e:2x2
jax: 0.10.0
libtpu: 0.0.40
codegen_flags: <defaults>
</compile_context>

<pallas_src>
import jax
import jax.numpy as jnp
from jax import lax
from jax.experimental import pallas as pl
from jax.experimental.pallas import tpu as pltpu

C1 = 25       # real conv out-channels
C_PAD = 128   # conv out-channels padded to one full 128-lane vreg width
H_IN = 24     # implied by Linear(900, 4): 25 * 6 * 6


def _cnn_fused_kernel(x_ref, w1_ref, b1_ref, w2_ref, b2_ref, wfc_ref, bfc_ref,
                      o_ref, xp1, y1, xp2, y2):
    # Per-image refs (grid is over the batch):
    #   x_ref  : (1, H, W, Cin)        NHWC input block
    #   w1_ref : (9, Cin, C)           C = 128 (lane-padded out-channels)
    #   b1_ref : (1, C)
    #   w2_ref : (9, 25, C)
    #   b2_ref : (1, C)
    #   wfc_ref: (36, O, C)            fc weight, row = h*6 + w, contracted over C
    #   bfc_ref: (1, O)
    #   o_ref  : (1, 1, O)
    #   xp1    : (H+2, W+2, Cin)       zero-halo scratch (padding=1 in-kernel)
    #   y1     : (H, W, C)             conv1 + ReLU output
    #   xp2    : (H/2+2, W/2+2, C)     zero-halo scratch for conv2
    #   y2     : (H/2, W/2, C)         conv2 + ReLU output
    _, H, W, Cin = x_ref.shape
    C = y1.shape[-1]
    C2in = w2_ref.shape[1]            # 25 real channels feeding conv2
    H1, W1 = H // 2, W // 2
    H2, W2 = H1 // 2, W1 // 2
    O = o_ref.shape[-1]
    f32 = jnp.float32

    # ---------------- conv1 (3x3, stride 1, pad 1) + ReLU ----------------
    xp1[...] = jnp.zeros_like(xp1)
    xp1[1:H + 1, 1:W + 1, :] = x_ref[0]

    acc1 = jnp.zeros((H * W, C), f32)
    for k in range(9):                              # 9 shifted MXU matmuls
        ky, kx = k // 3, k % 3
        patch = xp1[ky:ky + H, kx:kx + W, :].reshape(H * W, Cin)
        acc1 = acc1 + jnp.dot(patch, w1_ref[k], preferred_element_type=f32)
    acc1 = jnp.maximum(acc1 + b1_ref[...], 0.0)     # bias + ReLU, lane-dense
    y1[...] = acc1.reshape(H, W, C)

    # ------- maxpool 2x2/2, written straight into conv2's halo scratch -------
    xp2[...] = jnp.zeros_like(xp2)
    p00 = y1[pl.ds(0, H1, 2), pl.ds(0, W1, 2), :]
    p01 = y1[pl.ds(0, H1, 2), pl.ds(1, W1, 2), :]
    p10 = y1[pl.ds(1, H1, 2), pl.ds(0, W1, 2), :]
    p11 = y1[pl.ds(1, H1, 2), pl.ds(1, W1, 2), :]
    xp2[1:H1 + 1, 1:W1 + 1, :] = jnp.maximum(jnp.maximum(p00, p01),
                                             jnp.maximum(p10, p11))

    # ---------------- conv2 (3x3, stride 1, pad 1) + ReLU ----------------
    acc2 = jnp.zeros((H1 * W1, C), f32)
    for k in range(9):
        ky, kx = k // 3, k % 3
        # only the 25 real channels participate in the contraction
        patch = xp2[ky:ky + H1, kx:kx + W1, 0:C2in].reshape(H1 * W1, C2in)
        acc2 = acc2 + jnp.dot(patch, w2_ref[k], preferred_element_type=f32)
    acc2 = jnp.maximum(acc2 + b2_ref[...], 0.0)
    y2[...] = acc2.reshape(H1, W1, C)

    # -------- maxpool 2x2/2 fused with the Linear(900, 4) epilogue --------
    out = bfc_ref[...].astype(f32)                  # (1, O)
    for hh in range(H2):
        for ww in range(W2):
            v00 = y2[2 * hh,     2 * ww:2 * ww + 1, :]
            v01 = y2[2 * hh,     2 * ww + 1:2 * ww + 2, :]
            v10 = y2[2 * hh + 1, 2 * ww:2 * ww + 1, :]
            v11 = y2[2 * hh + 1, 2 * ww + 1:2 * ww + 2, :]
            v = jnp.maximum(jnp.maximum(v00, v01),
                            jnp.maximum(v10, v11))  # (1, C) pooled features
            # contract over channels with the (h,w)-row of the permuted fc weight
            out = out + lax.dot_general(
                v, wfc_ref[hh * W2 + ww],
                dimension_numbers=(((1,), (1,)), ((), ())),
                preferred_element_type=f32)
    o_ref[0] = out


def init_params(key, in_dim):
    k1, k2, k3, k4 = jax.random.split(key, 4)
    # Conv weights ~ N(0, sqrt(2 / (k*k*out_ch))) exactly as in the torch __init__.
    std = (2.0 / (3 * 3 * C1)) ** 0.5
    w1 = jax.random.normal(k1, (3, 3, in_dim, C1), jnp.float32) * std   # (ky,kx,cin,cout)
    b1 = jnp.zeros((C1,), jnp.float32)
    w2 = jax.random.normal(k2, (3, 3, C1, C1), jnp.float32) * std
    b2 = jnp.zeros((C1,), jnp.float32)
    # Linear(900, 4): torch default init ~ U(-1/sqrt(900), 1/sqrt(900)); weight is (out, in).
    bound = 1.0 / (900.0 ** 0.5)
    w_fc = jax.random.uniform(k3, (4, 900), jnp.float32, -bound, bound)
    b_fc = jax.random.uniform(k4, (4,), jnp.float32, -bound, bound)

    # ---- one-time packing for the fused kernel ----
    # conv weights: (9, cin, 128) with the out-channel (lane) dim zero-padded to 128
    w1p = jnp.zeros((9, in_dim, C_PAD), jnp.float32).at[:, :, :C1].set(
        w1.reshape(9, in_dim, C1))
    b1p = jnp.zeros((1, C_PAD), jnp.float32).at[0, :C1].set(b1)
    w2p = jnp.zeros((9, C1, C_PAD), jnp.float32).at[:, :, :C1].set(
        w2.reshape(9, C1, C1))
    b2p = jnp.zeros((1, C_PAD), jnp.float32).at[0, :C1].set(b2)
    # fc weight: permute rows from torch's (c, h, w) flatten order to (h, w, c),
    # pad c to 128 -> per-spatial-position channel contraction in the kernel.
    w_chw = w_fc.reshape(4, C1, 6, 6)                                   # (o, c, h, w)
    w_pad = jnp.zeros((4, C_PAD, 6, 6), jnp.float32).at[:, :C1].set(w_chw)
    wfct = jnp.transpose(w_pad, (2, 3, 0, 1)).reshape(36, 4, C_PAD)     # ((h*6+w), o, c)
    bfcp = b_fc.reshape(1, 4)

    return dict(w1p=w1p, b1p=b1p, w2p=w2p, b2p=b2p, wfct=wfct, bfcp=bfcp,
                # raw torch-layout weights kept only for the pure-JAX reference
                w1=w1, b1=b1, w2=w2, b2=b2, w_fc=w_fc, b_fc=b_fc)


@jax.jit
def cnn_forward(params, x_nchw):
    # x_nchw: [N, Cin, 24, 24] (PyTorch layout) -> NHWC for the fused kernel.
    x = jnp.transpose(x_nchw.astype(jnp.float32), (0, 2, 3, 1))
    N, H, W, Cin = x.shape
    C = C_PAD
    out = pl.pallas_call(
        _cnn_fused_kernel,
        out_shape=jax.ShapeDtypeStruct((N, 1, 4), jnp.float32),
        grid_spec=pltpu.PrefetchScalarGridSpec(
            num_scalar_prefetch=0,
            grid=(N,),                                   # one image per step
            in_specs=[
                pl.BlockSpec((1, H, W, Cin), lambda n: (n, 0, 0, 0)),
                pl.BlockSpec((9, Cin, C), lambda n: (0, 0, 0)),
                pl.BlockSpec((1, C), lambda n: (0, 0)),
                pl.BlockSpec((9, C1, C), lambda n: (0, 0, 0)),
                pl.BlockSpec((1, C), lambda n: (0, 0)),
                pl.BlockSpec((36, 4, C), lambda n: (0, 0, 0)),
                pl.BlockSpec((1, 4), lambda n: (0, 0)),
            ],
            out_specs=pl.BlockSpec((1, 1, 4), lambda n: (n, 0, 0)),
            scratch_shapes=[
                pltpu.VMEM((H + 2, W + 2, Cin), jnp.float32),            # xp1
                pltpu.VMEM((H, W, C), jnp.float32),                      # y1
                pltpu.VMEM((H // 2 + 2, W // 2 + 2, C), jnp.float32),    # xp2
                pltpu.VMEM((H // 2, W // 2, C), jnp.float32),            # y2
            ]),
        compiler_params=pltpu.CompilerParams(
            dimension_semantics=("parallel",)),          # v7x: 2 TCs split batch
    )(x, params["w1p"], params["b1p"], params["w2p"], params["b2p"],
      params["wfct"], params["bfcp"])
    return out.reshape(N, 4)


def reference_forward(params, x_nchw):
    # Pure-JAX mirror of the PyTorch module, for validation.
    hi = lax.Precision.HIGHEST
    x = jnp.transpose(x_nchw.astype(jnp.float32), (0, 2, 3, 1))          # NHWC

    def conv3x3_relu(x, w, b):                                           # w: (3,3,cin,cout)
        xp = jnp.pad(x, ((0, 0), (1, 1), (1, 1), (0, 0)))
        H, W = x.shape[1], x.shape[2]
        acc = jnp.zeros(x.shape[:3] + (w.shape[-1],), jnp.float32)
        for ky in range(3):
            for kx in range(3):
                acc = acc + jnp.einsum("nhwc,cd->nhwd",
                                       xp[:, ky:ky + H, kx:kx + W, :], w[ky, kx],
                                       precision=hi)
        return jnp.maximum(acc + b, 0.0)

    def pool2x2(x):
        N, H, W, C = x.shape
        return x.reshape(N, H // 2, 2, W // 2, 2, C).max(axis=(2, 4))

    h = pool2x2(conv3x3_relu(x, params["w1"], params["b1"]))
    h = pool2x2(conv3x3_relu(h, params["w2"], params["b2"]))
    feat = jnp.transpose(h, (0, 3, 1, 2)).reshape(h.shape[0], -1)        # (c,h,w) flatten
    return jnp.dot(feat, params["w_fc"].T, precision=hi) + params["b_fc"]


if __name__ == "__main__":
    key = jax.random.PRNGKey(0)
    k_param, k_x = jax.random.split(key)
    in_dim = 3
    # n_class is unused by the reference module (fc always outputs 4).
    x = jax.random.normal(k_x, (2, in_dim, H_IN, H_IN), jnp.float32)
    params = init_params(k_param, in_dim)

    out = jax.block_until_ready(cnn_forward(params, x))
    assert out.shape == (2, 4) and out.dtype == jnp.float32

    ref = jax.block_until_ready(jax.jit(reference_forward)(params, x))
    assert jnp.allclose(out, ref, atol=1e-2, rtol=1e-2), (out, ref)
    print("KERNEL_OK")
</pallas_src>

<mosaic_0001>
module attributes {stable_mosaic.version = 11 : i64} {
  func.func @_cnn_fused_kernel(%arg0: i32, %arg1: memref<1x24x24x3xf32, #tpu.memory_space<vmem>>, %arg2: memref<9x3x128xf32, #tpu.memory_space<vmem>>, %arg3: memref<1x128xf32, #tpu.memory_space<vmem>>, %arg4: memref<9x25x128xf32, #tpu.memory_space<vmem>>, %arg5: memref<1x128xf32, #tpu.memory_space<vmem>>, %arg6: memref<36x4x128xf32, #tpu.memory_space<vmem>>, %arg7: memref<1x4xf32, #tpu.memory_space<vmem>>, %arg8: memref<1x1x4xf32, #tpu.memory_space<vmem>>, %arg9: memref<26x26x3xf32, #tpu.memory_space<vmem>>, %arg10: memref<24x24x128xf32, #tpu.memory_space<vmem>>, %arg11: memref<14x14x128xf32, #tpu.memory_space<vmem>>, %arg12: memref<12x12x128xf32, #tpu.memory_space<vmem>>) attributes {dimension_semantics = [#tpu.dimension_semantics<parallel>], iteration_bounds = array<i64: 2>, scalar_prefetch = 0 : i64, scratch_operands = 4 : i64, tpu.core_type = #tpu.core_type<tc>, window_params = [{transform_indices = @transform_0, window_bounds = array<i64: 1, 24, 24, 3>}, {pipeline_mode = #tpu.pipeline_mode<synchronous>, transform_indices = @transform_1, window_bounds = array<i64: 9, 3, 128>}, {pipeline_mode = #tpu.pipeline_mode<synchronous>, transform_indices = @transform_2, window_bounds = array<i64: 1, 128>}, {pipeline_mode = #tpu.pipeline_mode<synchronous>, transform_indices = @transform_3, window_bounds = array<i64: 9, 25, 128>}, {pipeline_mode = #tpu.pipeline_mode<synchronous>, transform_indices = @transform_4, window_bounds = array<i64: 1, 128>}, {pipeline_mode = #tpu.pipeline_mode<synchronous>, transform_indices = @transform_5, window_bounds = array<i64: 36, 4, 128>}, {pipeline_mode = #tpu.pipeline_mode<synchronous>, transform_indices = @transform_6, window_bounds = array<i64: 1, 4>}, {transform_indices = @transform_7, window_bounds = array<i64: 1, 1, 4>}]} {
    %cst = arith.constant 0.000000e+00 : f32
    %0 = vector.broadcast %cst : f32 to vector<26x26x3xf32>
    %c0 = arith.constant 0 : index
    %c0_0 = arith.constant 0 : index
    %c0_1 = arith.constant 0 : index
    %1 = vector.load %arg9[%c0, %c0_0, %c0_1] : memref<26x26x3xf32, #tpu.memory_space<vmem>>, vector<26x26x3xf32>
    tpu.vector_store %arg9[%c0, %c0_0, %c0_1], %0 {strides = array<i32>} : memref<26x26x3xf32, #tpu.memory_space<vmem>>, vector<26x26x3xf32>,
    %c0_2 = arith.constant 0 : index
    %c0_3 = arith.constant 0 : index
    %c0_4 = arith.constant 0 : index
    %c0_5 = arith.constant 0 : index
    %2 = vector.load %arg1[%c0_2, %c0_3, %c0_4, %c0_5] : memref<1x24x24x3xf32, #tpu.memory_space<vmem>>, vector<1x24x24x3xf32>
    %3 = vector.shape_cast %2 : vector<1x24x24x3xf32> to vector<24x24x3xf32>
    %c1 = arith.constant 1 : index
    %c1_6 = arith.constant 1 : index
    %c0_7 = arith.constant 0 : index
    %4 = vector.load %arg9[%c1, %c1_6, %c0_7] : memref<26x26x3xf32, #tpu.memory_space<vmem>>, vector<24x24x3xf32>
    tpu.vector_store %arg9[%c1, %c1_6, %c0_7], %3 {strides = array<i32>} : memref<26x26x3xf32, #tpu.memory_space<vmem>>, vector<24x24x3xf32>,
    %cst_8 = arith.constant 0.000000e+00 : f32
    %5 = vector.broadcast %cst_8 : f32 to vector<576x128xf32>
    %c0_9 = arith.constant 0 : index
    %c0_10 = arith.constant 0 : index
    %c0_11 = arith.constant 0 : index
    %6 = vector.load %arg9[%c0_9, %c0_10, %c0_11] : memref<26x26x3xf32, #tpu.memory_space<vmem>>, vector<24x24x3xf32>
    %7 = vector.shape_cast %6 : vector<24x24x3xf32> to vector<576x3xf32>
    %c0_12 = arith.constant 0 : index
    %c0_13 = arith.constant 0 : index
    %c0_14 = arith.constant 0 : index
    %8 = vector.load %arg2[%c0_12, %c0_13, %c0_14] : memref<9x3x128xf32, #tpu.memory_space<vmem>>, vector<1x3x128xf32>
    %9 = vector.shape_cast %8 : vector<1x3x128xf32> to vector<3x128xf32>
    %cst_15 = arith.constant dense<0.000000e+00> : vector<576x128xf32>
    %10 = tpu.matmul %7, %9, %cst_15 {dimension_numbers = #tpu.dot_dimension_numbers<[1], [0], [0], [1], [0, 0, 1, 1], [], []>} : vector<576x3xf32>, vector<3x128xf32>, vector<576x128xf32> -> vector<576x128xf32>
    %11 = arith.addf %5, %10 : vector<576x128xf32>
    %c0_16 = arith.constant 0 : index
    %c1_17 = arith.constant 1 : index
    %c0_18 = arith.constant 0 : index
    %12 = vector.load %arg9[%c0_16, %c1_17, %c0_18] : memref<26x26x3xf32, #tpu.memory_space<vmem>>, vector<24x24x3xf32>
    %13 = vector.shape_cast %12 : vector<24x24x3xf32> to vector<576x3xf32>
    %c1_19 = arith.constant 1 : index
    %c0_20 = arith.constant 0 : index
    %c0_21 = arith.constant 0 : index
    %14 = vector.load %arg2[%c1_19, %c0_20, %c0_21] : memref<9x3x128xf32, #tpu.memory_space<vmem>>, vector<1x3x128xf32>
    %15 = vector.shape_cast %14 : vector<1x3x128xf32> to vector<3x128xf32>
    %cst_22 = arith.constant dense<0.000000e+00> : vector<576x128xf32>
    %16 = tpu.matmul %13, %15, %cst_22 {dimension_numbers = #tpu.dot_dimension_numbers<[1], [0], [0], [1], [0, 0, 1, 1], [], []>} : vector<576x3xf32>, vector<3x128xf32>, vector<576x128xf32> -> vector<576x128xf32>
    %17 = arith.addf %11, %16 : vector<576x128xf32>
    %c0_23 = arith.constant 0 : index
    %c2 = arith.constant 2 : index
    %c0_24 = arith.constant 0 : index
    %18 = vector.load %arg9[%c0_23, %c2, %c0_24] : memref<26x26x3xf32, #tpu.memory_space<vmem>>, vector<24x24x3xf32>
    %19 = vector.shape_cast %18 : vector<24x24x3xf32> to vector<576x3xf32>
    %c2_25 = arith.constant 2 : index
    %c0_26 = arith.constant 0 : index
    %c0_27 = arith.constant 0 : index
    %20 = vector.load %arg2[%c2_25, %c0_26, %c0_27] : memref<9x3x128xf32, #tpu.memory_space<vmem>>, vector<1x3x128xf32>
    %21 = vector.shape_cast %20 : vector<1x3x128xf32> to vector<3x128xf32>
    %cst_28 = arith.constant dense<0.000000e+00> : vector<576x128xf32>
    %22 = tpu.matmul %19, %21, %cst_28 {dimension_numbers = #tpu.dot_dimension_numbers<[1], [0], [0], [1], [0, 0, 1, 1], [], []>} : vector<576x3xf32>, vector<3x128xf32>, vector<576x128xf32> -> vector<576x128xf32>
    %23 = arith.addf %17, %22 : vector<576x128xf32>
    %c1_29 = arith.constant 1 : index
    %c0_30 = arith.constant 0 : index
    %c0_31 = arith.constant 0 : index
    %24 = vector.load %arg9[%c1_29, %c0_30, %c0_31] : memref<26x26x3xf32, #tpu.memory_space<vmem>>, vector<24x24x3xf32>
    %25 = vector.shape_cast %24 : vector<24x24x3xf32> to vector<576x3xf32>
    %c3 = arith.constant 3 : index
    %c0_32 = arith.constant 0 : index
    %c0_33 = arith.constant 0 : index
    %26 = vector.load %arg2[%c3, %c0_32, %c0_33] : memref<9x3x128xf32, #tpu.memory_space<vmem>>, vector<1x3x128xf32>
    %27 = vector.shape_cast %26 : vector<1x3x128xf32> to vector<3x128xf32>
    %cst_34 = arith.constant dense<0.000000e+00> : vector<576x128xf32>
    %28 = tpu.matmul %25, %27, %cst_34 {dimension_numbers = #tpu.dot_dimension_numbers<[1], [0], [0], [1], [0, 0, 1, 1], [], []>} : vector<576x3xf32>, vector<3x128xf32>, vector<576x128xf32> -> vector<576x128xf32>
    %29 = arith.addf %23, %28 : vector<576x128xf32>
    %c1_35 = arith.constant 1 : index
    %c1_36 = arith.constant 1 : index
    %c0_37 = arith.constant 0 : index
    %30 = vector.load %arg9[%c1_35, %c1_36, %c0_37] : memref<26x26x3xf32, #tpu.memory_space<vmem>>, vector<24x24x3xf32>
    %31 = vector.shape_cast %30 : vector<24x24x3xf32> to vector<576x3xf32>
    %c4 = arith.constant 4 : index
    %c0_38 = arith.constant 0 : index
    %c0_39 = arith.constant 0 : index
    %32 = vector.load %arg2[%c4, %c0_38, %c0_39] : memref<9x3x128xf32, #tpu.memory_space<vmem>>, vector<1x3x128xf32>
    %33 = vector.shape_cast %32 : vector<1x3x128xf32> to vector<3x128xf32>
    %cst_40 = arith.constant dense<0.000000e+00> : vector<576x128xf32>
    %34 = tpu.matmul %31, %33, %cst_40 {dimension_numbers = #tpu.dot_dimension_numbers<[1], [0], [0], [1], [0, 0, 1, 1], [], []>} : vector<576x3xf32>, vector<3x128xf32>, vector<576x128xf32> -> vector<576x128xf32>
    %35 = arith.addf %29, %34 : vector<576x128xf32>
    %c1_41 = arith.constant 1 : index
    %c2_42 = arith.constant 2 : index
    %c0_43 = arith.constant 0 : index
    %36 = vector.load %arg9[%c1_41, %c2_42, %c0_43] : memref<26x26x3xf32, #tpu.memory_space<vmem>>, vector<24x24x3xf32>
    %37 = vector.shape_cast %36 : vector<24x24x3xf32> to vector<576x3xf32>
    %c5 = arith.constant 5 : index
    %c0_44 = arith.constant 0 : index
    %c0_45 = arith.constant 0 : index
    %38 = vector.load %arg2[%c5, %c0_44, %c0_45] : memref<9x3x128xf32, #tpu.memory_space<vmem>>, vector<1x3x128xf32>
    %39 = vector.shape_cast %38 : vector<1x3x128xf32> to vector<3x128xf32>
    %cst_46 = arith.constant dense<0.000000e+00> : vector<576x128xf32>
    %40 = tpu.matmul %37, %39, %cst_46 {dimension_numbers = #tpu.dot_dimension_numbers<[1], [0], [0], [1], [0, 0, 1, 1], [], []>} : vector<576x3xf32>, vector<3x128xf32>, vector<576x128xf32> -> vector<576x128xf32>
    %41 = arith.addf %35, %40 : vector<576x128xf32>
    %c2_47 = arith.constant 2 : index
    %c0_48 = arith.constant 0 : index
    %c0_49 = arith.constant 0 : index
    %42 = vector.load %arg9[%c2_47, %c0_48, %c0_49] : memref<26x26x3xf32, #tpu.memory_space<vmem>>, vector<24x24x3xf32>
    %43 = vector.shape_cast %42 : vector<24x24x3xf32> to vector<576x3xf32>
    %c6 = arith.constant 6 : index
    %c0_50 = arith.constant 0 : index
    %c0_51 = arith.constant 0 : index
    %44 = vector.load %arg2[%c6, %c0_50, %c0_51] : memref<9x3x128xf32, #tpu.memory_space<vmem>>, vector<1x3x128xf32>
    %45 = vector.shape_cast %44 : vector<1x3x128xf32> to vector<3x128xf32>
    %cst_52 = arith.constant dense<0.000000e+00> : vector<576x128xf32>
    %46 = tpu.matmul %43, %45, %cst_52 {dimension_numbers = #tpu.dot_dimension_numbers<[1], [0], [0], [1], [0, 0, 1, 1], [], []>} : vector<576x3xf32>, vector<3x128xf32>, vector<576x128xf32> -> vector<576x128xf32>
    %47 = arith.addf %41, %46 : vector<576x128xf32>
    %c2_53 = arith.constant 2 : index
    %c1_54 = arith.constant 1 : index
    %c0_55 = arith.constant 0 : index
    %48 = vector.load %arg9[%c2_53, %c1_54, %c0_55] : memref<26x26x3xf32, #tpu.memory_space<vmem>>, vector<24x24x3xf32>
    %49 = vector.shape_cast %48 : vector<24x24x3xf32> to vector<576x3xf32>
    %c7 = arith.constant 7 : index
    %c0_56 = arith.constant 0 : index
    %c0_57 = arith.constant 0 : index
    %50 = vector.load %arg2[%c7, %c0_56, %c0_57] : memref<9x3x128xf32, #tpu.memory_space<vmem>>, vector<1x3x128xf32>
    %51 = vector.shape_cast %50 : vector<1x3x128xf32> to vector<3x128xf32>
    %cst_58 = arith.constant dense<0.000000e+00> : vector<576x128xf32>
    %52 = tpu.matmul %49, %51, %cst_58 {dimension_numbers = #tpu.dot_dimension_numbers<[1], [0], [0], [1], [0, 0, 1, 1], [], []>} : vector<576x3xf32>, vector<3x128xf32>, vector<576x128xf32> -> vector<576x128xf32>
    %53 = arith.addf %47, %52 : vector<576x128xf32>
    %c2_59 = arith.constant 2 : index
    %c2_60 = arith.constant 2 : index
    %c0_61 = arith.constant 0 : index
    %54 = vector.load %arg9[%c2_59, %c2_60, %c0_61] : memref<26x26x3xf32, #tpu.memory_space<vmem>>, vector<24x24x3xf32>
    %55 = vector.shape_cast %54 : vector<24x24x3xf32> to vector<576x3xf32>
    %c8 = arith.constant 8 : index
    %c0_62 = arith.constant 0 : index
    %c0_63 = arith.constant 0 : index
    %56 = vector.load %arg2[%c8, %c0_62, %c0_63] : memref<9x3x128xf32, #tpu.memory_space<vmem>>, vector<1x3x128xf32>
    %57 = vector.shape_cast %56 : vector<1x3x128xf32> to vector<3x128xf32>
    %cst_64 = arith.constant dense<0.000000e+00> : vector<576x128xf32>
    %58 = tpu.matmul %55, %57, %cst_64 {dimension_numbers = #tpu.dot_dimension_numbers<[1], [0], [0], [1], [0, 0, 1, 1], [], []>} : vector<576x3xf32>, vector<3x128xf32>, vector<576x128xf32> -> vector<576x128xf32>
    %59 = arith.addf %53, %58 : vector<576x128xf32>
    %c0_65 = arith.constant 0 : index
    %c0_66 = arith.constant 0 : index
    %60 = vector.load %arg3[%c0_65, %c0_66] : memref<1x128xf32, #tpu.memory_space<vmem>>, vector<1x128xf32>
    %61 = vector.broadcast %60 : vector<1x128xf32> to vector<576x128xf32>
    %62 = arith.addf %59, %61 : vector<576x128xf32>
    %cst_67 = arith.constant 0.000000e+00 : f32
    %63 = vector.broadcast %cst_67 : f32 to vector<576x128xf32>
    %64 = arith.maximumf %62, %63 : vector<576x128xf32>
    %65 = vector.shape_cast %64 : vector<576x128xf32> to vector<24x24x128xf32>
    %c0_68 = arith.constant 0 : index
    %c0_69 = arith.constant 0 : index
    %c0_70 = arith.constant 0 : index
    %66 = vector.load %arg10[%c0_68, %c0_69, %c0_70] : memref<24x24x128xf32, #tpu.memory_space<vmem>>, vector<24x24x128xf32>
    tpu.vector_store %arg10[%c0_68, %c0_69, %c0_70], %65 {strides = array<i32>} : memref<24x24x128xf32, #tpu.memory_space<vmem>>, vector<24x24x128xf32>,
    %cst_71 = arith.constant 0.000000e+00 : f32
    %67 = vector.broadcast %cst_71 : f32 to vector<14x14x128xf32>
    %c0_72 = arith.constant 0 : index
    %c0_73 = arith.constant 0 : index
    %c0_74 = arith.constant 0 : index
    %68 = vector.load %arg11[%c0_72, %c0_73, %c0_74] : memref<14x14x128xf32, #tpu.memory_space<vmem>>, vector<14x14x128xf32>
    tpu.vector_store %arg11[%c0_72, %c0_73, %c0_74], %67 {strides = array<i32>} : memref<14x14x128xf32, #tpu.memory_space<vmem>>, vector<14x14x128xf32>,
    %c0_75 = arith.constant 0 : index
    %c0_76 = arith.constant 0 : index
    %c0_77 = arith.constant 0 : index
    %69 = tpu.strided_load %arg10[%c0_75, %c0_76, %c0_77] {strides = array<i32: 2, 2, 1>} : memref<24x24x128xf32, #tpu.memory_space<vmem>>, vector<12x12x128xf32>
    %c0_78 = arith.constant 0 : index
    %c1_79 = arith.constant 1 : index
    %c0_80 = arith.constant 0 : index
    %70 = tpu.strided_load %arg10[%c0_78, %c1_79, %c0_80] {strides = array<i32: 2, 2, 1>} : memref<24x24x128xf32, #tpu.memory_space<vmem>>, vector<12x12x128xf32>
    %c1_81 = arith.constant 1 : index
    %c0_82 = arith.constant 0 : index
    %c0_83 = arith.constant 0 : index
    %71 = tpu.strided_load %arg10[%c1_81, %c0_82, %c0_83] {strides = array<i32: 2, 2, 1>} : memref<24x24x128xf32, #tpu.memory_space<vmem>>, vector<12x12x128xf32>
    %c1_84 = arith.constant 1 : index
    %c1_85 = arith.constant 1 : index
    %c0_86 = arith.constant 0 : index
    %72 = tpu.strided_load %arg10[%c1_84, %c1_85, %c0_86] {strides = array<i32: 2, 2, 1>} : memref<24x24x128xf32, #tpu.memory_space<vmem>>, vector<12x12x128xf32>
    %73 = arith.maximumf %69, %70 : vector<12x12x128xf32>
    %74 = arith.maximumf %71, %72 : vector<12x12x128xf32>
    %75 = arith.maximumf %73, %74 : vector<12x12x128xf32>
    %c1_87 = arith.constant 1 : index
    %c1_88 = arith.constant 1 : index
    %c0_89 = arith.constant 0 : index
    %76 = vector.load %arg11[%c1_87, %c1_88, %c0_89] : memref<14x14x128xf32, #tpu.memory_space<vmem>>, vector<12x12x128xf32>
    tpu.vector_store %arg11[%c1_87, %c1_88, %c0_89], %75 {strides = array<i32>} : memref<14x14x128xf32, #tpu.memory_space<vmem>>, vector<12x12x128xf32>,
    %cst_90 = arith.constant 0.000000e+00 : f32
    %77 = vector.broadcast %cst_90 : f32 to vector<144x128xf32>
    %c0_91 = arith.constant 0 : index
    %c0_92 = arith.constant 0 : index
    %c0_93 = arith.constant 0 : index
    %78 = vector.load %arg11[%c0_91, %c0_92, %c0_93] : memref<14x14x128xf32, #tpu.memory_space<vmem>>, vector<12x12x25xf32>
    %79 = vector.shape_cast %78 : vector<12x12x25xf32> to vector<144x25xf32>
    %c0_94 = arith.constant 0 : index
    %c0_95 = arith.constant 0 : index
    %c0_96 = arith.constant 0 : index
    %80 = vector.load %arg4[%c0_94, %c0_95, %c0_96] : memref<9x25x128xf32, #tpu.memory_space<vmem>>, vector<1x25x128xf32>
    %81 = vector.shape_cast %80 : vector<1x25x128xf32> to vector<25x128xf32>
    %cst_97 = arith.constant dense<0.000000e+00> : vector<144x128xf32>
    %82 = tpu.matmul %79, %81, %cst_97 {dimension_numbers = #tpu.dot_dimension_numbers<[1], [0], [0], [1], [0, 0, 1, 1], [], []>} : vector<144x25xf32>, vector<25x128xf32>, vector<144x128xf32> -> vector<144x128xf32>
    %83 = arith.addf %77, %82 : vector<144x128xf32>
    %c0_98 = arith.constant 0 : index
    %c1_99 = arith.constant 1 : index
    %c0_100 = arith.constant 0 : index
    %84 = vector.load %arg11[%c0_98, %c1_99, %c0_100] : memref<14x14x128xf32, #tpu.memory_space<vmem>>, vector<12x12x25xf32>
    %85 = vector.shape_cast %84 : vector<12x12x25xf32> to vector<144x25xf32>
    %c1_101 = arith.constant 1 : index
    %c0_102 = arith.constant 0 : index
    %c0_103 = arith.constant 0 : index
    %86 = vector.load %arg4[%c1_101, %c0_102, %c0_103] : memref<9x25x128xf32, #tpu.memory_space<vmem>>, vector<1x25x128xf32>
    %87 = vector.shape_cast %86 : vector<1x25x128xf32> to vector<25x128xf32>
    %cst_104 = arith.constant dense<0.000000e+00> : vector<144x128xf32>
    %88 = tpu.matmul %85, %87, %cst_104 {dimension_numbers = #tpu.dot_dimension_numbers<[1], [0], [0], [1], [0, 0, 1, 1], [], []>} : vector<144x25xf32>, vector<25x128xf32>, vector<144x128xf32> -> vector<144x128xf32>
    %89 = arith.addf %83, %88 : vector<144x128xf32>
    %c0_105 = arith.constant 0 : index
    %c2_106 = arith.constant 2 : index
    %c0_107 = arith.constant 0 : index
    %90 = vector.load %arg11[%c0_105, %c2_106, %c0_107] : memref<14x14x128xf32, #tpu.memory_space<vmem>>, vector<12x12x25xf32>
    %91 = vector.shape_cast %90 : vector<12x12x25xf32> to vector<144x25xf32>
    %c2_108 = arith.constant 2 : index
    %c0_109 = arith.constant 0 : index
    %c0_110 = arith.constant 0 : index
    %92 = vector.load %arg4[%c2_108, %c0_109, %c0_110] : memref<9x25x128xf32, #tpu.memory_space<vmem>>, vector<1x25x128xf32>
    %93 = vector.shape_cast %92 : vector<1x25x128xf32> to vector<25x128xf32>
    %cst_111 = arith.constant dense<0.000000e+00> : vector<144x128xf32>
    %94 = tpu.matmul %91, %93, %cst_111 {dimension_numbers = #tpu.dot_dimension_numbers<[1], [0], [0], [1], [0, 0, 1, 1], [], []>} : vector<144x25xf32>, vector<25x128xf32>, vector<144x128xf32> -> vector<144x128xf32>
    %95 = arith.addf %89, %94 : vector<144x128xf32>
    %c1_112 = arith.constant 1 : index
    %c0_113 = arith.constant 0 : index
    %c0_114 = arith.constant 0 : index
    %96 = vector.load %arg11[%c1_112, %c0_113, %c0_114] : memref<14x14x128xf32, #tpu.memory_space<vmem>>, vector<12x12x25xf32>
    %97 = vector.shape_cast %96 : vector<12x12x25xf32> to vector<144x25xf32>
    %c3_115 = arith.constant 3 : index
    %c0_116 = arith.constant 0 : index
    %c0_117 = arith.constant 0 : index
    %98 = vector.load %arg4[%c3_115, %c0_116, %c0_117] : memref<9x25x128xf32, #tpu.memory_space<vmem>>, vector<1x25x128xf32>
    %99 = vector.shape_cast %98 : vector<1x25x128xf32> to vector<25x128xf32>
    %cst_118 = arith.constant dense<0.000000e+00> : vector<144x128xf32>
    %100 = tpu.matmul %97, %99, %cst_118 {dimension_numbers = #tpu.dot_dimension_numbers<[1], [0], [0], [1], [0, 0, 1, 1], [], []>} : vector<144x25xf32>, vector<25x128xf32>, vector<144x128xf32> -> vector<144x128xf32>
    %101 = arith.addf %95, %100 : vector<144x128xf32>
    %c1_119 = arith.constant 1 : index
    %c1_120 = arith.constant 1 : index
    %c0_121 = arith.constant 0 : index
    %102 = vector.load %arg11[%c1_119, %c1_120, %c0_121] : memref<14x14x128xf32, #tpu.memory_space<vmem>>, vector<12x12x25xf32>
    %103 = vector.shape_cast %102 : vector<12x12x25xf32> to vector<144x25xf32>
    %c4_122 = arith.constant 4 : index
    %c0_123 = arith.constant 0 : index
    %c0_124 = arith.constant 0 : index
    %104 = vector.load %arg4[%c4_122, %c0_123, %c0_124] : memref<9x25x128xf32, #tpu.memory_space<vmem>>, vector<1x25x128xf32>
    %105 = vector.shape_cast %104 : vector<1x25x128xf32> to vector<25x128xf32>
    %cst_125 = arith.constant dense<0.000000e+00> : vector<144x128xf32>
    %106 = tpu.matmul %103, %105, %cst_125 {dimension_numbers = #tpu.dot_dimension_numbers<[1], [0], [0], [1], [0, 0, 1, 1], [], []>} : vector<144x25xf32>, vector<25x128xf32>, vector<144x128xf32> -> vector<144x128xf32>
    %107 = arith.addf %101, %106 : vector<144x128xf32>
    %c1_126 = arith.constant 1 : index
    %c2_127 = arith.constant 2 : index
    %c0_128 = arith.constant 0 : index
    %108 = vector.load %arg11[%c1_126, %c2_127, %c0_128] : memref<14x14x128xf32, #tpu.memory_space<vmem>>, vector<12x12x25xf32>
    %109 = vector.shape_cast %108 : vector<12x12x25xf32> to vector<144x25xf32>
    %c5_129 = arith.constant 5 : index
    %c0_130 = arith.constant 0 : index
    %c0_131 = arith.constant 0 : index
    %110 = vector.load %arg4[%c5_129, %c0_130, %c0_131] : memref<9x25x128xf32, #tpu.memory_space<vmem>>, vector<1x25x128xf32>
    %111 = vector.shape_cast %110 : vector<1x25x128xf32> to vector<25x128xf32>
    %cst_132 = arith.constant dense<0.000000e+00> : vector<144x128xf32>
    %112 = tpu.matmul %109, %111, %cst_132 {dimension_numbers = #tpu.dot_dimension_numbers<[1], [0], [0], [1], [0, 0, 1, 1], [], []>} : vector<144x25xf32>, vector<25x128xf32>, vector<144x128xf32> -> vector<144x128xf32>
    %113 = arith.addf %107, %112 : vector<144x128xf32>
    %c2_133 = arith.constant 2 : index
    %c0_134 = arith.constant 0 : index
    %c0_135 = arith.constant 0 : index
    %114 = vector.load %arg11[%c2_133, %c0_134, %c0_135] : memref<14x14x128xf32, #tpu.memory_space<vmem>>, vector<12x12x25xf32>
    %115 = vector.shape_cast %114 : vector<12x12x25xf32> to vector<144x25xf32>
    %c6_136 = arith.constant 6 : index
    %c0_137 = arith.constant 0 : index
    %c0_138 = arith.constant 0 : index
    %116 = vector.load %arg4[%c6_136, %c0_137, %c0_138] : memref<9x25x128xf32, #tpu.memory_space<vmem>>, vector<1x25x128xf32>
    %117 = vector.shape_cast %116 : vector<1x25x128xf32> to vector<25x128xf32>
    %cst_139 = arith.constant dense<0.000000e+00> : vector<144x128xf32>
    %118 = tpu.matmul %115, %117, %cst_139 {dimension_numbers = #tpu.dot_dimension_numbers<[1], [0], [0], [1], [0, 0, 1, 1], [], []>} : vector<144x25xf32>, vector<25x128xf32>, vector<144x128xf32> -> vector<144x128xf32>
    %119 = arith.addf %113, %118 : vector<144x128xf32>
    %c2_140 = arith.constant 2 : index
    %c1_141 = arith.constant 1 : index
    %c0_142 = arith.constant 0 : index
    %120 = vector.load %arg11[%c2_140, %c1_141, %c0_142] : memref<14x14x128xf32, #tpu.memory_space<vmem>>, vector<12x12x25xf32>
    %121 = vector.shape_cast %120 : vector<12x12x25xf32> to vector<144x25xf32>
    %c7_143 = arith.constant 7 : index
    %c0_144 = arith.constant 0 : index
    %c0_145 = arith.constant 0 : index
    %122 = vector.load %arg4[%c7_143, %c0_144, %c0_145] : memref<9x25x128xf32, #tpu.memory_space<vmem>>, vector<1x25x128xf32>
    %123 = vector.shape_cast %122 : vector<1x25x128xf32> to vector<25x128xf32>
    %cst_146 = arith.constant dense<0.000000e+00> : vector<144x128xf32>
    %124 = tpu.matmul %121, %123, %cst_146 {dimension_numbers = #tpu.dot_dimension_numbers<[1], [0], [0], [1], [0, 0, 1, 1], [], []>} : vector<144x25xf32>, vector<25x128xf32>, vector<144x128xf32> -> vector<144x128xf32>
    %125 = arith.addf %119, %124 : vector<144x128xf32>
    %c2_147 = arith.constant 2 : index
    %c2_148 = arith.constant 2 : index
    %c0_149 = arith.constant 0 : index
    %126 = vector.load %arg11[%c2_147, %c2_148, %c0_149] : memref<14x14x128xf32, #tpu.memory_space<vmem>>, vector<12x12x25xf32>
    %127 = vector.shape_cast %126 : vector<12x12x25xf32> to vector<144x25xf32>
    %c8_150 = arith.constant 8 : index
    %c0_151 = arith.constant 0 : index
    %c0_152 = arith.constant 0 : index
    %128 = vector.load %arg4[%c8_150, %c0_151, %c0_152] : memref<9x25x128xf32, #tpu.memory_space<vmem>>, vector<1x25x128xf32>
    %129 = vector.shape_cast %128 : vector<1x25x128xf32> to vector<25x128xf32>
    %cst_153 = arith.constant dense<0.000000e+00> : vector<144x128xf32>
    %130 = tpu.matmul %127, %129, %cst_153 {dimension_numbers = #tpu.dot_dimension_numbers<[1], [0], [0], [1], [0, 0, 1, 1], [], []>} : vector<144x25xf32>, vector<25x128xf32>, vector<144x128xf32> -> vector<144x128xf32>
    %131 = arith.addf %125, %130 : vector<144x128xf32>
    %c0_154 = arith.constant 0 : index
    %c0_155 = arith.constant 0 : index
    %132 = vector.load %arg5[%c0_154, %c0_155] : memref<1x128xf32, #tpu.memory_space<vmem>>, vector<1x128xf32>
    %133 = vector.broadcast %132 : vector<1x128xf32> to vector<144x128xf32>
    %134 = arith.addf %131, %133 : vector<144x128xf32>
    %cst_156 = arith.constant 0.000000e+00 : f32
    %135 = vector.broadcast %cst_156 : f32 to vector<144x128xf32>
    %136 = arith.maximumf %134, %135 : vector<144x128xf32>
    %137 = vector.shape_cast %136 : vector<144x128xf32> to vector<12x12x128xf32>
    %c0_157 = arith.constant 0 : index
    %c0_158 = arith.constant 0 : index
    %c0_159 = arith.constant 0 : index
    %138 = vector.load %arg12[%c0_157, %c0_158, %c0_159] : memref<12x12x128xf32, #tpu.memory_space<vmem>>, vector<12x12x128xf32>
    tpu.vector_store %arg12[%c0_157, %c0_158, %c0_159], %137 {strides = array<i32>} : memref<12x12x128xf32, #tpu.memory_space<vmem>>, vector<12x12x128xf32>,
    %c0_160 = arith.constant 0 : index
    %c0_161 = arith.constant 0 : index
    %139 = vector.load %arg7[%c0_160, %c0_161] : memref<1x4xf32, #tpu.memory_space<vmem>>, vector<1x4xf32>
    %c0_162 = arith.constant 0 : index
    %c0_163 = arith.constant 0 : index
    %c0_164 = arith.constant 0 : index
    %140 = vector.load %arg12[%c0_162, %c0_163, %c0_164] : memref<12x12x128xf32, #tpu.memory_space<vmem>>, vector<1x1x128xf32>
    %141 = vector.shape_cast %140 : vector<1x1x128xf32> to vector<1x128xf32>
    %c0_165 = arith.constant 0 : index
    %c1_166 = arith.constant 1 : index
    %c0_167 = arith.constant 0 : index
    %142 = vector.load %arg12[%c0_165, %c1_166, %c0_167] : memref<12x12x128xf32, #tpu.memory_space<vmem>>, vector<1x1x128xf32>
    %143 = vector.shape_cast %142 : vector<1x1x128xf32> to vector<1x128xf32>
    %c1_168 = arith.constant 1 : index
    %c0_169 = arith.constant 0 : index
    %c0_170 = arith.constant 0 : index
    %144 = vector.load %arg12[%c1_168, %c0_169, %c0_170] : memref<12x12x128xf32, #tpu.memory_space<vmem>>, vector<1x1x128xf32>
    %145 = vector.shape_cast %144 : vector<1x1x128xf32> to vector<1x128xf32>
    %c1_171 = arith.constant 1 : index
    %c1_172 = arith.constant 1 : index
    %c0_173 = arith.constant 0 : index
    %146 = vector.load %arg12[%c1_171, %c1_172, %c0_173] : memref<12x12x128xf32, #tpu.memory_space<vmem>>, vector<1x1x128xf32>
    %147 = vector.shape_cast %146 : vector<1x1x128xf32> to vector<1x128xf32>
    %148 = arith.maximumf %141, %143 : vector<1x128xf32>
    %149 = arith.maximumf %145, %147 : vector<1x128xf32>
    %150 = arith.maximumf %148, %149 : vector<1x128xf32>
    %c0_174 = arith.constant 0 : index
    %c0_175 = arith.constant 0 : index
    %c0_176 = arith.constant 0 : index
    %151 = vector.load %arg6[%c0_174, %c0_175, %c0_176] : memref<36x4x128xf32, #tpu.memory_space<vmem>>, vector<1x4x128xf32>
    %152 = vector.shape_cast %151 : vector<1x4x128xf32> to vector<4x128xf32>
    %cst_177 = arith.constant dense<0.000000e+00> : vector<1x4xf32>
    %153 = tpu.matmul %150, %152, %cst_177 {dimension_numbers = #tpu.dot_dimension_numbers<[1], [1], [0], [0], [0, 0, 1, 0], [], []>} : vector<1x128xf32>, vector<4x128xf32>, vector<1x4xf32> -> vector<1x4xf32>
    %154 = arith.addf %139, %153 : vector<1x4xf32>
    %c0_178 = arith.constant 0 : index
    %c2_179 = arith.constant 2 : index
    %c0_180 = arith.constant 0 : index
    %155 = vector.load %arg12[%c0_178, %c2_179, %c0_180] : memref<12x12x128xf32, #tpu.memory_space<vmem>>, vector<1x1x128xf32>
    %156 = vector.shape_cast %155 : vector<1x1x128xf32> to vector<1x128xf32>
    %c0_181 = arith.constant 0 : index
    %c3_182 = arith.constant 3 : index
    %c0_183 = arith.constant 0 : index
    %157 = vector.load %arg12[%c0_181, %c3_182, %c0_183] : memref<12x12x128xf32, #tpu.memory_space<vmem>>, vector<1x1x128xf32>
    %158 = vector.shape_cast %157 : vector<1x1x128xf32> to vector<1x128xf32>
    %c1_184 = arith.constant 1 : index
    %c2_185 = arith.constant 2 : index
    %c0_186 = arith.constant 0 : index
    %159 = vector.load %arg12[%c1_184, %c2_185, %c0_186] : memref<12x12x128xf32, #tpu.memory_space<vmem>>, vector<1x1x128xf32>
    %160 = vector.shape_cast %159 : vector<1x1x128xf32> to vector<1x128xf32>
    %c1_187 = arith.constant 1 : index
    %c3_188 = arith.constant 3 : index
    %c0_189 = arith.constant 0 : index
    %161 = vector.load %arg12[%c1_187, %c3_188, %c0_189] : memref<12x12x128xf32, #tpu.memory_space<vmem>>, vector<1x1x128xf32>
    %162 = vector.shape_cast %161 : vector<1x1x128xf32> to vector<1x128xf32>
    %163 = arith.maximumf %156, %158 : vector<1x128xf32>
    %164 = arith.maximumf %160, %162 : vector<1x128xf32>
    %165 = arith.maximumf %163, %164 : vector<1x128xf32>
    %c1_190 = arith.constant 1 : index
    %c0_191 = arith.constant 0 : index
    %c0_192 = arith.constant 0 : index
    %166 = vector.load %arg6[%c1_190, %c0_191, %c0_192] : memref<36x4x128xf32, #tpu.memory_space<vmem>>, vector<1x4x128xf32>
    %167 = vector.shape_cast %166 : vector<1x4x128xf32> to vector<4x128xf32>
    %cst_193 = arith.constant dense<0.000000e+00> : vector<1x4xf32>
    %168 = tpu.matmul %165, %167, %cst_193 {dimension_numbers = #tpu.dot_dimension_numbers<[1], [1], [0], [0], [0, 0, 1, 0], [], []>} : vector<1x128xf32>, vector<4x128xf32>, vector<1x4xf32> -> vector<1x4xf32>
    %169 = arith.addf %154, %168 : vector<1x4xf32>
    %c0_194 = arith.constant 0 : index
    %c4_195 = arith.constant 4 : index
    %c0_196 = arith.constant 0 : index
    %170 = vector.load %arg12[%c0_194, %c4_195, %c0_196] : memref<12x12x128xf32, #tpu.memory_space<vmem>>, vector<1x1x128xf32>
    %171 = vector.shape_cast %170 : vector<1x1x128xf32> to vector<1x128xf32>
    %c0_197 = arith.constant 0 : index
    %c5_198 = arith.constant 5 : index
    %c0_199 = arith.constant 0 : index
    %172 = vector.load %arg12[%c0_197, %c5_198, %c0_199] : memref<12x12x128xf32, #tpu.memory_space<vmem>>, vector<1x1x128xf32>
    %173 = vector.shape_cast %172 : vector<1x1x128xf32> to vector<1x128xf32>
    %c1_200 = arith.constant 1 : index
    %c4_201 = arith.constant 4 : index
    %c0_202 = arith.constant 0 : index
    %174 = vector.load %arg12[%c1_200, %c4_201, %c0_202] : memref<12x12x128xf32, #tpu.memory_space<vmem>>, vector<1x1x128xf32>
    %175 = vector.shape_cast %174 : vector<1x1x128xf32> to vector<1x128xf32>
    %c1_203 = arith.constant 1 : index
    %c5_204 = arith.constant 5 : index
    %c0_205 = arith.constant 0 : index
    %176 = vector.load %arg12[%c1_203, %c5_204, %c0_205] : memref<12x12x128xf32, #tpu.memory_space<vmem>>, vector<1x1x128xf32>
    %177 = vector.shape_cast %176 : vector<1x1x128xf32> to vector<1x128xf32>
    %178 = arith.maximumf %171, %173 : vector<1x128xf32>
    %179 = arith.maximumf %175, %177 : vector<1x128xf32>
    %180 = arith.maximumf %178, %179 : vector<1x128xf32>
    %c2_206 = arith.constant 2 : index
    %c0_207 = arith.constant 0 : index
    %c0_208 = arith.constant 0 : index
    %181 = vector.load %arg6[%c2_206, %c0_207, %c0_208] : memref<36x4x128xf32, #tpu.memory_space<vmem>>, vector<1x4x128xf32>
    %182 = vector.shape_cast %181 : vector<1x4x128xf32> to vector<4x128xf32>
    %cst_209 = arith.constant dense<0.000000e+00> : vector<1x4xf32>
    %183 = tpu.matmul %180, %182, %cst_209 {dimension_numbers = #tpu.dot_dimension_numbers<[1], [1], [0], [0], [0, 0, 1, 0], [], []>} : vector<1x128xf32>, vector<4x128xf32>, vector<1x4xf32> -> vector<1x4xf32>
    %184 = arith.addf %169, %183 : vector<1x4xf32>
    %c0_210 = arith.constant 0 : index
    %c6_211 = arith.constant 6 : index
    %c0_212 = arith.constant 0 : index
    %185 = vector.load %arg12[%c0_210, %c6_211, %c0_212] : memref<12x12x128xf32, #tpu.memory_space<vmem>>, vector<1x1x128xf32>
    %186 = vector.shape_cast %185 : vector<1x1x128xf32> to vector<1x128xf32>
    %c0_213 = arith.constant 0 : index
    %c7_214 = arith.constant 7 : index
    %c0_215 = arith.constant 0 : index
    %187 = vector.load %arg12[%c0_213, %c7_214, %c0_215] : memref<12x12x128xf32, #tpu.memory_space<vmem>>, vector<1x1x128xf32>
    %188 = vector.shape_cast %187 : vector<1x1x128xf32> to vector<1x128xf32>
    %c1_216 = arith.constant 1 : index
    %c6_217 = arith.constant 6 : index
    %c0_218 = arith.constant 0 : index
    %189 = vector.load %arg12[%c1_216, %c6_217, %c0_218] : memref<12x12x128xf32, #tpu.memory_space<vmem>>, vector<1x1x128xf32>
    %190 = vector.shape_cast %189 : vector<1x1x128xf32> to vector<1x128xf32>
    %c1_219 = arith.constant 1 : index
    %c7_220 = arith.constant 7 : index
    %c0_221 = arith.constant 0 : index
    %191 = vector.load %arg12[%c1_219, %c7_220, %c0_221] : memref<12x12x128xf32, #tpu.memory_space<vmem>>, vector<1x1x128xf32>
    %192 = vector.shape_cast %191 : vector<1x1x128xf32> to vector<1x128xf32>
    %193 = arith.maximumf %186, %188 : vector<1x128xf32>
    %194 = arith.maximumf %190, %192 : vector<1x128xf32>
    %195 = arith.maximumf %193, %194 : vector<1x128xf32>
    %c3_222 = arith.constant 3 : index
    %c0_223 = arith.constant 0 : index
    %c0_224 = arith.constant 0 : index
    %196 = vector.load %arg6[%c3_222, %c0_223, %c0_224] : memref<36x4x128xf32, #tpu.memory_space<vmem>>, vector<1x4x128xf32>
    %197 = vector.shape_cast %196 : vector<1x4x128xf32> to vector<4x128xf32>
    %cst_225 = arith.constant dense<0.000000e+00> : vector<1x4xf32>
    %198 = tpu.matmul %195, %197, %cst_225 {dimension_numbers = #tpu.dot_dimension_numbers<[1], [1], [0], [0], [0, 0, 1, 0], [], []>} : vector<1x128xf32>, vector<4x128xf32>, vector<1x4xf32> -> vector<1x4xf32>
    %199 = arith.addf %184, %198 : vector<1x4xf32>
    %c0_226 = arith.constant 0 : index
    %c8_227 = arith.constant 8 : index
    %c0_228 = arith.constant 0 : index
    %200 = vector.load %arg12[%c0_226, %c8_227, %c0_228] : memref<12x12x128xf32, #tpu.memory_space<vmem>>, vector<1x1x128xf32>
    %201 = vector.shape_cast %200 : vector<1x1x128xf32> to vector<1x128xf32>
    %c0_229 = arith.constant 0 : index
    %c9 = arith.constant 9 : index
    %c0_230 = arith.constant 0 : index
    %202 = vector.load %arg12[%c0_229, %c9, %c0_230] : memref<12x12x128xf32, #tpu.memory_space<vmem>>, vector<1x1x128xf32>
    %203 = vector.shape_cast %202 : vector<1x1x128xf32> to vector<1x128xf32>
    %c1_231 = arith.constant 1 : index
    %c8_232 = arith.constant 8 : index
    %c0_233 = arith.constant 0 : index
    %204 = vector.load %arg12[%c1_231, %c8_232, %c0_233] : memref<12x12x128xf32, #tpu.memory_space<vmem>>, vector<1x1x128xf32>
    %205 = vector.shape_cast %204 : vector<1x1x128xf32> to vector<1x128xf32>
    %c1_234 = arith.constant 1 : index
    %c9_235 = arith.constant 9 : index
    %c0_236 = arith.constant 0 : index
    %206 = vector.load %arg12[%c1_234, %c9_235, %c0_236] : memref<12x12x128xf32, #tpu.memory_space<vmem>>, vector<1x1x128xf32>
    %207 = vector.shape_cast %206 : vector<1x1x128xf32> to vector<1x128xf32>
    %208 = arith.maximumf %201, %203 : vector<1x128xf32>
    %209 = arith.maximumf %205, %207 : vector<1x128xf32>
    %210 = arith.maximumf %208, %209 : vector<1x128xf32>
    %c4_237 = arith.constant 4 : index
    %c0_238 = arith.constant 0 : index
    %c0_239 = arith.constant 0 : index
    %211 = vector.load %arg6[%c4_237, %c0_238, %c0_239] : memref<36x4x128xf32, #tpu.memory_space<vmem>>, vector<1x4x128xf32>
    %212 = vector.shape_cast %211 : vector<1x4x128xf32> to vector<4x128xf32>
    %cst_240 = arith.constant dense<0.000000e+00> : vector<1x4xf32>
    %213 = tpu.matmul %210, %212, %cst_240 {dimension_numbers = #tpu.dot_dimension_numbers<[1], [1], [0], [0], [0, 0, 1, 0], [], []>} : vector<1x128xf32>, vector<4x128xf32>, vector<1x4xf32> -> vector<1x4xf32>
    %214 = arith.addf %199, %213 : vector<1x4xf32>
    %c0_241 = arith.constant 0 : index
    %c10 = arith.constant 10 : index
    %c0_242 = arith.constant 0 : index
    %215 = vector.load %arg12[%c0_241, %c10, %c0_242] : memref<12x12x128xf32, #tpu.memory_space<vmem>>, vector<1x1x128xf32>
    %216 = vector.shape_cast %215 : vector<1x1x128xf32> to vector<1x128xf32>
    %c0_243 = arith.constant 0 : index
    %c11 = arith.constant 11 : index
    %c0_244 = arith.constant 0 : index
    %217 = vector.load %arg12[%c0_243, %c11, %c0_244] : memref<12x12x128xf32, #tpu.memory_space<vmem>>, vector<1x1x128xf32>
    %218 = vector.shape_cast %217 : vector<1x1x128xf32> to vector<1x128xf32>
    %c1_245 = arith.constant 1 : index
    %c10_246 = arith.constant 10 : index
    %c0_247 = arith.constant 0 : index
    %219 = vector.load %arg12[%c1_245, %c10_246, %c0_247] : memref<12x12x128xf32, #tpu.memory_space<vmem>>, vector<1x1x128xf32>
    %220 = vector.shape_cast %219 : vector<1x1x128xf32> to vector<1x128xf32>
    %c1_248 = arith.constant 1 : index
    %c11_249 = arith.constant 11 : index
    %c0_250 = arith.constant 0 : index
    %221 = vector.load %arg12[%c1_248, %c11_249, %c0_250] : memref<12x12x128xf32, #tpu.memory_space<vmem>>, vector<1x1x128xf32>
    %222 = vector.shape_cast %221 : vector<1x1x128xf32> to vector<1x128xf32>
    %223 = arith.maximumf %216, %218 : vector<1x128xf32>
    %224 = arith.maximumf %220, %222 : vector<1x128xf32>
    %225 = arith.maximumf %223, %224 : vector<1x128xf32>
    %c5_251 = arith.constant 5 : index
    %c0_252 = arith.constant 0 : index
    %c0_253 = arith.constant 0 : index
    %226 = vector.load %arg6[%c5_251, %c0_252, %c0_253] : memref<36x4x128xf32, #tpu.memory_space<vmem>>, vector<1x4x128xf32>
    %227 = vector.shape_cast %226 : vector<1x4x128xf32> to vector<4x128xf32>
    %cst_254 = arith.constant dense<0.000000e+00> : vector<1x4xf32>
    %228 = tpu.matmul %225, %227, %cst_254 {dimension_numbers = #tpu.dot_dimension_numbers<[1], [1], [0], [0], [0, 0, 1, 0], [], []>} : vector<1x128xf32>, vector<4x128xf32>, vector<1x4xf32> -> vector<1x4xf32>
    %229 = arith.addf %214, %228 : vector<1x4xf32>
    %c2_255 = arith.constant 2 : index
    %c0_256 = arith.constant 0 : index
    %c0_257 = arith.constant 0 : index
    %230 = vector.load %arg12[%c2_255, %c0_256, %c0_257] : memref<12x12x128xf32, #tpu.memory_space<vmem>>, vector<1x1x128xf32>
    %231 = vector.shape_cast %230 : vector<1x1x128xf32> to vector<1x128xf32>
    %c2_258 = arith.constant 2 : index
    %c1_259 = arith.constant 1 : index
    %c0_260 = arith.constant 0 : index
    %232 = vector.load %arg12[%c2_258, %c1_259, %c0_260] : memref<12x12x128xf32, #tpu.memory_space<vmem>>, vector<1x1x128xf32>
    %233 = vector.shape_cast %232 : vector<1x1x128xf32> to vector<1x128xf32>
    %c3_261 = arith.constant 3 : index
    %c0_262 = arith.constant 0 : index
    %c0_263 = arith.constant 0 : index
    %234 = vector.load %arg12[%c3_261, %c0_262, %c0_263] : memref<12x12x128xf32, #tpu.memory_space<vmem>>, vector<1x1x128xf32>
    %235 = vector.shape_cast %234 : vector<1x1x128xf32> to vector<1x128xf32>
    %c3_264 = arith.constant 3 : index
    %c1_265 = arith.constant 1 : index
    %c0_266 = arith.constant 0 : index
    %236 = vector.load %arg12[%c3_264, %c1_265, %c0_266] : memref<12x12x128xf32, #tpu.memory_space<vmem>>, vector<1x1x128xf32>
    %237 = vector.shape_cast %236 : vector<1x1x128xf32> to vector<1x128xf32>
    %238 = arith.maximumf %231, %233 : vector<1x128xf32>
    %239 = arith.maximumf %235, %237 : vector<1x128xf32>
    %240 = arith.maximumf %238, %239 : vector<1x128xf32>
    %c6_267 = arith.constant 6 : index
    %c0_268 = arith.constant 0 : index
    %c0_269 = arith.constant 0 : index
    %241 = vector.load %arg6[%c6_267, %c0_268, %c0_269] : memref<36x4x128xf32, #tpu.memory_space<vmem>>, vector<1x4x128xf32>
    %242 = vector.shape_cast %241 : vector<1x4x128xf32> to vector<4x128xf32>
    %cst_270 = arith.constant dense<0.000000e+00> : vector<1x4xf32>
    %243 = tpu.matmul %240, %242, %cst_270 {dimension_numbers = #tpu.dot_dimension_numbers<[1], [1], [0], [0], [0, 0, 1, 0], [], []>} : vector<1x128xf32>, vector<4x128xf32>, vector<1x4xf32> -> vector<1x4xf32>
    %244 = arith.addf %229, %243 : vector<1x4xf32>
    %c2_271 = arith.constant 2 : index
    %c2_272 = arith.constant 2 : index
    %c0_273 = arith.constant 0 : index
    %245 = vector.load %arg12[%c2_271, %c2_272, %c0_273] : memref<12x12x128xf32, #tpu.memory_space<vmem>>, vector<1x1x128xf32>
    %246 = vector.shape_cast %245 : vector<1x1x128xf32> to vector<1x128xf32>
    %c2_274 = arith.constant 2 : index
    %c3_275 = arith.constant 3 : index
    %c0_276 = arith.constant 0 : index
    %247 = vector.load %arg12[%c2_274, %c3_275, %c0_276] : memref<12x12x128xf32, #tpu.memory_space<vmem>>, vector<1x1x128xf32>
    %248 = vector.shape_cast %247 : vector<1x1x128xf32> to vector<1x128xf32>
    %c3_277 = arith.constant 3 : index
    %c2_278 = arith.constant 2 : index
    %c0_279 = arith.constant 0 : index
    %249 = vector.load %arg12[%c3_277, %c2_278, %c0_279] : memref<12x12x128xf32, #tpu.memory_space<vmem>>, vector<1x1x128xf32>
    %250 = vector.shape_cast %249 : vector<1x1x128xf32> to vector<1x128xf32>
    %c3_280 = arith.constant 3 : index
    %c3_281 = arith.constant 3 : index
    %c0_282 = arith.constant 0 : index
    %251 = vector.load %arg12[%c3_280, %c3_281, %c0_282] : memref<12x12x128xf32, #tpu.memory_space<vmem>>, vector<1x1x128xf32>
    %252 = vector.shape_cast %251 : vector<1x1x128xf32> to vector<1x128xf32>
    %253 = arith.maximumf %246, %248 : vector<1x128xf32>
    %254 = arith.maximumf %250, %252 : vector<1x128xf32>
    %255 = arith.maximumf %253, %254 : vector<1x128xf32>
    %c7_283 = arith.constant 7 : index
    %c0_284 = arith.constant 0 : index
    %c0_285 = arith.constant 0 : index
    %256 = vector.load %arg6[%c7_283, %c0_284, %c0_285] : memref<36x4x128xf32, #tpu.memory_space<vmem>>, vector<1x4x128xf32>
    %257 = vector.shape_cast %256 : vector<1x4x128xf32> to vector<4x128xf32>
    %cst_286 = arith.constant dense<0.000000e+00> : vector<1x4xf32>
    %258 = tpu.matmul %255, %257, %cst_286 {dimension_numbers = #tpu.dot_dimension_numbers<[1], [1], [0], [0], [0, 0, 1, 0], [], []>} : vector<1x128xf32>, vector<4x128xf32>, vector<1x4xf32> -> vector<1x4xf32>
    %259 = arith.addf %244, %258 : vector<1x4xf32>
    %c2_287 = arith.constant 2 : index
    %c4_288 = arith.constant 4 : index
    %c0_289 = arith.constant 0 : index
    %260 = vector.load %arg12[%c2_287, %c4_288, %c0_289] : memref<12x12x128xf32, #tpu.memory_space<vmem>>, vector<1x1x128xf32>
    %261 = vector.shape_cast %260 : vector<1x1x128xf32> to vector<1x128xf32>
    %c2_290 = arith.constant 2 : index
    %c5_291 = arith.constant 5 : index
    %c0_292 = arith.constant 0 : index
    %262 = vector.load %arg12[%c2_290, %c5_291, %c0_292] : memref<12x12x128xf32, #tpu.memory_space<vmem>>, vector<1x1x128xf32>
    %263 = vector.shape_cast %262 : vector<1x1x128xf32> to vector<1x128xf32>
    %c3_293 = arith.constant 3 : index
    %c4_294 = arith.constant 4 : index
    %c0_295 = arith.constant 0 : index
    %264 = vector.load %arg12[%c3_293, %c4_294, %c0_295] : memref<12x12x128xf32, #tpu.memory_space<vmem>>, vector<1x1x128xf32>
    %265 = vector.shape_cast %264 : vector<1x1x128xf32> to vector<1x128xf32>
    %c3_296 = arith.constant 3 : index
    %c5_297 = arith.constant 5 : index
    %c0_298 = arith.constant 0 : index
    %266 = vector.load %arg12[%c3_296, %c5_297, %c0_298] : memref<12x12x128xf32, #tpu.memory_space<vmem>>, vector<1x1x128xf32>
    %267 = vector.shape_cast %266 : vector<1x1x128xf32> to vector<1x128xf32>
    %268 = arith.maximumf %261, %263 : vector<1x128xf32>
    %269 = arith.maximumf %265, %267 : vector<1x128xf32>
    %270 = arith.maximumf %268, %269 : vector<1x128xf32>
    %c8_299 = arith.constant 8 : index
    %c0_300 = arith.constant 0 : index
    %c0_301 = arith.constant 0 : index
    %271 = vector.load %arg6[%c8_299, %c0_300, %c0_301] : memref<36x4x128xf32, #tpu.memory_space<vmem>>, vector<1x4x128xf32>
    %272 = vector.shape_cast %271 : vector<1x4x128xf32> to vector<4x128xf32>
    %cst_302 = arith.constant dense<0.000000e+00> : vector<1x4xf32>
    %273 = tpu.matmul %270, %272, %cst_302 {dimension_numbers = #tpu.dot_dimension_numbers<[1], [1], [0], [0], [0, 0, 1, 0], [], []>} : vector<1x128xf32>, vector<4x128xf32>, vector<1x4xf32> -> vector<1x4xf32>
    %274 = arith.addf %259, %273 : vector<1x4xf32>
    %c2_303 = arith.constant 2 : index
    %c6_304 = arith.constant 6 : index
    %c0_305 = arith.constant 0 : index
    %275 = vector.load %arg12[%c2_303, %c6_304, %c0_305] : memref<12x12x128xf32, #tpu.memory_space<vmem>>, vector<1x1x128xf32>
    %276 = vector.shape_cast %275 : vector<1x1x128xf32> to vector<1x128xf32>
    %c2_306 = arith.constant 2 : index
    %c7_307 = arith.constant 7 : index
    %c0_308 = arith.constant 0 : index
    %277 = vector.load %arg12[%c2_306, %c7_307, %c0_308] : memref<12x12x128xf32, #tpu.memory_space<vmem>>, vector<1x1x128xf32>
    %278 = vector.shape_cast %277 : vector<1x1x128xf32> to vector<1x128xf32>
    %c3_309 = arith.constant 3 : index
    %c6_310 = arith.constant 6 : index
    %c0_311 = arith.constant 0 : index
    %279 = vector.load %arg12[%c3_309, %c6_310, %c0_311] : memref<12x12x128xf32, #tpu.memory_space<vmem>>, vector<1x1x128xf32>
    %280 = vector.shape_cast %279 : vector<1x1x128xf32> to vector<1x128xf32>
    %c3_312 = arith.constant 3 : index
    %c7_313 = arith.constant 7 : index
    %c0_314 = arith.constant 0 : index
    %281 = vector.load %arg12[%c3_312, %c7_313, %c0_314] : memref<12x12x128xf32, #tpu.memory_space<vmem>>, vector<1x1x128xf32>
    %282 = vector.shape_cast %281 : vector<1x1x128xf32> to vector<1x128xf32>
    %283 = arith.maximumf %276, %278 : vector<1x128xf32>
    %284 = arith.maximumf %280, %282 : vector<1x128xf32>
    %285 = arith.maximumf %283, %284 : vector<1x128xf32>
    %c9_315 = arith.constant 9 : index
    %c0_316 = arith.constant 0 : index
    %c0_317 = arith.constant 0 : index
    %286 = vector.load %arg6[%c9_315, %c0_316, %c0_317] : memref<36x4x128xf32, #tpu.memory_space<vmem>>, vector<1x4x128xf32>
    %287 = vector.shape_cast %286 : vector<1x4x128xf32> to vector<4x128xf32>
    %cst_318 = arith.constant dense<0.000000e+00> : vector<1x4xf32>
    %288 = tpu.matmul %285, %287, %cst_318 {dimension_numbers = #tpu.dot_dimension_numbers<[1], [1], [0], [0], [0, 0, 1, 0], [], []>} : vector<1x128xf32>, vector<4x128xf32>, vector<1x4xf32> -> vector<1x4xf32>
    %289 = arith.addf %274, %288 : vector<1x4xf32>
    %c2_319 = arith.constant 2 : index
    %c8_320 = arith.constant 8 : index
    %c0_321 = arith.constant 0 : index
    %290 = vector.load %arg12[%c2_319, %c8_320, %c0_321] : memref<12x12x128xf32, #tpu.memory_space<vmem>>, vector<1x1x128xf32>
    %291 = vector.shape_cast %290 : vector<1x1x128xf32> to vector<1x128xf32>
    %c2_322 = arith.constant 2 : index
    %c9_323 = arith.constant 9 : index
    %c0_324 = arith.constant 0 : index
    %292 = vector.load %arg12[%c2_322, %c9_323, %c0_324] : memref<12x12x128xf32, #tpu.memory_space<vmem>>, vector<1x1x128xf32>
    %293 = vector.shape_cast %292 : vector<1x1x128xf32> to vector<1x128xf32>
    %c3_325 = arith.constant 3 : index
    %c8_326 = arith.constant 8 : index
    %c0_327 = arith.constant 0 : index
    %294 = vector.load %arg12[%c3_325, %c8_326, %c0_327] : memref<12x12x128xf32, #tpu.memory_space<vmem>>, vector<1x1x128xf32>
    %295 = vector.shape_cast %294 : vector<1x1x128xf32> to vector<1x128xf32>
    %c3_328 = arith.constant 3 : index
    %c9_329 = arith.constant 9 : index
    %c0_330 = arith.constant 0 : index
    %296 = vector.load %arg12[%c3_328, %c9_329, %c0_330] : memref<12x12x128xf32, #tpu.memory_space<vmem>>, vector<1x1x128xf32>
    %297 = vector.shape_cast %296 : vector<1x1x128xf32> to vector<1x128xf32>
    %298 = arith.maximumf %291, %293 : vector<1x128xf32>
    %299 = arith.maximumf %295, %297 : vector<1x128xf32>
    %300 = arith.maximumf %298, %299 : vector<1x128xf32>
    %c10_331 = arith.constant 10 : index
    %c0_332 = arith.constant 0 : index
    %c0_333 = arith.constant 0 : index
    %301 = vector.load %arg6[%c10_331, %c0_332, %c0_333] : memref<36x4x128xf32, #tpu.memory_space<vmem>>, vector<1x4x128xf32>
    %302 = vector.shape_cast %301 : vector<1x4x128xf32> to vector<4x128xf32>
    %cst_334 = arith.constant dense<0.000000e+00> : vector<1x4xf32>
    %303 = tpu.matmul %300, %302, %cst_334 {dimension_numbers = #tpu.dot_dimension_numbers<[1], [1], [0], [0], [0, 0, 1, 0], [], []>} : vector<1x128xf32>, vector<4x128xf32>, vector<1x4xf32> -> vector<1x4xf32>
    %304 = arith.addf %289, %303 : vector<1x4xf32>
    %c2_335 = arith.constant 2 : index
    %c10_336 = arith.constant 10 : index
    %c0_337 = arith.constant 0 : index
    %305 = vector.load %arg12[%c2_335, %c10_336, %c0_337] : memref<12x12x128xf32, #tpu.memory_space<vmem>>, vector<1x1x128xf32>
    %306 = vector.shape_cast %305 : vector<1x1x128xf32> to vector<1x128xf32>
    %c2_338 = arith.constant 2 : index
    %c11_339 = arith.constant 11 : index
    %c0_340 = arith.constant 0 : index
    %307 = vector.load %arg12[%c2_338, %c11_339, %c0_340] : memref<12x12x128xf32, #tpu.memory_space<vmem>>, vector<1x1x128xf32>
    %308 = vector.shape_cast %307 : vector<1x1x128xf32> to vector<1x128xf32>
    %c3_341 = arith.constant 3 : index
    %c10_342 = arith.constant 10 : index
    %c0_343 = arith.constant 0 : index
    %309 = vector.load %arg12[%c3_341, %c10_342, %c0_343] : memref<12x12x128xf32, #tpu.memory_space<vmem>>, vector<1x1x128xf32>
    %310 = vector.shape_cast %309 : vector<1x1x128xf32> to vector<1x128xf32>
    %c3_344 = arith.constant 3 : index
    %c11_345 = arith.constant 11 : index
    %c0_346 = arith.constant 0 : index
    %311 = vector.load %arg12[%c3_344, %c11_345, %c0_346] : memref<12x12x128xf32, #tpu.memory_space<vmem>>, vector<1x1x128xf32>
    %312 = vector.shape_cast %311 : vector<1x1x128xf32> to vector<1x128xf32>
    %313 = arith.maximumf %306, %308 : vector<1x128xf32>
    %314 = arith.maximumf %310, %312 : vector<1x128xf32>
    %315 = arith.maximumf %313, %314 : vector<1x128xf32>
    %c11_347 = arith.constant 11 : index
    %c0_348 = arith.constant 0 : index
    %c0_349 = arith.constant 0 : index
    %316 = vector.load %arg6[%c11_347, %c0_348, %c0_349] : memref<36x4x128xf32, #tpu.memory_space<vmem>>, vector<1x4x128xf32>
    %317 = vector.shape_cast %316 : vector<1x4x128xf32> to vector<4x128xf32>
    %cst_350 = arith.constant dense<0.000000e+00> : vector<1x4xf32>
    %318 = tpu.matmul %315, %317, %cst_350 {dimension_numbers = #tpu.dot_dimension_numbers<[1], [1], [0], [0], [0, 0, 1, 0], [], []>} : vector<1x128xf32>, vector<4x128xf32>, vector<1x4xf32> -> vector<1x4xf32>
    %319 = arith.addf %304, %318 : vector<1x4xf32>
    %c4_351 = arith.constant 4 : index
    %c0_352 = arith.constant 0 : index
    %c0_353 = arith.constant 0 : index
    %320 = vector.load %arg12[%c4_351, %c0_352, %c0_353] : memref<12x12x128xf32, #tpu.memory_space<vmem>>, vector<1x1x128xf32>
    %321 = vector.shape_cast %320 : vector<1x1x128xf32> to vector<1x128xf32>
    %c4_354 = arith.constant 4 : index
    %c1_355 = arith.constant 1 : index
    %c0_356 = arith.constant 0 : index
    %322 = vector.load %arg12[%c4_354, %c1_355, %c0_356] : memref<12x12x128xf32, #tpu.memory_space<vmem>>, vector<1x1x128xf32>
    %323 = vector.shape_cast %322 : vector<1x1x128xf32> to vector<1x128xf32>
    %c5_357 = arith.constant 5 : index
    %c0_358 = arith.constant 0 : index
    %c0_359 = arith.constant 0 : index
    %324 = vector.load %arg12[%c5_357, %c0_358, %c0_359] : memref<12x12x128xf32, #tpu.memory_space<vmem>>, vector<1x1x128xf32>
    %325 = vector.shape_cast %324 : vector<1x1x128xf32> to vector<1x128xf32>
    %c5_360 = arith.constant 5 : index
    %c1_361 = arith.constant 1 : index
    %c0_362 = arith.constant 0 : index
    %326 = vector.load %arg12[%c5_360, %c1_361, %c0_362] : memref<12x12x128xf32, #tpu.memory_space<vmem>>, vector<1x1x128xf32>
    %327 = vector.shape_cast %326 : vector<1x1x128xf32> to vector<1x128xf32>
    %328 = arith.maximumf %321, %323 : vector<1x128xf32>
    %329 = arith.maximumf %325, %327 : vector<1x128xf32>
    %330 = arith.maximumf %328, %329 : vector<1x128xf32>
    %c12 = arith.constant 12 : index
    %c0_363 = arith.constant 0 : index
    %c0_364 = arith.constant 0 : index
    %331 = vector.load %arg6[%c12, %c0_363, %c0_364] : memref<36x4x128xf32, #tpu.memory_space<vmem>>, vector<1x4x128xf32>
    %332 = vector.shape_cast %331 : vector<1x4x128xf32> to vector<4x128xf32>
    %cst_365 = arith.constant dense<0.000000e+00> : vector<1x4xf32>
    %333 = tpu.matmul %330, %332, %cst_365 {dimension_numbers = #tpu.dot_dimension_numbers<[1], [1], [0], [0], [0, 0, 1, 0], [], []>} : vector<1x128xf32>, vector<4x128xf32>, vector<1x4xf32> -> vector<1x4xf32>
    %334 = arith.addf %319, %333 : vector<1x4xf32>
    %c4_366 = arith.constant 4 : index
    %c2_367 = arith.constant 2 : index
    %c0_368 = arith.constant 0 : index
    %335 = vector.load %arg12[%c4_366, %c2_367, %c0_368] : memref<12x12x128xf32, #tpu.memory_space<vmem>>, vector<1x1x128xf32>
    %336 = vector.shape_cast %335 : vector<1x1x128xf32> to vector<1x128xf32>
    %c4_369 = arith.constant 4 : index
    %c3_370 = arith.constant 3 : index
    %c0_371 = arith.constant 0 : index
    %337 = vector.load %arg12[%c4_369, %c3_370, %c0_371] : memref<12x12x128xf32, #tpu.memory_space<vmem>>, vector<1x1x128xf32>
    %338 = vector.shape_cast %337 : vector<1x1x128xf32> to vector<1x128xf32>
    %c5_372 = arith.constant 5 : index
    %c2_373 = arith.constant 2 : index
    %c0_374 = arith.constant 0 : index
    %339 = vector.load %arg12[%c5_372, %c2_373, %c0_374] : memref<12x12x128xf32, #tpu.memory_space<vmem>>, vector<1x1x128xf32>
    %340 = vector.shape_cast %339 : vector<1x1x128xf32> to vector<1x128xf32>
    %c5_375 = arith.constant 5 : index
    %c3_376 = arith.constant 3 : index
    %c0_377 = arith.constant 0 : index
    %341 = vector.load %arg12[%c5_375, %c3_376, %c0_377] : memref<12x12x128xf32, #tpu.memory_space<vmem>>, vector<1x1x128xf32>
    %342 = vector.shape_cast %341 : vector<1x1x128xf32> to vector<1x128xf32>
    %343 = arith.maximumf %336, %338 : vector<1x128xf32>
    %344 = arith.maximumf %340, %342 : vector<1x128xf32>
    %345 = arith.maximumf %343, %344 : vector<1x128xf32>
    %c13 = arith.constant 13 : index
    %c0_378 = arith.constant 0 : index
    %c0_379 = arith.constant 0 : index
    %346 = vector.load %arg6[%c13, %c0_378, %c0_379] : memref<36x4x128xf32, #tpu.memory_space<vmem>>, vector<1x4x128xf32>
    %347 = vector.shape_cast %346 : vector<1x4x128xf32> to vector<4x128xf32>
    %cst_380 = arith.constant dense<0.000000e+00> : vector<1x4xf32>
    %348 = tpu.matmul %345, %347, %cst_380 {dimension_numbers = #tpu.dot_dimension_numbers<[1], [1], [0], [0], [0, 0, 1, 0], [], []>} : vector<1x128xf32>, vector<4x128xf32>, vector<1x4xf32> -> vector<1x4xf32>
    %349 = arith.addf %334, %348 : vector<1x4xf32>
    %c4_381 = arith.constant 4 : index
    %c4_382 = arith.constant 4 : index
    %c0_383 = arith.constant 0 : index
    %350 = vector.load %arg12[%c4_381, %c4_382, %c0_383] : memref<12x12x128xf32, #tpu.memory_space<vmem>>, vector<1x1x128xf32>
    %351 = vector.shape_cast %350 : vector<1x1x128xf32> to vector<1x128xf32>
    %c4_384 = arith.constant 4 : index
    %c5_385 = arith.constant 5 : index
    %c0_386 = arith.constant 0 : index
    %352 = vector.load %arg12[%c4_384, %c5_385, %c0_386] : memref<12x12x128xf32, #tpu.memory_space<vmem>>, vector<1x1x128xf32>
    %353 = vector.shape_cast %352 : vector<1x1x128xf32> to vector<1x128xf32>
    %c5_387 = arith.constant 5 : index
    %c4_388 = arith.constant 4 : index
    %c0_389 = arith.constant 0 : index
    %354 = vector.load %arg12[%c5_387, %c4_388, %c0_389] : memref<12x12x128xf32, #tpu.memory_space<vmem>>, vector<1x1x128xf32>
    %355 = vector.shape_cast %354 : vector<1x1x128xf32> to vector<1x128xf32>
    %c5_390 = arith.constant 5 : index
    %c5_391 = arith.constant 5 : index
    %c0_392 = arith.constant 0 : index
    %356 = vector.load %arg12[%c5_390, %c5_391, %c0_392] : memref<12x12x128xf32, #tpu.memory_space<vmem>>, vector<1x1x128xf32>
    %357 = vector.shape_cast %356 : vector<1x1x128xf32> to vector<1x128xf32>
    %358 = arith.maximumf %351, %353 : vector<1x128xf32>
    %359 = arith.maximumf %355, %357 : vector<1x128xf32>
    %360 = arith.maximumf %358, %359 : vector<1x128xf32>
    %c14 = arith.constant 14 : index
    %c0_393 = arith.constant 0 : index
    %c0_394 = arith.constant 0 : index
    %361 = vector.load %arg6[%c14, %c0_393, %c0_394] : memref<36x4x128xf32, #tpu.memory_space<vmem>>, vector<1x4x128xf32>
    %362 = vector.shape_cast %361 : vector<1x4x128xf32> to vector<4x128xf32>
    %cst_395 = arith.constant dense<0.000000e+00> : vector<1x4xf32>
    %363 = tpu.matmul %360, %362, %cst_395 {dimension_numbers = #tpu.dot_dimension_numbers<[1], [1], [0], [0], [0, 0, 1, 0], [], []>} : vector<1x128xf32>, vector<4x128xf32>, vector<1x4xf32> -> vector<1x4xf32>
    %364 = arith.addf %349, %363 : vector<1x4xf32>
    %c4_396 = arith.constant 4 : index
    %c6_397 = arith.constant 6 : index
    %c0_398 = arith.constant 0 : index
    %365 = vector.load %arg12[%c4_396, %c6_397, %c0_398] : memref<12x12x128xf32, #tpu.memory_space<vmem>>, vector<1x1x128xf32>
    %366 = vector.shape_cast %365 : vector<1x1x128xf32> to vector<1x128xf32>
    %c4_399 = arith.constant 4 : index
    %c7_400 = arith.constant 7 : index
    %c0_401 = arith.constant 0 : index
    %367 = vector.load %arg12[%c4_399, %c7_400, %c0_401] : memref<12x12x128xf32, #tpu.memory_space<vmem>>, vector<1x1x128xf32>
    %368 = vector.shape_cast %367 : vector<1x1x128xf32> to vector<1x128xf32>
    %c5_402 = arith.constant 5 : index
    %c6_403 = arith.constant 6 : index
    %c0_404 = arith.constant 0 : index
    %369 = vector.load %arg12[%c5_402, %c6_403, %c0_404] : memref<12x12x128xf32, #tpu.memory_space<vmem>>, vector<1x1x128xf32>
    %370 = vector.shape_cast %369 : vector<1x1x128xf32> to vector<1x128xf32>
    %c5_405 = arith.constant 5 : index
    %c7_406 = arith.constant 7 : index
    %c0_407 = arith.constant 0 : index
    %371 = vector.load %arg12[%c5_405, %c7_406, %c0_407] : memref<12x12x128xf32, #tpu.memory_space<vmem>>, vector<1x1x128xf32>
    %372 = vector.shape_cast %371 : vector<1x1x128xf32> to vector<1x128xf32>
    %373 = arith.maximumf %366, %368 : vector<1x128xf32>
    %374 = arith.maximumf %370, %372 : vector<1x128xf32>
    %375 = arith.maximumf %373, %374 : vector<1x128xf32>
    %c15 = arith.constant 15 : index
    %c0_408 = arith.constant 0 : index
    %c0_409 = arith.constant 0 : index
    %376 = vector.load %arg6[%c15, %c0_408, %c0_409] : memref<36x4x128xf32, #tpu.memory_space<vmem>>, vector<1x4x128xf32>
    %377 = vector.shape_cast %376 : vector<1x4x128xf32> to vector<4x128xf32>
    %cst_410 = arith.constant dense<0.000000e+00> : vector<1x4xf32>
    %378 = tpu.matmul %375, %377, %cst_410 {dimension_numbers = #tpu.dot_dimension_numbers<[1], [1], [0], [0], [0, 0, 1, 0], [], []>} : vector<1x128xf32>, vector<4x128xf32>, vector<1x4xf32> -> vector<1x4xf32>
    %379 = arith.addf %364, %378 : vector<1x4xf32>
    %c4_411 = arith.constant 4 : index
    %c8_412 = arith.constant 8 : index
    %c0_413 = arith.constant 0 : index
    %380 = vector.load %arg12[%c4_411, %c8_412, %c0_413] : memref<12x12x128xf32, #tpu.memory_space<vmem>>, vector<1x1x128xf32>
    %381 = vector.shape_cast %380 : vector<1x1x128xf32> to vector<1x128xf32>
    %c4_414 = arith.constant 4 : index
    %c9_415 = arith.constant 9 : index
    %c0_416 = arith.constant 0 : index
    %382 = vector.load %arg12[%c4_414, %c9_415, %c0_416] : memref<12x12x128xf32, #tpu.memory_space<vmem>>, vector<1x1x128xf32>
    %383 = vector.shape_cast %382 : vector<1x1x128xf32> to vector<1x128xf32>
    %c5_417 = arith.constant 5 : index
    %c8_418 = arith.constant 8 : index
    %c0_419 = arith.constant 0 : index
    %384 = vector.load %arg12[%c5_417, %c8_418, %c0_419] : memref<12x12x128xf32, #tpu.memory_space<vmem>>, vector<1x1x128xf32>
    %385 = vector.shape_cast %384 : vector<1x1x128xf32> to vector<1x128xf32>
    %c5_420 = arith.constant 5 : index
    %c9_421 = arith.constant 9 : index
    %c0_422 = arith.constant 0 : index
    %386 = vector.load %arg12[%c5_420, %c9_421, %c0_422] : memref<12x12x128xf32, #tpu.memory_space<vmem>>, vector<1x1x128xf32>
    %387 = vector.shape_cast %386 : vector<1x1x128xf32> to vector<1x128xf32>
    %388 = arith.maximumf %381, %383 : vector<1x128xf32>
    %389 = arith.maximumf %385, %387 : vector<1x128xf32>
    %390 = arith.maximumf %388, %389 : vector<1x128xf32>
    %c16 = arith.constant 16 : index
    %c0_423 = arith.constant 0 : index
    %c0_424 = arith.constant 0 : index
    %391 = vector.load %arg6[%c16, %c0_423, %c0_424] : memref<36x4x128xf32, #tpu.memory_space<vmem>>, vector<1x4x128xf32>
    %392 = vector.shape_cast %391 : vector<1x4x128xf32> to vector<4x128xf32>
    %cst_425 = arith.constant dense<0.000000e+00> : vector<1x4xf32>
    %393 = tpu.matmul %390, %392, %cst_425 {dimension_numbers = #tpu.dot_dimension_numbers<[1], [1], [0], [0], [0, 0, 1, 0], [], []>} : vector<1x128xf32>, vector<4x128xf32>, vector<1x4xf32> -> vector<1x4xf32>
    %394 = arith.addf %379, %393 : vector<1x4xf32>
    %c4_426 = arith.constant 4 : index
    %c10_427 = arith.constant 10 : index
    %c0_428 = arith.constant 0 : index
    %395 = vector.load %arg12[%c4_426, %c10_427, %c0_428] : memref<12x12x128xf32, #tpu.memory_space<vmem>>, vector<1x1x128xf32>
    %396 = vector.shape_cast %395 : vector<1x1x128xf32> to vector<1x128xf32>
    %c4_429 = arith.constant 4 : index
    %c11_430 = arith.constant 11 : index
    %c0_431 = arith.constant 0 : index
    %397 = vector.load %arg12[%c4_429, %c11_430, %c0_431] : memref<12x12x128xf32, #tpu.memory_space<vmem>>, vector<1x1x128xf32>
    %398 = vector.shape_cast %397 : vector<1x1x128xf32> to vector<1x128xf32>
    %c5_432 = arith.constant 5 : index
    %c10_433 = arith.constant 10 : index
    %c0_434 = arith.constant 0 : index
    %399 = vector.load %arg12[%c5_432, %c10_433, %c0_434] : memref<12x12x128xf32, #tpu.memory_space<vmem>>, vector<1x1x128xf32>
    %400 = vector.shape_cast %399 : vector<1x1x128xf32> to vector<1x128xf32>
    %c5_435 = arith.constant 5 : index
    %c11_436 = arith.constant 11 : index
    %c0_437 = arith.constant 0 : index
    %401 = vector.load %arg12[%c5_435, %c11_436, %c0_437] : memref<12x12x128xf32, #tpu.memory_space<vmem>>, vector<1x1x128xf32>
    %402 = vector.shape_cast %401 : vector<1x1x128xf32> to vector<1x128xf32>
    %403 = arith.maximumf %396, %398 : vector<1x128xf32>
    %404 = arith.maximumf %400, %402 : vector<1x128xf32>
    %405 = arith.maximumf %403, %404 : vector<1x128xf32>
    %c17 = arith.constant 17 : index
    %c0_438 = arith.constant 0 : index
    %c0_439 = arith.constant 0 : index
    %406 = vector.load %arg6[%c17, %c0_438, %c0_439] : memref<36x4x128xf32, #tpu.memory_space<vmem>>, vector<1x4x128xf32>
    %407 = vector.shape_cast %406 : vector<1x4x128xf32> to vector<4x128xf32>
    %cst_440 = arith.constant dense<0.000000e+00> : vector<1x4xf32>
    %408 = tpu.matmul %405, %407, %cst_440 {dimension_numbers = #tpu.dot_dimension_numbers<[1], [1], [0], [0], [0, 0, 1, 0], [], []>} : vector<1x128xf32>, vector<4x128xf32>, vector<1x4xf32> -> vector<1x4xf32>
    %409 = arith.addf %394, %408 : vector<1x4xf32>
    %c6_441 = arith.constant 6 : index
    %c0_442 = arith.constant 0 : index
    %c0_443 = arith.constant 0 : index
    %410 = vector.load %arg12[%c6_441, %c0_442, %c0_443] : memref<12x12x128xf32, #tpu.memory_space<vmem>>, vector<1x1x128xf32>
    %411 = vector.shape_cast %410 : vector<1x1x128xf32> to vector<1x128xf32>
    %c6_444 = arith.constant 6 : index
    %c1_445 = arith.constant 1 : index
    %c0_446 = arith.constant 0 : index
    %412 = vector.load %arg12[%c6_444, %c1_445, %c0_446] : memref<12x12x128xf32, #tpu.memory_space<vmem>>, vector<1x1x128xf32>
    %413 = vector.shape_cast %412 : vector<1x1x128xf32> to vector<1x128xf32>
    %c7_447 = arith.constant 7 : index
    %c0_448 = arith.constant 0 : index
    %c0_449 = arith.constant 0 : index
    %414 = vector.load %arg12[%c7_447, %c0_448, %c0_449] : memref<12x12x128xf32, #tpu.memory_space<vmem>>, vector<1x1x128xf32>
    %415 = vector.shape_cast %414 : vector<1x1x128xf32> to vector<1x128xf32>
    %c7_450 = arith.constant 7 : index
    %c1_451 = arith.constant 1 : index
    %c0_452 = arith.constant 0 : index
    %416 = vector.load %arg12[%c7_450, %c1_451, %c0_452] : memref<12x12x128xf32, #tpu.memory_space<vmem>>, vector<1x1x128xf32>
    %417 = vector.shape_cast %416 : vector<1x1x128xf32> to vector<1x128xf32>
    %418 = arith.maximumf %411, %413 : vector<1x128xf32>
    %419 = arith.maximumf %415, %417 : vector<1x128xf32>
    %420 = arith.maximumf %418, %419 : vector<1x128xf32>
    %c18 = arith.constant 18 : index
    %c0_453 = arith.constant 0 : index
    %c0_454 = arith.constant 0 : index
    %421 = vector.load %arg6[%c18, %c0_453, %c0_454] : memref<36x4x128xf32, #tpu.memory_space<vmem>>, vector<1x4x128xf32>
    %422 = vector.shape_cast %421 : vector<1x4x128xf32> to vector<4x128xf32>
    %cst_455 = arith.constant dense<0.000000e+00> : vector<1x4xf32>
    %423 = tpu.matmul %420, %422, %cst_455 {dimension_numbers = #tpu.dot_dimension_numbers<[1], [1], [0], [0], [0, 0, 1, 0], [], []>} : vector<1x128xf32>, vector<4x128xf32>, vector<1x4xf32> -> vector<1x4xf32>
    %424 = arith.addf %409, %423 : vector<1x4xf32>
    %c6_456 = arith.constant 6 : index
    %c2_457 = arith.constant 2 : index
    %c0_458 = arith.constant 0 : index
    %425 = vector.load %arg12[%c6_456, %c2_457, %c0_458] : memref<12x12x128xf32, #tpu.memory_space<vmem>>, vector<1x1x128xf32>
    %426 = vector.shape_cast %425 : vector<1x1x128xf32> to vector<1x128xf32>
    %c6_459 = arith.constant 6 : index
    %c3_460 = arith.constant 3 : index
    %c0_461 = arith.constant 0 : index
    %427 = vector.load %arg12[%c6_459, %c3_460, %c0_461] : memref<12x12x128xf32, #tpu.memory_space<vmem>>, vector<1x1x128xf32>
    %428 = vector.shape_cast %427 : vector<1x1x128xf32> to vector<1x128xf32>
    %c7_462 = arith.constant 7 : index
    %c2_463 = arith.constant 2 : index
    %c0_464 = arith.constant 0 : index
    %429 = vector.load %arg12[%c7_462, %c2_463, %c0_464] : memref<12x12x128xf32, #tpu.memory_space<vmem>>, vector<1x1x128xf32>
    %430 = vector.shape_cast %429 : vector<1x1x128xf32> to vector<1x128xf32>
    %c7_465 = arith.constant 7 : index
    %c3_466 = arith.constant 3 : index
    %c0_467 = arith.constant 0 : index
    %431 = vector.load %arg12[%c7_465, %c3_466, %c0_467] : memref<12x12x128xf32, #tpu.memory_space<vmem>>, vector<1x1x128xf32>
    %432 = vector.shape_cast %431 : vector<1x1x128xf32> to vector<1x128xf32>
    %433 = arith.maximumf %426, %428 : vector<1x128xf32>
    %434 = arith.maximumf %430, %432 : vector<1x128xf32>
    %435 = arith.maximumf %433, %434 : vector<1x128xf32>
    %c19 = arith.constant 19 : index
    %c0_468 = arith.constant 0 : index
    %c0_469 = arith.constant 0 : index
    %436 = vector.load %arg6[%c19, %c0_468, %c0_469] : memref<36x4x128xf32, #tpu.memory_space<vmem>>, vector<1x4x128xf32>
    %437 = vector.shape_cast %436 : vector<1x4x128xf32> to vector<4x128xf32>
    %cst_470 = arith.constant dense<0.000000e+00> : vector<1x4xf32>
    %438 = tpu.matmul %435, %437, %cst_470 {dimension_numbers = #tpu.dot_dimension_numbers<[1], [1], [0], [0], [0, 0, 1, 0], [], []>} : vector<1x128xf32>, vector<4x128xf32>, vector<1x4xf32> -> vector<1x4xf32>
    %439 = arith.addf %424, %438 : vector<1x4xf32>
    %c6_471 = arith.constant 6 : index
    %c4_472 = arith.constant 4 : index
    %c0_473 = arith.constant 0 : index
    %440 = vector.load %arg12[%c6_471, %c4_472, %c0_473] : memref<12x12x128xf32, #tpu.memory_space<vmem>>, vector<1x1x128xf32>
    %441 = vector.shape_cast %440 : vector<1x1x128xf32> to vector<1x128xf32>
    %c6_474 = arith.constant 6 : index
    %c5_475 = arith.constant 5 : index
    %c0_476 = arith.constant 0 : index
    %442 = vector.load %arg12[%c6_474, %c5_475, %c0_476] : memref<12x12x128xf32, #tpu.memory_space<vmem>>, vector<1x1x128xf32>
    %443 = vector.shape_cast %442 : vector<1x1x128xf32> to vector<1x128xf32>
    %c7_477 = arith.constant 7 : index
    %c4_478 = arith.constant 4 : index
    %c0_479 = arith.constant 0 : index
    %444 = vector.load %arg12[%c7_477, %c4_478, %c0_479] : memref<12x12x128xf32, #tpu.memory_space<vmem>>, vector<1x1x128xf32>
    %445 = vector.shape_cast %444 : vector<1x1x128xf32> to vector<1x128xf32>
    %c7_480 = arith.constant 7 : index
    %c5_481 = arith.constant 5 : index
    %c0_482 = arith.constant 0 : index
    %446 = vector.load %arg12[%c7_480, %c5_481, %c0_482] : memref<12x12x128xf32, #tpu.memory_space<vmem>>, vector<1x1x128xf32>
    %447 = vector.shape_cast %446 : vector<1x1x128xf32> to vector<1x128xf32>
    %448 = arith.maximumf %441, %443 : vector<1x128xf32>
    %449 = arith.maximumf %445, %447 : vector<1x128xf32>
    %450 = arith.maximumf %448, %449 : vector<1x128xf32>
    %c20 = arith.constant 20 : index
    %c0_483 = arith.constant 0 : index
    %c0_484 = arith.constant 0 : index
    %451 = vector.load %arg6[%c20, %c0_483, %c0_484] : memref<36x4x128xf32, #tpu.memory_space<vmem>>, vector<1x4x128xf32>
    %452 = vector.shape_cast %451 : vector<1x4x128xf32> to vector<4x128xf32>
    %cst_485 = arith.constant dense<0.000000e+00> : vector<1x4xf32>
    %453 = tpu.matmul %450, %452, %cst_485 {dimension_numbers = #tpu.dot_dimension_numbers<[1], [1], [0], [0], [0, 0, 1, 0], [], []>} : vector<1x128xf32>, vector<4x128xf32>, vector<1x4xf32> -> vector<1x4xf32>
    %454 = arith.addf %439, %453 : vector<1x4xf32>
    %c6_486 = arith.constant 6 : index
    %c6_487 = arith.constant 6 : index
    %c0_488 = arith.constant 0 : index
    %455 = vector.load %arg12[%c6_486, %c6_487, %c0_488] : memref<12x12x128xf32, #tpu.memory_space<vmem>>, vector<1x1x128xf32>
    %456 = vector.shape_cast %455 : vector<1x1x128xf32> to vector<1x128xf32>
    %c6_489 = arith.constant 6 : index
    %c7_490 = arith.constant 7 : index
    %c0_491 = arith.constant 0 : index
    %457 = vector.load %arg12[%c6_489, %c7_490, %c0_491] : memref<12x12x128xf32, #tpu.memory_space<vmem>>, vector<1x1x128xf32>
    %458 = vector.shape_cast %457 : vector<1x1x128xf32> to vector<1x128xf32>
    %c7_492 = arith.constant 7 : index
    %c6_493 = arith.constant 6 : index
    %c0_494 = arith.constant 0 : index
    %459 = vector.load %arg12[%c7_492, %c6_493, %c0_494] : memref<12x12x128xf32, #tpu.memory_space<vmem>>, vector<1x1x128xf32>
    %460 = vector.shape_cast %459 : vector<1x1x128xf32> to vector<1x128xf32>
    %c7_495 = arith.constant 7 : index
    %c7_496 = arith.constant 7 : index
    %c0_497 = arith.constant 0 : index
    %461 = vector.load %arg12[%c7_495, %c7_496, %c0_497] : memref<12x12x128xf32, #tpu.memory_space<vmem>>, vector<1x1x128xf32>
    %462 = vector.shape_cast %461 : vector<1x1x128xf32> to vector<1x128xf32>
    %463 = arith.maximumf %456, %458 : vector<1x128xf32>
    %464 = arith.maximumf %460, %462 : vector<1x128xf32>
    %465 = arith.maximumf %463, %464 : vector<1x128xf32>
    %c21 = arith.constant 21 : index
    %c0_498 = arith.constant 0 : index
    %c0_499 = arith.constant 0 : index
    %466 = vector.load %arg6[%c21, %c0_498, %c0_499] : memref<36x4x128xf32, #tpu.memory_space<vmem>>, vector<1x4x128xf32>
    %467 = vector.shape_cast %466 : vector<1x4x128xf32> to vector<4x128xf32>
    %cst_500 = arith.constant dense<0.000000e+00> : vector<1x4xf32>
    %468 = tpu.matmul %465, %467, %cst_500 {dimension_numbers = #tpu.dot_dimension_numbers<[1], [1], [0], [0], [0, 0, 1, 0], [], []>} : vector<1x128xf32>, vector<4x128xf32>, vector<1x4xf32> -> vector<1x4xf32>
    %469 = arith.addf %454, %468 : vector<1x4xf32>
    %c6_501 = arith.constant 6 : index
    %c8_502 = arith.constant 8 : index
    %c0_503 = arith.constant 0 : index
    %470 = vector.load %arg12[%c6_501, %c8_502, %c0_503] : memref<12x12x128xf32, #tpu.memory_space<vmem>>, vector<1x1x128xf32>
    %471 = vector.shape_cast %470 : vector<1x1x128xf32> to vector<1x128xf32>
    %c6_504 = arith.constant 6 : index
    %c9_505 = arith.constant 9 : index
    %c0_506 = arith.constant 0 : index
    %472 = vector.load %arg12[%c6_504, %c9_505, %c0_506] : memref<12x12x128xf32, #tpu.memory_space<vmem>>, vector<1x1x128xf32>
    %473 = vector.shape_cast %472 : vector<1x1x128xf32> to vector<1x128xf32>
    %c7_507 = arith.constant 7 : index
    %c8_508 = arith.constant 8 : index
    %c0_509 = arith.constant 0 : index
    %474 = vector.load %arg12[%c7_507, %c8_508, %c0_509] : memref<12x12x128xf32, #tpu.memory_space<vmem>>, vector<1x1x128xf32>
    %475 = vector.shape_cast %474 : vector<1x1x128xf32> to vector<1x128xf32>
    %c7_510 = arith.constant 7 : index
    %c9_511 = arith.constant 9 : index
    %c0_512 = arith.constant 0 : index
    %476 = vector.load %arg12[%c7_510, %c9_511, %c0_512] : memref<12x12x128xf32, #tpu.memory_space<vmem>>, vector<1x1x128xf32>
    %477 = vector.shape_cast %476 : vector<1x1x128xf32> to vector<1x128xf32>
    %478 = arith.maximumf %471, %473 : vector<1x128xf32>
    %479 = arith.maximumf %475, %477 : vector<1x128xf32>
    %480 = arith.maximumf %478, %479 : vector<1x128xf32>
    %c22 = arith.constant 22 : index
    %c0_513 = arith.constant 0 : index
    %c0_514 = arith.constant 0 : index
    %481 = vector.load %arg6[%c22, %c0_513, %c0_514] : memref<36x4x128xf32, #tpu.memory_space<vmem>>, vector<1x4x128xf32>
    %482 = vector.shape_cast %481 : vector<1x4x128xf32> to vector<4x128xf32>
    %cst_515 = arith.constant dense<0.000000e+00> : vector<1x4xf32>
    %483 = tpu.matmul %480, %482, %cst_515 {dimension_numbers = #tpu.dot_dimension_numbers<[1], [1], [0], [0], [0, 0, 1, 0], [], []>} : vector<1x128xf32>, vector<4x128xf32>, vector<1x4xf32> -> vector<1x4xf32>
    %484 = arith.addf %469, %483 : vector<1x4xf32>
    %c6_516 = arith.constant 6 : index
    %c10_517 = arith.constant 10 : index
    %c0_518 = arith.constant 0 : index
    %485 = vector.load %arg12[%c6_516, %c10_517, %c0_518] : memref<12x12x128xf32, #tpu.memory_space<vmem>>, vector<1x1x128xf32>
    %486 = vector.shape_cast %485 : vector<1x1x128xf32> to vector<1x128xf32>
    %c6_519 = arith.constant 6 : index
    %c11_520 = arith.constant 11 : index
    %c0_521 = arith.constant 0 : index
    %487 = vector.load %arg12[%c6_519, %c11_520, %c0_521] : memref<12x12x128xf32, #tpu.memory_space<vmem>>, vector<1x1x128xf32>
    %488 = vector.shape_cast %487 : vector<1x1x128xf32> to vector<1x128xf32>
    %c7_522 = arith.constant 7 : index
    %c10_523 = arith.constant 10 : index
    %c0_524 = arith.constant 0 : index
    %489 = vector.load %arg12[%c7_522, %c10_523, %c0_524] : memref<12x12x128xf32, #tpu.memory_space<vmem>>, vector<1x1x128xf32>
    %490 = vector.shape_cast %489 : vector<1x1x128xf32> to vector<1x128xf32>
    %c7_525 = arith.constant 7 : index
    %c11_526 = arith.constant 11 : index
    %c0_527 = arith.constant 0 : index
    %491 = vector.load %arg12[%c7_525, %c11_526, %c0_527] : memref<12x12x128xf32, #tpu.memory_space<vmem>>, vector<1x1x128xf32>
    %492 = vector.shape_cast %491 : vector<1x1x128xf32> to vector<1x128xf32>
    %493 = arith.maximumf %486, %488 : vector<1x128xf32>
    %494 = arith.maximumf %490, %492 : vector<1x128xf32>
    %495 = arith.maximumf %493, %494 : vector<1x128xf32>
    %c23 = arith.constant 23 : index
    %c0_528 = arith.constant 0 : index
    %c0_529 = arith.constant 0 : index
    %496 = vector.load %arg6[%c23, %c0_528, %c0_529] : memref<36x4x128xf32, #tpu.memory_space<vmem>>, vector<1x4x128xf32>
    %497 = vector.shape_cast %496 : vector<1x4x128xf32> to vector<4x128xf32>
    %cst_530 = arith.constant dense<0.000000e+00> : vector<1x4xf32>
    %498 = tpu.matmul %495, %497, %cst_530 {dimension_numbers = #tpu.dot_dimension_numbers<[1], [1], [0], [0], [0, 0, 1, 0], [], []>} : vector<1x128xf32>, vector<4x128xf32>, vector<1x4xf32> -> vector<1x4xf32>
    %499 = arith.addf %484, %498 : vector<1x4xf32>
    %c8_531 = arith.constant 8 : index
    %c0_532 = arith.constant 0 : index
    %c0_533 = arith.constant 0 : index
    %500 = vector.load %arg12[%c8_531, %c0_532, %c0_533] : memref<12x12x128xf32, #tpu.memory_space<vmem>>, vector<1x1x128xf32>
    %501 = vector.shape_cast %500 : vector<1x1x128xf32> to vector<1x128xf32>
    %c8_534 = arith.constant 8 : index
    %c1_535 = arith.constant 1 : index
    %c0_536 = arith.constant 0 : index
    %502 = vector.load %arg12[%c8_534, %c1_535, %c0_536] : memref<12x12x128xf32, #tpu.memory_space<vmem>>, vector<1x1x128xf32>
    %503 = vector.shape_cast %502 : vector<1x1x128xf32> to vector<1x128xf32>
    %c9_537 = arith.constant 9 : index
    %c0_538 = arith.constant 0 : index
    %c0_539 = arith.constant 0 : index
    %504 = vector.load %arg12[%c9_537, %c0_538, %c0_539] : memref<12x12x128xf32, #tpu.memory_space<vmem>>, vector<1x1x128xf32>
    %505 = vector.shape_cast %504 : vector<1x1x128xf32> to vector<1x128xf32>
    %c9_540 = arith.constant 9 : index
    %c1_541 = arith.constant 1 : index
    %c0_542 = arith.constant 0 : index
    %506 = vector.load %arg12[%c9_540, %c1_541, %c0_542] : memref<12x12x128xf32, #tpu.memory_space<vmem>>, vector<1x1x128xf32>
    %507 = vector.shape_cast %506 : vector<1x1x128xf32> to vector<1x128xf32>
    %508 = arith.maximumf %501, %503 : vector<1x128xf32>
    %509 = arith.maximumf %505, %507 : vector<1x128xf32>
    %510 = arith.maximumf %508, %509 : vector<1x128xf32>
    %c24 = arith.constant 24 : index
    %c0_543 = arith.constant 0 : index
    %c0_544 = arith.constant 0 : index
    %511 = vector.load %arg6[%c24, %c0_543, %c0_544] : memref<36x4x128xf32, #tpu.memory_space<vmem>>, vector<1x4x128xf32>
    %512 = vector.shape_cast %511 : vector<1x4x128xf32> to vector<4x128xf32>
    %cst_545 = arith.constant dense<0.000000e+00> : vector<1x4xf32>
    %513 = tpu.matmul %510, %512, %cst_545 {dimension_numbers = #tpu.dot_dimension_numbers<[1], [1], [0], [0], [0, 0, 1, 0], [], []>} : vector<1x128xf32>, vector<4x128xf32>, vector<1x4xf32> -> vector<1x4xf32>
    %514 = arith.addf %499, %513 : vector<1x4xf32>
    %c8_546 = arith.constant 8 : index
    %c2_547 = arith.constant 2 : index
    %c0_548 = arith.constant 0 : index
    %515 = vector.load %arg12[%c8_546, %c2_547, %c0_548] : memref<12x12x128xf32, #tpu.memory_space<vmem>>, vector<1x1x128xf32>
    %516 = vector.shape_cast %515 : vector<1x1x128xf32> to vector<1x128xf32>
    %c8_549 = arith.constant 8 : index
    %c3_550 = arith.constant 3 : index
    %c0_551 = arith.constant 0 : index
    %517 = vector.load %arg12[%c8_549, %c3_550, %c0_551] : memref<12x12x128xf32, #tpu.memory_space<vmem>>, vector<1x1x128xf32>
    %518 = vector.shape_cast %517 : vector<1x1x128xf32> to vector<1x128xf32>
    %c9_552 = arith.constant 9 : index
    %c2_553 = arith.constant 2 : index
    %c0_554 = arith.constant 0 : index
    %519 = vector.load %arg12[%c9_552, %c2_553, %c0_554] : memref<12x12x128xf32, #tpu.memory_space<vmem>>, vector<1x1x128xf32>
    %520 = vector.shape_cast %519 : vector<1x1x128xf32> to vector<1x128xf32>
    %c9_555 = arith.constant 9 : index
    %c3_556 = arith.constant 3 : index
    %c0_557 = arith.constant 0 : index
    %521 = vector.load %arg12[%c9_555, %c3_556, %c0_557] : memref<12x12x128xf32, #tpu.memory_space<vmem>>, vector<1x1x128xf32>
    %522 = vector.shape_cast %521 : vector<1x1x128xf32> to vector<1x128xf32>
    %523 = arith.maximumf %516, %518 : vector<1x128xf32>
    %524 = arith.maximumf %520, %522 : vector<1x128xf32>
    %525 = arith.maximumf %523, %524 : vector<1x128xf32>
    %c25 = arith.constant 25 : index
    %c0_558 = arith.constant 0 : index
    %c0_559 = arith.constant 0 : index
    %526 = vector.load %arg6[%c25, %c0_558, %c0_559] : memref<36x4x128xf32, #tpu.memory_space<vmem>>, vector<1x4x128xf32>
    %527 = vector.shape_cast %526 : vector<1x4x128xf32> to vector<4x128xf32>
    %cst_560 = arith.constant dense<0.000000e+00> : vector<1x4xf32>
    %528 = tpu.matmul %525, %527, %cst_560 {dimension_numbers = #tpu.dot_dimension_numbers<[1], [1], [0], [0], [0, 0, 1, 0], [], []>} : vector<1x128xf32>, vector<4x128xf32>, vector<1x4xf32> -> vector<1x4xf32>
    %529 = arith.addf %514, %528 : vector<1x4xf32>
    %c8_561 = arith.constant 8 : index
    %c4_562 = arith.constant 4 : index
    %c0_563 = arith.constant 0 : index
    %530 = vector.load %arg12[%c8_561, %c4_562, %c0_563] : memref<12x12x128xf32, #tpu.memory_space<vmem>>, vector<1x1x128xf32>
    %531 = vector.shape_cast %530 : vector<1x1x128xf32> to vector<1x128xf32>
    %c8_564 = arith.constant 8 : index
    %c5_565 = arith.constant 5 : index
    %c0_566 = arith.constant 0 : index
    %532 = vector.load %arg12[%c8_564, %c5_565, %c0_566] : memref<12x12x128xf32, #tpu.memory_space<vmem>>, vector<1x1x128xf32>
    %533 = vector.shape_cast %532 : vector<1x1x128xf32> to vector<1x128xf32>
    %c9_567 = arith.constant 9 : index
    %c4_568 = arith.constant 4 : index
    %c0_569 = arith.constant 0 : index
    %534 = vector.load %arg12[%c9_567, %c4_568, %c0_569] : memref<12x12x128xf32, #tpu.memory_space<vmem>>, vector<1x1x128xf32>
    %535 = vector.shape_cast %534 : vector<1x1x128xf32> to vector<1x128xf32>
    %c9_570 = arith.constant 9 : index
    %c5_571 = arith.constant 5 : index
    %c0_572 = arith.constant 0 : index
    %536 = vector.load %arg12[%c9_570, %c5_571, %c0_572] : memref<12x12x128xf32, #tpu.memory_space<vmem>>, vector<1x1x128xf32>
    %537 = vector.shape_cast %536 : vector<1x1x128xf32> to vector<1x128xf32>
    %538 = arith.maximumf %531, %533 : vector<1x128xf32>
    %539 = arith.maximumf %535, %537 : vector<1x128xf32>
    %540 = arith.maximumf %538, %539 : vector<1x128xf32>
    %c26 = arith.constant 26 : index
    %c0_573 = arith.constant 0 : index
    %c0_574 = arith.constant 0 : index
    %541 = vector.load %arg6[%c26, %c0_573, %c0_574] : memref<36x4x128xf32, #tpu.memory_space<vmem>>, vector<1x4x128xf32>
    %542 = vector.shape_cast %541 : vector<1x4x128xf32> to vector<4x128xf32>
    %cst_575 = arith.constant dense<0.000000e+00> : vector<1x4xf32>
    %543 = tpu.matmul %540, %542, %cst_575 {dimension_numbers = #tpu.dot_dimension_numbers<[1], [1], [0], [0], [0, 0, 1, 0], [], []>} : vector<1x128xf32>, vector<4x128xf32>, vector<1x4xf32> -> vector<1x4xf32>
    %544 = arith.addf %529, %543 : vector<1x4xf32>
    %c8_576 = arith.constant 8 : index
    %c6_577 = arith.constant 6 : index
    %c0_578 = arith.constant 0 : index
    %545 = vector.load %arg12[%c8_576, %c6_577, %c0_578] : memref<12x12x128xf32, #tpu.memory_space<vmem>>, vector<1x1x128xf32>
    %546 = vector.shape_cast %545 : vector<1x1x128xf32> to vector<1x128xf32>
    %c8_579 = arith.constant 8 : index
    %c7_580 = arith.constant 7 : index
    %c0_581 = arith.constant 0 : index
    %547 = vector.load %arg12[%c8_579, %c7_580, %c0_581] : memref<12x12x128xf32, #tpu.memory_space<vmem>>, vector<1x1x128xf32>
    %548 = vector.shape_cast %547 : vector<1x1x128xf32> to vector<1x128xf32>
    %c9_582 = arith.constant 9 : index
    %c6_583 = arith.constant 6 : index
    %c0_584 = arith.constant 0 : index
    %549 = vector.load %arg12[%c9_582, %c6_583, %c0_584] : memref<12x12x128xf32, #tpu.memory_space<vmem>>, vector<1x1x128xf32>
    %550 = vector.shape_cast %549 : vector<1x1x128xf32> to vector<1x128xf32>
    %c9_585 = arith.constant 9 : index
    %c7_586 = arith.constant 7 : index
    %c0_587 = arith.constant 0 : index
    %551 = vector.load %arg12[%c9_585, %c7_586, %c0_587] : memref<12x12x128xf32, #tpu.memory_space<vmem>>, vector<1x1x128xf32>
    %552 = vector.shape_cast %551 : vector<1x1x128xf32> to vector<1x128xf32>
    %553 = arith.maximumf %546, %548 : vector<1x128xf32>
    %554 = arith.maximumf %550, %552 : vector<1x128xf32>
    %555 = arith.maximumf %553, %554 : vector<1x128xf32>
    %c27 = arith.constant 27 : index
    %c0_588 = arith.constant 0 : index
    %c0_589 = arith.constant 0 : index
    %556 = vector.load %arg6[%c27, %c0_588, %c0_589] : memref<36x4x128xf32, #tpu.memory_space<vmem>>, vector<1x4x128xf32>
    %557 = vector.shape_cast %556 : vector<1x4x128xf32> to vector<4x128xf32>
    %cst_590 = arith.constant dense<0.000000e+00> : vector<1x4xf32>
    %558 = tpu.matmul %555, %557, %cst_590 {dimension_numbers = #tpu.dot_dimension_numbers<[1], [1], [0], [0], [0, 0, 1, 0], [], []>} : vector<1x128xf32>, vector<4x128xf32>, vector<1x4xf32> -> vector<1x4xf32>
    %559 = arith.addf %544, %558 : vector<1x4xf32>
    %c8_591 = arith.constant 8 : index
    %c8_592 = arith.constant 8 : index
    %c0_593 = arith.constant 0 : index
    %560 = vector.load %arg12[%c8_591, %c8_592, %c0_593] : memref<12x12x128xf32, #tpu.memory_space<vmem>>, vector<1x1x128xf32>
    %561 = vector.shape_cast %560 : vector<1x1x128xf32> to vector<1x128xf32>
    %c8_594 = arith.constant 8 : index
    %c9_595 = arith.constant 9 : index
    %c0_596 = arith.constant 0 : index
    %562 = vector.load %arg12[%c8_594, %c9_595, %c0_596] : memref<12x12x128xf32, #tpu.memory_space<vmem>>, vector<1x1x128xf32>
    %563 = vector.shape_cast %562 : vector<1x1x128xf32> to vector<1x128xf32>
    %c9_597 = arith.constant 9 : index
    %c8_598 = arith.constant 8 : index
    %c0_599 = arith.constant 0 : index
    %564 = vector.load %arg12[%c9_597, %c8_598, %c0_599] : memref<12x12x128xf32, #tpu.memory_space<vmem>>, vector<1x1x128xf32>
    %565 = vector.shape_cast %564 : vector<1x1x128xf32> to vector<1x128xf32>
    %c9_600 = arith.constant 9 : index
    %c9_601 = arith.constant 9 : index
    %c0_602 = arith.constant 0 : index
    %566 = vector.load %arg12[%c9_600, %c9_601, %c0_602] : memref<12x12x128xf32, #tpu.memory_space<vmem>>, vector<1x1x128xf32>
    %567 = vector.shape_cast %566 : vector<1x1x128xf32> to vector<1x128xf32>
    %568 = arith.maximumf %561, %563 : vector<1x128xf32>
    %569 = arith.maximumf %565, %567 : vector<1x128xf32>
    %570 = arith.maximumf %568, %569 : vector<1x128xf32>
    %c28 = arith.constant 28 : index
    %c0_603 = arith.constant 0 : index
    %c0_604 = arith.constant 0 : index
    %571 = vector.load %arg6[%c28, %c0_603, %c0_604] : memref<36x4x128xf32, #tpu.memory_space<vmem>>, vector<1x4x128xf32>
    %572 = vector.shape_cast %571 : vector<1x4x128xf32> to vector<4x128xf32>
    %cst_605 = arith.constant dense<0.000000e+00> : vector<1x4xf32>
    %573 = tpu.matmul %570, %572, %cst_605 {dimension_numbers = #tpu.dot_dimension_numbers<[1], [1], [0], [0], [0, 0, 1, 0], [], []>} : vector<1x128xf32>, vector<4x128xf32>, vector<1x4xf32> -> vector<1x4xf32>
    %574 = arith.addf %559, %573 : vector<1x4xf32>
    %c8_606 = arith.constant 8 : index
    %c10_607 = arith.constant 10 : index
    %c0_608 = arith.constant 0 : index
    %575 = vector.load %arg12[%c8_606, %c10_607, %c0_608] : memref<12x12x128xf32, #tpu.memory_space<vmem>>, vector<1x1x128xf32>
    %576 = vector.shape_cast %575 : vector<1x1x128xf32> to vector<1x128xf32>
    %c8_609 = arith.constant 8 : index
    %c11_610 = arith.constant 11 : index
    %c0_611 = arith.constant 0 : index
    %577 = vector.load %arg12[%c8_609, %c11_610, %c0_611] : memref<12x12x128xf32, #tpu.memory_space<vmem>>, vector<1x1x128xf32>
    %578 = vector.shape_cast %577 : vector<1x1x128xf32> to vector<1x128xf32>
    %c9_612 = arith.constant 9 : index
    %c10_613 = arith.constant 10 : index
    %c0_614 = arith.constant 0 : index
    %579 = vector.load %arg12[%c9_612, %c10_613, %c0_614] : memref<12x12x128xf32, #tpu.memory_space<vmem>>, vector<1x1x128xf32>
    %580 = vector.shape_cast %579 : vector<1x1x128xf32> to vector<1x128xf32>
    %c9_615 = arith.constant 9 : index
    %c11_616 = arith.constant 11 : index
    %c0_617 = arith.constant 0 : index
    %581 = vector.load %arg12[%c9_615, %c11_616, %c0_617] : memref<12x12x128xf32, #tpu.memory_space<vmem>>, vector<1x1x128xf32>
    %582 = vector.shape_cast %581 : vector<1x1x128xf32> to vector<1x128xf32>
    %583 = arith.maximumf %576, %578 : vector<1x128xf32>
    %584 = arith.maximumf %580, %582 : vector<1x128xf32>
    %585 = arith.maximumf %583, %584 : vector<1x128xf32>
    %c29 = arith.constant 29 : index
    %c0_618 = arith.constant 0 : index
    %c0_619 = arith.constant 0 : index
    %586 = vector.load %arg6[%c29, %c0_618, %c0_619] : memref<36x4x128xf32, #tpu.memory_space<vmem>>, vector<1x4x128xf32>
    %587 = vector.shape_cast %586 : vector<1x4x128xf32> to vector<4x128xf32>
    %cst_620 = arith.constant dense<0.000000e+00> : vector<1x4xf32>
    %588 = tpu.matmul %585, %587, %cst_620 {dimension_numbers = #tpu.dot_dimension_numbers<[1], [1], [0], [0], [0, 0, 1, 0], [], []>} : vector<1x128xf32>, vector<4x128xf32>, vector<1x4xf32> -> vector<1x4xf32>
    %589 = arith.addf %574, %588 : vector<1x4xf32>
    %c10_621 = arith.constant 10 : index
    %c0_622 = arith.constant 0 : index
    %c0_623 = arith.constant 0 : index
    %590 = vector.load %arg12[%c10_621, %c0_622, %c0_623] : memref<12x12x128xf32, #tpu.memory_space<vmem>>, vector<1x1x128xf32>
    %591 = vector.shape_cast %590 : vector<1x1x128xf32> to vector<1x128xf32>
    %c10_624 = arith.constant 10 : index
    %c1_625 = arith.constant 1 : index
    %c0_626 = arith.constant 0 : index
    %592 = vector.load %arg12[%c10_624, %c1_625, %c0_626] : memref<12x12x128xf32, #tpu.memory_space<vmem>>, vector<1x1x128xf32>
    %593 = vector.shape_cast %592 : vector<1x1x128xf32> to vector<1x128xf32>
    %c11_627 = arith.constant 11 : index
    %c0_628 = arith.constant 0 : index
    %c0_629 = arith.constant 0 : index
    %594 = vector.load %arg12[%c11_627, %c0_628, %c0_629] : memref<12x12x128xf32, #tpu.memory_space<vmem>>, vector<1x1x128xf32>
    %595 = vector.shape_cast %594 : vector<1x1x128xf32> to vector<1x128xf32>
    %c11_630 = arith.constant 11 : index
    %c1_631 = arith.constant 1 : index
    %c0_632 = arith.constant 0 : index
    %596 = vector.load %arg12[%c11_630, %c1_631, %c0_632] : memref<12x12x128xf32, #tpu.memory_space<vmem>>, vector<1x1x128xf32>
    %597 = vector.shape_cast %596 : vector<1x1x128xf32> to vector<1x128xf32>
    %598 = arith.maximumf %591, %593 : vector<1x128xf32>
    %599 = arith.maximumf %595, %597 : vector<1x128xf32>
    %600 = arith.maximumf %598, %599 : vector<1x128xf32>
    %c30 = arith.constant 30 : index
    %c0_633 = arith.constant 0 : index
    %c0_634 = arith.constant 0 : index
    %601 = vector.load %arg6[%c30, %c0_633, %c0_634] : memref<36x4x128xf32, #tpu.memory_space<vmem>>, vector<1x4x128xf32>
    %602 = vector.shape_cast %601 : vector<1x4x128xf32> to vector<4x128xf32>
    %cst_635 = arith.constant dense<0.000000e+00> : vector<1x4xf32>
    %603 = tpu.matmul %600, %602, %cst_635 {dimension_numbers = #tpu.dot_dimension_numbers<[1], [1], [0], [0], [0, 0, 1, 0], [], []>} : vector<1x128xf32>, vector<4x128xf32>, vector<1x4xf32> -> vector<1x4xf32>
    %604 = arith.addf %589, %603 : vector<1x4xf32>
    %c10_636 = arith.constant 10 : index
    %c2_637 = arith.constant 2 : index
    %c0_638 = arith.constant 0 : index
    %605 = vector.load %arg12[%c10_636, %c2_637, %c0_638] : memref<12x12x128xf32, #tpu.memory_space<vmem>>, vector<1x1x128xf32>
    %606 = vector.shape_cast %605 : vector<1x1x128xf32> to vector<1x128xf32>
    %c10_639 = arith.constant 10 : index
    %c3_640 = arith.constant 3 : index
    %c0_641 = arith.constant 0 : index
    %607 = vector.load %arg12[%c10_639, %c3_640, %c0_641] : memref<12x12x128xf32, #tpu.memory_space<vmem>>, vector<1x1x128xf32>
    %608 = vector.shape_cast %607 : vector<1x1x128xf32> to vector<1x128xf32>
    %c11_642 = arith.constant 11 : index
    %c2_643 = arith.constant 2 : index
    %c0_644 = arith.constant 0 : index
    %609 = vector.load %arg12[%c11_642, %c2_643, %c0_644] : memref<12x12x128xf32, #tpu.memory_space<vmem>>, vector<1x1x128xf32>
    %610 = vector.shape_cast %609 : vector<1x1x128xf32> to vector<1x128xf32>
    %c11_645 = arith.constant 11 : index
    %c3_646 = arith.constant 3 : index
    %c0_647 = arith.constant 0 : index
    %611 = vector.load %arg12[%c11_645, %c3_646, %c0_647] : memref<12x12x128xf32, #tpu.memory_space<vmem>>, vector<1x1x128xf32>
    %612 = vector.shape_cast %611 : vector<1x1x128xf32> to vector<1x128xf32>
    %613 = arith.maximumf %606, %608 : vector<1x128xf32>
    %614 = arith.maximumf %610, %612 : vector<1x128xf32>
    %615 = arith.maximumf %613, %614 : vector<1x128xf32>
    %c31 = arith.constant 31 : index
    %c0_648 = arith.constant 0 : index
    %c0_649 = arith.constant 0 : index
    %616 = vector.load %arg6[%c31, %c0_648, %c0_649] : memref<36x4x128xf32, #tpu.memory_space<vmem>>, vector<1x4x128xf32>
    %617 = vector.shape_cast %616 : vector<1x4x128xf32> to vector<4x128xf32>
    %cst_650 = arith.constant dense<0.000000e+00> : vector<1x4xf32>
    %618 = tpu.matmul %615, %617, %cst_650 {dimension_numbers = #tpu.dot_dimension_numbers<[1], [1], [0], [0], [0, 0, 1, 0], [], []>} : vector<1x128xf32>, vector<4x128xf32>, vector<1x4xf32> -> vector<1x4xf32>
    %619 = arith.addf %604, %618 : vector<1x4xf32>
    %c10_651 = arith.constant 10 : index
    %c4_652 = arith.constant 4 : index
    %c0_653 = arith.constant 0 : index
    %620 = vector.load %arg12[%c10_651, %c4_652, %c0_653] : memref<12x12x128xf32, #tpu.memory_space<vmem>>, vector<1x1x128xf32>
    %621 = vector.shape_cast %620 : vector<1x1x128xf32> to vector<1x128xf32>
    %c10_654 = arith.constant 10 : index
    %c5_655 = arith.constant 5 : index
    %c0_656 = arith.constant 0 : index
    %622 = vector.load %arg12[%c10_654, %c5_655, %c0_656] : memref<12x12x128xf32, #tpu.memory_space<vmem>>, vector<1x1x128xf32>
    %623 = vector.shape_cast %622 : vector<1x1x128xf32> to vector<1x128xf32>
    %c11_657 = arith.constant 11 : index
    %c4_658 = arith.constant 4 : index
    %c0_659 = arith.constant 0 : index
    %624 = vector.load %arg12[%c11_657, %c4_658, %c0_659] : memref<12x12x128xf32, #tpu.memory_space<vmem>>, vector<1x1x128xf32>
    %625 = vector.shape_cast %624 : vector<1x1x128xf32> to vector<1x128xf32>
    %c11_660 = arith.constant 11 : index
    %c5_661 = arith.constant 5 : index
    %c0_662 = arith.constant 0 : index
    %626 = vector.load %arg12[%c11_660, %c5_661, %c0_662] : memref<12x12x128xf32, #tpu.memory_space<vmem>>, vector<1x1x128xf32>
    %627 = vector.shape_cast %626 : vector<1x1x128xf32> to vector<1x128xf32>
    %628 = arith.maximumf %621, %623 : vector<1x128xf32>
    %629 = arith.maximumf %625, %627 : vector<1x128xf32>
    %630 = arith.maximumf %628, %629 : vector<1x128xf32>
    %c32 = arith.constant 32 : index
    %c0_663 = arith.constant 0 : index
    %c0_664 = arith.constant 0 : index
    %631 = vector.load %arg6[%c32, %c0_663, %c0_664] : memref<36x4x128xf32, #tpu.memory_space<vmem>>, vector<1x4x128xf32>
    %632 = vector.shape_cast %631 : vector<1x4x128xf32> to vector<4x128xf32>
    %cst_665 = arith.constant dense<0.000000e+00> : vector<1x4xf32>
    %633 = tpu.matmul %630, %632, %cst_665 {dimension_numbers = #tpu.dot_dimension_numbers<[1], [1], [0], [0], [0, 0, 1, 0], [], []>} : vector<1x128xf32>, vector<4x128xf32>, vector<1x4xf32> -> vector<1x4xf32>
    %634 = arith.addf %619, %633 : vector<1x4xf32>
    %c10_666 = arith.constant 10 : index
    %c6_667 = arith.constant 6 : index
    %c0_668 = arith.constant 0 : index
    %635 = vector.load %arg12[%c10_666, %c6_667, %c0_668] : memref<12x12x128xf32, #tpu.memory_space<vmem>>, vector<1x1x128xf32>
    %636 = vector.shape_cast %635 : vector<1x1x128xf32> to vector<1x128xf32>
    %c10_669 = arith.constant 10 : index
    %c7_670 = arith.constant 7 : index
    %c0_671 = arith.constant 0 : index
    %637 = vector.load %arg12[%c10_669, %c7_670, %c0_671] : memref<12x12x128xf32, #tpu.memory_space<vmem>>, vector<1x1x128xf32>
    %638 = vector.shape_cast %637 : vector<1x1x128xf32> to vector<1x128xf32>
    %c11_672 = arith.constant 11 : index
    %c6_673 = arith.constant 6 : index
    %c0_674 = arith.constant 0 : index
    %639 = vector.load %arg12[%c11_672, %c6_673, %c0_674] : memref<12x12x128xf32, #tpu.memory_space<vmem>>, vector<1x1x128xf32>
    %640 = vector.shape_cast %639 : vector<1x1x128xf32> to vector<1x128xf32>
    %c11_675 = arith.constant 11 : index
    %c7_676 = arith.constant 7 : index
    %c0_677 = arith.constant 0 : index
    %641 = vector.load %arg12[%c11_675, %c7_676, %c0_677] : memref<12x12x128xf32, #tpu.memory_space<vmem>>, vector<1x1x128xf32>
    %642 = vector.shape_cast %641 : vector<1x1x128xf32> to vector<1x128xf32>
    %643 = arith.maximumf %636, %638 : vector<1x128xf32>
    %644 = arith.maximumf %640, %642 : vector<1x128xf32>
    %645 = arith.maximumf %643, %644 : vector<1x128xf32>
    %c33 = arith.constant 33 : index
    %c0_678 = arith.constant 0 : index
    %c0_679 = arith.constant 0 : index
    %646 = vector.load %arg6[%c33, %c0_678, %c0_679] : memref<36x4x128xf32, #tpu.memory_space<vmem>>, vector<1x4x128xf32>
    %647 = vector.shape_cast %646 : vector<1x4x128xf32> to vector<4x128xf32>
    %cst_680 = arith.constant dense<0.000000e+00> : vector<1x4xf32>
    %648 = tpu.matmul %645, %647, %cst_680 {dimension_numbers = #tpu.dot_dimension_numbers<[1], [1], [0], [0], [0, 0, 1, 0], [], []>} : vector<1x128xf32>, vector<4x128xf32>, vector<1x4xf32> -> vector<1x4xf32>
    %649 = arith.addf %634, %648 : vector<1x4xf32>
    %c10_681 = arith.constant 10 : index
    %c8_682 = arith.constant 8 : index
    %c0_683 = arith.constant 0 : index
    %650 = vector.load %arg12[%c10_681, %c8_682, %c0_683] : memref<12x12x128xf32, #tpu.memory_space<vmem>>, vector<1x1x128xf32>
    %651 = vector.shape_cast %650 : vector<1x1x128xf32> to vector<1x128xf32>
    %c10_684 = arith.constant 10 : index
    %c9_685 = arith.constant 9 : index
    %c0_686 = arith.constant 0 : index
    %652 = vector.load %arg12[%c10_684, %c9_685, %c0_686] : memref<12x12x128xf32, #tpu.memory_space<vmem>>, vector<1x1x128xf32>
    %653 = vector.shape_cast %652 : vector<1x1x128xf32> to vector<1x128xf32>
    %c11_687 = arith.constant 11 : index
    %c8_688 = arith.constant 8 : index
    %c0_689 = arith.constant 0 : index
    %654 = vector.load %arg12[%c11_687, %c8_688, %c0_689] : memref<12x12x128xf32, #tpu.memory_space<vmem>>, vector<1x1x128xf32>
    %655 = vector.shape_cast %654 : vector<1x1x128xf32> to vector<1x128xf32>
    %c11_690 = arith.constant 11 : index
    %c9_691 = arith.constant 9 : index
    %c0_692 = arith.constant 0 : index
    %656 = vector.load %arg12[%c11_690, %c9_691, %c0_692] : memref<12x12x128xf32, #tpu.memory_space<vmem>>, vector<1x1x128xf32>
    %657 = vector.shape_cast %656 : vector<1x1x128xf32> to vector<1x128xf32>
    %658 = arith.maximumf %651, %653 : vector<1x128xf32>
    %659 = arith.maximumf %655, %657 : vector<1x128xf32>
    %660 = arith.maximumf %658, %659 : vector<1x128xf32>
    %c34 = arith.constant 34 : index
    %c0_693 = arith.constant 0 : index
    %c0_694 = arith.constant 0 : index
    %661 = vector.load %arg6[%c34, %c0_693, %c0_694] : memref<36x4x128xf32, #tpu.memory_space<vmem>>, vector<1x4x128xf32>
    %662 = vector.shape_cast %661 : vector<1x4x128xf32> to vector<4x128xf32>
    %cst_695 = arith.constant dense<0.000000e+00> : vector<1x4xf32>
    %663 = tpu.matmul %660, %662, %cst_695 {dimension_numbers = #tpu.dot_dimension_numbers<[1], [1], [0], [0], [0, 0, 1, 0], [], []>} : vector<1x128xf32>, vector<4x128xf32>, vector<1x4xf32> -> vector<1x4xf32>
    %664 = arith.addf %649, %663 : vector<1x4xf32>
    %c10_696 = arith.constant 10 : index
    %c10_697 = arith.constant 10 : index
    %c0_698 = arith.constant 0 : index
    %665 = vector.load %arg12[%c10_696, %c10_697, %c0_698] : memref<12x12x128xf32, #tpu.memory_space<vmem>>, vector<1x1x128xf32>
    %666 = vector.shape_cast %665 : vector<1x1x128xf32> to vector<1x128xf32>
    %c10_699 = arith.constant 10 : index
    %c11_700 = arith.constant 11 : index
    %c0_701 = arith.constant 0 : index
    %667 = vector.load %arg12[%c10_699, %c11_700, %c0_701] : memref<12x12x128xf32, #tpu.memory_space<vmem>>, vector<1x1x128xf32>
    %668 = vector.shape_cast %667 : vector<1x1x128xf32> to vector<1x128xf32>
    %c11_702 = arith.constant 11 : index
    %c10_703 = arith.constant 10 : index
    %c0_704 = arith.constant 0 : index
    %669 = vector.load %arg12[%c11_702, %c10_703, %c0_704] : memref<12x12x128xf32, #tpu.memory_space<vmem>>, vector<1x1x128xf32>
    %670 = vector.shape_cast %669 : vector<1x1x128xf32> to vector<1x128xf32>
    %c11_705 = arith.constant 11 : index
    %c11_706 = arith.constant 11 : index
    %c0_707 = arith.constant 0 : index
    %671 = vector.load %arg12[%c11_705, %c11_706, %c0_707] : memref<12x12x128xf32, #tpu.memory_space<vmem>>, vector<1x1x128xf32>
    %672 = vector.shape_cast %671 : vector<1x1x128xf32> to vector<1x128xf32>
    %673 = arith.maximumf %666, %668 : vector<1x128xf32>
    %674 = arith.maximumf %670, %672 : vector<1x128xf32>
    %675 = arith.maximumf %673, %674 : vector<1x128xf32>
    %c35 = arith.constant 35 : index
    %c0_708 = arith.constant 0 : index
    %c0_709 = arith.constant 0 : index
    %676 = vector.load %arg6[%c35, %c0_708, %c0_709] : memref<36x4x128xf32, #tpu.memory_space<vmem>>, vector<1x4x128xf32>
    %677 = vector.shape_cast %676 : vector<1x4x128xf32> to vector<4x128xf32>
    %cst_710 = arith.constant dense<0.000000e+00> : vector<1x4xf32>
    %678 = tpu.matmul %675, %677, %cst_710 {dimension_numbers = #tpu.dot_dimension_numbers<[1], [1], [0], [0], [0, 0, 1, 0], [], []>} : vector<1x128xf32>, vector<4x128xf32>, vector<1x4xf32> -> vector<1x4xf32>
    %679 = arith.addf %664, %678 : vector<1x4xf32>
    %c0_711 = arith.constant 0 : index
    %c0_712 = arith.constant 0 : index
    %c0_713 = arith.constant 0 : index
    %680 = vector.load %arg8[%c0_711, %c0_712, %c0_713] : memref<1x1x4xf32, #tpu.memory_space<vmem>>, vector<1x1x4xf32>
    %681 = vector.shape_cast %680 : vector<1x1x4xf32> to vector<1x4xf32>
    %682 = vector.shape_cast %679 : vector<1x4xf32> to vector<1x1x4xf32>
    tpu.vector_store %arg8[%c0_711, %c0_712, %c0_713], %682 {strides = array<i32>} : memref<1x1x4xf32, #tpu.memory_space<vmem>>, vector<1x1x4xf32>,
    return
  }
  func.func @transform_0(%arg0: i32) -> (i32, i32, i32, i32) {
    %c0_i32 = arith.constant 0 : i32
    %c0_i32_0 = arith.constant 0 : i32
    %c0_i32_1 = arith.constant 0 : i32
    %c0_i32_2 = arith.constant 0 : i32
    return %arg0, %c0_i32, %c0_i32_0, %c0_i32_1 : i32, i32, i32, i32
  }
  func.func @transform_1(%arg0: i32) -> (i32, i32, i32) {
    %c0_i32 = arith.constant 0 : i32
    %c0_i32_0 = arith.constant 0 : i32
    %c0_i32_1 = arith.constant 0 : i32
    %c0_i32_2 = arith.constant 0 : i32
    return %c0_i32, %c0_i32_0, %c0_i32_1 : i32, i32, i32
  }
  func.func @transform_2(%arg0: i32) -> (i32, i32) {
    %c0_i32 = arith.constant 0 : i32
    %c0_i32_0 = arith.constant 0 : i32
    %c0_i32_1 = arith.constant 0 : i32
    return %c0_i32, %c0_i32_0 : i32, i32
  }
  func.func @transform_3(%arg0: i32) -> (i32, i32, i32) {
    %c0_i32 = arith.constant 0 : i32
    %c0_i32_0 = arith.constant 0 : i32
    %c0_i32_1 = arith.constant 0 : i32
    %c0_i32_2 = arith.constant 0 : i32
    return %c0_i32, %c0_i32_0, %c0_i32_1 : i32, i32, i32
  }
  func.func @transform_4(%arg0: i32) -> (i32, i32) {
    %c0_i32 = arith.constant 0 : i32
    %c0_i32_0 = arith.constant 0 : i32
    %c0_i32_1 = arith.constant 0 : i32
    return %c0_i32, %c0_i32_0 : i32, i32
  }
  func.func @transform_5(%arg0: i32) -> (i32, i32, i32) {
    %c0_i32 = arith.constant 0 : i32
    %c0_i32_0 = arith.constant 0 : i32
    %c0_i32_1 = arith.constant 0 : i32
    %c0_i32_2 = arith.constant 0 : i32
    return %c0_i32, %c0_i32_0, %c0_i32_1 : i32, i32, i32
  }
  func.func @transform_6(%arg0: i32) -> (i32, i32) {
    %c0_i32 = arith.constant 0 : i32
    %c0_i32_0 = arith.constant 0 : i32
    %c0_i32_1 = arith.constant 0 : i32
    return %c0_i32, %c0_i32_0 : i32, i32
  }
  func.func @transform_7(%arg0: i32) -> (i32, i32, i32) {
    %c0_i32 = arith.constant 0 : i32
    %c0_i32_0 = arith.constant 0 : i32
    %c0_i32_1 = arith.constant 0 : i32
    return %arg0, %c0_i32, %c0_i32_0 : i32, i32, i32
  }
}

</mosaic_0001>

<bundles_post_ra>
// kernel: cnn_forward.1
= control target key start
LH: loop header
LB: loop body
LE: loop exit
PB: predicated region body
PF: predicated region fallthrough
CT: control target
= control target key end

     0   :  { %12 = vsyncpa [#allocation7], 0  ;;  %s14970_s0 = inlined_call_operand.vmem [shape: f32[2,24,24,3], index: 0, kind: input, shape index: {}]   ;;  %s14971_s1 = inlined_call_operand.vmem [shape: f32[9,3,128], index: 1, kind: input, shape index: {}]   ;;  %s14972_s2 = inlined_call_operand.vmem [shape: f32[1,128], index: 2, kind: input, shape index: {}]   ;;  %s14973_s3 = inlined_call_operand.vmem [shape: f32[9,25,128], index: 3, kind: input, shape index: {}]   ;;  %s14974_s4 = inlined_call_operand.vmem [shape: f32[1,128], index: 4, kind: input, shape index: {}]   ;;  %s14975_s5 = inlined_call_operand.vmem [shape: f32[36,4,128], index: 5, kind: input, shape index: {}]   ;;  %s14976_s6 = inlined_call_operand.vmem [shape: f32[1,4], index: 6, kind: input, shape index: {}]   ;;  %s14977_s7 = inlined_call_operand.hbm [shape: f32[2,1,4], index: 7, kind: output, shape index: {}]  }
   0x1   :  { %14 = vsyncpa [#allocation7 + $0x1], 0  ;;  %s11030_s24 = smov 0   ;;  %s11032_s25 = smov 0  }
   0x2   :  { %s11034_s26 = smov 0   ;;  %s11036_s27 = smov 0  }
   0x3 LB: > { %s11051_s28 = sadd.s32 4294967295, %s10987_s27   ;;  %s9951_s29 = sadd.s32 4294967294, %s10987_s27   ;;  %s10987_s27 = sphi %s11036_s27, %s15261_s27   ;;  %s10983_s26 = sphi %s11034_s26, %s15260_s26   ;;  %s10979_s25 = sphi %s11032_s25, %s15259_s25   ;;  %s10975_s24 = sphi %s11030_s24, %s15258_s24  }
   0x4   : > { %s11055_s30 = sadd.s32 1, %s10987_s27   ;;  %s179_s8 = sadd.s32 1, %s10983_s26 }
   0x5   : > { %s176_s9 = ssub.s32 %s10987_s27, %s11055_s30  ;;  %p189_p0 = scmp.ne.s32.totalorder %s10983_s26, %s10979_s25 }
   0x6   : > { %p177_p1 = scmp.eq.s32.totalorder %s176_s9, 0  ;;  %p190_p2 = scmp.eq.s32.totalorder %s11051_s28, 1 }
   0x7   : > { %p195_p3 = scmp.ne.s32.totalorder %s10979_s25, %s10975_s24  ;;  %p196_p4 = scmp.eq.s32.totalorder %s9951_s29, 1 }
   0x8   : > { %s11066_s10 = scalar_select %p177_p1, %s10983_s26, %s179_s8  }
   0x9   : > { %p11068_p5 = por %p190_p2, %p189_p0  ;;  %p11072_p6 = por %p196_p4, %p195_p3 }
   0xa   : > { %p9954_p7 = scmp.ge.s32.totalorder %s10987_s27, 1  ;;  %p240_p8 = scmp.lt.s32.totalorder %s10987_s27, 3 }
   0xc   : > { %p241_p9 = pnand %p9954_p7, %p240_p8 }
   0xe   : > { %244 = sbr.rel (%p241_p9) target bundleno = 2749 (0xabd), region = 48 }
  0x13   : > { %v9956_v0 = vld [vmem:[%s14971_s1 + $0x4] sm:$0x7]  ;;  %vm890_vm0 = vcmask 1042432   ;;  %vm276_vm1 = vcmask 23552   ;;  %v10989_v1 = vmov 0.0   ;;  %p271_p10 = scmp.lt.s32.totalorder %s11051_s28, 1  ;;  %s9845_s13 = scalar_lea.hbm %s14977_s7, %s11051_s28 }
  0x14   : > { %9957 = vmatpush.msk.msra.mxu0 %vm890_vm0, %v9956_v0  ;;  %277 = vst.msk [vmem:[#allocation2] sm:$0xff] %vm276_vm1, %v10989_v1  ;;  %10861 = vmatpush.msk.msra.mxu1 %vm890_vm0, %v9956_v0  ;;  %v10251_v3 = vld [vmem:[%s14971_s1 + $0x10] sm:$0x7]  ;;  %vm280_vm2 = vcmask 17408   ;;  %v599_v8 = vld [vmem:[%s14971_s1] sm:$0x7] }
  0x15   : > { %278 = vst.msk [vmem:[#allocation2 + $0x8] sm:$0xff] %vm276_vm1, %v10989_v1  ;;  %10862 = vmatpush.msk.msra.mxu2 %vm890_vm0, %v9956_v0  ;;  %s272_s17 = scalar_select %p271_p10, %s11051_s28, 1  ;;  %v10103_v9 = vld [vmem:[%s14971_s1 + $0x8] sm:$0x7]  ;;  %v10177_v10 = vld [vmem:[%s14971_s1 + $0xc] sm:$0x7] }
  0x16   : > { %279 = vst.msk [vmem:[#allocation2 + $0x10] sm:$0xff] %vm276_vm1, %v10989_v1  ;;  %10252 = vmatpush.msk.msrb.mxu0 %vm890_vm0, %v10251_v3  ;;  %10030 = vmatpush.msk.msrb.mxu1 %vm890_vm0, %v599_v8  ;;  %vm6529_vm3 = vcmask 1040384   ;;  %vm6492_vm4 = vcmask 203776   ;;  %s269_s29 = sand.u32 1, %s10979_s25   ;;  %s9849_s16 = sshll.u32 %s9845_s13, 4  ;;  %vm9834_vm5 = vcmask 24576   ;;  %s9850_s16 = int_to_ptr.hbm [resolvable:$true] %s9849_s16 }
  0x17   : > { %282 = vst.msk [vmem:[#allocation2 + $0x20] sm:$0xff] %vm276_vm1, %v10989_v1  ;;  %s10863_s18 = smul.u32 576, %s272_s17  ;;  %10104 = vmatpush.msk.msrb.mxu2 %vm890_vm0, %v10103_v9  ;;  %10178 = vmatpush.msk.msra.mxu3 %vm890_vm0, %v10177_v10  ;;  %s270_s14 = scalar_lea.vmem [#allocation6], %s269_s29 }
  0x18   : > { %283 = vst.msk [vmem:[#allocation2 + $0x28] sm:$0xff] %vm276_vm1, %v10989_v1  ;;  %s9847_s15 = sshll.u32 %s270_s14, 4  ;;  %s9837_s17 = scalar_lea.sflag [#allocation7], %s269_s29  ;;  %s9848_s15 = int_to_ptr.vmem [resolvable:$true] %s9847_s15 }
  0x19   : > { %284 = vst.msk [vmem:[#allocation2 + $0x30] sm:$0xff] %vm276_vm1, %v10989_v1  ;;  %s11274_s21 = scalar_lea.vmem %s14970_s0, %s10863_s18  ;;  %s10939_s18 = sshra.s32 %s9850_s16, 4  ;;  %s10940_s18 = int_to_ptr.hbm [resolvable:$true] %s10939_s18 }
  0x1a   : > { %286 = vst.msk [vmem:[#allocation2 + $0x40] sm:$0xff] %vm276_vm1, %v10989_v1  ;;  %v447_v4 = vld [vmem:[%s11274_s21 + $0x208] sm:$0xff]  ;;  %v449_v11 = vld [vmem:[%s11274_s21 + $0x218] sm:$0xff]  ;;  %v448_v12 = vld [vmem:[%s11274_s21 + $0x210] sm:$0xff]  ;;  %s10941_s19 = scalar_lea.hbm %s10940_s18, 1  ;;  %s10945_s22 = scalar_lea.hbm %s14977_s7, 2 }
  0x1b   : > { %287 = vst.msk [vmem:[#allocation2 + $0x48] sm:$0xff] %vm276_vm1, %v10989_v1  ;;  %v450_v13 = vld [vmem:[%s11274_s21 + $0x220] sm:$0xff]  ;;  %v383_v15 = vld [vmem:[%s11274_s21 + $0x8] sm:$0xff]  ;;  %v384_v16 = vld [vmem:[%s11274_s21 + $0x10] sm:$0xff]  ;;  %p10942_p11 = scmp.ne.s32.totalorder %s10940_s18, %s10941_s19  ;;  %p10946_p0 = scmp.lt.s32.totalorder %s10940_s18, %s14977_s7 }
  0x1c   : > { %v600_v2 = vld [vmem:[#allocation2 + $0x1] sm:$0xff]  ;;  %288 = vst.msk [vmem:[#allocation2 + $0x50] sm:$0xff] %vm276_vm1, %v10989_v1  ;;  %v382_v14 = vld [vmem:[%s11274_s21] sm:$0xff]  ;;  %v385_v19 = vld [vmem:[%s11274_s21 + $0x18] sm:$0xff]  ;;  %p10947_p1 = scmp.lt.s32.totalorder %s10945_s22, %s10941_s19 }
  0x1d   : > { %9958 = vmatmul.msk.f32.vlgmr.msra.gmra.mxu0 %vm276_vm1, %v600_v2  ;;  %290 = vst.msk [vmem:[#allocation2 + $0x60] sm:$0xff] %vm276_vm1, %v10989_v1  ;;  %v601_v5 = vld [vmem:[#allocation2 + $0x9] sm:$0xff]  ;;  %v527_v23 = vld [vmem:[#allocation2] sm:$0xff]  ;;  %v386_v26 = vld [vmem:[%s11274_s21 + $0x20] sm:$0xff]  ;;  %p10943_p12 = pnand %p10942_p11, %p11068_p5 }
  0x1e   : > { %291 = vst.msk [vmem:[#allocation2 + $0x68] sm:$0xff] %vm276_vm1, %v10989_v1  ;;  %v1579_v27 = vld [vmem:[#allocation2 + $0x2] sm:$0xff]  ;;  %v1580_v32 = vld [vmem:[#allocation2 + $0xa] sm:$0xff]  ;;  %v390_v44 = vld [vmem:[%s11274_s21 + $0x40] sm:$0xff]  ;;  %p10948_p2 = por %p10947_p1, %p10946_p0 }
  0x1f   : > { %292 = vst.msk [vmem:[#allocation2 + $0x70] sm:$0xff] %vm276_vm1, %v10989_v1  ;;  %v528_v28 = vld [vmem:[#allocation2 + $0x8] sm:$0xff]  ;;  %v387_v31 = vld [vmem:[%s11274_s21 + $0x28] sm:$0xff]  ;;  %v529_v33 = vld [vmem:[#allocation2 + $0x10] sm:$0xff]  ;;  %p10944_p13 = pneg %p10943_p12 }
  0x20   : > { %294 = vst.msk [vmem:[#allocation2 + $0x80] sm:$0xff] %vm276_vm1, %v10989_v1  ;;  %v388_v36 = vld [vmem:[%s11274_s21 + $0x30] sm:$0xff]  ;;  %v389_v40 = vld [vmem:[%s11274_s21 + $0x38] sm:$0xff]  ;;  %v391_v48 = vld [vmem:[%s11274_s21 + $0x48] sm:$0xff] }
  0x21   : > { %295 = vst.msk [vmem:[#allocation2 + $0x88] sm:$0xff] %vm276_vm1, %v10989_v1  ;;  %v392_v52 = vld [vmem:[%s11274_s21 + $0x50] sm:$0xff]  ;;  %v393_v56 = vld [vmem:[%s11274_s21 + $0x58] sm:$0xff]  ;;  %v394_v60 = vld [vmem:[%s11274_s21 + $0x60] sm:$0xff]  ;;  %p10949_p3 = pnand %p10948_p2, %p10944_p13 }
  0x22   : > { %296 = vst.msk [vmem:[#allocation2 + $0x90] sm:$0xff] %vm276_vm1, %v10989_v1  ;;  %v395_v0 = vld [vmem:[%s11274_s21 + $0x68] sm:$0xff]  ;;  %v397_v8 = vld [vmem:[%s11274_s21 + $0x78] sm:$0xff] }
  0x23   : > { %298 = vst.msk [vmem:[#allocation2 + $0xa0] sm:$0xff] %vm276_vm1, %v10989_v1 }
  0x24   : > { %299 = vst.msk [vmem:[#allocation2 + $0xa8] sm:$0xff] %vm276_vm1, %v10989_v1 }
  0x25   : > { %300 = vst.msk [vmem:[#allocation2 + $0xb0] sm:$0xff] %vm276_vm1, %v10989_v1  ;;  %9959 = vmatmul.msk.f32.gmra.mxu0 %vm276_vm1, %v601_v5 }
  0x26   : > { %302 = vst.msk [vmem:[#allocation2 + $0xc0] sm:$0xff] %vm276_vm1, %v10989_v1 }
  0x27   : > { %303 = vst.msk [vmem:[#allocation2 + $0xc8] sm:$0xff] %vm276_vm1, %v10989_v1 }
  0x28   : > { %304 = vst.msk [vmem:[#allocation2 + $0xd0] sm:$0xff] %vm276_vm1, %v10989_v1 }
  0x29   : > { %306 = vst.msk [vmem:[#allocation2 + $0xe0] sm:$0xff] %vm276_vm1, %v10989_v1 }
  0x2a   : > { %307 = vst.msk [vmem:[#allocation2 + $0xe8] sm:$0xff] %vm276_vm1, %v10989_v1 }
  0x2b   : > { %308 = vst.msk [vmem:[#allocation2 + $0xf0] sm:$0xff] %vm276_vm1, %v10989_v1 }
  0x2c   : > { %310 = vst.msk [vmem:[#allocation2 + $0x100] sm:$0xff] %vm276_vm1, %v10989_v1 }
  0x2d   : > { %311 = vst.msk [vmem:[#allocation2 + $0x108] sm:$0xff] %vm276_vm1, %v10989_v1 }
  0x2e   : > { %312 = vst.msk [vmem:[#allocation2 + $0x110] sm:$0xff] %vm276_vm1, %v10989_v1 }
  0x2f   : > { %314 = vst.msk [vmem:[#allocation2 + $0x120] sm:$0xff] %vm276_vm1, %v10989_v1 }
  0x30   : > { %315 = vst.msk [vmem:[#allocation2 + $0x128] sm:$0xff] %vm276_vm1, %v10989_v1 }
  0x31   : > { %316 = vst.msk [vmem:[#allocation2 + $0x130] sm:$0xff] %vm276_vm1, %v10989_v1 }
  0x32   : > { %318 = vst.msk [vmem:[#allocation2 + $0x140] sm:$0xff] %vm276_vm1, %v10989_v1 }
  0x33   : > { %319 = vst.msk [vmem:[#allocation2 + $0x148] sm:$0xff] %vm276_vm1, %v10989_v1 }
  0x34   : > { %320 = vst.msk [vmem:[#allocation2 + $0x150] sm:$0xff] %vm276_vm1, %v10989_v1 }
  0x35   : > { %322 = vst.msk [vmem:[#allocation2 + $0x160] sm:$0xff] %vm276_vm1, %v10989_v1 }
  0x36   : > { %323 = vst.msk [vmem:[#allocation2 + $0x168] sm:$0xff] %vm276_vm1, %v10989_v1 }
  0x37   : > { %324 = vst.msk [vmem:[#allocation2 + $0x170] sm:$0xff] %vm276_vm1, %v10989_v1 }
  0x38   : > { %326 = vst.msk [vmem:[#allocation2 + $0x180] sm:$0xff] %vm276_vm1, %v10989_v1 }
  0x39   : > { %327 = vst.msk [vmem:[#allocation2 + $0x188] sm:$0xff] %vm276_vm1, %v10989_v1 }
  0x3a   : > { %328 = vst.msk [vmem:[#allocation2 + $0x190] sm:$0xff] %vm276_vm1, %v10989_v1 }
  0x3b   : > { %330 = vst.msk [vmem:[#allocation2 + $0x1a0] sm:$0xff] %vm276_vm1, %v10989_v1 }
  0x3c   : > { %331 = vst.msk [vmem:[#allocation2 + $0x1a8] sm:$0xff] %vm276_vm1, %v10989_v1 }
  0x3d   : > { %332 = vst.msk [vmem:[#allocation2 + $0x1b0] sm:$0xff] %vm276_vm1, %v10989_v1 }
  0x3e   : > { %334 = vst.msk [vmem:[#allocation2 + $0x1c0] sm:$0xff] %vm276_vm1, %v10989_v1 }
  0x3f   : > { %335 = vst.msk [vmem:[#allocation2 + $0x1c8] sm:$0xff] %vm276_vm1, %v10989_v1 }
  0x40   : > { %336 = vst.msk [vmem:[#allocation2 + $0x1d0] sm:$0xff] %vm276_vm1, %v10989_v1 }
  0x41   : > { %338 = vst.msk [vmem:[#allocation2 + $0x1e0] sm:$0xff] %vm276_vm1, %v10989_v1 }
  0x42   : > { %339 = vst.msk [vmem:[#allocation2 + $0x1e8] sm:$0xff] %vm276_vm1, %v10989_v1 }
  0x43   : > { %340 = vst.msk [vmem:[#allocation2 + $0x1f0] sm:$0xff] %vm276_vm1, %v10989_v1 }
  0x44   : > { %342 = vst.msk [vmem:[#allocation2 + $0x200] sm:$0xff] %vm276_vm1, %v10989_v1 }
  0x45   : > { %343 = vst.msk [vmem:[#allocation2 + $0x208] sm:$0xff] %vm276_vm1, %v10989_v1 }
  0x46   : > { %344 = vst.msk [vmem:[#allocation2 + $0x210] sm:$0xff] %vm276_vm1, %v10989_v1 }
  0x47   : > { %346 = vst.msk [vmem:[#allocation2 + $0x220] sm:$0xff] %vm276_vm1, %v10989_v1 }
  0x48   : > { %347 = vst.msk [vmem:[#allocation2 + $0x228] sm:$0xff] %vm276_vm1, %v10989_v1 }
  0x49   : > { %348 = vst.msk [vmem:[#allocation2 + $0x230] sm:$0xff] %vm276_vm1, %v10989_v1 }
  0x4a   : > { %350 = vst.msk [vmem:[#allocation2 + $0x240] sm:$0xff] %vm276_vm1, %v10989_v1 }
  0x4b   : > { %351 = vst.msk [vmem:[#allocation2 + $0x248] sm:$0xff] %vm276_vm1, %v10989_v1 }
  0x4c   : > { %352 = vst.msk [vmem:[#allocation2 + $0x250] sm:$0xff] %vm276_vm1, %v10989_v1 }
  0x4d   : > { %354 = vst.msk [vmem:[#allocation2 + $0x260] sm:$0xff] %vm276_vm1, %v10989_v1 }
  0x4e   : > { %355 = vst.msk [vmem:[#allocation2 + $0x268] sm:$0xff] %vm276_vm1, %v10989_v1 }
  0x4f   : > { %356 = vst.msk [vmem:[#allocation2 + $0x270] sm:$0xff] %vm276_vm1, %v10989_v1 }
  0x50   : > { %358 = vst.msk [vmem:[#allocation2 + $0x280] sm:$0xff] %vm276_vm1, %v10989_v1 }
  0x51   : > { %359 = vst.msk [vmem:[#allocation2 + $0x288] sm:$0xff] %vm276_vm1, %v10989_v1 }
  0x52   : > { %360 = vst.msk [vmem:[#allocation2 + $0x290] sm:$0xff] %vm276_vm1, %v10989_v1 }
  0x53   : > { %362 = vst.msk [vmem:[#allocation2 + $0x2a0] sm:$0xff] %vm276_vm1, %v10989_v1 }
  0x54   : > { %363 = vst.msk [vmem:[#allocation2 + $0x2a8] sm:$0xff] %vm276_vm1, %v10989_v1 }
  0x55   : > { %364 = vst.msk [vmem:[#allocation2 + $0x2b0] sm:$0xff] %vm276_vm1, %v10989_v1 }
  0x56   : > { %366 = vst.msk [vmem:[#allocation2 + $0x2c0] sm:$0xff] %vm276_vm1, %v10989_v1 }
  0x57   : > { %367 = vst.msk [vmem:[#allocation2 + $0x2c8] sm:$0xff] %vm276_vm1, %v10989_v1 }
  0x58   : > { %368 = vst.msk [vmem:[#allocation2 + $0x2d0] sm:$0xff] %vm276_vm1, %v10989_v1 }
  0x59   : > { %370 = vst.msk [vmem:[#allocation2 + $0x2e0] sm:$0xff] %vm276_vm1, %v10989_v1 }
  0x5a   : > { %371 = vst.msk [vmem:[#allocation2 + $0x2e8] sm:$0xff] %vm276_vm1, %v10989_v1 }
  0x5b   : > { %372 = vst.msk [vmem:[#allocation2 + $0x2f0] sm:$0xff] %vm276_vm1, %v10989_v1 }
  0x5c   : > { %374 = vst.msk [vmem:[#allocation2 + $0x300] sm:$0xff] %vm276_vm1, %v10989_v1 }
  0x5d   : > { %375 = vst.msk [vmem:[#allocation2 + $0x308] sm:$0xff] %vm276_vm1, %v10989_v1 }
  0x5e   : > { %376 = vst.msk [vmem:[#allocation2 + $0x310] sm:$0xff] %vm276_vm1, %v10989_v1 }
  0x5f   : > { %378 = vst.msk [vmem:[#allocation2 + $0x320] sm:$0xff] %vm276_vm1, %v10989_v1 }
  0x60   : > { %379 = vst.msk [vmem:[#allocation2 + $0x328] sm:$0xff] %vm276_vm1, %v10989_v1 }
  0x61   : > { %380 = vst.msk [vmem:[#allocation2 + $0x330] sm:$0xff] %vm276_vm1, %v10989_v1 }
  0x62   : > { %5986 = vst [vmem:[#allocation4] sm:$0xff] %v10989_v1 }
  0x63   : > { %5987 = vst [vmem:[#allocation4 + $0x8] sm:$0x3f] %v10989_v1 }
  0x64   : > { %5988 = vst [vmem:[#allocation4 + $0x10] sm:$0xff] %v10989_v1 }
  0x65   : > { %5989 = vst [vmem:[#allocation4 + $0x18] sm:$0x3f] %v10989_v1 }
  0x66   : > { %5990 = vst [vmem:[#allocation4 + $0x20] sm:$0xff] %v10989_v1 }
  0x67   : > { %5991 = vst [vmem:[#allocation4 + $0x28] sm:$0x3f] %v10989_v1 }
  0x68   : > { %5992 = vst [vmem:[#allocation4 + $0x30] sm:$0xff] %v10989_v1 }
  0x69   : > { %5993 = vst [vmem:[#allocation4 + $0x38] sm:$0x3f] %v10989_v1 }
  0x6a   : > { %5994 = vst [vmem:[#allocation4 + $0x40] sm:$0xff] %v10989_v1 }
  0x6b   : > { %5995 = vst [vmem:[#allocation4 + $0x48] sm:$0x3f] %v10989_v1 }
  0x6c   : > { %5996 = vst [vmem:[#allocation4 + $0x50] sm:$0xff] %v10989_v1 }
  0x6d   : > { %5997 = vst [vmem:[#allocation4 + $0x58] sm:$0x3f] %v10989_v1 }
  0x6e   : > { %5998 = vst [vmem:[#allocation4 + $0x60] sm:$0xff] %v10989_v1 }
  0x6f   : > { %5999 = vst [vmem:[#allocation4 + $0x68] sm:$0x3f] %v10989_v1 }
  0x70   : > { %6000 = vst [vmem:[#allocation4 + $0x70] sm:$0xff] %v10989_v1 }
  0x71   : > { %6001 = vst [vmem:[#allocation4 + $0x78] sm:$0x3f] %v10989_v1 }
  0x72   : > { %6002 = vst [vmem:[#allocation4 + $0x80] sm:$0xff] %v10989_v1 }
  0x73   : > { %6003 = vst [vmem:[#allocation4 + $0x88] sm:$0x3f] %v10989_v1 }
  0x74   : > { %6004 = vst [vmem:[#allocation4 + $0x90] sm:$0xff] %v10989_v1 }
  0x75   : > { %6005 = vst [vmem:[#allocation4 + $0x98] sm:$0x3f] %v10989_v1 }
  0x76   : > { %6006 = vst [vmem:[#allocation4 + $0xa0] sm:$0xff] %v10989_v1 }
  0x77   : > { %6007 = vst [vmem:[#allocation4 + $0xa8] sm:$0x3f] %v10989_v1 }
  0x78   : > { %6008 = vst [vmem:[#allocation4 + $0xb0] sm:$0xff] %v10989_v1 }
  0x79   : > { %6009 = vst [vmem:[#allocation4 + $0xb8] sm:$0x3f] %v10989_v1 }
  0x7a   : > { %6010 = vst [vmem:[#allocation4 + $0xc0] sm:$0xff] %v10989_v1 }
  0x7b   : > { %6011 = vst [vmem:[#allocation4 + $0xc8] sm:$0x3f] %v10989_v1 }
  0x7c   : > { %6012 = vst [vmem:[#allocation4 + $0xd0] sm:$0xff] %v10989_v1 }
  0x7d   : > { %6013 = vst [vmem:[#allocation4 + $0xd8] sm:$0x3f] %v10989_v1 }
  0x7e   : > { %369 = vst.msk [vmem:[#allocation2 + $0x2d8] sm:$0x3] %vm280_vm2, %v10989_v1 }
  0x7f   : > { %520 = vst.msk [vmem:[#allocation2 + $0x2d1] sm:$0xff] %vm276_vm1, %v447_v4  ;;  %v396_v4 = vld [vmem:[%s11274_s21 + $0x70] sm:$0xff] }
  0x80   : > { %281 = vst.msk [vmem:[#allocation2 + $0x18] sm:$0x3] %vm280_vm2, %v10989_v1 }
  0x81   : > { %285 = vst.msk [vmem:[#allocation2 + $0x38] sm:$0x3] %vm280_vm2, %v10989_v1 }
  0x82   : > { %289 = vst.msk [vmem:[#allocation2 + $0x58] sm:$0x3] %vm280_vm2, %v10989_v1 }
  0x83   : > { %293 = vst.msk [vmem:[#allocation2 + $0x78] sm:$0x3] %vm280_vm2, %v10989_v1 }
  0x84   : > { %297 = vst.msk [vmem:[#allocation2 + $0x98] sm:$0x3] %vm280_vm2, %v10989_v1 }
  0x85   : > { %301 = vst.msk [vmem:[#allocation2 + $0xb8] sm:$0x3] %vm280_vm2, %v10989_v1 }
  0x86   : > { %v668_v6 = vld [vmem:[#allocation2 + $0x2d1] sm:$0xff]  ;;  %305 = vst.msk [vmem:[#allocation2 + $0xd8] sm:$0x3] %vm280_vm2, %v10989_v1 }
  0x87   : > { %10026 = vmatmul.msk.f32.vlgmr.msra.gmra.mxu1 %vm276_vm1, %v668_v6  ;;  %309 = vst.msk [vmem:[#allocation2 + $0xf8] sm:$0x3] %vm280_vm2, %v10989_v1  ;;  %v602_v7 = vld [vmem:[#allocation2 + $0x11] sm:$0xff] }
  0x88   : > { %313 = vst.msk [vmem:[#allocation2 + $0x118] sm:$0x3] %vm280_vm2, %v10989_v1  ;;  %9960 = vmatmul.msk.f32.gmra.mxu0 %vm276_vm1, %v602_v7  ;;  %v1581_v37 = vld [vmem:[#allocation2 + $0x12] sm:$0xff] }
  0x89   : > { %317 = vst.msk [vmem:[#allocation2 + $0x138] sm:$0x3] %vm280_vm2, %v10989_v1 }
  0x8a   : > { %321 = vst.msk [vmem:[#allocation2 + $0x158] sm:$0x3] %vm280_vm2, %v10989_v1 }
  0x8b   : > { %325 = vst.msk [vmem:[#allocation2 + $0x178] sm:$0x3] %vm280_vm2, %v10989_v1 }
  0x8c   : > { %329 = vst.msk [vmem:[#allocation2 + $0x198] sm:$0x3] %vm280_vm2, %v10989_v1 }
  0x8d   : > { %333 = vst.msk [vmem:[#allocation2 + $0x1b8] sm:$0x3] %vm280_vm2, %v10989_v1 }
  0x8e   : > { %337 = vst.msk [vmem:[#allocation2 + $0x1d8] sm:$0x3] %vm280_vm2, %v10989_v1 }
  0x8f   : > { %341 = vst.msk [vmem:[#allocation2 + $0x1f8] sm:$0x3] %vm280_vm2, %v10989_v1 }
  0x90   : > { %345 = vst.msk [vmem:[#allocation2 + $0x218] sm:$0x3] %vm280_vm2, %v10989_v1 }
  0x91   : > { %349 = vst.msk [vmem:[#allocation2 + $0x238] sm:$0x3] %vm280_vm2, %v10989_v1 }
  0x92   : > { %353 = vst.msk [vmem:[#allocation2 + $0x258] sm:$0x3] %vm280_vm2, %v10989_v1 }
  0x93   : > { %357 = vst.msk [vmem:[#allocation2 + $0x278] sm:$0x3] %vm280_vm2, %v10989_v1 }
  0x94   : > { %361 = vst.msk [vmem:[#allocation2 + $0x298] sm:$0x3] %vm280_vm2, %v10989_v1 }
  0x95   : > { %365 = vst.msk [vmem:[#allocation2 + $0x2b8] sm:$0x3] %vm280_vm2, %v10989_v1 }
  0x96   : > { %373 = vst.msk [vmem:[#allocation2 + $0x2f8] sm:$0x3] %vm280_vm2, %v10989_v1 }
  0x97   : > { %377 = vst.msk [vmem:[#allocation2 + $0x318] sm:$0x3] %vm280_vm2, %v10989_v1 }
  0x98   : > { %381 = vst.msk [vmem:[#allocation2 + $0x338] sm:$0x3] %vm280_vm2, %v10989_v1 }
  0x99   : > { %522 = vst.msk [vmem:[#allocation2 + $0x2e9] sm:$0xff] %vm276_vm1, %v449_v11 }
  0x9a   : > { %521 = vst.msk [vmem:[#allocation2 + $0x2e1] sm:$0xff] %vm276_vm1, %v448_v12  ;;  %v11437_v9 = vpop.f32.mrf.mxu0 }
  0x9b   : > { %523 = vst.msk [vmem:[#allocation2 + $0x2f1] sm:$0xff] %vm276_vm1, %v450_v13  ;;  %v398_v13 = vld [vmem:[%s11274_s21 + $0x80] sm:$0xff] }
  0x9c   : > { %455 = vst.msk [vmem:[#allocation2 + $0x21] sm:$0xff] %vm276_vm1, %v382_v14 }
  0x9d   : > { %456 = vst.msk [vmem:[#allocation2 + $0x29] sm:$0xff] %vm276_vm1, %v383_v15 }
  0x9e   : > { %457 = vst.msk [vmem:[#allocation2 + $0x31] sm:$0xff] %vm276_vm1, %v384_v16 }
  0x9f   : > { %458 = vst.msk [vmem:[#allocation2 + $0x41] sm:$0xff] %vm276_vm1, %v385_v19 }
  0xa0   : > { %v670_v17 = vld [vmem:[#allocation2 + $0x2e9] sm:$0xff]  ;;  %459 = vst.msk [vmem:[#allocation2 + $0x49] sm:$0xff] %vm276_vm1, %v386_v26 }
  0xa1   : > { %10028 = vmatmul.msk.f32.vlgmr.msra.gmra.mxu2 %vm276_vm1, %v670_v17  ;;  %v669_v18 = vld [vmem:[#allocation2 + $0x2e1] sm:$0xff]  ;;  %460 = vst.msk [vmem:[#allocation2 + $0x51] sm:$0xff] %vm276_vm1, %v387_v31 }
  0xa2   : > { %10027 = vmatmul.msk.f32.gmra.mxu1 %vm276_vm1, %v669_v18  ;;  %v671_v22 = vld [vmem:[#allocation2 + $0x2f1] sm:$0xff]  ;;  %461 = vst.msk [vmem:[#allocation2 + $0x61] sm:$0xff] %vm276_vm1, %v388_v36  ;;  %v11447_v14 = vpop.f32.mrf.mxu0  ;;  %v399_v18 = vld [vmem:[%s11274_s21 + $0x88] sm:$0xff] }
  0xa3   : > { %v603_v20 = vld [vmem:[#allocation2 + $0x21] sm:$0xff]  ;;  %462 = vst.msk [vmem:[#allocation2 + $0x69] sm:$0xff] %vm276_vm1, %v389_v40 }
  0xa4   : > { %v2177_v21 = vld [vmem:[#allocation2 + $0x20] sm:$0xff]  ;;  %9961 = vmatmul.msk.f32.gmra.mxu0 %vm276_vm1, %v603_v20  ;;  %v604_v24 = vld [vmem:[#allocation2 + $0x29] sm:$0xff]  ;;  %463 = vst.msk [vmem:[#allocation2 + $0x71] sm:$0xff] %vm276_vm1, %v390_v44 }
  0xa5   : > { %10179 = vmatmul.msk.f32.vlgmr.msra.gmra.mxu3 %vm276_vm1, %v2177_v21  ;;  %v2178_v25 = vld [vmem:[#allocation2 + $0x28] sm:$0xff]  ;;  %v605_v29 = vld [vmem:[#allocation2 + $0x31] sm:$0xff]  ;;  %464 = vst.msk [vmem:[#allocation2 + $0x81] sm:$0xff] %vm276_vm1, %v391_v48 }
  0xa6   : > { %v2179_v30 = vld [vmem:[#allocation2 + $0x30] sm:$0xff]  ;;  %v606_v34 = vld [vmem:[#allocation2 + $0x41] sm:$0xff]  ;;  %465 = vst.msk [vmem:[#allocation2 + $0x89] sm:$0xff] %vm276_vm1, %v392_v52 }
  0xa7   : > { %v2180_v35 = vld [vmem:[#allocation2 + $0x40] sm:$0xff]  ;;  %v607_v38 = vld [vmem:[#allocation2 + $0x49] sm:$0xff]  ;;  %v1584_v49 = vld [vmem:[#allocation2 + $0x32] sm:$0xff]  ;;  %466 = vst.msk [vmem:[#allocation2 + $0x91] sm:$0xff] %vm276_vm1, %v393_v56 }
  0xa8   : > { %v2181_v39 = vld [vmem:[#allocation2 + $0x48] sm:$0xff]  ;;  %v608_v42 = vld [vmem:[#allocation2 + $0x51] sm:$0xff]  ;;  %467 = vst.msk [vmem:[#allocation2 + $0xa1] sm:$0xff] %vm276_vm1, %v394_v60 }
  0xa9   : > { %10029 = vmatmul.msk.f32.gmra.mxu2 %vm276_vm1, %v671_v22  ;;  %v1582_v41 = vld [vmem:[#allocation2 + $0x22] sm:$0xff]  ;;  %v2182_v43 = vld [vmem:[#allocation2 + $0x50] sm:$0xff]  ;;  %468 = vst.msk [vmem:[#allocation2 + $0xa9] sm:$0xff] %vm276_vm1, %v395_v0 }
  0xaa   : > { %10031 = vmatmul.msk.f32.vlgmr.msrb.gmra.mxu1 %vm276_vm1, %v527_v23  ;;  %v1583_v45 = vld [vmem:[#allocation2 + $0x2a] sm:$0xff]  ;;  %v609_v46 = vld [vmem:[#allocation2 + $0x61] sm:$0xff]  ;;  %v1587_v61 = vld [vmem:[#allocation2 + $0x52] sm:$0xff]  ;;  %469 = vst.msk [vmem:[#allocation2 + $0xb1] sm:$0xff] %vm276_vm1, %v396_v4 }
  0xab   : > { %v2183_v47 = vld [vmem:[#allocation2 + $0x60] sm:$0xff]  ;;  %v610_v50 = vld [vmem:[#allocation2 + $0x69] sm:$0xff]  ;;  %v611_v54 = vld [vmem:[#allocation2 + $0x71] sm:$0xff]  ;;  %470 = vst.msk [vmem:[#allocation2 + $0xc1] sm:$0xff] %vm276_vm1, %v397_v8 }
  0xac   : > { %9962 = vmatmul.msk.f32.gmra.mxu0 %vm276_vm1, %v604_v24  ;;  %v2184_v51 = vld [vmem:[#allocation2 + $0x68] sm:$0xff]  ;;  %v2185_v55 = vld [vmem:[#allocation2 + $0x70] sm:$0xff]  ;;  %v2186_v59 = vld [vmem:[#allocation2 + $0x80] sm:$0xff]  ;;  %471 = vst.msk [vmem:[#allocation2 + $0xc9] sm:$0xff] %vm276_vm1, %v398_v13 }
  0xad   : > { %10180 = vmatmul.msk.f32.gmra.mxu3 %vm276_vm1, %v2178_v25  ;;  %v1585_v53 = vld [vmem:[#allocation2 + $0x42] sm:$0xff]  ;;  %v1586_v57 = vld [vmem:[#allocation2 + $0x4a] sm:$0xff]  ;;  %v1590_v10 = vld [vmem:[#allocation2 + $0x72] sm:$0xff]  ;;  %472 = vst.msk [vmem:[#allocation2 + $0xd1] sm:$0xff] %vm276_vm1, %v399_v18 }
  0xae   : > { %v612_v58 = vld [vmem:[#allocation2 + $0x81] sm:$0xff]  ;;  %v613_v62 = vld [vmem:[#allocation2 + $0x89] sm:$0xff]  ;;  %v614_v2 = vld [vmem:[#allocation2 + $0x91] sm:$0xff] }
  0xaf   : > { %v2187_v63 = vld [vmem:[#allocation2 + $0x88] sm:$0xff]  ;;  %v2188_v3 = vld [vmem:[#allocation2 + $0x90] sm:$0xff]  ;;  %v2189_v7 = vld [vmem:[#allocation2 + $0xa0] sm:$0xff] }
  0xb0   : > { %v1588_v1 = vld [vmem:[#allocation2 + $0x62] sm:$0xff]  ;;  %v1589_v5 = vld [vmem:[#allocation2 + $0x6a] sm:$0xff] }
  0xb1   : > { %10105 = vmatmul.msk.f32.vlgmr.msrb.gmra.mxu2 %vm276_vm1, %v1579_v27  ;;  %v615_v6 = vld [vmem:[#allocation2 + $0xa1] sm:$0xff]  ;;  %v616_v11 = vld [vmem:[#allocation2 + $0xa9] sm:$0xff]  ;;  %v617_v16 = vld [vmem:[#allocation2 + $0xb1] sm:$0xff] }
  0xb2   : > { %10032 = vmatmul.msk.f32.gmra.mxu1 %vm276_vm1, %v528_v28  ;;  %v2190_v12 = vld [vmem:[#allocation2 + $0xa8] sm:$0xff]  ;;  %v2191_v17 = vld [vmem:[#allocation2 + $0xb0] sm:$0xff]  ;;  %v2192_v23 = vld [vmem:[#allocation2 + $0xc0] sm:$0xff] }
  0xb3   : > { %v1591_v15 = vld [vmem:[#allocation2 + $0x82] sm:$0xff]  ;;  %v1592_v20 = vld [vmem:[#allocation2 + $0x8a] sm:$0xff] }
  0xb4   : > { %9963 = vmatmul.msk.f32.gmra.mxu0 %vm276_vm1, %v605_v29  ;;  %v618_v22 = vld [vmem:[#allocation2 + $0xc1] sm:$0xff]  ;;  %v619_v28 = vld [vmem:[#allocation2 + $0xc9] sm:$0xff]  ;;  %v620_v36 = vld [vmem:[#allocation2 + $0xd1] sm:$0xff] }
  0xb5   : > { %10181 = vmatmul.msk.f32.gmra.mxu3 %vm276_vm1, %v2179_v30  ;;  %v400_v24 = vld [vmem:[%s11274_s21 + $0x90] sm:$0xff]  ;;  %v405_v4 = vld [vmem:[%s11274_s21 + $0xb8] sm:$0xff] }
  0xb6   : > { %473 = vst.msk [vmem:[#allocation2 + $0xe1] sm:$0xff] %vm276_vm1, %v400_v24  ;;  %v2193_v29 = vld [vmem:[#allocation2 + $0xc8] sm:$0xff] }
  0xb7   : > { %v1595_v40 = vld [vmem:[#allocation2 + $0xaa] sm:$0xff]  ;;  %478 = vst.msk [vmem:[#allocation2 + $0x111] sm:$0xff] %vm276_vm1, %v405_v4 }
  0xb8   : > { %v1598_v8 = vld [vmem:[#allocation2 + $0xca] sm:$0xff] }
  0xb9   : > { %10106 = vmatmul.msk.f32.gmra.mxu2 %vm276_vm1, %v1580_v32  ;;  %v1594_v32 = vld [vmem:[#allocation2 + $0xa2] sm:$0xff] }
  0xba   : > { %10033 = vmatmul.msk.f32.gmra.mxu1 %vm276_vm1, %v529_v33 }
  0xbc   : > { %9964 = vmatmul.msk.f32.gmra.mxu0 %vm276_vm1, %v606_v34 }
  0xbd   : > { %10182 = vmatmul.msk.f32.gmra.mxu3 %vm276_vm1, %v2180_v35  ;;  %v621_v44 = vld [vmem:[#allocation2 + $0xe1] sm:$0xff] }
  0xc1   : > { %10107 = vmatmul.msk.f32.gmra.mxu2 %vm276_vm1, %v1581_v37  ;;  %v11480_v37 = vld [vmem:[#allocation2 + $0xd0] sm:$0xff] }
  0xc2   : > { %10034 = vmatmul.msk.f32.gmra.mxu1 %vm276_vm1, %v2177_v21 }
  0xc4   : > { %9965 = vmatmul.msk.f32.gmra.mxu0 %vm276_vm1, %v607_v38  ;;  %v402_v38 = vld [vmem:[%s11274_s21 + $0xa0] sm:$0xff] }
  0xc5   : > { %10183 = vmatmul.msk.f32.gmra.mxu3 %vm276_vm1, %v2181_v39  ;;  %475 = vst.msk [vmem:[#allocation2 + $0xf1] sm:$0xff] %vm276_vm1, %v402_v38 }
  0xc9   : > { %10108 = vmatmul.msk.f32.gmra.mxu2 %vm276_vm1, %v1582_v41 }
  0xca   : > { %10035 = vmatmul.msk.f32.gmra.mxu1 %vm276_vm1, %v2178_v25  ;;  %v1593_v25 = vld [vmem:[#allocation2 + $0x92] sm:$0xff] }
  0xcc   : > { %9966 = vmatmul.msk.f32.gmra.mxu0 %vm276_vm1, %v608_v42 }
  0xcd   : > { %10184 = vmatmul.msk.f32.gmra.mxu3 %vm276_vm1, %v2182_v43 }
  0xd1   : > { %10109 = vmatmul.msk.f32.gmra.mxu2 %vm276_vm1, %v1583_v45  ;;  %v11493_v45 = vld [vmem:[#allocation2 + $0xe0] sm:$0xff] }
  0xd2   : > { %10036 = vmatmul.msk.f32.gmra.mxu1 %vm276_vm1, %v2179_v30  ;;  %v401_v30 = vld [vmem:[%s11274_s21 + $0x98] sm:$0xff] }
  0xd3   : > { %474 = vst.msk [vmem:[#allocation2 + $0xe9] sm:$0xff] %vm276_vm1, %v401_v30 }
  0xd4   : > { %9967 = vmatmul.msk.f32.gmra.mxu0 %vm276_vm1, %v609_v46  ;;  %v403_v46 = vld [vmem:[%s11274_s21 + $0xa8] sm:$0xff] }
  0xd5   : > { %10185 = vmatmul.msk.f32.gmra.mxu3 %vm276_vm1, %v2183_v47  ;;  %476 = vst.msk [vmem:[#allocation2 + $0x101] sm:$0xff] %vm276_vm1, %v403_v46 }
  0xd9   : > { %10110 = vmatmul.msk.f32.gmra.mxu2 %vm276_vm1, %v1584_v49 }
  0xda   : > { %10037 = vmatmul.msk.f32.gmra.mxu1 %vm276_vm1, %v2180_v35  ;;  %v11507_v56 = vld [vmem:[#allocation2 + $0xe8] sm:$0xff] }
  0xdb   : > { %v1601_v46 = vld [vmem:[#allocation2 + $0xea] sm:$0xff] }
  0xdc   : > { %9968 = vmatmul.msk.f32.gmra.mxu0 %vm276_vm1, %v610_v50  ;;  %v1596_v50 = vld [vmem:[#allocation2 + $0xb2] sm:$0xff]  ;;  %v624_v13 = vld [vmem:[#allocation2 + $0x101] sm:$0xff] }
  0xdd   : > { %10186 = vmatmul.msk.f32.gmra.mxu3 %vm276_vm1, %v2184_v51 }
  0xe1   : > { %10111 = vmatmul.msk.f32.gmra.mxu2 %vm276_vm1, %v1585_v53 }
  0xe2   : > { %10038 = vmatmul.msk.f32.gmra.mxu1 %vm276_vm1, %v2181_v39 }
  0xe4   : > { %9969 = vmatmul.msk.f32.gmra.mxu0 %vm276_vm1, %v611_v54 }
  0xe5   : > { %10187 = vmatmul.msk.f32.gmra.mxu3 %vm276_vm1, %v2185_v55 }
  0xe9   : > { %10112 = vmatmul.msk.f32.gmra.mxu2 %vm276_vm1, %v1586_v57  ;;  %v404_v57 = vld [vmem:[%s11274_s21 + $0xb0] sm:$0xff] }
  0xea   : > { %10039 = vmatmul.msk.f32.gmra.mxu1 %vm276_vm1, %v2182_v43  ;;  %477 = vst.msk [vmem:[#allocation2 + $0x109] sm:$0xff] %vm276_vm1, %v404_v57 }
  0xec   : > { %9970 = vmatmul.msk.f32.gmra.mxu0 %vm276_vm1, %v612_v58 }
  0xed   : > { %10188 = vmatmul.msk.f32.gmra.mxu3 %vm276_vm1, %v2186_v59 }
  0xf1   : > { %10113 = vmatmul.msk.f32.gmra.mxu2 %vm276_vm1, %v1587_v61  ;;  %v1597_v61 = vld [vmem:[#allocation2 + $0xc2] sm:$0xff] }
  0xf2   : > { %10040 = vmatmul.msk.f32.gmra.mxu1 %vm276_vm1, %v2183_v47 }
  0xf4   : > { %9971 = vmatmul.msk.f32.gmra.mxu0 %vm276_vm1, %v613_v62 }
  0xf5   : > { %10189 = vmatmul.msk.f32.gmra.mxu3 %vm276_vm1, %v2187_v63 }
  0xf9   : > { %10114 = vmatmul.msk.f32.gmra.mxu2 %vm276_vm1, %v1588_v1 }
  0xfa   : > { %10041 = vmatmul.msk.f32.gmra.mxu1 %vm276_vm1, %v2184_v51 }
  0xfc   : > { %9972 = vmatmul.msk.f32.gmra.mxu0 %vm276_vm1, %v614_v2  ;;  %v623_v2 = vld [vmem:[#allocation2 + $0xf1] sm:$0xff] }
  0xfd   : > { %10190 = vmatmul.msk.f32.gmra.mxu3 %vm276_vm1, %v2188_v3 }
 0x101   : > { %10115 = vmatmul.msk.f32.gmra.mxu2 %vm276_vm1, %v1589_v5 }
 0x102   : > { %10042 = vmatmul.msk.f32.gmra.mxu1 %vm276_vm1, %v2185_v55  ;;  %v622_v55 = vld [vmem:[#allocation2 + $0xe9] sm:$0xff] }
 0x104   : > { %9973 = vmatmul.msk.f32.gmra.mxu0 %vm276_vm1, %v615_v6  ;;  %v11455_v19 = vpop.f32.mrf.mxu1 }
 0x105   : > { %10191 = vmatmul.msk.f32.gmra.mxu3 %vm276_vm1, %v2189_v7  ;;  %v11457_v21 = vpop.f32.mrf.mxu0 }
 0x109   : > { %10116 = vmatmul.msk.f32.gmra.mxu2 %vm276_vm1, %v1590_v10 }
 0x10a   : > { %10043 = vmatmul.msk.f32.gmra.mxu1 %vm276_vm1, %v2186_v59 }
 0x10c   : > { %9974 = vmatmul.msk.f32.gmra.mxu0 %vm276_vm1, %v616_v11 }
 0x10d   : > { %10192 = vmatmul.msk.f32.gmra.mxu3 %vm276_vm1, %v2190_v12 }
 0x111   : > { %10117 = vmatmul.msk.f32.gmra.mxu2 %vm276_vm1, %v1591_v15  ;;  %v406_v15 = vld [vmem:[%s11274_s21 + $0xc0] sm:$0xff] }
 0x112   : > { %10044 = vmatmul.msk.f32.gmra.mxu1 %vm276_vm1, %v2187_v63  ;;  %479 = vst.msk [vmem:[#allocation2 + $0x121] sm:$0xff] %vm276_vm1, %v406_v15 }
 0x114   : > { %9975 = vmatmul.msk.f32.gmra.mxu0 %vm276_vm1, %v617_v16 }
 0x115   : > { %10193 = vmatmul.msk.f32.gmra.mxu3 %vm276_vm1, %v2191_v17 }
 0x119   : > { %10118 = vmatmul.msk.f32.gmra.mxu2 %vm276_vm1, %v1592_v20  ;;  %v1599_v20 = vld [vmem:[#allocation2 + $0xd2] sm:$0xff] }
 0x11a   : > { %10045 = vmatmul.msk.f32.gmra.mxu1 %vm276_vm1, %v2188_v3  ;;  %v11521_v3 = vld [vmem:[#allocation2 + $0xf0] sm:$0xff] }
 0x11c   : > { %9976 = vmatmul.msk.f32.gmra.mxu0 %vm276_vm1, %v618_v22 }
 0x11d   : > { %10194 = vmatmul.msk.f32.gmra.mxu3 %vm276_vm1, %v2192_v23 }
 0x11f   : > { %v11465_v26 = vpop.f32.mrf.mxu1 }
 0x121   : > { %10119 = vmatmul.msk.f32.gmra.mxu2 %vm276_vm1, %v1593_v25  ;;  %v11468_v27 = vpop.f32.mrf.mxu0  ;;  %v625_v25 = vld [vmem:[#allocation2 + $0x109] sm:$0xff] }
 0x122   : > { %10046 = vmatmul.msk.f32.gmra.mxu1 %vm276_vm1, %v2189_v7 }
 0x124   : > { %v11473_v31 = vpop.f32.mrf.mxu2  ;;  %9977 = vmatmul.msk.f32.gmra.mxu0 %vm276_vm1, %v619_v28  ;;  %v11550_v28 = vld [vmem:[#allocation2 + $0x108] sm:$0xff] }
 0x125   : > { %10195 = vmatmul.msk.f32.gmra.mxu3 %vm276_vm1, %v2193_v29 }
 0x127   : > { %v1363_v33 = vpop.f32.mrf.mxu1 }
 0x128   : > { %v2487_v34 = vpop.f32.mrf.mxu3  ;;  %v1364_v47 = vadd.f32 %v1363_v33, %v11437_v9  ;;  %v1600_v33 = vld [vmem:[#allocation2 + $0xe2] sm:$0xff] }
 0x129   : > { %10120 = vmatmul.msk.f32.gmra.mxu2 %vm276_vm1, %v1594_v32  ;;  %v11478_v35 = vpop.f32.mrf.mxu0 }
 0x12a   : > { %10047 = vmatmul.msk.f32.gmra.mxu1 %vm276_vm1, %v2190_v12 }
 0x12c   : > { %v11485_v39 = vpop.f32.mrf.mxu2  ;;  %9978 = vmatmul.msk.f32.gmra.mxu0 %vm276_vm1, %v620_v36 }
 0x12d   : > { %10196 = vmatmul.msk.f32.gmra.mxu3 %vm276_vm1, %v11480_v37 }
 0x12f   : > { %v1366_v41 = vpop.f32.mrf.mxu1 }
 0x130   : > { %v2490_v42 = vpop.f32.mrf.mxu3  ;;  %v1367_v58 = vadd.f32 %v1366_v41, %v11447_v14  ;;  %v11535_v14 = vld [vmem:[#allocation2 + $0x100] sm:$0xff]  ;;  %v11565_v41 = vld [vmem:[#allocation2 + $0x110] sm:$0xff] }
 0x131   : > { %10121 = vmatmul.msk.f32.gmra.mxu2 %vm276_vm1, %v1595_v40  ;;  %v11491_v43 = vpop.f32.mrf.mxu0  ;;  %v626_v40 = vld [vmem:[#allocation2 + $0x111] sm:$0xff] }
 0x132   : > { %10048 = vmatmul.msk.f32.gmra.mxu1 %vm276_vm1, %v2191_v17 }
 0x134   : > { %v1889_v48 = vpop.f32.mrf.mxu2  ;;  %9979 = vmatmul.msk.f32.gmra.mxu0 %vm276_vm1, %v621_v44 }
 0x135   : > { %10197 = vmatmul.msk.f32.gmra.mxu3 %vm276_vm1, %v11493_v45  ;;  %v2105_v49 = vadd.f32 %v1889_v48, %v1364_v47 }
 0x137   : > { %v11502_v51 = vadd.f32 %v2487_v34, %v2105_v49  ;;  %v1369_v52 = vpop.f32.mrf.mxu1 }
 0x138   : > { %v2493_v53 = vpop.f32.mrf.mxu3  ;;  %v1370_v5 = vadd.f32 %v1369_v52, %v11457_v21  ;;  %v627_v52 = vld [vmem:[#allocation2 + $0x121] sm:$0xff] }
 0x139   : > { %10122 = vmatmul.msk.f32.gmra.mxu2 %vm276_vm1, %v1596_v50  ;;  %v11505_v54 = vpop.f32.mrf.mxu0 }
 0x13a   : > { %10049 = vmatmul.msk.f32.gmra.mxu1 %vm276_vm1, %v2192_v23 }
 0x13c   : > { %v1892_v59 = vpop.f32.mrf.mxu2  ;;  %9980 = vmatmul.msk.f32.gmra.mxu0 %vm276_vm1, %v622_v55 }
 0x13d   : > { %10198 = vmatmul.msk.f32.gmra.mxu3 %vm276_vm1, %v11507_v56  ;;  %v2106_v60 = vadd.f32 %v1892_v59, %v1367_v58  ;;  %v1602_v58 = vld [vmem:[#allocation2 + $0xf2] sm:$0xff] }
 0x13f   : > { %v11516_v62 = vadd.f32 %v2490_v42, %v2106_v60  ;;  %v1372_v63 = vpop.f32.mrf.mxu1 }
 0x140   : > { %v2496_v0 = vpop.f32.mrf.mxu3  ;;  %v1373_v16 = vadd.f32 %v1372_v63, %v11468_v27  ;;  %v407_v27 = vld [vmem:[%s11274_s21 + $0xc8] sm:$0xff] }
 0x141   : > { %10123 = vmatmul.msk.f32.gmra.mxu2 %vm276_vm1, %v1597_v61  ;;  %v11519_v1 = vpop.f32.mrf.mxu0  ;;  %480 = vst.msk [vmem:[#allocation2 + $0x129] sm:$0xff] %vm276_vm1, %v407_v27 }
 0x142   : > { %10050 = vmatmul.msk.f32.gmra.mxu1 %vm276_vm1, %v2193_v29 }
 0x144   : > { %v1895_v6 = vpop.f32.mrf.mxu2  ;;  %9981 = vmatmul.msk.f32.gmra.mxu0 %vm276_vm1, %v623_v2 }
 0x145   : > { %10199 = vmatmul.msk.f32.gmra.mxu3 %vm276_vm1, %v11521_v3  ;;  %v2107_v7 = vadd.f32 %v1895_v6, %v1370_v5  ;;  %v1603_v6 = vld [vmem:[#allocation2 + $0x102] sm:$0xff] }
 0x147   : > { %v11530_v9 = vadd.f32 %v2493_v53, %v2107_v7  ;;  %v1375_v10 = vpop.f32.mrf.mxu1  ;;  %v11580_v53 = vld [vmem:[#allocation2 + $0x120] sm:$0xff] }
 0x148   : > { %v2499_v11 = vpop.f32.mrf.mxu3  ;;  %v1376_v29 = vadd.f32 %v1375_v10, %v11478_v35  ;;  %v408_v35 = vld [vmem:[%s11274_s21 + $0xd0] sm:$0xff] }
 0x149   : > { %10124 = vmatmul.msk.f32.gmra.mxu2 %vm276_vm1, %v1598_v8  ;;  %v11533_v12 = vpop.f32.mrf.mxu0  ;;  %481 = vst.msk [vmem:[#allocation2 + $0x131] sm:$0xff] %vm276_vm1, %v408_v35  ;;  %v11595_v2 = vld [vmem:[#allocation2 + $0x128] sm:$0xff] }
 0x14a   : > { %10051 = vmatmul.msk.f32.gmra.mxu1 %vm276_vm1, %v11480_v37 }
 0x14c   : > { %v1898_v17 = vpop.f32.mrf.mxu2  ;;  %9982 = vmatmul.msk.f32.gmra.mxu0 %vm276_vm1, %v624_v13 }
 0x14d   : > { %10200 = vmatmul.msk.f32.gmra.mxu3 %vm276_vm1, %v11535_v14  ;;  %v2108_v18 = vadd.f32 %v1898_v17, %v1373_v16 }
 0x14f   : > { %v11545_v21 = vadd.f32 %v2496_v0, %v2108_v18  ;;  %v1378_v22 = vpop.f32.mrf.mxu1  ;;  %v628_v0 = vld [vmem:[#allocation2 + $0x129] sm:$0xff] }
 0x150   : > { %v2502_v23 = vpop.f32.mrf.mxu3  ;;  %v1379_v42 = vadd.f32 %v1378_v22, %v11491_v43  ;;  %v409_v43 = vld [vmem:[%s11274_s21 + $0xd8] sm:$0xff] }
 0x151   : > { %10125 = vmatmul.msk.f32.gmra.mxu2 %vm276_vm1, %v1599_v20  ;;  %v11548_v24 = vpop.f32.mrf.mxu0  ;;  %482 = vst.msk [vmem:[#allocation2 + $0x141] sm:$0xff] %vm276_vm1, %v409_v43  ;;  %v629_v13 = vld [vmem:[#allocation2 + $0x131] sm:$0xff] }
 0x152   : > { %10052 = vmatmul.msk.f32.gmra.mxu1 %vm276_vm1, %v11493_v45  ;;  %v1604_v18 = vld [vmem:[#allocation2 + $0x10a] sm:$0xff] }
 0x154   : > { %v1901_v30 = vpop.f32.mrf.mxu2  ;;  %9983 = vmatmul.msk.f32.gmra.mxu0 %vm276_vm1, %v625_v25 }
 0x155   : > { %10201 = vmatmul.msk.f32.gmra.mxu3 %vm276_vm1, %v11550_v28  ;;  %v2109_v32 = vadd.f32 %v1901_v30, %v1376_v29 }
 0x157   : > { %v11560_v34 = vadd.f32 %v2499_v11, %v2109_v32  ;;  %v1381_v36 = vpop.f32.mrf.mxu1 }
 0x158   : > { %v2505_v37 = vpop.f32.mrf.mxu3  ;;  %v1382_v55 = vadd.f32 %v1381_v36, %v11505_v54  ;;  %v410_v54 = vld [vmem:[%s11274_s21 + $0xe0] sm:$0xff]  ;;  %v11625_v27 = vld [vmem:[#allocation2 + $0x140] sm:$0xff] }
 0x159   : > { %10126 = vmatmul.msk.f32.gmra.mxu2 %vm276_vm1, %v1600_v33  ;;  %v11563_v38 = vpop.f32.mrf.mxu0  ;;  %483 = vst.msk [vmem:[#allocation2 + $0x149] sm:$0xff] %vm276_vm1, %v410_v54  ;;  %v1605_v33 = vld [vmem:[#allocation2 + $0x112] sm:$0xff] }
 0x15a   : > { %10053 = vmatmul.msk.f32.gmra.mxu1 %vm276_vm1, %v11507_v56 }
 0x15c   : > { %v1904_v44 = vpop.f32.mrf.mxu2  ;;  %9984 = vmatmul.msk.f32.gmra.mxu0 %vm276_vm1, %v626_v40 }
 0x15d   : > { %10202 = vmatmul.msk.f32.gmra.mxu3 %vm276_vm1, %v11565_v41  ;;  %v2110_v45 = vadd.f32 %v1904_v44, %v1379_v42 }
 0x15f   : > { %v11575_v47 = vadd.f32 %v2502_v23, %v2110_v45  ;;  %v1384_v48 = vpop.f32.mrf.mxu1 }
 0x160   : > { %v2508_v49 = vpop.f32.mrf.mxu3  ;;  %v11640_v42 = vld [vmem:[#allocation2 + $0x148] sm:$0xff] }
 0x161   : > { %10127 = vmatmul.msk.f32.gmra.mxu2 %vm276_vm1, %v1601_v46  ;;  %v11578_v50 = vpop.f32.mrf.mxu0 }
 0x162   : > { %10054 = vmatmul.msk.f32.gmra.mxu1 %vm276_vm1, %v11521_v3  ;;  %v1385_v3 = vadd.f32 %v1384_v48, %v11519_v1  ;;  %v411_v1 = vld [vmem:[%s11274_s21 + $0xe8] sm:$0xff] }
 0x163   : > { %484 = vst.msk [vmem:[#allocation2 + $0x151] sm:$0xff] %vm276_vm1, %v411_v1  ;;  %v1606_v48 = vld [vmem:[#allocation2 + $0x122] sm:$0xff] }
 0x164   : > { %v1907_v56 = vpop.f32.mrf.mxu2  ;;  %9985 = vmatmul.msk.f32.gmra.mxu0 %vm276_vm1, %v627_v52 }
 0x165   : > { %10203 = vmatmul.msk.f32.gmra.mxu3 %vm276_vm1, %v11580_v53  ;;  %v2111_v57 = vadd.f32 %v1907_v56, %v1382_v55 }
 0x167   : > { %v11590_v59 = vadd.f32 %v2505_v37, %v2111_v57  ;;  %v1387_v60 = vpop.f32.mrf.mxu1 }
 0x168   : > { %v2511_v61 = vpop.f32.mrf.mxu3  ;;  %v1388_v15 = vadd.f32 %v1387_v60, %v11533_v12  ;;  %v412_v12 = vld [vmem:[%s11274_s21 + $0xf0] sm:$0xff] }
 0x169   : > { %10128 = vmatmul.msk.f32.gmra.mxu2 %vm276_vm1, %v1602_v58  ;;  %v11593_v63 = vpop.f32.mrf.mxu0  ;;  %485 = vst.msk [vmem:[#allocation2 + $0x161] sm:$0xff] %vm276_vm1, %v412_v12  ;;  %v1609_v12 = vld [vmem:[#allocation2 + $0x142] sm:$0xff] }
 0x16a   : > { %10055 = vmatmul.msk.f32.gmra.mxu1 %vm276_vm1, %v11535_v14  ;;  %v11610_v14 = vld [vmem:[#allocation2 + $0x130] sm:$0xff] }
 0x16b   : > { %v11655_v56 = vld [vmem:[#allocation2 + $0x150] sm:$0xff] }
 0x16c   : > { %v1910_v4 = vpop.f32.mrf.mxu2  ;;  %9986 = vmatmul.msk.f32.gmra.mxu0 %vm276_vm1, %v628_v0 }
 0x16d   : > { %10204 = vmatmul.msk.f32.gmra.mxu3 %vm276_vm1, %v11595_v2  ;;  %v2112_v5 = vadd.f32 %v1910_v4, %v1385_v3 }
 0x16f   : > { %v11605_v7 = vadd.f32 %v2508_v49, %v2112_v5  ;;  %v1390_v8 = vpop.f32.mrf.mxu1 }
 0x170   : > { %v2514_v10 = vpop.f32.mrf.mxu3  ;;  %v1391_v29 = vadd.f32 %v1390_v8, %v11548_v24  ;;  %v413_v24 = vld [vmem:[%s11274_s21 + $0xf8] sm:$0xff]  ;;  %v11670_v5 = vld [vmem:[#allocation2 + $0x160] sm:$0xff] }
 0x171   : > { %10129 = vmatmul.msk.f32.gmra.mxu2 %vm276_vm1, %v1603_v6  ;;  %v11608_v11 = vpop.f32.mrf.mxu0  ;;  %486 = vst.msk [vmem:[#allocation2 + $0x169] sm:$0xff] %vm276_vm1, %v413_v24 }
 0x172   : > { %10056 = vmatmul.msk.f32.gmra.mxu1 %vm276_vm1, %v11550_v28  ;;  %v630_v28 = vld [vmem:[#allocation2 + $0x141] sm:$0xff] }
 0x174   : > { %v1913_v16 = vpop.f32.mrf.mxu2  ;;  %9987 = vmatmul.msk.f32.gmra.mxu0 %vm276_vm1, %v629_v13  ;;  %v1608_v13 = vld [vmem:[#allocation2 + $0x132] sm:$0xff] }
 0x175   : > { %10205 = vmatmul.msk.f32.gmra.mxu3 %vm276_vm1, %v11610_v14  ;;  %v2113_v17 = vadd.f32 %v1913_v16, %v1388_v15 }
 0x177   : > { %v11620_v20 = vadd.f32 %v2511_v61, %v2113_v17  ;;  %v1393_v22 = vpop.f32.mrf.mxu1  ;;  %v1607_v61 = vld [vmem:[#allocation2 + $0x12a] sm:$0xff] }
 0x178   : > { %v2517_v23 = vpop.f32.mrf.mxu3  ;;  %v1394_v44 = vadd.f32 %v1393_v22, %v11563_v38  ;;  %v414_v38 = vld [vmem:[%s11274_s21 + $0x100] sm:$0xff] }
 0x179   : > { %10130 = vmatmul.msk.f32.gmra.mxu2 %vm276_vm1, %v1604_v18  ;;  %v11623_v25 = vpop.f32.mrf.mxu0  ;;  %487 = vst.msk [vmem:[#allocation2 + $0x171] sm:$0xff] %vm276_vm1, %v414_v38  ;;  %v11685_v18 = vld [vmem:[#allocation2 + $0x168] sm:$0xff] }
 0x17a   : > { %10057 = vmatmul.msk.f32.gmra.mxu1 %vm276_vm1, %v11565_v41  ;;  %v631_v41 = vld [vmem:[#allocation2 + $0x149] sm:$0xff] }
 0x17c   : > { %v1916_v30 = vpop.f32.mrf.mxu2  ;;  %9988 = vmatmul.msk.f32.gmra.mxu0 %vm276_vm1, %v630_v28 }
 0x17d   : > { %10206 = vmatmul.msk.f32.gmra.mxu3 %vm276_vm1, %v11625_v27  ;;  %v2114_v32 = vadd.f32 %v1916_v30, %v1391_v29 }
 0x17f   : > { %v11635_v36 = vadd.f32 %v2514_v10, %v2114_v32  ;;  %v1396_v37 = vpop.f32.mrf.mxu1 }
 0x180   : > { %v2520_v40 = vpop.f32.mrf.mxu3  ;;  %v1397_v57 = vadd.f32 %v1396_v37, %v11578_v50  ;;  %v415_v50 = vld [vmem:[%s11274_s21 + $0x108] sm:$0xff]  ;;  %v11700_v37 = vld [vmem:[#allocation2 + $0x170] sm:$0xff] }
 0x181   : > { %10131 = vmatmul.msk.f32.gmra.mxu2 %vm276_vm1, %v1605_v33  ;;  %v11638_v35 = vpop.f32.mrf.mxu0  ;;  %488 = vst.msk [vmem:[#allocation2 + $0x181] sm:$0xff] %vm276_vm1, %v415_v50 }
 0x182   : > { %10058 = vmatmul.msk.f32.gmra.mxu1 %vm276_vm1, %v11580_v53  ;;  %v632_v53 = vld [vmem:[#allocation2 + $0x151] sm:$0xff] }
 0x184   : > { %v1919_v45 = vpop.f32.mrf.mxu2  ;;  %9989 = vmatmul.msk.f32.gmra.mxu0 %vm276_vm1, %v631_v41 }
 0x185   : > { %10207 = vmatmul.msk.f32.gmra.mxu3 %vm276_vm1, %v11640_v42  ;;  %v2115_v46 = vadd.f32 %v1919_v45, %v1394_v44  ;;  %v1610_v44 = vld [vmem:[#allocation2 + $0x14a] sm:$0xff] }
 0x187   : > { %v11650_v49 = vadd.f32 %v2517_v23, %v2115_v46  ;;  %v1399_v52 = vpop.f32.mrf.mxu1 }
 0x188   : > { %v2523_v43 = vpop.f32.mrf.mxu3  ;;  %v1400_v6 = vadd.f32 %v1399_v52, %v11593_v63  ;;  %v416_v63 = vld [vmem:[%s11274_s21 + $0x110] sm:$0xff] }
 0x189   : > { %10132 = vmatmul.msk.f32.gmra.mxu2 %vm276_vm1, %v1606_v48  ;;  %v11653_v55 = vpop.f32.mrf.mxu0  ;;  %489 = vst.msk [vmem:[#allocation2 + $0x189] sm:$0xff] %vm276_vm1, %v416_v63 }
 0x18a   : > { %10059 = vmatmul.msk.f32.gmra.mxu1 %vm276_vm1, %v11595_v2  ;;  %v633_v2 = vld [vmem:[#allocation2 + $0x161] sm:$0xff] }
 0x18c   : > { %v1922_v58 = vpop.f32.mrf.mxu2  ;;  %9990 = vmatmul.msk.f32.gmra.mxu0 %vm276_vm1, %v632_v53 }
 0x18d   : > { %10208 = vmatmul.msk.f32.gmra.mxu3 %vm276_vm1, %v11655_v56  ;;  %v2116_v60 = vadd.f32 %v1922_v58, %v1397_v57  ;;  %v1611_v58 = vld [vmem:[#allocation2 + $0x152] sm:$0xff] }
 0x18f   : > { %v11665_v0 = vadd.f32 %v2520_v40, %v2116_v60  ;;  %v1402_v54 = vpop.f32.mrf.mxu1 }
 0x190   : > { %v2526_v3 = vpop.f32.mrf.mxu3  ;;  %v1403_v22 = vadd.f32 %v1402_v54, %v11608_v11  ;;  %v417_v11 = vld [vmem:[%s11274_s21 + $0x118] sm:$0xff] }
 0x191   : > { %10133 = vmatmul.msk.f32.gmra.mxu2 %vm276_vm1, %v1607_v61  ;;  %v11668_v4 = vpop.f32.mrf.mxu0  ;;  %490 = vst.msk [vmem:[#allocation2 + $0x191] sm:$0xff] %vm276_vm1, %v417_v11 }
 0x192   : > { %10060 = vmatmul.msk.f32.gmra.mxu1 %vm276_vm1, %v11610_v14  ;;  %v634_v14 = vld [vmem:[#allocation2 + $0x169] sm:$0xff] }
 0x194   : > { %v1925_v8 = vpop.f32.mrf.mxu2  ;;  %9991 = vmatmul.msk.f32.gmra.mxu0 %vm276_vm1, %v633_v2  ;;  %v11730_v2 = vld [vmem:[#allocation2 + $0x188] sm:$0xff] }
 0x195   : > { %10209 = vmatmul.msk.f32.gmra.mxu3 %vm276_vm1, %v11670_v5  ;;  %v2117_v10 = vadd.f32 %v1925_v8, %v1400_v6 }
 0x197   : > { %v11680_v1 = vadd.f32 %v2523_v43, %v2117_v10  ;;  %v1405_v15 = vpop.f32.mrf.mxu1  ;;  %v11715_v43 = vld [vmem:[#allocation2 + $0x180] sm:$0xff] }
 0x198   : > { %v2529_v16 = vpop.f32.mrf.mxu3  ;;  %v1406_v40 = vadd.f32 %v1405_v15, %v11623_v25  ;;  %v418_v25 = vld [vmem:[%s11274_s21 + $0x120] sm:$0xff]  ;;  %v1612_v10 = vld [vmem:[#allocation2 + $0x162] sm:$0xff]  ;;  %v11745_v63 = vld [vmem:[#allocation2 + $0x190] sm:$0xff] }
 0x199   : > { %10134 = vmatmul.msk.f32.gmra.mxu2 %vm276_vm1, %v1608_v13  ;;  %v11683_v17 = vpop.f32.mrf.mxu0  ;;  %491 = vst.msk [vmem:[#allocation2 + $0x1a1] sm:$0xff] %vm276_vm1, %v418_v25 }
 0x19a   : > { %10061 = vmatmul.msk.f32.gmra.mxu1 %vm276_vm1, %v11625_v27  ;;  %v635_v27 = vld [vmem:[#allocation2 + $0x171] sm:$0xff] }
 0x19c   : > { %v1928_v23 = vpop.f32.mrf.mxu2  ;;  %9992 = vmatmul.msk.f32.gmra.mxu0 %vm276_vm1, %v634_v14 }
 0x19d   : > { %10210 = vmatmul.msk.f32.gmra.mxu3 %vm276_vm1, %v11685_v18  ;;  %v2118_v28 = vadd.f32 %v1928_v23, %v1403_v22 }
 0x19f   : > { %v11695_v29 = vadd.f32 %v2526_v3, %v2118_v28  ;;  %v1408_v30 = vpop.f32.mrf.mxu1 }
 0x1a0   : > { %v2532_v32 = vpop.f32.mrf.mxu3  ;;  %v1409_v53 = vadd.f32 %v1408_v30, %v11638_v35  ;;  %v419_v35 = vld [vmem:[%s11274_s21 + $0x128] sm:$0xff] }
 0x1a1   : > { %10135 = vmatmul.msk.f32.gmra.mxu2 %vm276_vm1, %v1609_v12  ;;  %v11698_v33 = vpop.f32.mrf.mxu0  ;;  %492 = vst.msk [vmem:[#allocation2 + $0x1a9] sm:$0xff] %vm276_vm1, %v419_v35  ;;  %v1613_v12 = vld [vmem:[#allocation2 + $0x16a] sm:$0xff] }
 0x1a2   : > { %10062 = vmatmul.msk.f32.gmra.mxu1 %vm276_vm1, %v11640_v42  ;;  %v636_v42 = vld [vmem:[#allocation2 + $0x181] sm:$0xff] }
 0x1a4   : > { %v1931_v41 = vpop.f32.mrf.mxu2  ;;  %9993 = vmatmul.msk.f32.gmra.mxu0 %vm276_vm1, %v635_v27 }
 0x1a5   : > { %10211 = vmatmul.msk.f32.gmra.mxu3 %vm276_vm1, %v11700_v37  ;;  %v2119_v24 = vadd.f32 %v1931_v41, %v1406_v40  ;;  %v11760_v40 = vld [vmem:[#allocation2 + $0x1a0] sm:$0xff] }
 0x1a7   : > { %v11710_v45 = vadd.f32 %v2529_v16, %v2119_v24  ;;  %v1411_v46 = vpop.f32.mrf.mxu1 }
 0x1a8   : > { %v2535_v48 = vpop.f32.mrf.mxu3  ;;  %v1412_v50 = vadd.f32 %v1411_v46, %v11653_v55  ;;  %v420_v55 = vld [vmem:[%s11274_s21 + $0x130] sm:$0xff]  ;;  %v1614_v46 = vld [vmem:[#allocation2 + $0x172] sm:$0xff] }
 0x1a9   : > { %10136 = vmatmul.msk.f32.gmra.mxu2 %vm276_vm1, %v1610_v44  ;;  %v11713_v52 = vpop.f32.mrf.mxu0  ;;  %493 = vst.msk [vmem:[#allocation2 + $0x1b1] sm:$0xff] %vm276_vm1, %v420_v55 }
 0x1aa   : > { %10063 = vmatmul.msk.f32.gmra.mxu1 %vm276_vm1, %v11655_v56  ;;  %v637_v56 = vld [vmem:[#allocation2 + $0x189] sm:$0xff] }
 0x1ac   : > { %v1934_v38 = vpop.f32.mrf.mxu2  ;;  %9994 = vmatmul.msk.f32.gmra.mxu0 %vm276_vm1, %v636_v42 }
 0x1ad   : > { %10212 = vmatmul.msk.f32.gmra.mxu3 %vm276_vm1, %v11715_v43  ;;  %v2120_v57 = vadd.f32 %v1934_v38, %v1409_v53  ;;  %v11775_v38 = vld [vmem:[#allocation2 + $0x1a8] sm:$0xff] }
 0x1af   : > { %v11725_v60 = vadd.f32 %v2532_v32, %v2120_v57  ;;  %v1414_v61 = vpop.f32.mrf.mxu1 }
 0x1b0   : > { %v2538_v54 = vpop.f32.mrf.mxu3  ;;  %v1415_v22 = vadd.f32 %v1414_v61, %v11668_v4  ;;  %v421_v4 = vld [vmem:[%s11274_s21 + $0x138] sm:$0xff] }
 0x1b1   : > { %10137 = vmatmul.msk.f32.gmra.mxu2 %vm276_vm1, %v1611_v58  ;;  %v11728_v3 = vpop.f32.mrf.mxu0  ;;  %494 = vst.msk [vmem:[#allocation2 + $0x1c1] sm:$0xff] %vm276_vm1, %v421_v4  ;;  %v1617_v4 = vld [vmem:[#allocation2 + $0x192] sm:$0xff] }
 0x1b2   : > { %10064 = vmatmul.msk.f32.gmra.mxu1 %vm276_vm1, %v11670_v5  ;;  %v638_v5 = vld [vmem:[#allocation2 + $0x191] sm:$0xff] }
 0x1b4   : > { %v1937_v6 = vpop.f32.mrf.mxu2  ;;  %9995 = vmatmul.msk.f32.gmra.mxu0 %vm276_vm1, %v637_v56 }
 0x1b5   : > { %10213 = vmatmul.msk.f32.gmra.mxu3 %vm276_vm1, %v11730_v2  ;;  %v2121_v8 = vadd.f32 %v1937_v6, %v1412_v50 }
 0x1b7   : > { %v11740_v13 = vadd.f32 %v2535_v48, %v2121_v8  ;;  %v1417_v15 = vpop.f32.mrf.mxu1  ;;  %v11790_v8 = vld [vmem:[#allocation2 + $0x1b0] sm:$0xff] }
 0x1b8   : > { %v2541_v16 = vpop.f32.mrf.mxu3  ;;  %v1418_v41 = vadd.f32 %v1417_v15, %v11683_v17  ;;  %v422_v17 = vld [vmem:[%s11274_s21 + $0x140] sm:$0xff] }
 0x1b9   : > { %10138 = vmatmul.msk.f32.gmra.mxu2 %vm276_vm1, %v1612_v10  ;;  %v11743_v14 = vpop.f32.mrf.mxu0  ;;  %495 = vst.msk [vmem:[#allocation2 + $0x1c9] sm:$0xff] %vm276_vm1, %v422_v17 }
 0x1ba   : > { %10065 = vmatmul.msk.f32.gmra.mxu1 %vm276_vm1, %v11685_v18  ;;  %v639_v18 = vld [vmem:[#allocation2 + $0x1a1] sm:$0xff] }
 0x1bc   : > { %v1940_v23 = vpop.f32.mrf.mxu2  ;;  %9996 = vmatmul.msk.f32.gmra.mxu0 %vm276_vm1, %v638_v5  ;;  %v1616_v5 = vld [vmem:[#allocation2 + $0x18a] sm:$0xff] }
 0x1bd   : > { %10214 = vmatmul.msk.f32.gmra.mxu3 %vm276_vm1, %v11745_v63  ;;  %v2122_v28 = vadd.f32 %v1940_v23, %v1415_v22 }
 0x1bf   : > { %v11755_v30 = vadd.f32 %v2538_v54, %v2122_v28  ;;  %v1420_v32 = vpop.f32.mrf.mxu1  ;;  %v1615_v54 = vld [vmem:[#allocation2 + $0x182] sm:$0xff] }
 0x1c0   : > { %v2544_v27 = vpop.f32.mrf.mxu3  ;;  %v1421_v57 = vadd.f32 %v1420_v32, %v11698_v33  ;;  %v423_v33 = vld [vmem:[%s11274_s21 + $0x148] sm:$0xff] }
 0x1c1   : > { %10139 = vmatmul.msk.f32.gmra.mxu2 %vm276_vm1, %v1613_v12  ;;  %v11758_v11 = vpop.f32.mrf.mxu0  ;;  %496 = vst.msk [vmem:[#allocation2 + $0x1d1] sm:$0xff] %vm276_vm1, %v423_v33  ;;  %v11805_v12 = vld [vmem:[#allocation2 + $0x1c0] sm:$0xff] }
 0x1c2   : > { %10066 = vmatmul.msk.f32.gmra.mxu1 %vm276_vm1, %v11700_v37  ;;  %v640_v37 = vld [vmem:[#allocation2 + $0x1a9] sm:$0xff] }
 0x1c4   : > { %v1943_v24 = vpop.f32.mrf.mxu2  ;;  %9997 = vmatmul.msk.f32.gmra.mxu0 %vm276_vm1, %v639_v18 }
 0x1c5   : > { %10215 = vmatmul.msk.f32.gmra.mxu3 %vm276_vm1, %v11760_v40  ;;  %v2123_v44 = vadd.f32 %v1943_v24, %v1418_v41 }
 0x1c7   : > { %v11770_v48 = vadd.f32 %v2541_v16, %v2123_v44  ;;  %v1423_v42 = vpop.f32.mrf.mxu1 }
 0x1c8   : > { %v2547_v25 = vpop.f32.mrf.mxu3  ;;  %v1424_v10 = vadd.f32 %v1423_v42, %v11713_v52  ;;  %v424_v52 = vld [vmem:[%s11274_s21 + $0x150] sm:$0xff] }
 0x1c9   : > { %10140 = vmatmul.msk.f32.gmra.mxu2 %vm276_vm1, %v1614_v46  ;;  %v11773_v53 = vpop.f32.mrf.mxu0  ;;  %497 = vst.msk [vmem:[#allocation2 + $0x1e1] sm:$0xff] %vm276_vm1, %v424_v52  ;;  %v11820_v42 = vld [vmem:[#allocation2 + $0x1c8] sm:$0xff] }
 0x1ca   : > { %10067 = vmatmul.msk.f32.gmra.mxu1 %vm276_vm1, %v11715_v43  ;;  %v641_v43 = vld [vmem:[#allocation2 + $0x1b1] sm:$0xff] }
 0x1cc   : > { %v1946_v58 = vpop.f32.mrf.mxu2  ;;  %9998 = vmatmul.msk.f32.gmra.mxu0 %vm276_vm1, %v640_v37 }
 0x1cd   : > { %10216 = vmatmul.msk.f32.gmra.mxu3 %vm276_vm1, %v11775_v38  ;;  %v2124_v61 = vadd.f32 %v1946_v58, %v1421_v57  ;;  %v1618_v57 = vld [vmem:[#allocation2 + $0x1a2] sm:$0xff] }
 0x1cf   : > { %v11785_v56 = vadd.f32 %v2544_v27, %v2124_v61  ;;  %v1426_v35 = vpop.f32.mrf.mxu1 }
 0x1d0   : > { %v2550_v50 = vpop.f32.mrf.mxu3  ;;  %v1427_v32 = vadd.f32 %v1426_v35, %v11728_v3  ;;  %v425_v3 = vld [vmem:[%s11274_s21 + $0x158] sm:$0xff] }
 0x1d1   : > { %10141 = vmatmul.msk.f32.gmra.mxu2 %vm276_vm1, %v1615_v54  ;;  %v11788_v6 = vpop.f32.mrf.mxu0  ;;  %498 = vst.msk [vmem:[#allocation2 + $0x1e9] sm:$0xff] %vm276_vm1, %v425_v3 }
 0x1d2   : > { %10068 = vmatmul.msk.f32.gmra.mxu1 %vm276_vm1, %v11730_v2  ;;  %v642_v2 = vld [vmem:[#allocation2 + $0x1c1] sm:$0xff] }
 0x1d4   : > { %v1949_v15 = vpop.f32.mrf.mxu2  ;;  %9999 = vmatmul.msk.f32.gmra.mxu0 %vm276_vm1, %v641_v43 }
 0x1d5   : > { %10217 = vmatmul.msk.f32.gmra.mxu3 %vm276_vm1, %v11790_v8  ;;  %v2125_v16 = vadd.f32 %v1949_v15, %v1424_v10  ;;  %v1619_v15 = vld [vmem:[#allocation2 + $0x1aa] sm:$0xff] }
 0x1d7   : > { %v11800_v55 = vadd.f32 %v2547_v25, %v2125_v16  ;;  %v1429_v22 = vpop.f32.mrf.mxu1 }
 0x1d8   : > { %v2553_v23 = vpop.f32.mrf.mxu3  ;;  %v1430_v25 = vadd.f32 %v1429_v22, %v11743_v14  ;;  %v426_v14 = vld [vmem:[%s11274_s21 + $0x160] sm:$0xff]  ;;  %v11865_v3 = vld [vmem:[#allocation2 + $0x1e8] sm:$0xff] }
 0x1d9   : > { %10142 = vmatmul.msk.f32.gmra.mxu2 %vm276_vm1, %v1616_v5  ;;  %v11803_v28 = vpop.f32.mrf.mxu0  ;;  %499 = vst.msk [vmem:[#allocation2 + $0x1f1] sm:$0xff] %vm276_vm1, %v426_v14 }
 0x1da   : > { %10069 = vmatmul.msk.f32.gmra.mxu1 %vm276_vm1, %v11745_v63  ;;  %v643_v63 = vld [vmem:[#allocation2 + $0x1c9] sm:$0xff] }
 0x1dc   : > { %v1952_v27 = vpop.f32.mrf.mxu2  ;;  %10000 = vmatmul.msk.f32.gmra.mxu0 %vm276_vm1, %v642_v2  ;;  %v11850_v2 = vld [vmem:[#allocation2 + $0x1e0] sm:$0xff] }
 0x1dd   : > { %10218 = vmatmul.msk.f32.gmra.mxu3 %vm276_vm1, %v11805_v12  ;;  %v2126_v18 = vadd.f32 %v1952_v27, %v1427_v32 }
 0x1df   : > { %v11815_v41 = vadd.f32 %v2550_v50, %v2126_v18  ;;  %v1432_v24 = vpop.f32.mrf.mxu1  ;;  %v11835_v50 = vld [vmem:[#allocation2 + $0x1d0] sm:$0xff] }
 0x1e0   : > { %v2556_v44 = vpop.f32.mrf.mxu3  ;;  %v1433_v43 = vadd.f32 %v1432_v24, %v11758_v11  ;;  %v427_v11 = vld [vmem:[%s11274_s21 + $0x168] sm:$0xff]  ;;  %v1620_v18 = vld [vmem:[#allocation2 + $0x1b2] sm:$0xff] }
 0x1e1   : > { %10143 = vmatmul.msk.f32.gmra.mxu2 %vm276_vm1, %v1617_v4  ;;  %v11818_v46 = vpop.f32.mrf.mxu0  ;;  %500 = vst.msk [vmem:[#allocation2 + $0x201] sm:$0xff] %vm276_vm1, %v427_v11 }
 0x1e2   : > { %10070 = vmatmul.msk.f32.gmra.mxu1 %vm276_vm1, %v11760_v40  ;;  %v644_v40 = vld [vmem:[#allocation2 + $0x1d1] sm:$0xff] }
 0x1e4   : > { %v1955_v37 = vpop.f32.mrf.mxu2  ;;  %10001 = vmatmul.msk.f32.gmra.mxu0 %vm276_vm1, %v643_v63 }
 0x1e5   : > { %10219 = vmatmul.msk.f32.gmra.mxu3 %vm276_vm1, %v11820_v42  ;;  %v2127_v17 = vadd.f32 %v1955_v37, %v1430_v25 }
 0x1e7   : > { %v11830_v58 = vadd.f32 %v2553_v23, %v2127_v17  ;;  %v1435_v61 = vpop.f32.mrf.mxu1 }
 0x1e8   : > { %v2559_v54 = vpop.f32.mrf.mxu3  ;;  %v1436_v52 = vadd.f32 %v1435_v61, %v11773_v53  ;;  %v428_v53 = vld [vmem:[%s11274_s21 + $0x170] sm:$0xff] }
 0x1e9   : > { %10144 = vmatmul.msk.f32.gmra.mxu2 %vm276_vm1, %v1618_v57  ;;  %v11833_v35 = vpop.f32.mrf.mxu0  ;;  %501 = vst.msk [vmem:[#allocation2 + $0x209] sm:$0xff] %vm276_vm1, %v428_v53  ;;  %v1621_v57 = vld [vmem:[#allocation2 + $0x1c2] sm:$0xff] }
 0x1ea   : > { %10071 = vmatmul.msk.f32.gmra.mxu1 %vm276_vm1, %v11775_v38  ;;  %v645_v38 = vld [vmem:[#allocation2 + $0x1e1] sm:$0xff] }
 0x1ec   : > { %v1958_v33 = vpop.f32.mrf.mxu2  ;;  %10002 = vmatmul.msk.f32.gmra.mxu0 %vm276_vm1, %v644_v40 }
 0x1ed   : > { %10220 = vmatmul.msk.f32.gmra.mxu3 %vm276_vm1, %v11835_v50  ;;  %v2128_v10 = vadd.f32 %v1958_v33, %v1433_v43  ;;  %v11880_v43 = vld [vmem:[#allocation2 + $0x1f0] sm:$0xff] }
 0x1ef   : > { %v11845_v16 = vadd.f32 %v2556_v44, %v2128_v10  ;;  %v1438_v5 = vpop.f32.mrf.mxu1 }
 0x1f0   : > { %v2562_v22 = vpop.f32.mrf.mxu3  ;;  %v1439_v25 = vadd.f32 %v1438_v5, %v11788_v6  ;;  %v429_v6 = vld [vmem:[%s11274_s21 + $0x178] sm:$0xff] }
 0x1f1   : > { %10145 = vmatmul.msk.f32.gmra.mxu2 %vm276_vm1, %v1619_v15  ;;  %v11848_v23 = vpop.f32.mrf.mxu0  ;;  %502 = vst.msk [vmem:[#allocation2 + $0x211] sm:$0xff] %vm276_vm1, %v429_v6  ;;  %v1622_v5 = vld [vmem:[#allocation2 + $0x1ca] sm:$0xff] }
 0x1f2   : > { %10072 = vmatmul.msk.f32.gmra.mxu1 %vm276_vm1, %v11790_v8  ;;  %v646_v8 = vld [vmem:[#allocation2 + $0x1e9] sm:$0xff] }
 0x1f4   : > { %v1961_v32 = vpop.f32.mrf.mxu2  ;;  %10003 = vmatmul.msk.f32.gmra.mxu0 %vm276_vm1, %v645_v38 }
 0x1f5   : > { %10221 = vmatmul.msk.f32.gmra.mxu3 %vm276_vm1, %v11850_v2  ;;  %v2129_v27 = vadd.f32 %v1961_v32, %v1436_v52  ;;  %v11895_v32 = vld [vmem:[#allocation2 + $0x200] sm:$0xff] }
 0x1f7   : > { %v11860_v4 = vadd.f32 %v2559_v54, %v2129_v27  ;;  %v1441_v24 = vpop.f32.mrf.mxu1 }
 0x1f8   : > { %v2565_v44 = vpop.f32.mrf.mxu3  ;;  %v1442_v33 = vadd.f32 %v1441_v24, %v11803_v28  ;;  %v430_v28 = vld [vmem:[%s11274_s21 + $0x180] sm:$0xff] }
 0x1f9   : > { %10146 = vmatmul.msk.f32.gmra.mxu2 %vm276_vm1, %v1620_v18  ;;  %v11863_v63 = vpop.f32.mrf.mxu0  ;;  %503 = vst.msk [vmem:[#allocation2 + $0x221] sm:$0xff] %vm276_vm1, %v430_v28  ;;  %v1625_v28 = vld [vmem:[#allocation2 + $0x1ea] sm:$0xff] }
 0x1fa   : > { %10073 = vmatmul.msk.f32.gmra.mxu1 %vm276_vm1, %v11805_v12  ;;  %v647_v12 = vld [vmem:[#allocation2 + $0x1f1] sm:$0xff] }
 0x1fc   : > { %v1964_v37 = vpop.f32.mrf.mxu2  ;;  %10004 = vmatmul.msk.f32.gmra.mxu0 %vm276_vm1, %v646_v8 }
 0x1fd   : > { %10222 = vmatmul.msk.f32.gmra.mxu3 %vm276_vm1, %v11865_v3  ;;  %v2130_v17 = vadd.f32 %v1964_v37, %v1439_v25 }
 0x1ff   : > { %v11875_v61 = vadd.f32 %v2562_v22, %v2130_v17  ;;  %v1444_v54 = vpop.f32.mrf.mxu1  ;;  %v11910_v17 = vld [vmem:[#allocation2 + $0x208] sm:$0xff] }
 0x200   : > { %v2568_v40 = vpop.f32.mrf.mxu3  ;;  %v1445_v27 = vadd.f32 %v1444_v54, %v11818_v46  ;;  %v431_v46 = vld [vmem:[%s11274_s21 + $0x188] sm:$0xff] }
 0x201   : > { %10147 = vmatmul.msk.f32.gmra.mxu2 %vm276_vm1, %v1621_v57  ;;  %v11878_v14 = vpop.f32.mrf.mxu0  ;;  %504 = vst.msk [vmem:[#allocation2 + $0x229] sm:$0xff] %vm276_vm1, %v431_v46 }
 0x202   : > { %10074 = vmatmul.msk.f32.gmra.mxu1 %vm276_vm1, %v11820_v42  ;;  %v648_v42 = vld [vmem:[#allocation2 + $0x201] sm:$0xff] }
 0x204   : > { %v1967_v10 = vpop.f32.mrf.mxu2  ;;  %10005 = vmatmul.msk.f32.gmra.mxu0 %vm276_vm1, %v647_v12  ;;  %v1624_v12 = vld [vmem:[#allocation2 + $0x1e2] sm:$0xff] }
 0x205   : > { %10223 = vmatmul.msk.f32.gmra.mxu3 %vm276_vm1, %v11880_v43  ;;  %v2131_v15 = vadd.f32 %v1967_v10, %v1442_v33 }
 0x207   : > { %v11890_v22 = vadd.f32 %v2565_v44, %v2131_v15  ;;  %v1447_v38 = vpop.f32.mrf.mxu1  ;;  %v1623_v44 = vld [vmem:[#allocation2 + $0x1d2] sm:$0xff] }
 0x208   : > { %v2571_v11 = vpop.f32.mrf.mxu3  ;;  %v1448_v57 = vadd.f32 %v1447_v38, %v11833_v35  ;;  %v432_v35 = vld [vmem:[%s11274_s21 + $0x190] sm:$0xff] }
 0x209   : > { %10148 = vmatmul.msk.f32.gmra.mxu2 %vm276_vm1, %v1622_v5  ;;  %v11893_v52 = vpop.f32.mrf.mxu0  ;;  %v11925_v5 = vld [vmem:[#allocation2 + $0x210] sm:$0xff]  ;;  %505 = vst.msk [vmem:[#allocation2 + $0x231] sm:$0xff] %vm276_vm1, %v432_v35  ;;  %v11955_v35 = vld [vmem:[#allocation2 + $0x228] sm:$0xff] }
 0x20a   : > { %10075 = vmatmul.msk.f32.gmra.mxu1 %vm276_vm1, %v11835_v50  ;;  %v649_v50 = vld [vmem:[#allocation2 + $0x209] sm:$0xff] }
 0x20c   : > { %v1970_v18 = vpop.f32.mrf.mxu2  ;;  %10006 = vmatmul.msk.f32.gmra.mxu0 %vm276_vm1, %v648_v42 }
 0x20d   : > { %10224 = vmatmul.msk.f32.gmra.mxu3 %vm276_vm1, %v11895_v32  ;;  %v2132_v24 = vadd.f32 %v1970_v18, %v1445_v27 }
 0x20f   : > { %v11905_v8 = vadd.f32 %v2568_v40, %v2132_v24  ;;  %v1450_v53 = vpop.f32.mrf.mxu1 }
 0x210   : > { %v2574_v25 = vpop.f32.mrf.mxu3  ;;  %v1451_v38 = vadd.f32 %v1450_v53, %v11848_v23  ;;  %v433_v23 = vld [vmem:[%s11274_s21 + $0x198] sm:$0xff] }
 0x211   : > { %10149 = vmatmul.msk.f32.gmra.mxu2 %vm276_vm1, %v1623_v44  ;;  %v11908_v37 = vpop.f32.mrf.mxu0  ;;  %506 = vst.msk [vmem:[#allocation2 + $0x241] sm:$0xff] %vm276_vm1, %v433_v23 }
 0x212   : > { %10076 = vmatmul.msk.f32.gmra.mxu1 %vm276_vm1, %v11850_v2  ;;  %v650_v2 = vld [vmem:[#allocation2 + $0x211] sm:$0xff] }
 0x214   : > { %v1973_v54 = vpop.f32.mrf.mxu2  ;;  %10007 = vmatmul.msk.f32.gmra.mxu0 %vm276_vm1, %v649_v50  ;;  %v11940_v50 = vld [vmem:[#allocation2 + $0x220] sm:$0xff] }
 0x215   : > { %10225 = vmatmul.msk.f32.gmra.mxu3 %vm276_vm1, %v11910_v17  ;;  %v2133_v40 = vadd.f32 %v1973_v54, %v1448_v57  ;;  %v1626_v57 = vld [vmem:[#allocation2 + $0x1f2] sm:$0xff] }
 0x217   : > { %v11920_v6 = vadd.f32 %v2571_v11, %v2133_v40  ;;  %v1453_v33 = vpop.f32.mrf.mxu1 }
 0x218   : > { %v2577_v10 = vpop.f32.mrf.mxu3  ;;  %v1454_v53 = vadd.f32 %v1453_v33, %v11863_v63  ;;  %v434_v63 = vld [vmem:[%s11274_s21 + $0x1a0] sm:$0xff] }
 0x219   : > { %10150 = vmatmul.msk.f32.gmra.mxu2 %vm276_vm1, %v1624_v12  ;;  %v11923_v15 = vpop.f32.mrf.mxu0  ;;  %507 = vst.msk [vmem:[#allocation2 + $0x249] sm:$0xff] %vm276_vm1, %v434_v63 }
 0x21a   : > { %10077 = vmatmul.msk.f32.gmra.mxu1 %vm276_vm1, %v11865_v3  ;;  %v651_v3 = vld [vmem:[#allocation2 + $0x221] sm:$0xff] }
 0x21c   : > { %v1976_v11 = vpop.f32.mrf.mxu2  ;;  %10008 = vmatmul.msk.f32.gmra.mxu0 %vm276_vm1, %v650_v2 }
 0x21d   : > { %10226 = vmatmul.msk.f32.gmra.mxu3 %vm276_vm1, %v11925_v5  ;;  %v2134_v42 = vadd.f32 %v1976_v11, %v1451_v38  ;;  %v1627_v11 = vld [vmem:[#allocation2 + $0x202] sm:$0xff] }
 0x21f   : > { %v11935_v27 = vadd.f32 %v2574_v25, %v2134_v42  ;;  %v1456_v18 = vpop.f32.mrf.mxu1 }
 0x220   : > { %v2580_v24 = vpop.f32.mrf.mxu3  ;;  %v1457_v33 = vadd.f32 %v1456_v18, %v11878_v14  ;;  %v435_v14 = vld [vmem:[%s11274_s21 + $0x1a8] sm:$0xff] }
 0x221   : > { %10151 = vmatmul.msk.f32.gmra.mxu2 %vm276_vm1, %v1625_v28  ;;  %v11938_v44 = vpop.f32.mrf.mxu0  ;;  %508 = vst.msk [vmem:[#allocation2 + $0x251] sm:$0xff] %vm276_vm1, %v435_v14 }
 0x222   : > { %10078 = vmatmul.msk.f32.gmra.mxu1 %vm276_vm1, %v11880_v43  ;;  %v652_v43 = vld [vmem:[#allocation2 + $0x229] sm:$0xff] }
 0x224   : > { %v1979_v25 = vpop.f32.mrf.mxu2  ;;  %10009 = vmatmul.msk.f32.gmra.mxu0 %vm276_vm1, %v651_v3 }
 0x225   : > { %10227 = vmatmul.msk.f32.gmra.mxu3 %vm276_vm1, %v11940_v50  ;;  %v2135_v46 = vadd.f32 %v1979_v25, %v1454_v53  ;;  %v11970_v53 = vld [vmem:[#allocation2 + $0x230] sm:$0xff] }
 0x227   : > { %v11950_v54 = vadd.f32 %v2577_v10, %v2135_v46  ;;  %v1459_v40 = vpop.f32.mrf.mxu1  ;;  %v1628_v46 = vld [vmem:[#allocation2 + $0x20a] sm:$0xff] }
 0x228   : > { %v2583_v12 = vpop.f32.mrf.mxu3  ;;  %v1460_v18 = vadd.f32 %v1459_v40, %v11893_v52  ;;  %v436_v52 = vld [vmem:[%s11274_s21 + $0x1b0] sm:$0xff] }
 0x229   : > { %10152 = vmatmul.msk.f32.gmra.mxu2 %vm276_vm1, %v1626_v57  ;;  %v11953_v2 = vpop.f32.mrf.mxu0  ;;  %509 = vst.msk [vmem:[#allocation2 + $0x261] sm:$0xff] %vm276_vm1, %v436_v52 }
 0x22a   : > { %10079 = vmatmul.msk.f32.gmra.mxu1 %vm276_vm1, %v11895_v32  ;;  %v653_v32 = vld [vmem:[#allocation2 + $0x231] sm:$0xff] }
 0x22c   : > { %v1982_v10 = vpop.f32.mrf.mxu2  ;;  %10010 = vmatmul.msk.f32.gmra.mxu0 %vm276_vm1, %v652_v43 }
 0x22d   : > { %10228 = vmatmul.msk.f32.gmra.mxu3 %vm276_vm1, %v11955_v35  ;;  %v2136_v38 = vadd.f32 %v1982_v10, %v1457_v33  ;;  %v11985_v10 = vld [vmem:[#allocation2 + $0x240] sm:$0xff] }
 0x22f   : > { %v11965_v42 = vadd.f32 %v2580_v24, %v2136_v38  ;;  %v1462_v28 = vpop.f32.mrf.mxu1 }
 0x230   : > { %v2586_v3 = vpop.f32.mrf.mxu3  ;;  %v1463_v40 = vadd.f32 %v1462_v28, %v11908_v37  ;;  %v437_v37 = vld [vmem:[%s11274_s21 + $0x1b8] sm:$0xff] }
 0x231   : > { %10153 = vmatmul.msk.f32.gmra.mxu2 %vm276_vm1, %v1627_v11  ;;  %v11968_v23 = vpop.f32.mrf.mxu0  ;;  %v1629_v11 = vld [vmem:[#allocation2 + $0x212] sm:$0xff]  ;;  %510 = vst.msk [vmem:[#allocation2 + $0x269] sm:$0xff] %vm276_vm1, %v437_v37  ;;  %v1631_v37 = vld [vmem:[#allocation2 + $0x22a] sm:$0xff] }
 0x232   : > { %10080 = vmatmul.msk.f32.gmra.mxu1 %vm276_vm1, %v11910_v17  ;;  %v654_v17 = vld [vmem:[#allocation2 + $0x241] sm:$0xff] }
 0x234   : > { %v1985_v24 = vpop.f32.mrf.mxu2  ;;  %10011 = vmatmul.msk.f32.gmra.mxu0 %vm276_vm1, %v653_v32 }
 0x235   : > { %10229 = vmatmul.msk.f32.gmra.mxu3 %vm276_vm1, %v11970_v53  ;;  %v2137_v25 = vadd.f32 %v1985_v24, %v1460_v18 }
 0x237   : > { %v11980_v57 = vadd.f32 %v2583_v12, %v2137_v25  ;;  %v1465_v43 = vpop.f32.mrf.mxu1  ;;  %v12000_v25 = vld [vmem:[#allocation2 + $0x248] sm:$0xff] }
 0x238   : > { %v2589_v63 = vpop.f32.mrf.mxu3  ;;  %v1466_v28 = vadd.f32 %v1465_v43, %v11923_v15  ;;  %v438_v15 = vld [vmem:[%s11274_s21 + $0x1c0] sm:$0xff] }
 0x239   : > { %10154 = vmatmul.msk.f32.gmra.mxu2 %vm276_vm1, %v1628_v46  ;;  %v11983_v33 = vpop.f32.mrf.mxu0  ;;  %511 = vst.msk [vmem:[#allocation2 + $0x271] sm:$0xff] %vm276_vm1, %v438_v15  ;;  %v12030_v15 = vld [vmem:[#allocation2 + $0x260] sm:$0xff] }
 0x23a   : > { %10081 = vmatmul.msk.f32.gmra.mxu1 %vm276_vm1, %v11925_v5  ;;  %v655_v5 = vld [vmem:[#allocation2 + $0x249] sm:$0xff] }
 0x23c   : > { %v1988_v12 = vpop.f32.mrf.mxu2  ;;  %10012 = vmatmul.msk.f32.gmra.mxu0 %vm276_vm1, %v654_v17  ;;  %v1630_v17 = vld [vmem:[#allocation2 + $0x222] sm:$0xff] }
 0x23d   : > { %10230 = vmatmul.msk.f32.gmra.mxu3 %vm276_vm1, %v11985_v10  ;;  %v2138_v38 = vadd.f32 %v1988_v12, %v1463_v40 }
 0x23f   : > { %v11995_v32 = vadd.f32 %v2586_v3, %v2138_v38  ;;  %v1468_v14 = vpop.f32.mrf.mxu1 }
 0x240   : > { %v2592_v18 = vpop.f32.mrf.mxu3  ;;  %v1469_v43 = vadd.f32 %v1468_v14, %v11938_v44  ;;  %v439_v44 = vld [vmem:[%s11274_s21 + $0x1c8] sm:$0xff] }
 0x241   : > { %15019 = vst [vmem:[#allocation9_spill] sm:$0xff] %v11995_v32  ;;  %10155 = vmatmul.msk.f32.gmra.mxu2 %vm276_vm1, %v1629_v11  ;;  %v11998_v24 = vpop.f32.mrf.mxu0  ;;  %v12015_v11 = vld [vmem:[#allocation2 + $0x250] sm:$0xff] }
 0x242   : > { %10082 = vmatmul.msk.f32.gmra.mxu1 %vm276_vm1, %v11940_v50  ;;  %v656_v50 = vld [vmem:[#allocation2 + $0x251] sm:$0xff]  ;;  %512 = vst.msk [vmem:[#allocation2 + $0x281] sm:$0xff] %vm276_vm1, %v439_v44  ;;  %v12045_v44 = vld [vmem:[#allocation2 + $0x268] sm:$0xff] }
 0x244   : > { %v1991_v3 = vpop.f32.mrf.mxu2  ;;  %10013 = vmatmul.msk.f32.gmra.mxu0 %vm276_vm1, %v655_v5 }
 0x245   : > { %10231 = vmatmul.msk.f32.gmra.mxu3 %vm276_vm1, %v12000_v25  ;;  %v2139_v46 = vadd.f32 %v1991_v3, %v1466_v28 }
 0x247   : > { %v12010_v52 = vadd.f32 %v2589_v63, %v2139_v46  ;;  %v1471_v40 = vpop.f32.mrf.mxu1 }
 0x248   : > { %v2595_v12 = vpop.f32.mrf.mxu3  ;;  %v1472_v14 = vadd.f32 %v1471_v40, %v11953_v2  ;;  %v440_v2 = vld [vmem:[%s11274_s21 + $0x1d0] sm:$0xff] }
 0x249   : > { %15020 = vst [vmem:[#allocation10_spill] sm:$0xff] %v12010_v52  ;;  %10156 = vmatmul.msk.f32.gmra.mxu2 %vm276_vm1, %v1630_v17  ;;  %v12013_v38 = vpop.f32.mrf.mxu0 }
 0x24a   : > { %10083 = vmatmul.msk.f32.gmra.mxu1 %vm276_vm1, %v11955_v35  ;;  %v657_v35 = vld [vmem:[#allocation2 + $0x261] sm:$0xff]  ;;  %513 = vst.msk [vmem:[#allocation2 + $0x289] sm:$0xff] %vm276_vm1, %v440_v2  ;;  %v12060_v2 = vld [vmem:[#allocation2 + $0x270] sm:$0xff] }
 0x24c   : > { %v1994_v63 = vpop.f32.mrf.mxu2  ;;  %10014 = vmatmul.msk.f32.gmra.mxu0 %vm276_vm1, %v656_v50 }
 0x24d   : > { %10232 = vmatmul.msk.f32.gmra.mxu3 %vm276_vm1, %v12015_v11  ;;  %v2140_v5 = vadd.f32 %v1994_v63, %v1469_v43  ;;  %v1632_v43 = vld [vmem:[#allocation2 + $0x232] sm:$0xff] }
 0x24f   : > { %v12025_v28 = vadd.f32 %v2592_v18, %v2140_v5  ;;  %v1474_v3 = vpop.f32.mrf.mxu1 }
 0x250   : > { %v2598_v46 = vpop.f32.mrf.mxu3  ;;  %v1475_v40 = vadd.f32 %v1474_v3, %v11968_v23  ;;  %v441_v23 = vld [vmem:[%s11274_s21 + $0x1d8] sm:$0xff] }
 0x251   : > { %15021 = vst [vmem:[#allocation11_spill] sm:$0xff] %v12025_v28  ;;  %10157 = vmatmul.msk.f32.gmra.mxu2 %vm276_vm1, %v1631_v37  ;;  %v12028_v17 = vpop.f32.mrf.mxu0 }
 0x252   : > { %10084 = vmatmul.msk.f32.gmra.mxu1 %vm276_vm1, %v11970_v53  ;;  %v658_v53 = vld [vmem:[#allocation2 + $0x269] sm:$0xff]  ;;  %514 = vst.msk [vmem:[#allocation2 + $0x291] sm:$0xff] %vm276_vm1, %v441_v23  ;;  %v12075_v23 = vld [vmem:[#allocation2 + $0x280] sm:$0xff] }
 0x254   : > { %v1997_v18 = vpop.f32.mrf.mxu2  ;;  %10015 = vmatmul.msk.f32.gmra.mxu0 %vm276_vm1, %v657_v35 }
 0x255   : > { %10233 = vmatmul.msk.f32.gmra.mxu3 %vm276_vm1, %v12030_v15  ;;  %v2141_v50 = vadd.f32 %v1997_v18, %v1472_v14  ;;  %v1633_v14 = vld [vmem:[#allocation2 + $0x242] sm:$0xff] }
 0x257   : > { %v12040_v63 = vadd.f32 %v2595_v12, %v2141_v50  ;;  %v1477_v5 = vpop.f32.mrf.mxu1 }
 0x258   : > { %v2601_v37 = vpop.f32.mrf.mxu3  ;;  %v1478_v3 = vadd.f32 %v1477_v5, %v11983_v33  ;;  %v442_v33 = vld [vmem:[%s11274_s21 + $0x1e0] sm:$0xff] }
 0x259   : > { %15022 = vst [vmem:[#allocation12_spill] sm:$0xff] %v12040_v63  ;;  %10158 = vmatmul.msk.f32.gmra.mxu2 %vm276_vm1, %v1632_v43  ;;  %v12043_v28 = vpop.f32.mrf.mxu0 }
 0x25a   : > { %10085 = vmatmul.msk.f32.gmra.mxu1 %vm276_vm1, %v11985_v10  ;;  %v659_v10 = vld [vmem:[#allocation2 + $0x271] sm:$0xff]  ;;  %515 = vst.msk [vmem:[#allocation2 + $0x2a1] sm:$0xff] %vm276_vm1, %v442_v33  ;;  %v12090_v33 = vld [vmem:[#allocation2 + $0x288] sm:$0xff] }
 0x25c   : > { %v2000_v12 = vpop.f32.mrf.mxu2  ;;  %10016 = vmatmul.msk.f32.gmra.mxu0 %vm276_vm1, %v658_v53 }
 0x25d   : > { %10234 = vmatmul.msk.f32.gmra.mxu3 %vm276_vm1, %v12045_v44  ;;  %v2142_v35 = vadd.f32 %v2000_v12, %v1475_v40  ;;  %v1634_v40 = vld [vmem:[#allocation2 + $0x24a] sm:$0xff] }
 0x25f   : > { %v12055_v18 = vadd.f32 %v2598_v46, %v2142_v35  ;;  %v1480_v50 = vpop.f32.mrf.mxu1 }
 0x260   : > { %v2604_v43 = vpop.f32.mrf.mxu3  ;;  %v1481_v5 = vadd.f32 %v1480_v50, %v11998_v24  ;;  %v443_v24 = vld [vmem:[%s11274_s21 + $0x1e8] sm:$0xff] }
 0x261   : > { %15023 = vst [vmem:[#allocation13_spill] sm:$0xff] %v12055_v18  ;;  %10159 = vmatmul.msk.f32.gmra.mxu2 %vm276_vm1, %v1633_v14  ;;  %v12058_v63 = vpop.f32.mrf.mxu0 }
 0x262   : > { %10086 = vmatmul.msk.f32.gmra.mxu1 %vm276_vm1, %v12000_v25  ;;  %v660_v25 = vld [vmem:[#allocation2 + $0x281] sm:$0xff]  ;;  %516 = vst.msk [vmem:[#allocation2 + $0x2a9] sm:$0xff] %vm276_vm1, %v443_v24  ;;  %v12105_v24 = vld [vmem:[#allocation2 + $0x290] sm:$0xff] }
 0x264   : > { %v2003_v46 = vpop.f32.mrf.mxu2  ;;  %10017 = vmatmul.msk.f32.gmra.mxu0 %vm276_vm1, %v659_v10 }
 0x265   : > { %10235 = vmatmul.msk.f32.gmra.mxu3 %vm276_vm1, %v12060_v2  ;;  %v2143_v53 = vadd.f32 %v2003_v46, %v1478_v3  ;;  %v1635_v3 = vld [vmem:[#allocation2 + $0x252] sm:$0xff] }
 0x267   : > { %v12070_v12 = vadd.f32 %v2601_v37, %v2143_v53  ;;  %v1483_v35 = vpop.f32.mrf.mxu1 }
 0x268   : > { %v2607_v14 = vpop.f32.mrf.mxu3  ;;  %v1484_v50 = vadd.f32 %v1483_v35, %v12013_v38  ;;  %v444_v38 = vld [vmem:[%s11274_s21 + $0x1f0] sm:$0xff] }
 0x269   : > { %15024 = vst [vmem:[#allocation14_spill] sm:$0xff] %v12070_v12  ;;  %10160 = vmatmul.msk.f32.gmra.mxu2 %vm276_vm1, %v1634_v40  ;;  %v12073_v18 = vpop.f32.mrf.mxu0 }
 0x26a   : > { %10087 = vmatmul.msk.f32.gmra.mxu1 %vm276_vm1, %v12015_v11  ;;  %v661_v11 = vld [vmem:[#allocation2 + $0x289] sm:$0xff]  ;;  %517 = vst.msk [vmem:[#allocation2 + $0x2b1] sm:$0xff] %vm276_vm1, %v444_v38  ;;  %v12120_v38 = vld [vmem:[#allocation2 + $0x2a0] sm:$0xff] }
 0x26c   : > { %v2006_v37 = vpop.f32.mrf.mxu2  ;;  %10018 = vmatmul.msk.f32.gmra.mxu0 %vm276_vm1, %v660_v25 }
 0x26d   : > { %10236 = vmatmul.msk.f32.gmra.mxu3 %vm276_vm1, %v12075_v23  ;;  %v2144_v10 = vadd.f32 %v2006_v37, %v1481_v5  ;;  %v1636_v5 = vld [vmem:[#allocation2 + $0x262] sm:$0xff] }
 0x26f   : > { %v12085_v46 = vadd.f32 %v2604_v43, %v2144_v10  ;;  %v1486_v53 = vpop.f32.mrf.mxu1 }
 0x270   : > { %v2610_v40 = vpop.f32.mrf.mxu3  ;;  %v1487_v35 = vadd.f32 %v1486_v53, %v12028_v17  ;;  %v445_v17 = vld [vmem:[%s11274_s21 + $0x1f8] sm:$0xff] }
 0x271   : > { %15025 = vst [vmem:[#allocation15_spill] sm:$0xff] %v12085_v46  ;;  %10161 = vmatmul.msk.f32.gmra.mxu2 %vm276_vm1, %v1635_v3  ;;  %v12088_v12 = vpop.f32.mrf.mxu0 }
 0x272   : > { %10088 = vmatmul.msk.f32.gmra.mxu1 %vm276_vm1, %v12030_v15  ;;  %v662_v15 = vld [vmem:[#allocation2 + $0x291] sm:$0xff]  ;;  %518 = vst.msk [vmem:[#allocation2 + $0x2c1] sm:$0xff] %vm276_vm1, %v445_v17  ;;  %v12135_v17 = vld [vmem:[#allocation2 + $0x2a8] sm:$0xff] }
 0x274   : > { %v2009_v43 = vpop.f32.mrf.mxu2  ;;  %10019 = vmatmul.msk.f32.gmra.mxu0 %vm276_vm1, %v661_v11 }
 0x275   : > { %10237 = vmatmul.msk.f32.gmra.mxu3 %vm276_vm1, %v12090_v33  ;;  %v2145_v25 = vadd.f32 %v2009_v43, %v1484_v50  ;;  %v1637_v50 = vld [vmem:[#allocation2 + $0x26a] sm:$0xff] }
 0x277   : > { %v12100_v37 = vadd.f32 %v2607_v14, %v2145_v25  ;;  %v1489_v10 = vpop.f32.mrf.mxu1 }
 0x278   : > { %v2613_v3 = vpop.f32.mrf.mxu3  ;;  %v1490_v53 = vadd.f32 %v1489_v10, %v12043_v28  ;;  %v446_v28 = vld [vmem:[%s11274_s21 + $0x200] sm:$0xff] }
 0x279   : > { %15026 = vst [vmem:[#allocation16_spill] sm:$0xff] %v12100_v37  ;;  %10162 = vmatmul.msk.f32.gmra.mxu2 %vm276_vm1, %v1636_v5  ;;  %v12103_v46 = vpop.f32.mrf.mxu0 }
 0x27a   : > { %10089 = vmatmul.msk.f32.gmra.mxu1 %vm276_vm1, %v12045_v44  ;;  %v663_v44 = vld [vmem:[#allocation2 + $0x2a1] sm:$0xff]  ;;  %519 = vst.msk [vmem:[#allocation2 + $0x2c9] sm:$0xff] %vm276_vm1, %v446_v28 }
 0x27c   : > { %v2012_v14 = vpop.f32.mrf.mxu2  ;;  %10020 = vmatmul.msk.f32.gmra.mxu0 %vm276_vm1, %v662_v15 }
 0x27d   : > { %10238 = vmatmul.msk.f32.gmra.mxu3 %vm276_vm1, %v12105_v24  ;;  %v2146_v11 = vadd.f32 %v2012_v14, %v1487_v35  ;;  %v1638_v35 = vld [vmem:[#allocation2 + $0x272] sm:$0xff] }
 0x27f   : > { %v12115_v43 = vadd.f32 %v2610_v40, %v2146_v11  ;;  %v1492_v25 = vpop.f32.mrf.mxu1 }
 0x280   : > { %v2616_v5 = vpop.f32.mrf.mxu3  ;;  %v1493_v10 = vadd.f32 %v1492_v25, %v12058_v63  ;;  %v665_v25 = vld [vmem:[#allocation2 + $0x2b1] sm:$0xff] }
 0x281   : > { %15027 = vst [vmem:[#allocation17_spill] sm:$0xff] %v12115_v43  ;;  %10163 = vmatmul.msk.f32.gmra.mxu2 %vm276_vm1, %v1637_v50  ;;  %v12118_v37 = vpop.f32.mrf.mxu0  ;;  %v2241_v52 = vld [vmem:[#allocation2 + $0x2c8] sm:$0xff] }
 0x282   : > { %10090 = vmatmul.msk.f32.gmra.mxu1 %vm276_vm1, %v12060_v2  ;;  %v664_v2 = vld [vmem:[#allocation2 + $0x2a9] sm:$0xff] }
 0x284   : > { %v2015_v40 = vpop.f32.mrf.mxu2  ;;  %10021 = vmatmul.msk.f32.gmra.mxu0 %vm276_vm1, %v663_v44 }
 0x285   : > { %10239 = vmatmul.msk.f32.gmra.mxu3 %vm276_vm1, %v12120_v38  ;;  %v2147_v15 = vadd.f32 %v2015_v40, %v1490_v53  ;;  %v1639_v53 = vld [vmem:[#allocation2 + $0x282] sm:$0xff] }
 0x287   : > { %v12130_v14 = vadd.f32 %v2613_v3, %v2147_v15  ;;  %v1495_v11 = vpop.f32.mrf.mxu1 }
 0x288   : > { %v2619_v50 = vpop.f32.mrf.mxu3  ;;  %v1496_v28 = vadd.f32 %v1495_v11, %v12073_v18  ;;  %v666_v11 = vld [vmem:[#allocation2 + $0x2c1] sm:$0xff] }
 0x289   : > { %15028 = vst [vmem:[#allocation18_spill] sm:$0xff] %v12130_v14  ;;  %10164 = vmatmul.msk.f32.gmra.mxu2 %vm276_vm1, %v1638_v35  ;;  %v12133_v43 = vpop.f32.mrf.mxu0 }
 0x28a   : > { %10091 = vmatmul.msk.f32.gmra.mxu1 %vm276_vm1, %v12075_v23  ;;  %v10399_v23 = vld [vmem:[%s14971_s1 + $0x18] sm:$0x7] }
 0x28b   : > { %10400 = vmatpush.msk.msra.mxu2 %vm890_vm0, %v10399_v23 }
 0x28c   : > { %v2018_v44 = vpop.f32.mrf.mxu2  ;;  %10022 = vmatmul.msk.f32.gmra.mxu0 %vm276_vm1, %v664_v2  ;;  %v12154_v2 = vld [vmem:[#allocation2 + $0x2b0] sm:$0xff] }
 0x28d   : > { %10240 = vmatmul.msk.f32.gmra.mxu3 %vm276_vm1, %v12135_v17  ;;  %v2148_v3 = vadd.f32 %v2018_v44, %v1493_v10 }
 0x28f   : > { %v12145_v40 = vadd.f32 %v2616_v5, %v2148_v3  ;;  %v1498_v15 = vpop.f32.mrf.mxu1  ;;  %v10473_v5 = vld [vmem:[%s14971_s1 + $0x1c] sm:$0x7]  ;;  %v10325_v3 = vld [vmem:[%s14971_s1 + $0x14] sm:$0x7] }
 0x290   : > { %v2622_v35 = vpop.f32.mrf.mxu3  ;;  %10474 = vmatpush.msk.msrb.mxu3 %vm890_vm0, %v10473_v5  ;;  %10326 = vmatpush.msk.msra.mxu1 %vm890_vm0, %v10325_v3  ;;  %v1641_v3 = vld [vmem:[#allocation2 + $0x292] sm:$0xff] }
 0x291   : > { %15029 = vst [vmem:[#allocation19_spill] sm:$0xff] %v12145_v40  ;;  %10165 = vmatmul.msk.f32.gmra.mxu2 %vm276_vm1, %v1639_v53  ;;  %v12152_v63 = vpop.f32.mrf.mxu0  ;;  %v1640_v53 = vld [vmem:[#allocation2 + $0x28a] sm:$0xff] }
 0x292   : > { %10092 = vmatmul.msk.f32.gmra.mxu1 %vm276_vm1, %v12090_v33 }
 0x294   : > { %v2021_v10 = vpop.f32.mrf.mxu2  ;;  %10023 = vmatmul.msk.f32.gmra.mxu0 %vm276_vm1, %v665_v25  ;;  %v2240_v25 = vld [vmem:[#allocation2 + $0x2c0] sm:$0xff] }
 0x295   : > { %10241 = vmatmul.msk.f32.gmra.mxu3 %vm276_vm1, %v12154_v2  ;;  %v2149_v44 = vadd.f32 %v2021_v10, %v1496_v28  ;;  %v10547_v28 = vld [vmem:[%s14971_s1 + $0x20] sm:$0x7] }
 0x296   : > { %10548 = vmatpush.msk.msra.mxu0 %vm890_vm0, %v10547_v28 }
 0x297   : > { %v12170_v23 = vadd.f32 %v2619_v50, %v2149_v44  ;;  %v1501_v33 = vpop.f32.mrf.mxu1  ;;  %v1499_v50 = vadd.f32 %v1498_v15, %v12088_v12 }
 0x298   : > { %v2625_v5 = vpop.f32.mrf.mxu3  ;;  %v1502_v12 = vadd.f32 %v1501_v33, %v12103_v46 }
 0x299   : > { %15030 = vst [vmem:[#allocation20_spill] sm:$0xff] %v12170_v23  ;;  %10166 = vmatmul.msk.f32.gmra.mxu2 %vm276_vm1, %v1640_v53  ;;  %v12173_v18 = vpop.f32.mrf.mxu0 }
 0x29a   : > { %10093 = vmatmul.msk.f32.gmra.mxu1 %vm276_vm1, %v12105_v24  ;;  %v667_v24 = vld [vmem:[#allocation2 + $0x2c9] sm:$0xff] }
 0x29c   : > { %v2024_v10 = vpop.f32.mrf.mxu2  ;;  %10024 = vmatmul.msk.f32.gmra.mxu0 %vm276_vm1, %v666_v11  ;;  %v1642_v11 = vld [vmem:[#allocation2 + $0x2a2] sm:$0xff] }
 0x29d   : > { %10242 = vmatmul.msk.f32.gmra.mxu3 %vm276_vm1, %v2240_v25  ;;  %v2150_v44 = vadd.f32 %v2024_v10, %v1499_v50 }
 0x29f   : > { %v12184_v53 = vadd.f32 %v2622_v35, %v2150_v44  ;;  %v1504_v23 = vpop.f32.mrf.mxu1 }
 0x2a0   : > { %v2628_v40 = vpop.f32.mrf.mxu3  ;;  %v1505_v46 = vadd.f32 %v1504_v23, %v12118_v37  ;;  %v451_v37 = vld [vmem:[%s11274_s21 + $0x228] sm:$0xff] }
 0x2a1   : > { %15031 = vst [vmem:[#allocation21_spill] sm:$0xff] %v12184_v53  ;;  %10167 = vmatmul.msk.f32.gmra.mxu2 %vm276_vm1, %v1641_v3  ;;  %v12187_v14 = vpop.f32.mrf.mxu0  ;;  %v2775_v3 = vld [vmem:[#allocation2 + $0x21] sm:$0xff]  ;;  %v12199_v53 = vld [vmem:[#allocation2 + $0x2d0] sm:$0xff] }
 0x2a2   : > { %10094 = vmatmul.msk.f32.gmra.mxu1 %vm276_vm1, %v12120_v38  ;;  %524 = vst.msk [vmem:[#allocation2 + $0x301] sm:$0xff] %vm276_vm1, %v451_v37 }
 0x2a4   : > { %v2027_v15 = vpop.f32.mrf.mxu2  ;;  %10025 = vmatmul.msk.f32.gmra.mxu0 %vm276_vm1, %v667_v24 }
 0x2a5   : > { %10243 = vmatmul.msk.f32.gmra.mxu3 %vm276_vm1, %v2241_v52  ;;  %v2151_v35 = vadd.f32 %v2027_v15, %v1502_v12 }
 0x2a7   : > { %v12194_v28 = vadd.f32 %v2625_v5, %v2151_v35  ;;  %v1507_v50 = vpop.f32.mrf.mxu1  ;;  %v1643_v5 = vld [vmem:[#allocation2 + $0x2aa] sm:$0xff] }
 0x2a8   : > { %v2631_v10 = vpop.f32.mrf.mxu3  ;;  %v1508_v23 = vadd.f32 %v1507_v50, %v12133_v43  ;;  %v2244_v43 = vld [vmem:[#allocation2 + $0x2e8] sm:$0xff] }
 0x2a9   : > { %15032 = vst [vmem:[#allocation22_spill] sm:$0xff] %v12194_v28  ;;  %10168 = vmatmul.msk.f32.gmra.mxu2 %vm276_vm1, %v1642_v11  ;;  %v12197_v44 = vpop.f32.mrf.mxu0  ;;  %v2776_v11 = vld [vmem:[#allocation2 + $0x29] sm:$0xff]  ;;  %v2780_v28 = vld [vmem:[#allocation2 + $0x51] sm:$0xff] }
 0x2aa   : > { %10095 = vmatmul.msk.f32.gmra.mxu1 %vm276_vm1, %v12135_v17  ;;  %v12212_v17 = vld [vmem:[#allocation2 + $0x2e0] sm:$0xff]  ;;  %v452_v50 = vld [vmem:[%s11274_s21 + $0x230] sm:$0xff] }
 0x2ab   : > { %525 = vst.msk [vmem:[#allocation2 + $0x309] sm:$0xff] %vm276_vm1, %v452_v50 }
 0x2ac   : > { %v2030_v38 = vpop.f32.mrf.mxu2  ;;  %10253 = vmatmul.msk.f32.vlgmr.msrb.gmra.mxu0 %vm276_vm1, %v2775_v3 }
 0x2ad   : > { %10244 = vmatmul.msk.f32.gmra.mxu3 %vm276_vm1, %v12199_v53  ;;  %v2152_v33 = vadd.f32 %v2030_v38, %v1505_v46  ;;  %v1644_v46 = vld [vmem:[#allocation2 + $0x2b2] sm:$0xff] }
 0x2af   : > { %v12207_v24 = vadd.f32 %v2628_v40, %v2152_v33  ;;  %v1510_v12 = vpop.f32.mrf.mxu1 }
 0x2b0   : > { %v2634_v15 = vpop.f32.mrf.mxu3 }
 0x2b1   : > { %15033 = vst [vmem:[#allocation23_spill] sm:$0xff] %v12207_v24  ;;  %10169 = vmatmul.msk.f32.gmra.mxu2 %vm276_vm1, %v1643_v5  ;;  %v12210_v35 = vpop.f32.mrf.mxu0  ;;  %v2777_v24 = vld [vmem:[#allocation2 + $0x31] sm:$0xff] }
 0x2b2   : > { %10096 = vmatmul.msk.f32.gmra.mxu1 %vm276_vm1, %v12154_v2  ;;  %v2247_v32 = vld [vmem:[#allocation2 + $0x308] sm:$0xff] }
 0x2b4   : > { %v2033_v40 = vpop.f32.mrf.mxu2  ;;  %10254 = vmatmul.msk.f32.gmra.mxu0 %vm276_vm1, %v2776_v11  ;;  %v1511_v11 = vadd.f32 %v1510_v12, %v12152_v63  ;;  %v2245_v63 = vld [vmem:[#allocation2 + $0x2f0] sm:$0xff] }
 0x2b5   : > { %10245 = vmatmul.msk.f32.gmra.mxu3 %vm276_vm1, %v12212_v17  ;;  %v2153_v3 = vadd.f32 %v2033_v40, %v1508_v23  ;;  %v1645_v23 = vld [vmem:[#allocation2 + $0x2c2] sm:$0xff]  ;;  %v453_v12 = vld [vmem:[%s11274_s21 + $0x238] sm:$0xff] }
 0x2b6   : > { %526 = vst.msk [vmem:[#allocation2 + $0x311] sm:$0xff] %vm276_vm1, %v453_v12 }
 0x2b7   : > { %v12222_v38 = vadd.f32 %v2631_v10, %v2153_v3  ;;  %v1513_v33 = vpop.f32.mrf.mxu1 }
 0x2b8   : > { %v2637_v5 = vpop.f32.mrf.mxu3 }
 0x2b9   : > { %15034 = vst [vmem:[#allocation24_spill] sm:$0xff] %v12222_v38  ;;  %10170 = vmatmul.msk.f32.gmra.mxu2 %vm276_vm1, %v1644_v46  ;;  %v12225_v2 = vpop.f32.mrf.mxu0  ;;  %v12238_v38 = vld [vmem:[#allocation2 + $0x41] sm:$0xff] }
 0x2ba   : > { %10097 = vmatmul.msk.f32.gmra.mxu1 %vm276_vm1, %v2240_v25 }
 0x2bc   : > { %v2036_v37 = vpop.f32.mrf.mxu2  ;;  %10255 = vmatmul.msk.f32.gmra.mxu0 %vm276_vm1, %v2777_v24  ;;  %v1514_v24 = vadd.f32 %v1513_v33, %v12173_v18  ;;  %v2246_v18 = vld [vmem:[#allocation2 + $0x300] sm:$0xff] }
 0x2bd   : > { %10246 = vmatmul.msk.f32.gmra.mxu3 %vm276_vm1, %v2244_v43  ;;  %v2154_v10 = vadd.f32 %v2036_v37, %v1511_v11  ;;  %v1646_v11 = vld [vmem:[#allocation2 + $0x2ca] sm:$0xff] }
 0x2bf   : > { %v12233_v40 = vadd.f32 %v2634_v15, %v2154_v10  ;;  %v1516_v3 = vpop.f32.mrf.mxu1 }
 0x2c0   : > { %v2640_v46 = vpop.f32.mrf.mxu3  ;;  %v1517_v33 = vadd.f32 %v1516_v3, %v12187_v14 }
 0x2c1   : > { %15035 = vst [vmem:[#allocation25_spill] sm:$0xff] %v12233_v40  ;;  %10171 = vmatmul.msk.f32.gmra.mxu2 %vm276_vm1, %v1645_v23  ;;  %v12236_v25 = vpop.f32.mrf.mxu0  ;;  %v2779_v40 = vld [vmem:[#allocation2 + $0x49] sm:$0xff] }
 0x2c2   : > { %10098 = vmatmul.msk.f32.gmra.mxu1 %vm276_vm1, %v2241_v52 }
 0x2c4   : > { %v2039_v50 = vpop.f32.mrf.mxu2  ;;  %10256 = vmatmul.msk.f32.gmra.mxu0 %vm276_vm1, %v12238_v38 }
 0x2c5   : > { %10247 = vmatmul.msk.f32.gmra.mxu3 %vm276_vm1, %v2245_v63  ;;  %v2155_v15 = vadd.f32 %v2039_v50, %v1514_v24  ;;  %v1647_v24 = vld [vmem:[#allocation2 + $0x2d2] sm:$0xff] }
 0x2c7   : > { %v12247_v37 = vadd.f32 %v2637_v5, %v2155_v15  ;;  %v1519_v10 = vpop.f32.mrf.mxu1 }
 0x2c8   : > { %v2643_v23 = vpop.f32.mrf.mxu3  ;;  %v1520_v14 = vadd.f32 %v1519_v10, %v12197_v44  ;;  %v1649_v10 = vld [vmem:[#allocation2 + $0x2ea] sm:$0xff] }
 0x2c9   : > { %15036 = vst [vmem:[#allocation26_spill] sm:$0xff] %v12247_v37  ;;  %10172 = vmatmul.msk.f32.gmra.mxu2 %vm276_vm1, %v1646_v11  ;;  %v12250_v52 = vpop.f32.mrf.mxu0 }
 0x2ca   : > { %10099 = vmatmul.msk.f32.gmra.mxu1 %vm276_vm1, %v12199_v53 }
 0x2cc   : > { %v2042_v12 = vpop.f32.mrf.mxu2  ;;  %10257 = vmatmul.msk.f32.gmra.mxu0 %vm276_vm1, %v2779_v40 }
 0x2cd   : > { %10248 = vmatmul.msk.f32.gmra.mxu3 %vm276_vm1, %v2246_v18  ;;  %v2156_v5 = vadd.f32 %v2042_v12, %v1517_v33 }
 0x2cf   : > { %v12257_v50 = vadd.f32 %v2640_v46, %v2156_v5  ;;  %v1522_v15 = vpop.f32.mrf.mxu1  ;;  %v1648_v46 = vld [vmem:[#allocation2 + $0x2e2] sm:$0xff] }
 0x2d0   : > { %v2646_v11 = vpop.f32.mrf.mxu3  ;;  %v1523_v44 = vadd.f32 %v1522_v15, %v12210_v35  ;;  %v1650_v15 = vld [vmem:[#allocation2 + $0x2f2] sm:$0xff] }
 0x2d1   : > { %15037 = vst [vmem:[#allocation27_spill] sm:$0xff] %v12257_v50  ;;  %10173 = vmatmul.msk.f32.gmra.mxu2 %vm276_vm1, %v1647_v24  ;;  %v12260_v37 = vpop.f32.mrf.mxu0  ;;  %v2781_v24 = vld [vmem:[#allocation2 + $0x61] sm:$0xff]  ;;  %v2248_v50 = vld [vmem:[#allocation2 + $0x310] sm:$0xff] }
 0x2d2   : > { %10100 = vmatmul.msk.f32.gmra.mxu1 %vm276_vm1, %v12212_v17 }
 0x2d4   : > { %v2045_v53 = vpop.f32.mrf.mxu2  ;;  %10258 = vmatmul.msk.f32.gmra.mxu0 %vm276_vm1, %v2780_v28 }
 0x2d5   : > { %10249 = vmatmul.msk.f32.gmra.mxu3 %vm276_vm1, %v2247_v32  ;;  %v2157_v3 = vadd.f32 %v2045_v53, %v1520_v14 }
 0x2d7   : > { %v12267_v18 = vadd.f32 %v2643_v23, %v2157_v3  ;;  %v1525_v33 = vpop.f32.mrf.mxu1 }
 0x2d8   : > { %v2649_v12 = vpop.f32.mrf.mxu3  ;;  %v1526_v35 = vadd.f32 %v1525_v33, %v12225_v2 }
 0x2d9   : > { %15038 = vst [vmem:[#allocation28_spill] sm:$0xff] %v12267_v18  ;;  %10174 = vmatmul.msk.f32.gmra.mxu2 %vm276_vm1, %v1648_v46  ;;  %v12270_v5 = vpop.f32.mrf.mxu0  ;;  %v2782_v46 = vld [vmem:[#allocation2 + $0x69] sm:$0xff] }
 0x2da   : > { %10101 = vmatmul.msk.f32.gmra.mxu1 %vm276_vm1, %v2244_v43 }
 0x2dc   : > { %v2048_v17 = vpop.f32.mrf.mxu2  ;;  %10259 = vmatmul.msk.f32.gmra.mxu0 %vm276_vm1, %v2781_v24 }
 0x2dd   : > { %10250 = vmatmul.msk.f32.gmra.mxu3 %vm276_vm1, %v2248_v50  ;;  %v2158_v32 = vadd.f32 %v2048_v17, %v1523_v44  ;;  %v3373_v17 = vld [vmem:[#allocation2 + $0x22] sm:$0xff] }
 0x2df   : > { %v12276_v23 = vadd.f32 %v2646_v11, %v2158_v32  ;;  %v1528_v14 = vpop.f32.mrf.mxu1 }
 0x2e0   : > { %v2652_v53 = vpop.f32.mrf.mxu3  ;;  %v1529_v2 = vadd.f32 %v1528_v14, %v12236_v25 }
 0x2e1   : > { %15039 = vst [vmem:[#allocation29_spill] sm:$0xff] %v12276_v23  ;;  %10175 = vmatmul.msk.f32.gmra.mxu2 %vm276_vm1, %v1649_v10  ;;  %v12279_v3 = vpop.f32.mrf.mxu0  ;;  %v2784_v23 = vld [vmem:[#allocation2 + $0x81] sm:$0xff] }
 0x2e2   : > { %10102 = vmatmul.msk.f32.gmra.mxu1 %vm276_vm1, %v2245_v63  ;;  %v2783_v63 = vld [vmem:[#allocation2 + $0x71] sm:$0xff] }
 0x2e4   : > { %v2051_v43 = vpop.f32.mrf.mxu2  ;;  %10260 = vmatmul.msk.f32.gmra.mxu0 %vm276_vm1, %v2782_v46 }
 0x2e5   : > { %10475 = vmatmul.msk.f32.vlgmr.msrb.gmra.mxu3 %vm276_vm1, %v12238_v38  ;;  %v2159_v50 = vadd.f32 %v2051_v43, %v1526_v35 }
 0x2e7   : > { %v12286_v11 = vadd.f32 %v2649_v12, %v2159_v50  ;;  %v1531_v44 = vpop.f32.mrf.mxu1  ;;  %v3972_v12 = vld [vmem:[#allocation2 + $0x40] sm:$0xff]  ;;  %v3374_v50 = vld [vmem:[#allocation2 + $0x2a] sm:$0xff] }
 0x2e8   : > { %v2655_v32 = vpop.f32.mrf.mxu3  ;;  %v1532_v25 = vadd.f32 %v1531_v44, %v12250_v52 }
 0x2e9   : > { %15040 = vst [vmem:[#allocation30_spill] sm:$0xff] %v12286_v11  ;;  %10176 = vmatmul.msk.f32.gmra.mxu2 %vm276_vm1, %v1650_v15  ;;  %v12289_v10 = vpop.f32.mrf.mxu0 }
 0x2ea   : > { %10327 = vmatmul.msk.f32.vlgmr.msra.gmra.mxu1 %vm276_vm1, %v3373_v17 }
 0x2ec   : > { %v2054_v33 = vpop.f32.mrf.mxu2  ;;  %10261 = vmatmul.msk.f32.gmra.mxu0 %vm276_vm1, %v2783_v63 }
 0x2ed   : > { %10476 = vmatmul.msk.f32.gmra.mxu3 %vm276_vm1, %v2779_v40  ;;  %v2160_v38 = vadd.f32 %v2054_v33, %v1529_v2  ;;  %v3375_v33 = vld [vmem:[#allocation2 + $0x32] sm:$0xff] }
 0x2ef   : > { %v12295_v35 = vadd.f32 %v2652_v53, %v2160_v38  ;;  %v1534_v43 = vpop.f32.mrf.mxu1  ;;  %v3973_v53 = vld [vmem:[#allocation2 + $0x48] sm:$0xff] }
 0x2f0   : > { %v2658_v11 = vpop.f32.mrf.mxu3  ;;  %v1535_v52 = vadd.f32 %v1534_v43, %v12260_v37 }
 0x2f1   : > { %15041 = vst [vmem:[#allocation31_spill] sm:$0xff] %v12295_v35  ;;  %10401 = vmatmul.msk.f32.vlgmr.msra.gmra.mxu2 %vm276_vm1, %v3972_v12  ;;  %v12298_v15 = vpop.f32.mrf.mxu0  ;;  %v2785_v35 = vld [vmem:[#allocation2 + $0x89] sm:$0xff] }
 0x2f2   : > { %10328 = vmatmul.msk.f32.gmra.mxu1 %vm276_vm1, %v3374_v50 }
 0x2f4   : > { %v2057_v14 = vpop.f32.mrf.mxu2  ;;  %10262 = vmatmul.msk.f32.gmra.mxu0 %vm276_vm1, %v2784_v23 }
 0x2f5   : > { %10477 = vmatmul.msk.f32.gmra.mxu3 %vm276_vm1, %v2780_v28  ;;  %v2161_v40 = vadd.f32 %v2057_v14, %v1532_v25  ;;  %v3376_v14 = vld [vmem:[#allocation2 + $0x42] sm:$0xff] }
 0x2f7   : > { %v12304_v17 = vadd.f32 %v2655_v32, %v2161_v40  ;;  %v1537_v2 = vpop.f32.mrf.mxu1  ;;  %v3974_v32 = vld [vmem:[#allocation2 + $0x50] sm:$0xff] }
 0x2f8   : > { %v2661_v38 = vpop.f32.mrf.mxu3  ;;  %v1538_v37 = vadd.f32 %v1537_v2, %v12270_v5 }
 0x2f9   : > { %15042 = vst [vmem:[#allocation32_spill] sm:$0xff] %v12304_v17  ;;  %10402 = vmatmul.msk.f32.gmra.mxu2 %vm276_vm1, %v3973_v53  ;;  %v12307_v12 = vpop.f32.mrf.mxu0  ;;  %v2786_v17 = vld [vmem:[#allocation2 + $0x91] sm:$0xff] }
 0x2fa   : > { %10329 = vmatmul.msk.f32.gmra.mxu1 %vm276_vm1, %v3375_v33 }
 0x2fc   : > { %v2060_v44 = vpop.f32.mrf.mxu2  ;;  %10263 = vmatmul.msk.f32.gmra.mxu0 %vm276_vm1, %v2785_v35 }
 0x2fd   : > { %10478 = vmatmul.msk.f32.gmra.mxu3 %vm276_vm1, %v2781_v24  ;;  %v2162_v28 = vadd.f32 %v2060_v44, %v1535_v52  ;;  %v3377_v44 = vld [vmem:[#allocation2 + $0x4a] sm:$0xff] }
 0x2ff   : > { %v12313_v50 = vadd.f32 %v2658_v11, %v2162_v28  ;;  %v1540_v25 = vpop.f32.mrf.mxu1  ;;  %v3975_v11 = vld [vmem:[#allocation2 + $0x60] sm:$0xff] }
 0x300   : > { %v2664_v40 = vpop.f32.mrf.mxu3  ;;  %v1541_v5 = vadd.f32 %v1540_v25, %v12279_v3 }
 0x301   : > { %15043 = vst [vmem:[#allocation33_spill] sm:$0xff] %v12313_v50  ;;  %10403 = vmatmul.msk.f32.gmra.mxu2 %vm276_vm1, %v3974_v32  ;;  %v12316_v53 = vpop.f32.mrf.mxu0  ;;  %v2787_v50 = vld [vmem:[#allocation2 + $0xa1] sm:$0xff] }
 0x302   : > { %10330 = vmatmul.msk.f32.gmra.mxu1 %vm276_vm1, %v3376_v14 }
 0x304   : > { %v2063_v43 = vpop.f32.mrf.mxu2  ;;  %10264 = vmatmul.msk.f32.gmra.mxu0 %vm276_vm1, %v2786_v17 }
 0x305   : > { %10479 = vmatmul.msk.f32.gmra.mxu3 %vm276_vm1, %v2782_v46  ;;  %v2163_v24 = vadd.f32 %v2063_v43, %v1538_v37  ;;  %v3378_v43 = vld [vmem:[#allocation2 + $0x52] sm:$0xff] }
 0x307   : > { %v12322_v33 = vadd.f32 %v2661_v38, %v2163_v24  ;;  %v1543_v52 = vpop.f32.mrf.mxu1  ;;  %v3976_v38 = vld [vmem:[#allocation2 + $0x68] sm:$0xff] }
 0x308   : > { %v2667_v28 = vpop.f32.mrf.mxu3  ;;  %v1544_v3 = vadd.f32 %v1543_v52, %v12289_v10 }
 0x309   : > { %15044 = vst [vmem:[#allocation34_spill] sm:$0xff] %v12322_v33  ;;  %10404 = vmatmul.msk.f32.gmra.mxu2 %vm276_vm1, %v3975_v11  ;;  %v12325_v32 = vpop.f32.mrf.mxu0  ;;  %v2788_v33 = vld [vmem:[#allocation2 + $0xa9] sm:$0xff] }
 0x30a   : > { %10331 = vmatmul.msk.f32.gmra.mxu1 %vm276_vm1, %v3377_v44 }
 0x30c   : > { %v2066_v2 = vpop.f32.mrf.mxu2  ;;  %10265 = vmatmul.msk.f32.gmra.mxu0 %vm276_vm1, %v2787_v50 }
 0x30d   : > { %10480 = vmatmul.msk.f32.gmra.mxu3 %vm276_vm1, %v2783_v63  ;;  %v2164_v46 = vadd.f32 %v2066_v2, %v1541_v5  ;;  %v3379_v2 = vld [vmem:[#allocation2 + $0x62] sm:$0xff] }
 0x30f   : > { %v12331_v14 = vadd.f32 %v2664_v40, %v2164_v46  ;;  %v1546_v37 = vpop.f32.mrf.mxu1  ;;  %v3977_v40 = vld [vmem:[#allocation2 + $0x70] sm:$0xff] }
 0x310   : > { %v2670_v24 = vpop.f32.mrf.mxu3  ;;  %v1547_v10 = vadd.f32 %v1546_v37, %v12298_v15 }
 0x311   : > { %15045 = vst [vmem:[#allocation35_spill] sm:$0xff] %v12331_v14  ;;  %10405 = vmatmul.msk.f32.gmra.mxu2 %vm276_vm1, %v3976_v38  ;;  %v12334_v11 = vpop.f32.mrf.mxu0  ;;  %v2789_v14 = vld [vmem:[#allocation2 + $0xb1] sm:$0xff] }
 0x312   : > { %10332 = vmatmul.msk.f32.gmra.mxu1 %vm276_vm1, %v3378_v43 }
 0x314   : > { %v2069_v25 = vpop.f32.mrf.mxu2  ;;  %10266 = vmatmul.msk.f32.gmra.mxu0 %vm276_vm1, %v2788_v33 }
 0x315   : > { %10481 = vmatmul.msk.f32.gmra.mxu3 %vm276_vm1, %v2784_v23  ;;  %v2165_v63 = vadd.f32 %v2069_v25, %v1544_v3  ;;  %v3380_v25 = vld [vmem:[#allocation2 + $0x6a] sm:$0xff] }
 0x317   : > { %v12340_v44 = vadd.f32 %v2667_v28, %v2165_v63  ;;  %v1549_v5 = vpop.f32.mrf.mxu1  ;;  %v3978_v28 = vld [vmem:[#allocation2 + $0x80] sm:$0xff] }
 0x318   : > { %v2673_v46 = vpop.f32.mrf.mxu3  ;;  %v1550_v15 = vadd.f32 %v1549_v5, %v12307_v12 }
 0x319   : > { %15046 = vst [vmem:[#allocation36_spill] sm:$0xff] %v12340_v44  ;;  %10406 = vmatmul.msk.f32.gmra.mxu2 %vm276_vm1, %v3977_v40  ;;  %v12343_v38 = vpop.f32.mrf.mxu0  ;;  %v2790_v44 = vld [vmem:[#allocation2 + $0xc1] sm:$0xff] }
 0x31a   : > { %10333 = vmatmul.msk.f32.gmra.mxu1 %vm276_vm1, %v3379_v2 }
 0x31c   : > { %v2072_v52 = vpop.f32.mrf.mxu2  ;;  %10267 = vmatmul.msk.f32.gmra.mxu0 %vm276_vm1, %v2789_v14 }
 0x31d   : > { %10482 = vmatmul.msk.f32.gmra.mxu3 %vm276_vm1, %v2785_v35  ;;  %v2166_v23 = vadd.f32 %v2072_v52, %v1547_v10  ;;  %v3381_v52 = vld [vmem:[#allocation2 + $0x72] sm:$0xff] }
 0x31f   : > { %v12349_v43 = vadd.f32 %v2670_v24, %v2166_v23  ;;  %v1552_v3 = vpop.f32.mrf.mxu1  ;;  %v3979_v24 = vld [vmem:[#allocation2 + $0x88] sm:$0xff] }
 0x320   : > { %v2676_v63 = vpop.f32.mrf.mxu3  ;;  %v1553_v12 = vadd.f32 %v1552_v3, %v12316_v53 }
 0x321   : > { %15047 = vst [vmem:[#allocation37_spill] sm:$0xff] %v12349_v43  ;;  %10407 = vmatmul.msk.f32.gmra.mxu2 %vm276_vm1, %v3978_v28  ;;  %v12352_v40 = vpop.f32.mrf.mxu0  ;;  %v2791_v43 = vld [vmem:[#allocation2 + $0xc9] sm:$0xff] }
 0x322   : > { %10334 = vmatmul.msk.f32.gmra.mxu1 %vm276_vm1, %v3380_v25 }
 0x324   : > { %v2075_v37 = vpop.f32.mrf.mxu2  ;;  %10268 = vmatmul.msk.f32.gmra.mxu0 %vm276_vm1, %v2790_v44 }
 0x325   : > { %10483 = vmatmul.msk.f32.gmra.mxu3 %vm276_vm1, %v2786_v17  ;;  %v2167_v35 = vadd.f32 %v2075_v37, %v1550_v15  ;;  %v3382_v37 = vld [vmem:[#allocation2 + $0x82] sm:$0xff] }
 0x327   : > { %v12358_v2 = vadd.f32 %v2673_v46, %v2167_v35  ;;  %v1555_v10 = vpop.f32.mrf.mxu1  ;;  %v3980_v46 = vld [vmem:[#allocation2 + $0x90] sm:$0xff] }
 0x328   : > { %v2679_v23 = vpop.f32.mrf.mxu3  ;;  %v1556_v53 = vadd.f32 %v1555_v10, %v12325_v32 }
 0x329   : > { %15048 = vst [vmem:[#allocation38_spill] sm:$0xff] %v12358_v2  ;;  %10408 = vmatmul.msk.f32.gmra.mxu2 %vm276_vm1, %v3979_v24  ;;  %v12361_v28 = vpop.f32.mrf.mxu0  ;;  %v2792_v2 = vld [vmem:[#allocation2 + $0xd1] sm:$0xff] }
 0x32a   : > { %10335 = vmatmul.msk.f32.gmra.mxu1 %vm276_vm1, %v3381_v52 }
 0x32c   : > { %v2078_v5 = vpop.f32.mrf.mxu2  ;;  %10269 = vmatmul.msk.f32.gmra.mxu0 %vm276_vm1, %v2791_v43 }
 0x32d   : > { %10484 = vmatmul.msk.f32.gmra.mxu3 %vm276_vm1, %v2787_v50  ;;  %v2168_v17 = vadd.f32 %v2078_v5, %v1553_v12  ;;  %v3383_v5 = vld [vmem:[#allocation2 + $0x8a] sm:$0xff] }
 0x32f   : > { %v12367_v25 = vadd.f32 %v2676_v63, %v2168_v17  ;;  %v1558_v15 = vpop.f32.mrf.mxu1  ;;  %v3981_v63 = vld [vmem:[#allocation2 + $0xa0] sm:$0xff] }
 0x330   : > { %v2682_v35 = vpop.f32.mrf.mxu3  ;;  %v1559_v32 = vadd.f32 %v1558_v15, %v12334_v11 }
 0x331   : > { %15049 = vst [vmem:[#allocation39_spill] sm:$0xff] %v12367_v25  ;;  %10409 = vmatmul.msk.f32.gmra.mxu2 %vm276_vm1, %v3980_v46  ;;  %v12370_v24 = vpop.f32.mrf.mxu0  ;;  %v2793_v25 = vld [vmem:[#allocation2 + $0xe1] sm:$0xff] }
 0x332   : > { %10336 = vmatmul.msk.f32.gmra.mxu1 %vm276_vm1, %v3382_v37 }
 0x334   : > { %v2081_v3 = vpop.f32.mrf.mxu2  ;;  %10270 = vmatmul.msk.f32.gmra.mxu0 %vm276_vm1, %v2792_v2 }
 0x335   : > { %10485 = vmatmul.msk.f32.gmra.mxu3 %vm276_vm1, %v2788_v33  ;;  %v2169_v50 = vadd.f32 %v2081_v3, %v1556_v53  ;;  %v3384_v3 = vld [vmem:[#allocation2 + $0x92] sm:$0xff] }
 0x337   : > { %v12376_v52 = vadd.f32 %v2679_v23, %v2169_v50  ;;  %v1561_v12 = vpop.f32.mrf.mxu1  ;;  %v3982_v23 = vld [vmem:[#allocation2 + $0xa8] sm:$0xff] }
 0x338   : > { %v2685_v17 = vpop.f32.mrf.mxu3  ;;  %v1562_v11 = vadd.f32 %v1561_v12, %v12343_v38 }
 0x339   : > { %15050 = vst [vmem:[#allocation40_spill] sm:$0xff] %v12376_v52  ;;  %10410 = vmatmul.msk.f32.gmra.mxu2 %vm276_vm1, %v3981_v63  ;;  %v12379_v46 = vpop.f32.mrf.mxu0  ;;  %v2794_v52 = vld [vmem:[#allocation2 + $0xe9] sm:$0xff] }
 0x33a   : > { %10337 = vmatmul.msk.f32.gmra.mxu1 %vm276_vm1, %v3383_v5 }
 0x33c   : > { %v2084_v10 = vpop.f32.mrf.mxu2  ;;  %10271 = vmatmul.msk.f32.gmra.mxu0 %vm276_vm1, %v2793_v25 }
 0x33d   : > { %10486 = vmatmul.msk.f32.gmra.mxu3 %vm276_vm1, %v2789_v14  ;;  %v2170_v33 = vadd.f32 %v2084_v10, %v1559_v32  ;;  %v3385_v10 = vld [vmem:[#allocation2 + $0xa2] sm:$0xff] }
 0x33f   : > { %v12385_v37 = vadd.f32 %v2682_v35, %v2170_v33  ;;  %v1564_v53 = vpop.f32.mrf.mxu1  ;;  %v3983_v35 = vld [vmem:[#allocation2 + $0xb0] sm:$0xff] }
 0x340   : > { %v2688_v50 = vpop.f32.mrf.mxu3  ;;  %v1565_v38 = vadd.f32 %v1564_v53, %v12352_v40 }
 0x341   : > { %15051 = vst [vmem:[#allocation41_spill] sm:$0xff] %v12385_v37  ;;  %10411 = vmatmul.msk.f32.gmra.mxu2 %vm276_vm1, %v3982_v23  ;;  %v12388_v63 = vpop.f32.mrf.mxu0  ;;  %v2795_v37 = vld [vmem:[#allocation2 + $0xf1] sm:$0xff] }
 0x342   : > { %10338 = vmatmul.msk.f32.gmra.mxu1 %vm276_vm1, %v3384_v3 }
 0x344   : > { %v2087_v15 = vpop.f32.mrf.mxu2  ;;  %10272 = vmatmul.msk.f32.gmra.mxu0 %vm276_vm1, %v2794_v52 }
 0x345   : > { %10487 = vmatmul.msk.f32.gmra.mxu3 %vm276_vm1, %v2790_v44  ;;  %v2171_v14 = vadd.f32 %v2087_v15, %v1562_v11  ;;  %v3386_v15 = vld [vmem:[#allocation2 + $0xaa] sm:$0xff] }
 0x347   : > { %v12394_v5 = vadd.f32 %v2685_v17, %v2171_v14  ;;  %v1567_v32 = vpop.f32.mrf.mxu1  ;;  %v3984_v17 = vld [vmem:[#allocation2 + $0xc0] sm:$0xff] }
 0x348   : > { %v2691_v33 = vpop.f32.mrf.mxu3  ;;  %v1568_v40 = vadd.f32 %v1567_v32, %v11455_v19 }
 0x349   : > { %15052 = vst [vmem:[#allocation42_spill] sm:$0xff] %v12394_v5  ;;  %10412 = vmatmul.msk.f32.gmra.mxu2 %vm276_vm1, %v3983_v35  ;;  %v12397_v23 = vpop.f32.mrf.mxu0  ;;  %v2796_v5 = vld [vmem:[#allocation2 + $0x101] sm:$0xff] }
 0x34a   : > { %10339 = vmatmul.msk.f32.gmra.mxu1 %vm276_vm1, %v3385_v10 }
 0x34c   : > { %v2090_v12 = vpop.f32.mrf.mxu2  ;;  %10273 = vmatmul.msk.f32.gmra.mxu0 %vm276_vm1, %v2795_v37 }
 0x34d   : > { %10488 = vmatmul.msk.f32.gmra.mxu3 %vm276_vm1, %v2791_v43  ;;  %v2172_v44 = vadd.f32 %v2090_v12, %v1565_v38  ;;  %v3387_v12 = vld [vmem:[#allocation2 + $0xb2] sm:$0xff] }
 0x34f   : > { %v12403_v3 = vadd.f32 %v2688_v50, %v2172_v44  ;;  %v1570_v11 = vpop.f32.mrf.mxu1  ;;  %v3985_v50 = vld [vmem:[#allocation2 + $0xc8] sm:$0xff] }
 0x350   : > { %v2694_v14 = vpop.f32.mrf.mxu3  ;;  %v1571_v19 = vadd.f32 %v1570_v11, %v11465_v26 }
 0x351   : > { %15053 = vst [vmem:[#allocation43_spill] sm:$0xff] %v12403_v3  ;;  %10413 = vmatmul.msk.f32.gmra.mxu2 %vm276_vm1, %v3984_v17  ;;  %v12406_v35 = vpop.f32.mrf.mxu0  ;;  %v12417_v3 = vld [vmem:[#allocation2 + $0x109] sm:$0xff] }
 0x352   : > { %10340 = vmatmul.msk.f32.gmra.mxu1 %vm276_vm1, %v3386_v15 }
 0x354   : > { %v2093_v53 = vpop.f32.mrf.mxu2  ;;  %10274 = vmatmul.msk.f32.gmra.mxu0 %vm276_vm1, %v2796_v5 }
 0x355   : > { %10489 = vmatmul.msk.f32.gmra.mxu3 %vm276_vm1, %v2792_v2  ;;  %v2173_v43 = vadd.f32 %v2093_v53, %v1568_v40  ;;  %v3388_v53 = vld [vmem:[#allocation2 + $0xc2] sm:$0xff] }
 0x357   : > { %v12412_v10 = vadd.f32 %v2691_v33, %v2173_v43  ;;  %v1573_v38 = vpop.f32.mrf.mxu1  ;;  %v3986_v33 = vld [vmem:[#allocation2 + $0xd0] sm:$0xff] }
 0x358   : > { %v2697_v44 = vpop.f32.mrf.mxu3  ;;  %v1574_v26 = vadd.f32 %v1573_v38, %v11473_v31 }
 0x359   : > { %15054 = vst [vmem:[#allocation44_spill] sm:$0xff] %v12412_v10  ;;  %10414 = vmatmul.msk.f32.gmra.mxu2 %vm276_vm1, %v3985_v50  ;;  %v12415_v17 = vpop.f32.mrf.mxu0 }
 0x35a   : > { %10341 = vmatmul.msk.f32.gmra.mxu1 %vm276_vm1, %v3387_v12  ;;  %v12429_v12 = vld [vmem:[#allocation2 + $0x111] sm:$0xff] }
 0x35c   : > { %v2096_v32 = vpop.f32.mrf.mxu2  ;;  %10275 = vmatmul.msk.f32.gmra.mxu0 %vm276_vm1, %v12417_v3 }
 0x35d   : > { %10490 = vmatmul.msk.f32.gmra.mxu3 %vm276_vm1, %v2793_v25  ;;  %v2174_v2 = vadd.f32 %v2096_v32, %v1571_v19 }
 0x35f   : > { %v12424_v15 = vadd.f32 %v2694_v14, %v2174_v2  ;;  %v1576_v40 = vpop.f32.mrf.mxu1  ;;  %v3987_v14 = vld [vmem:[#allocation2 + $0xe0] sm:$0xff]  ;;  %v3389_v2 = vld [vmem:[#allocation2 + $0xca] sm:$0xff] }
 0x360   : > { %v2700_v43 = vpop.f32.mrf.mxu3  ;;  %v1577_v31 = vadd.f32 %v1576_v40, %v11485_v39  ;;  %v12455_v39 = vld [vmem:[#allocation2 + $0x129] sm:$0xff] }
 0x361   : > { %15055 = vst [vmem:[#allocation45_spill] sm:$0xff] %v12424_v15  ;;  %10415 = vmatmul.msk.f32.gmra.mxu2 %vm276_vm1, %v3986_v33  ;;  %v12427_v50 = vpop.f32.mrf.mxu0 }
 0x362   : > { %10342 = vmatmul.msk.f32.gmra.mxu1 %vm276_vm1, %v3388_v53  ;;  %v12441_v53 = vld [vmem:[#allocation2 + $0x121] sm:$0xff] }
 0x364   : > { %v2099_v11 = vpop.f32.mrf.mxu2  ;;  %10276 = vmatmul.msk.f32.gmra.mxu0 %vm276_vm1, %v12429_v12 }
 0x365   : > { %10491 = vmatmul.msk.f32.gmra.mxu3 %vm276_vm1, %v2794_v52  ;;  %v2175_v25 = vadd.f32 %v2099_v11, %v1574_v26 }
 0x367   : > { %v12436_v19 = vadd.f32 %v2697_v44, %v2175_v25  ;;  %v3683_v32 = vpop.f32.mrf.mxu1  ;;  %v3988_v44 = vld [vmem:[#allocation2 + $0xe8] sm:$0xff]  ;;  %v3390_v25 = vld [vmem:[#allocation2 + $0xd2] sm:$0xff] }
 0x368   : > { %v4880_v33 = vpop.f32.mrf.mxu3 }
 0x369   : > { %15056 = vst [vmem:[#allocation46_spill] sm:$0xff] %v12436_v19  ;;  %10416 = vmatmul.msk.f32.gmra.mxu2 %vm276_vm1, %v3987_v14  ;;  %v12439_v15 = vpop.f32.mrf.mxu0  ;;  %v3301_v19 = vadd.f32 %v12361_v28, %v11502_v51  ;;  %v3391_v28 = vld [vmem:[#allocation2 + $0xe2] sm:$0xff] }
 0x36a   : > { %10343 = vmatmul.msk.f32.gmra.mxu1 %vm276_vm1, %v3389_v2 }
 0x36b   : > { %v3899_v40 = vadd.f32 %v3683_v32, %v3301_v19  ;;  %v12468_v19 = vld [vmem:[#allocation2 + $0x131] sm:$0xff] }
 0x36c   : > { %v2102_v38 = vpop.f32.mrf.mxu2  ;;  %10277 = vmatmul.msk.f32.gmra.mxu0 %vm276_vm1, %v12441_v53 }
 0x36d   : > { %10492 = vmatmul.msk.f32.gmra.mxu3 %vm276_vm1, %v2795_v37  ;;  %v2176_v52 = vadd.f32 %v2102_v38, %v1577_v31  ;;  %v3989_v31 = vld [vmem:[#allocation2 + $0xf0] sm:$0xff] }
 0x36f   : > { %v12448_v26 = vadd.f32 %v2700_v43, %v2176_v52  ;;  %v3686_v11 = vpop.f32.mrf.mxu1 }
 0x370   : > { %v4883_v14 = vpop.f32.mrf.mxu3 }
 0x371   : > { %15057 = vst [vmem:[#allocation47_spill] sm:$0xff] %v12448_v26  ;;  %10417 = vmatmul.msk.f32.gmra.mxu2 %vm276_vm1, %v3988_v44  ;;  %v12453_v2 = vpop.f32.mrf.mxu0  ;;  %v3302_v44 = vadd.f32 %v12370_v24, %v11516_v62  ;;  %v3392_v24 = vld [vmem:[#allocation2 + $0xea] sm:$0xff] }
 0x372   : > { %10344 = vmatmul.msk.f32.gmra.mxu1 %vm276_vm1, %v3390_v25 }
 0x373   : > { %v3900_v32 = vadd.f32 %v3686_v11, %v3302_v44 }
 0x374   : > { %v4282_v37 = vpop.f32.mrf.mxu2  ;;  %10278 = vmatmul.msk.f32.gmra.mxu0 %vm276_vm1, %v12455_v39 }
 0x375   : > { %10493 = vmatmul.msk.f32.gmra.mxu3 %vm276_vm1, %v2796_v5  ;;  %v4498_v43 = vadd.f32 %v4282_v37, %v3899_v40  ;;  %v3990_v40 = vld [vmem:[#allocation2 + $0x100] sm:$0xff] }
 0x377   : > { %v12461_v38 = vadd.f32 %v4880_v33, %v4498_v43  ;;  %v3689_v51 = vpop.f32.mrf.mxu1 }
 0x378   : > { %v4886_v52 = vpop.f32.mrf.mxu3 }
 0x379   : > { %10418 = vmatmul.msk.f32.gmra.mxu2 %vm276_vm1, %v3989_v31  ;;  %v12466_v25 = vpop.f32.mrf.mxu0  ;;  %v3303_v31 = vadd.f32 %v12379_v46, %v11530_v9  ;;  %v3393_v46 = vld [vmem:[#allocation2 + $0xf2] sm:$0xff] }
 0x37a   : > { %10345 = vmatmul.msk.f32.gmra.mxu1 %vm276_vm1, %v3391_v28  ;;  %v12482_v28 = vld [vmem:[#allocation2 + $0x141] sm:$0xff] }
 0x37b   : > { %v3901_v44 = vadd.f32 %v3689_v51, %v3303_v31 }
 0x37c   : > { %v4285_v5 = vpop.f32.mrf.mxu2  ;;  %10279 = vmatmul.msk.f32.gmra.mxu0 %vm276_vm1, %v12468_v19 }
 0x37d   : > { %10494 = vmatmul.msk.f32.gmra.mxu3 %vm276_vm1, %v12417_v3  ;;  %v4499_v33 = vadd.f32 %v4285_v5, %v3900_v32  ;;  %v3991_v32 = vld [vmem:[#allocation2 + $0x108] sm:$0xff] }
 0x37f   : > { %v12475_v37 = vadd.f32 %v4883_v14, %v4499_v33  ;;  %v3692_v62 = vpop.f32.mrf.mxu1 }
 0x380   : > { %v4889_v43 = vpop.f32.mrf.mxu3 }
 0x381   : > { %10419 = vmatmul.msk.f32.gmra.mxu2 %vm276_vm1, %v3990_v40  ;;  %v12480_v11 = vpop.f32.mrf.mxu0  ;;  %v3304_v40 = vadd.f32 %v12388_v63, %v11545_v21  ;;  %v3394_v63 = vld [vmem:[#allocation2 + $0x102] sm:$0xff] }
 0x382   : > { %10346 = vmatmul.msk.f32.gmra.mxu1 %vm276_vm1, %v3392_v24  ;;  %v12496_v24 = vld [vmem:[#allocation2 + $0x149] sm:$0xff] }
 0x383   : > { %v3902_v31 = vadd.f32 %v3692_v62, %v3304_v40 }
 0x384   : > { %v4288_v3 = vpop.f32.mrf.mxu2  ;;  %10280 = vmatmul.msk.f32.gmra.mxu0 %vm276_vm1, %v12482_v28 }
 0x385   : > { %10495 = vmatmul.msk.f32.gmra.mxu3 %vm276_vm1, %v12429_v12  ;;  %v4500_v14 = vadd.f32 %v4288_v3, %v3901_v44  ;;  %v3992_v44 = vld [vmem:[#allocation2 + $0x110] sm:$0xff] }
 0x387   : > { %v12489_v5 = vadd.f32 %v4886_v52, %v4500_v14  ;;  %v3695_v9 = vpop.f32.mrf.mxu1 }
 0x388   : > { %v4892_v33 = vpop.f32.mrf.mxu3 }
 0x389   : > { %10420 = vmatmul.msk.f32.gmra.mxu2 %vm276_vm1, %v3991_v32  ;;  %v12494_v51 = vpop.f32.mrf.mxu0  ;;  %v3305_v32 = vadd.f32 %v12397_v23, %v11560_v34  ;;  %v3395_v23 = vld [vmem:[#allocation2 + $0x10a] sm:$0xff] }
 0x38a   : > { %10347 = vmatmul.msk.f32.gmra.mxu1 %vm276_vm1, %v3393_v46  ;;  %v12510_v46 = vld [vmem:[#allocation2 + $0x151] sm:$0xff] }
 0x38b   : > { %v3903_v40 = vadd.f32 %v3695_v9, %v3305_v32 }
 0x38c   : > { %v4291_v12 = vpop.f32.mrf.mxu2  ;;  %10281 = vmatmul.msk.f32.gmra.mxu0 %vm276_vm1, %v12496_v24 }
 0x38d   : > { %10496 = vmatmul.msk.f32.gmra.mxu3 %vm276_vm1, %v12441_v53  ;;  %v4501_v52 = vadd.f32 %v4291_v12, %v3902_v31  ;;  %v3993_v31 = vld [vmem:[#allocation2 + $0x120] sm:$0xff] }
 0x38f   : > { %v12503_v3 = vadd.f32 %v4889_v43, %v4501_v52  ;;  %v3698_v21 = vpop.f32.mrf.mxu1 }
 0x390   : > { %v4895_v14 = vpop.f32.mrf.mxu3 }
 0x391   : > { %10421 = vmatmul.msk.f32.gmra.mxu2 %vm276_vm1, %v3992_v44  ;;  %v12508_v62 = vpop.f32.mrf.mxu0  ;;  %v3306_v44 = vadd.f32 %v12406_v35, %v11575_v47  ;;  %v3396_v35 = vld [vmem:[#allocation2 + $0x112] sm:$0xff] }
 0x392   : > { %10348 = vmatmul.msk.f32.gmra.mxu1 %vm276_vm1, %v3394_v63  ;;  %v12524_v63 = vld [vmem:[#allocation2 + $0x161] sm:$0xff] }
 0x393   : > { %v3904_v32 = vadd.f32 %v3698_v21, %v3306_v44 }
 0x394   : > { %v4294_v53 = vpop.f32.mrf.mxu2  ;;  %10282 = vmatmul.msk.f32.gmra.mxu0 %vm276_vm1, %v12510_v46 }
 0x395   : > { %10497 = vmatmul.msk.f32.gmra.mxu3 %vm276_vm1, %v12455_v39  ;;  %v4502_v43 = vadd.f32 %v4294_v53, %v3903_v40  ;;  %v3994_v40 = vld [vmem:[#allocation2 + $0x128] sm:$0xff] }
 0x397   : > { %v12517_v12 = vadd.f32 %v4892_v33, %v4502_v43  ;;  %v3701_v34 = vpop.f32.mrf.mxu1 }
 0x398   : > { %v4898_v52 = vpop.f32.mrf.mxu3 }
 0x399   : > { %10422 = vmatmul.msk.f32.gmra.mxu2 %vm276_vm1, %v3993_v31  ;;  %v12522_v9 = vpop.f32.mrf.mxu0  ;;  %v3307_v31 = vadd.f32 %v12415_v17, %v11590_v59  ;;  %v3397_v17 = vld [vmem:[#allocation2 + $0x122] sm:$0xff] }
 0x39a   : > { %10349 = vmatmul.msk.f32.gmra.mxu1 %vm276_vm1, %v3395_v23  ;;  %v12538_v23 = vld [vmem:[#allocation2 + $0x169] sm:$0xff] }
 0x39b   : > { %v3905_v44 = vadd.f32 %v3701_v34, %v3307_v31 }
 0x39c   : > { %v4297_v39 = vpop.f32.mrf.mxu2  ;;  %10283 = vmatmul.msk.f32.gmra.mxu0 %vm276_vm1, %v12524_v63 }
 0x39d   : > { %10498 = vmatmul.msk.f32.gmra.mxu3 %vm276_vm1, %v12468_v19  ;;  %v4503_v33 = vadd.f32 %v4297_v39, %v3904_v32  ;;  %v3995_v32 = vld [vmem:[#allocation2 + $0x130] sm:$0xff] }
 0x39f   : > { %v12531_v53 = vadd.f32 %v4895_v14, %v4503_v33  ;;  %v3704_v47 = vpop.f32.mrf.mxu1 }
 0x3a0   : > { %v4901_v43 = vpop.f32.mrf.mxu3 }
 0x3a1   : > { %10423 = vmatmul.msk.f32.gmra.mxu2 %vm276_vm1, %v3994_v40  ;;  %v12536_v21 = vpop.f32.mrf.mxu0  ;;  %v3308_v40 = vadd.f32 %v12427_v50, %v11605_v7  ;;  %v3398_v50 = vld [vmem:[#allocation2 + $0x12a] sm:$0xff] }
 0x3a2   : > { %10350 = vmatmul.msk.f32.gmra.mxu1 %vm276_vm1, %v3396_v35  ;;  %v12552_v35 = vld [vmem:[#allocation2 + $0x171] sm:$0xff] }
 0x3a3   : > { %v3906_v31 = vadd.f32 %v3704_v47, %v3308_v40 }
 0x3a4   : > { %v4300_v19 = vpop.f32.mrf.mxu2  ;;  %10284 = vmatmul.msk.f32.gmra.mxu0 %vm276_vm1, %v12538_v23 }
 0x3a5   : > { %10499 = vmatmul.msk.f32.gmra.mxu3 %vm276_vm1, %v12482_v28  ;;  %v4504_v14 = vadd.f32 %v4300_v19, %v3905_v44  ;;  %v3996_v44 = vld [vmem:[#allocation2 + $0x140] sm:$0xff] }
 0x3a7   : > { %v12545_v39 = vadd.f32 %v4898_v52, %v4504_v14  ;;  %v3707_v59 = vpop.f32.mrf.mxu1 }
 0x3a8   : > { %v4904_v33 = vpop.f32.mrf.mxu3 }
 0x3a9   : > { %10424 = vmatmul.msk.f32.gmra.mxu2 %vm276_vm1, %v3995_v32  ;;  %v12550_v34 = vpop.f32.mrf.mxu0  ;;  %v3309_v32 = vadd.f32 %v12439_v15, %v11620_v20  ;;  %v3399_v15 = vld [vmem:[#allocation2 + $0x132] sm:$0xff] }
 0x3aa   : > { %10351 = vmatmul.msk.f32.gmra.mxu1 %vm276_vm1, %v3397_v17  ;;  %v12566_v17 = vld [vmem:[#allocation2 + $0x181] sm:$0xff] }
 0x3ab   : > { %v3907_v40 = vadd.f32 %v3707_v59, %v3309_v32 }
 0x3ac   : > { %v4303_v28 = vpop.f32.mrf.mxu2  ;;  %10285 = vmatmul.msk.f32.gmra.mxu0 %vm276_vm1, %v12552_v35 }
 0x3ad   : > { %10500 = vmatmul.msk.f32.gmra.mxu3 %vm276_vm1, %v12496_v24  ;;  %v4505_v52 = vadd.f32 %v4303_v28, %v3906_v31  ;;  %v3997_v31 = vld [vmem:[#allocation2 + $0x148] sm:$0xff] }
 0x3af   : > { %v12559_v19 = vadd.f32 %v4901_v43, %v4505_v52  ;;  %v3710_v7 = vpop.f32.mrf.mxu1 }
 0x3b0   : > { %v4907_v14 = vpop.f32.mrf.mxu3 }
 0x3b1   : > { %10425 = vmatmul.msk.f32.gmra.mxu2 %vm276_vm1, %v3996_v44  ;;  %v12564_v47 = vpop.f32.mrf.mxu0  ;;  %v3310_v44 = vadd.f32 %v12453_v2, %v11635_v36  ;;  %v3400_v2 = vld [vmem:[#allocation2 + $0x142] sm:$0xff] }
 0x3b2   : > { %10352 = vmatmul.msk.f32.gmra.mxu1 %vm276_vm1, %v3398_v50  ;;  %v12580_v50 = vld [vmem:[#allocation2 + $0x189] sm:$0xff] }
 0x3b3   : > { %v3908_v32 = vadd.f32 %v3710_v7, %v3310_v44 }
 0x3b4   : > { %v4306_v24 = vpop.f32.mrf.mxu2  ;;  %10286 = vmatmul.msk.f32.gmra.mxu0 %vm276_vm1, %v12566_v17 }
 0x3b5   : > { %10501 = vmatmul.msk.f32.gmra.mxu3 %vm276_vm1, %v12510_v46  ;;  %v4506_v43 = vadd.f32 %v4306_v24, %v3907_v40  ;;  %v3998_v40 = vld [vmem:[#allocation2 + $0x150] sm:$0xff] }
 0x3b7   : > { %v12573_v28 = vadd.f32 %v4904_v33, %v4506_v43  ;;  %v3713_v20 = vpop.f32.mrf.mxu1 }
 0x3b8   : > { %v4910_v52 = vpop.f32.mrf.mxu3 }
 0x3b9   : > { %10426 = vmatmul.msk.f32.gmra.mxu2 %vm276_vm1, %v3997_v31  ;;  %v12578_v59 = vpop.f32.mrf.mxu0  ;;  %v3311_v31 = vadd.f32 %v12466_v25, %v11650_v49  ;;  %v3401_v25 = vld [vmem:[#allocation2 + $0x14a] sm:$0xff] }
 0x3ba   : > { %10353 = vmatmul.msk.f32.gmra.mxu1 %vm276_vm1, %v3399_v15  ;;  %v12594_v15 = vld [vmem:[#allocation2 + $0x191] sm:$0xff] }
 0x3bb   : > { %v3909_v44 = vadd.f32 %v3713_v20, %v3311_v31 }
 0x3bc   : > { %v4309_v46 = vpop.f32.mrf.mxu2  ;;  %10287 = vmatmul.msk.f32.gmra.mxu0 %vm276_vm1, %v12580_v50 }
 0x3bd   : > { %10502 = vmatmul.msk.f32.gmra.mxu3 %vm276_vm1, %v12524_v63  ;;  %v4507_v33 = vadd.f32 %v4309_v46, %v3908_v32  ;;  %v3999_v32 = vld [vmem:[#allocation2 + $0x160] sm:$0xff] }
 0x3bf   : > { %v12587_v24 = vadd.f32 %v4907_v14, %v4507_v33  ;;  %v3716_v36 = vpop.f32.mrf.mxu1 }
 0x3c0   : > { %v4913_v43 = vpop.f32.mrf.mxu3 }
 0x3c1   : > { %10427 = vmatmul.msk.f32.gmra.mxu2 %vm276_vm1, %v3998_v40  ;;  %v12592_v7 = vpop.f32.mrf.mxu0  ;;  %v3312_v40 = vadd.f32 %v12480_v11, %v11665_v0  ;;  %v3402_v11 = vld [vmem:[#allocation2 + $0x152] sm:$0xff] }
 0x3c2   : > { %10354 = vmatmul.msk.f32.gmra.mxu1 %vm276_vm1, %v3400_v2  ;;  %v12608_v2 = vld [vmem:[#allocation2 + $0x1a1] sm:$0xff] }
 0x3c3   : > { %v3910_v31 = vadd.f32 %v3716_v36, %v3312_v40 }
 0x3c4   : > { %v4312_v63 = vpop.f32.mrf.mxu2  ;;  %10288 = vmatmul.msk.f32.gmra.mxu0 %vm276_vm1, %v12594_v15 }
 0x3c5   : > { %10503 = vmatmul.msk.f32.gmra.mxu3 %vm276_vm1, %v12538_v23  ;;  %v4508_v14 = vadd.f32 %v4312_v63, %v3909_v44  ;;  %v4000_v44 = vld [vmem:[#allocation2 + $0x168] sm:$0xff] }
 0x3c7   : > { %v12601_v46 = vadd.f32 %v4910_v52, %v4508_v14  ;;  %v3719_v49 = vpop.f32.mrf.mxu1 }
 0x3c8   : > { %v4916_v33 = vpop.f32.mrf.mxu3 }
 0x3c9   : > { %10428 = vmatmul.msk.f32.gmra.mxu2 %vm276_vm1, %v3999_v32  ;;  %v12606_v20 = vpop.f32.mrf.mxu0  ;;  %v3313_v32 = vadd.f32 %v12494_v51, %v11680_v1  ;;  %v3403_v51 = vld [vmem:[#allocation2 + $0x162] sm:$0xff] }
 0x3ca   : > { %10355 = vmatmul.msk.f32.gmra.mxu1 %vm276_vm1, %v3401_v25  ;;  %v12622_v25 = vld [vmem:[#allocation2 + $0x1a9] sm:$0xff] }
 0x3cb   : > { %v3911_v40 = vadd.f32 %v3719_v49, %v3313_v32 }
 0x3cc   : > { %v4315_v23 = vpop.f32.mrf.mxu2  ;;  %10289 = vmatmul.msk.f32.gmra.mxu0 %vm276_vm1, %v12608_v2 }
 0x3cd   : > { %10504 = vmatmul.msk.f32.gmra.mxu3 %vm276_vm1, %v12552_v35  ;;  %v4509_v52 = vadd.f32 %v4315_v23, %v3910_v31  ;;  %v4001_v31 = vld [vmem:[#allocation2 + $0x170] sm:$0xff] }
 0x3cf   : > { %v12615_v63 = vadd.f32 %v4913_v43, %v4509_v52  ;;  %v3722_v0 = vpop.f32.mrf.mxu1 }
 0x3d0   : > { %v4919_v14 = vpop.f32.mrf.mxu3 }
 0x3d1   : > { %10429 = vmatmul.msk.f32.gmra.mxu2 %vm276_vm1, %v4000_v44  ;;  %v12620_v36 = vpop.f32.mrf.mxu0  ;;  %v3314_v44 = vadd.f32 %v12508_v62, %v11695_v29  ;;  %v3404_v62 = vld [vmem:[#allocation2 + $0x16a] sm:$0xff] }
 0x3d2   : > { %10356 = vmatmul.msk.f32.gmra.mxu1 %vm276_vm1, %v3402_v11  ;;  %v12636_v11 = vld [vmem:[#allocation2 + $0x1b1] sm:$0xff] }
 0x3d3   : > { %v3912_v32 = vadd.f32 %v3722_v0, %v3314_v44 }
 0x3d4   : > { %v4318_v35 = vpop.f32.mrf.mxu2  ;;  %10290 = vmatmul.msk.f32.gmra.mxu0 %vm276_vm1, %v12622_v25 }
 0x3d5   : > { %10505 = vmatmul.msk.f32.gmra.mxu3 %vm276_vm1, %v12566_v17  ;;  %v4510_v43 = vadd.f32 %v4318_v35, %v3911_v40  ;;  %v4002_v40 = vld [vmem:[#allocation2 + $0x180] sm:$0xff] }
 0x3d7   : > { %v12629_v23 = vadd.f32 %v4916_v33, %v4510_v43  ;;  %v3725_v1 = vpop.f32.mrf.mxu1 }
 0x3d8   : > { %v4922_v52 = vpop.f32.mrf.mxu3 }
 0x3d9   : > { %10430 = vmatmul.msk.f32.gmra.mxu2 %vm276_vm1, %v4001_v31  ;;  %v12634_v49 = vpop.f32.mrf.mxu0  ;;  %v3315_v31 = vadd.f32 %v12522_v9, %v11710_v45  ;;  %v3405_v9 = vld [vmem:[#allocation2 + $0x172] sm:$0xff] }
 0x3da   : > { %10357 = vmatmul.msk.f32.gmra.mxu1 %vm276_vm1, %v3403_v51  ;;  %v12650_v51 = vld [vmem:[#allocation2 + $0x1c1] sm:$0xff] }
 0x3db   : > { %v3913_v44 = vadd.f32 %v3725_v1, %v3315_v31 }
 0x3dc   : > { %v4321_v17 = vpop.f32.mrf.mxu2  ;;  %10291 = vmatmul.msk.f32.gmra.mxu0 %vm276_vm1, %v12636_v11 }
 0x3dd   : > { %10506 = vmatmul.msk.f32.gmra.mxu3 %vm276_vm1, %v12580_v50  ;;  %v4511_v33 = vadd.f32 %v4321_v17, %v3912_v32  ;;  %v4003_v32 = vld [vmem:[#allocation2 + $0x188] sm:$0xff] }
 0x3df   : > { %v12643_v35 = vadd.f32 %v4919_v14, %v4511_v33  ;;  %v3728_v29 = vpop.f32.mrf.mxu1 }
 0x3e0   : > { %v4925_v43 = vpop.f32.mrf.mxu3 }
 0x3e1   : > { %10431 = vmatmul.msk.f32.gmra.mxu2 %vm276_vm1, %v4002_v40  ;;  %v12648_v0 = vpop.f32.mrf.mxu0  ;;  %v3316_v40 = vadd.f32 %v12536_v21, %v11725_v60  ;;  %v3406_v21 = vld [vmem:[#allocation2 + $0x182] sm:$0xff] }
 0x3e2   : > { %10358 = vmatmul.msk.f32.gmra.mxu1 %vm276_vm1, %v3404_v62  ;;  %v12664_v62 = vld [vmem:[#allocation2 + $0x1c9] sm:$0xff] }
 0x3e3   : > { %v3914_v31 = vadd.f32 %v3728_v29, %v3316_v40 }
 0x3e4   : > { %v4324_v50 = vpop.f32.mrf.mxu2  ;;  %10292 = vmatmul.msk.f32.gmra.mxu0 %vm276_vm1, %v12650_v51 }
 0x3e5   : > { %10507 = vmatmul.msk.f32.gmra.mxu3 %vm276_vm1, %v12594_v15  ;;  %v4512_v14 = vadd.f32 %v4324_v50, %v3913_v44  ;;  %v4004_v44 = vld [vmem:[#allocation2 + $0x190] sm:$0xff] }
 0x3e7   : > { %v12657_v17 = vadd.f32 %v4922_v52, %v4512_v14  ;;  %v3731_v45 = vpop.f32.mrf.mxu1 }
 0x3e8   : > { %v4928_v33 = vpop.f32.mrf.mxu3 }
 0x3e9   : > { %10432 = vmatmul.msk.f32.gmra.mxu2 %vm276_vm1, %v4003_v32  ;;  %v12662_v1 = vpop.f32.mrf.mxu0  ;;  %v3317_v32 = vadd.f32 %v12550_v34, %v11740_v13  ;;  %v3407_v34 = vld [vmem:[#allocation2 + $0x18a] sm:$0xff] }
 0x3ea   : > { %10359 = vmatmul.msk.f32.gmra.mxu1 %vm276_vm1, %v3405_v9  ;;  %v12678_v9 = vld [vmem:[#allocation2 + $0x1d1] sm:$0xff] }
 0x3eb   : > { %v3915_v40 = vadd.f32 %v3731_v45, %v3317_v32 }
 0x3ec   : > { %v4327_v15 = vpop.f32.mrf.mxu2  ;;  %10293 = vmatmul.msk.f32.gmra.mxu0 %vm276_vm1, %v12664_v62 }
 0x3ed   : > { %10508 = vmatmul.msk.f32.gmra.mxu3 %vm276_vm1, %v12608_v2  ;;  %v4513_v52 = vadd.f32 %v4327_v15, %v3914_v31  ;;  %v4005_v31 = vld [vmem:[#allocation2 + $0x1a0] sm:$0xff] }
 0x3ef   : > { %v12671_v50 = vadd.f32 %v4925_v43, %v4513_v52  ;;  %v3734_v60 = vpop.f32.mrf.mxu1 }
 0x3f0   : > { %v4931_v14 = vpop.f32.mrf.mxu3 }
 0x3f1   : > { %10433 = vmatmul.msk.f32.gmra.mxu2 %vm276_vm1, %v4004_v44  ;;  %v12676_v29 = vpop.f32.mrf.mxu0  ;;  %v3318_v44 = vadd.f32 %v12564_v47, %v11755_v30  ;;  %v3408_v47 = vld [vmem:[#allocation2 + $0x192] sm:$0xff] }
 0x3f2   : > { %10360 = vmatmul.msk.f32.gmra.mxu1 %vm276_vm1, %v3406_v21  ;;  %v12692_v21 = vld [vmem:[#allocation2 + $0x1e1] sm:$0xff] }
 0x3f3   : > { %v3916_v32 = vadd.f32 %v3734_v60, %v3318_v44 }
 0x3f4   : > { %v4330_v2 = vpop.f32.mrf.mxu2  ;;  %10294 = vmatmul.msk.f32.gmra.mxu0 %vm276_vm1, %v12678_v9 }
 0x3f5   : > { %10509 = vmatmul.msk.f32.gmra.mxu3 %vm276_vm1, %v12622_v25  ;;  %v4514_v43 = vadd.f32 %v4330_v2, %v3915_v40  ;;  %v4006_v40 = vld [vmem:[#allocation2 + $0x1a8] sm:$0xff] }
 0x3f7   : > { %v12685_v15 = vadd.f32 %v4928_v33, %v4514_v43  ;;  %v3737_v13 = vpop.f32.mrf.mxu1 }
 0x3f8   : > { %v4934_v52 = vpop.f32.mrf.mxu3 }
 0x3f9   : > { %10434 = vmatmul.msk.f32.gmra.mxu2 %vm276_vm1, %v4005_v31  ;;  %v12690_v45 = vpop.f32.mrf.mxu0  ;;  %v3319_v31 = vadd.f32 %v12578_v59, %v11770_v48  ;;  %v3409_v59 = vld [vmem:[#allocation2 + $0x1a2] sm:$0xff] }
 0x3fa   : > { %10361 = vmatmul.msk.f32.gmra.mxu1 %vm276_vm1, %v3407_v34  ;;  %v12706_v34 = vld [vmem:[#allocation2 + $0x1e9] sm:$0xff] }
 0x3fb   : > { %v3917_v44 = vadd.f32 %v3737_v13, %v3319_v31 }
 0x3fc   : > { %v4333_v25 = vpop.f32.mrf.mxu2  ;;  %10295 = vmatmul.msk.f32.gmra.mxu0 %vm276_vm1, %v12692_v21 }
 0x3fd   : > { %10510 = vmatmul.msk.f32.gmra.mxu3 %vm276_vm1, %v12636_v11  ;;  %v4515_v33 = vadd.f32 %v4333_v25, %v3916_v32  ;;  %v4007_v32 = vld [vmem:[#allocation2 + $0x1b0] sm:$0xff] }
 0x3ff   : > { %v12699_v2 = vadd.f32 %v4931_v14, %v4515_v33  ;;  %v3740_v30 = vpop.f32.mrf.mxu1 }
 0x400   : > { %v4937_v43 = vpop.f32.mrf.mxu3 }
 0x401   : > { %10435 = vmatmul.msk.f32.gmra.mxu2 %vm276_vm1, %v4006_v40  ;;  %v12704_v60 = vpop.f32.mrf.mxu0  ;;  %v3320_v40 = vadd.f32 %v12592_v7, %v11785_v56  ;;  %v3410_v7 = vld [vmem:[#allocation2 + $0x1aa] sm:$0xff] }
 0x402   : > { %10362 = vmatmul.msk.f32.gmra.mxu1 %vm276_vm1, %v3408_v47  ;;  %v12720_v47 = vld [vmem:[#allocation2 + $0x1f1] sm:$0xff] }
 0x403   : > { %v3918_v31 = vadd.f32 %v3740_v30, %v3320_v40 }
 0x404   : > { %v4336_v11 = vpop.f32.mrf.mxu2  ;;  %10296 = vmatmul.msk.f32.gmra.mxu0 %vm276_vm1, %v12706_v34 }
 0x405   : > { %10511 = vmatmul.msk.f32.gmra.mxu3 %vm276_vm1, %v12650_v51  ;;  %v4516_v14 = vadd.f32 %v4336_v11, %v3917_v44  ;;  %v4008_v44 = vld [vmem:[#allocation2 + $0x1c0] sm:$0xff] }
 0x407   : > { %v12713_v25 = vadd.f32 %v4934_v52, %v4516_v14  ;;  %v3743_v48 = vpop.f32.mrf.mxu1 }
 0x408   : > { %v4940_v33 = vpop.f32.mrf.mxu3 }
 0x409   : > { %10436 = vmatmul.msk.f32.gmra.mxu2 %vm276_vm1, %v4007_v32  ;;  %v12718_v13 = vpop.f32.mrf.mxu0  ;;  %v3321_v32 = vadd.f32 %v12606_v20, %v11800_v55  ;;  %v3411_v20 = vld [vmem:[#allocation2 + $0x1b2] sm:$0xff] }
 0x40a   : > { %10363 = vmatmul.msk.f32.gmra.mxu1 %vm276_vm1, %v3409_v59  ;;  %v12734_v59 = vld [vmem:[#allocation2 + $0x201] sm:$0xff] }
 0x40b   : > { %v3919_v40 = vadd.f32 %v3743_v48, %v3321_v32 }
 0x40c   : > { %v4339_v51 = vpop.f32.mrf.mxu2  ;;  %10297 = vmatmul.msk.f32.gmra.mxu0 %vm276_vm1, %v12720_v47 }
 0x40d   : > { %10512 = vmatmul.msk.f32.gmra.mxu3 %vm276_vm1, %v12664_v62  ;;  %v4517_v52 = vadd.f32 %v4339_v51, %v3918_v31  ;;  %v4009_v31 = vld [vmem:[#allocation2 + $0x1c8] sm:$0xff] }
 0x40f   : > { %v12727_v11 = vadd.f32 %v4937_v43, %v4517_v52  ;;  %v3746_v56 = vpop.f32.mrf.mxu1 }
 0x410   : > { %v4943_v14 = vpop.f32.mrf.mxu3 }
 0x411   : > { %10437 = vmatmul.msk.f32.gmra.mxu2 %vm276_vm1, %v4008_v44  ;;  %v12732_v30 = vpop.f32.mrf.mxu0  ;;  %v3322_v44 = vadd.f32 %v12620_v36, %v11815_v41  ;;  %v3412_v36 = vld [vmem:[#allocation2 + $0x1c2] sm:$0xff] }
 0x412   : > { %10364 = vmatmul.msk.f32.gmra.mxu1 %vm276_vm1, %v3410_v7  ;;  %v12748_v7 = vld [vmem:[#allocation2 + $0x209] sm:$0xff] }
 0x413   : > { %v3920_v32 = vadd.f32 %v3746_v56, %v3322_v44 }
 0x414   : > { %v4342_v62 = vpop.f32.mrf.mxu2  ;;  %10298 = vmatmul.msk.f32.gmra.mxu0 %vm276_vm1, %v12734_v59 }
 0x415   : > { %10513 = vmatmul.msk.f32.gmra.mxu3 %vm276_vm1, %v12678_v9  ;;  %v4518_v43 = vadd.f32 %v4342_v62, %v3919_v40  ;;  %v4010_v40 = vld [vmem:[#allocation2 + $0x1d0] sm:$0xff] }
 0x417   : > { %v12741_v51 = vadd.f32 %v4940_v33, %v4518_v43  ;;  %v3749_v55 = vpop.f32.mrf.mxu1 }
 0x418   : > { %v4946_v52 = vpop.f32.mrf.mxu3 }
 0x419   : > { %10438 = vmatmul.msk.f32.gmra.mxu2 %vm276_vm1, %v4009_v31  ;;  %v12746_v48 = vpop.f32.mrf.mxu0  ;;  %v3323_v31 = vadd.f32 %v12634_v49, %v11830_v58  ;;  %v3413_v49 = vld [vmem:[#allocation2 + $0x1ca] sm:$0xff] }
 0x41a   : > { %10365 = vmatmul.msk.f32.gmra.mxu1 %vm276_vm1, %v3411_v20  ;;  %v12762_v20 = vld [vmem:[#allocation2 + $0x211] sm:$0xff] }
 0x41b   : > { %v3921_v44 = vadd.f32 %v3749_v55, %v3323_v31 }
 0x41c   : > { %v4345_v9 = vpop.f32.mrf.mxu2  ;;  %10299 = vmatmul.msk.f32.gmra.mxu0 %vm276_vm1, %v12748_v7 }
 0x41d   : > { %10514 = vmatmul.msk.f32.gmra.mxu3 %vm276_vm1, %v12692_v21  ;;  %v4519_v33 = vadd.f32 %v4345_v9, %v3920_v32  ;;  %v4011_v32 = vld [vmem:[#allocation2 + $0x1e0] sm:$0xff] }
 0x41f   : > { %v12755_v62 = vadd.f32 %v4943_v14, %v4519_v33  ;;  %v3752_v41 = vpop.f32.mrf.mxu1 }
 0x420   : > { %v4949_v43 = vpop.f32.mrf.mxu3 }
 0x421   : > { %10439 = vmatmul.msk.f32.gmra.mxu2 %vm276_vm1, %v4010_v40  ;;  %v12760_v56 = vpop.f32.mrf.mxu0  ;;  %v3324_v40 = vadd.f32 %v12648_v0, %v11845_v16  ;;  %v3414_v0 = vld [vmem:[#allocation2 + $0x1d2] sm:$0xff] }
 0x422   : > { %10366 = vmatmul.msk.f32.gmra.mxu1 %vm276_vm1, %v3412_v36  ;;  %v12776_v36 = vld [vmem:[#allocation2 + $0x221] sm:$0xff] }
 0x423   : > { %v3922_v31 = vadd.f32 %v3752_v41, %v3324_v40 }
 0x424   : > { %v4348_v21 = vpop.f32.mrf.mxu2  ;;  %10300 = vmatmul.msk.f32.gmra.mxu0 %vm276_vm1, %v12762_v20 }
 0x425   : > { %10515 = vmatmul.msk.f32.gmra.mxu3 %vm276_vm1, %v12706_v34  ;;  %v4520_v14 = vadd.f32 %v4348_v21, %v3921_v44  ;;  %v4012_v44 = vld [vmem:[#allocation2 + $0x1e8] sm:$0xff] }
 0x427   : > { %v12769_v9 = vadd.f32 %v4946_v52, %v4520_v14  ;;  %v3755_v58 = vpop.f32.mrf.mxu1 }
 0x428   : > { %v4952_v33 = vpop.f32.mrf.mxu3 }
 0x429   : > { %10440 = vmatmul.msk.f32.gmra.mxu2 %vm276_vm1, %v4011_v32  ;;  %v12774_v55 = vpop.f32.mrf.mxu0  ;;  %v3325_v32 = vadd.f32 %v12662_v1, %v11860_v4  ;;  %v3415_v1 = vld [vmem:[#allocation2 + $0x1e2] sm:$0xff] }
 0x42a   : > { %10367 = vmatmul.msk.f32.gmra.mxu1 %vm276_vm1, %v3413_v49  ;;  %v12790_v49 = vld [vmem:[#allocation2 + $0x229] sm:$0xff] }
 0x42b   : > { %v3923_v40 = vadd.f32 %v3755_v58, %v3325_v32 }
 0x42c   : > { %v4351_v34 = vpop.f32.mrf.mxu2  ;;  %10301 = vmatmul.msk.f32.gmra.mxu0 %vm276_vm1, %v12776_v36 }
 0x42d   : > { %10516 = vmatmul.msk.f32.gmra.mxu3 %vm276_vm1, %v12720_v47  ;;  %v4521_v52 = vadd.f32 %v4351_v34, %v3922_v31  ;;  %v4013_v31 = vld [vmem:[#allocation2 + $0x1f0] sm:$0xff] }
 0x42f   : > { %v12783_v21 = vadd.f32 %v4949_v43, %v4521_v52  ;;  %v3758_v16 = vpop.f32.mrf.mxu1 }
 0x430   : > { %v4955_v14 = vpop.f32.mrf.mxu3 }
 0x431   : > { %10441 = vmatmul.msk.f32.gmra.mxu2 %vm276_vm1, %v4012_v44  ;;  %v12788_v41 = vpop.f32.mrf.mxu0  ;;  %v3326_v44 = vadd.f32 %v12676_v29, %v11875_v61  ;;  %v3416_v29 = vld [vmem:[#allocation2 + $0x1ea] sm:$0xff] }
 0x432   : > { %10368 = vmatmul.msk.f32.gmra.mxu1 %vm276_vm1, %v3414_v0  ;;  %v12804_v0 = vld [vmem:[#allocation2 + $0x231] sm:$0xff] }
 0x433   : > { %v3924_v32 = vadd.f32 %v3758_v16, %v3326_v44 }
 0x434   : > { %v4354_v47 = vpop.f32.mrf.mxu2  ;;  %10302 = vmatmul.msk.f32.gmra.mxu0 %vm276_vm1, %v12790_v49 }
 0x435   : > { %10517 = vmatmul.msk.f32.gmra.mxu3 %vm276_vm1, %v12734_v59  ;;  %v4522_v43 = vadd.f32 %v4354_v47, %v3923_v40  ;;  %v4014_v40 = vld [vmem:[#allocation2 + $0x200] sm:$0xff] }
 0x437   : > { %v12797_v34 = vadd.f32 %v4952_v33, %v4522_v43  ;;  %v3761_v4 = vpop.f32.mrf.mxu1 }
 0x438   : > { %v4958_v52 = vpop.f32.mrf.mxu3 }
 0x439   : > { %10442 = vmatmul.msk.f32.gmra.mxu2 %vm276_vm1, %v4013_v31  ;;  %v12802_v58 = vpop.f32.mrf.mxu0  ;;  %v3327_v31 = vadd.f32 %v12690_v45, %v11890_v22  ;;  %v3417_v45 = vld [vmem:[#allocation2 + $0x1f2] sm:$0xff] }
 0x43a   : > { %10369 = vmatmul.msk.f32.gmra.mxu1 %vm276_vm1, %v3415_v1  ;;  %v12818_v1 = vld [vmem:[#allocation2 + $0x241] sm:$0xff] }
 0x43b   : > { %v3925_v44 = vadd.f32 %v3761_v4, %v3327_v31 }
 0x43c   : > { %v4357_v59 = vpop.f32.mrf.mxu2  ;;  %10303 = vmatmul.msk.f32.gmra.mxu0 %vm276_vm1, %v12804_v0 }
 0x43d   : > { %10518 = vmatmul.msk.f32.gmra.mxu3 %vm276_vm1, %v12748_v7  ;;  %v4523_v33 = vadd.f32 %v4357_v59, %v3924_v32  ;;  %v4015_v32 = vld [vmem:[#allocation2 + $0x208] sm:$0xff] }
 0x43f   : > { %v12811_v47 = vadd.f32 %v4955_v14, %v4523_v33  ;;  %v3764_v61 = vpop.f32.mrf.mxu1 }
 0x440   : > { %v4961_v43 = vpop.f32.mrf.mxu3 }
 0x441   : > { %10443 = vmatmul.msk.f32.gmra.mxu2 %vm276_vm1, %v4014_v40  ;;  %v12816_v16 = vpop.f32.mrf.mxu0  ;;  %v3328_v40 = vadd.f32 %v12704_v60, %v11905_v8  ;;  %v3418_v60 = vld [vmem:[#allocation2 + $0x202] sm:$0xff] }
 0x442   : > { %10370 = vmatmul.msk.f32.gmra.mxu1 %vm276_vm1, %v3416_v29  ;;  %v12832_v29 = vld [vmem:[#allocation2 + $0x249] sm:$0xff] }
 0x443   : > { %v3926_v31 = vadd.f32 %v3764_v61, %v3328_v40 }
 0x444   : > { %v4360_v7 = vpop.f32.mrf.mxu2  ;;  %10304 = vmatmul.msk.f32.gmra.mxu0 %vm276_vm1, %v12818_v1 }
 0x445   : > { %10519 = vmatmul.msk.f32.gmra.mxu3 %vm276_vm1, %v12762_v20  ;;  %v4524_v14 = vadd.f32 %v4360_v7, %v3925_v44  ;;  %v4016_v44 = vld [vmem:[#allocation2 + $0x210] sm:$0xff] }
 0x447   : > { %v12825_v59 = vadd.f32 %v4958_v52, %v4524_v14  ;;  %v3767_v22 = vpop.f32.mrf.mxu1 }
 0x448   : > { %v4964_v33 = vpop.f32.mrf.mxu3 }
 0x449   : > { %10444 = vmatmul.msk.f32.gmra.mxu2 %vm276_vm1, %v4015_v32  ;;  %v12830_v4 = vpop.f32.mrf.mxu0  ;;  %v3329_v32 = vadd.f32 %v12718_v13, %v11920_v6  ;;  %v3419_v13 = vld [vmem:[#allocation2 + $0x20a] sm:$0xff] }
 0x44a   : > { %10371 = vmatmul.msk.f32.gmra.mxu1 %vm276_vm1, %v3417_v45  ;;  %v12846_v45 = vld [vmem:[#allocation2 + $0x251] sm:$0xff] }
 0x44b   : > { %v3927_v40 = vadd.f32 %v3767_v22, %v3329_v32 }
 0x44c   : > { %v4363_v20 = vpop.f32.mrf.mxu2  ;;  %10305 = vmatmul.msk.f32.gmra.mxu0 %vm276_vm1, %v12832_v29 }
 0x44d   : > { %10520 = vmatmul.msk.f32.gmra.mxu3 %vm276_vm1, %v12776_v36  ;;  %v4525_v52 = vadd.f32 %v4363_v20, %v3926_v31  ;;  %v4017_v31 = vld [vmem:[#allocation2 + $0x220] sm:$0xff] }
 0x44f   : > { %v12839_v7 = vadd.f32 %v4961_v43, %v4525_v52  ;;  %v3770_v8 = vpop.f32.mrf.mxu1 }
 0x450   : > { %v4967_v14 = vpop.f32.mrf.mxu3 }
 0x451   : > { %10445 = vmatmul.msk.f32.gmra.mxu2 %vm276_vm1, %v4016_v44  ;;  %v12844_v61 = vpop.f32.mrf.mxu0  ;;  %v3330_v44 = vadd.f32 %v12732_v30, %v11935_v27  ;;  %v3420_v30 = vld [vmem:[#allocation2 + $0x212] sm:$0xff] }
 0x452   : > { %10372 = vmatmul.msk.f32.gmra.mxu1 %vm276_vm1, %v3418_v60  ;;  %v12860_v60 = vld [vmem:[#allocation2 + $0x261] sm:$0xff] }
 0x453   : > { %v3928_v32 = vadd.f32 %v3770_v8, %v3330_v44 }
 0x454   : > { %v4366_v36 = vpop.f32.mrf.mxu2  ;;  %10306 = vmatmul.msk.f32.gmra.mxu0 %vm276_vm1, %v12846_v45 }
 0x455   : > { %10521 = vmatmul.msk.f32.gmra.mxu3 %vm276_vm1, %v12790_v49  ;;  %v4526_v43 = vadd.f32 %v4366_v36, %v3927_v40  ;;  %v4018_v40 = vld [vmem:[#allocation2 + $0x228] sm:$0xff] }
 0x457   : > { %v12853_v20 = vadd.f32 %v4964_v33, %v4526_v43  ;;  %v3773_v6 = vpop.f32.mrf.mxu1 }
 0x458   : > { %v4970_v52 = vpop.f32.mrf.mxu3 }
 0x459   : > { %10446 = vmatmul.msk.f32.gmra.mxu2 %vm276_vm1, %v4017_v31  ;;  %v12858_v22 = vpop.f32.mrf.mxu0  ;;  %v3331_v31 = vadd.f32 %v12746_v48, %v11950_v54  ;;  %v3421_v48 = vld [vmem:[#allocation2 + $0x222] sm:$0xff] }
 0x45a   : > { %10373 = vmatmul.msk.f32.gmra.mxu1 %vm276_vm1, %v3419_v13  ;;  %v12874_v13 = vld [vmem:[#allocation2 + $0x269] sm:$0xff] }
 0x45b   : > { %v3929_v44 = vadd.f32 %v3773_v6, %v3331_v31 }
 0x45c   : > { %v4369_v49 = vpop.f32.mrf.mxu2  ;;  %10307 = vmatmul.msk.f32.gmra.mxu0 %vm276_vm1, %v12860_v60 }
 0x45d   : > { %10522 = vmatmul.msk.f32.gmra.mxu3 %vm276_vm1, %v12804_v0  ;;  %v4527_v33 = vadd.f32 %v4369_v49, %v3928_v32  ;;  %v4019_v32 = vld [vmem:[#allocation2 + $0x230] sm:$0xff] }
 0x45f   : > { %v12867_v36 = vadd.f32 %v4967_v14, %v4527_v33  ;;  %v3776_v27 = vpop.f32.mrf.mxu1 }
 0x460   : > { %v4973_v43 = vpop.f32.mrf.mxu3 }
 0x461   : > { %10447 = vmatmul.msk.f32.gmra.mxu2 %vm276_vm1, %v4018_v40  ;;  %v12872_v8 = vpop.f32.mrf.mxu0  ;;  %v3332_v40 = vadd.f32 %v12760_v56, %v11965_v42  ;;  %v3422_v56 = vld [vmem:[#allocation2 + $0x22a] sm:$0xff] }
 0x462   : > { %10374 = vmatmul.msk.f32.gmra.mxu1 %vm276_vm1, %v3420_v30  ;;  %v12888_v30 = vld [vmem:[#allocation2 + $0x271] sm:$0xff] }
 0x463   : > { %v3930_v31 = vadd.f32 %v3776_v27, %v3332_v40 }
 0x464   : > { %v4372_v0 = vpop.f32.mrf.mxu2  ;;  %10308 = vmatmul.msk.f32.gmra.mxu0 %vm276_vm1, %v12874_v13 }
 0x465   : > { %10523 = vmatmul.msk.f32.gmra.mxu3 %vm276_vm1, %v12818_v1  ;;  %v4528_v14 = vadd.f32 %v4372_v0, %v3929_v44  ;;  %v4020_v44 = vld [vmem:[#allocation2 + $0x240] sm:$0xff] }
 0x467   : > { %v12881_v49 = vadd.f32 %v4970_v52, %v4528_v14  ;;  %v3779_v54 = vpop.f32.mrf.mxu1 }
 0x468   : > { %v4976_v33 = vpop.f32.mrf.mxu3 }
 0x469   : > { %10448 = vmatmul.msk.f32.gmra.mxu2 %vm276_vm1, %v4019_v32  ;;  %v12886_v6 = vpop.f32.mrf.mxu0  ;;  %v3333_v32 = vadd.f32 %v12774_v55, %v11980_v57  ;;  %v3423_v55 = vld [vmem:[#allocation2 + $0x232] sm:$0xff] }
 0x46a   : > { %10375 = vmatmul.msk.f32.gmra.mxu1 %vm276_vm1, %v3421_v48  ;;  %v12902_v48 = vld [vmem:[#allocation2 + $0x281] sm:$0xff] }
 0x46b   : > { %v3931_v40 = vadd.f32 %v3779_v54, %v3333_v32 }
 0x46c   : > { %v4375_v1 = vpop.f32.mrf.mxu2  ;;  %10309 = vmatmul.msk.f32.gmra.mxu0 %vm276_vm1, %v12888_v30 }
 0x46d   : > { %10524 = vmatmul.msk.f32.gmra.mxu3 %vm276_vm1, %v12832_v29  ;;  %v4529_v52 = vadd.f32 %v4375_v1, %v3930_v31  ;;  %v4021_v31 = vld [vmem:[#allocation2 + $0x248] sm:$0xff] }
 0x46f   : > { %v12895_v0 = vadd.f32 %v4973_v43, %v4529_v52  ;;  %v3782_v42 = vpop.f32.mrf.mxu1 }
 0x470   : > { %v4979_v14 = vpop.f32.mrf.mxu3 }
 0x471   : > { %10449 = vmatmul.msk.f32.gmra.mxu2 %vm276_vm1, %v4020_v44  ;;  %v12900_v27 = vpop.f32.mrf.mxu0  ;;  %v15058_v44 = vld [vmem:[#allocation9_spill] sm:$0xff] }
 0x472   : > { %10376 = vmatmul.msk.f32.gmra.mxu1 %vm276_vm1, %v3422_v56  ;;  %v3334_v26 = vadd.f32 %v12788_v41, %v15058_v44  ;;  %v12916_v56 = vld [vmem:[#allocation2 + $0x289] sm:$0xff] }
 0x473   : > { %v15059_v44 = vld [vmem:[#allocation10_spill] sm:$0xff] }
 0x474   : > { %v4378_v29 = vpop.f32.mrf.mxu2  ;;  %10310 = vmatmul.msk.f32.gmra.mxu0 %vm276_vm1, %v12902_v48  ;;  %v3932_v32 = vadd.f32 %v3782_v42, %v3334_v26  ;;  %v3335_v10 = vadd.f32 %v12802_v58, %v15059_v44  ;;  %v12930_v42 = vld [vmem:[#allocation2 + $0x291] sm:$0xff] }
 0x475   : > { %10525 = vmatmul.msk.f32.gmra.mxu3 %vm276_vm1, %v12846_v45  ;;  %v4530_v43 = vadd.f32 %v4378_v29, %v3931_v40  ;;  %v4022_v40 = vld [vmem:[#allocation2 + $0x250] sm:$0xff] }
 0x476   : > { %v15061_v44 = vld [vmem:[#allocation11_spill] sm:$0xff] }
 0x477   : > { %v12909_v1 = vadd.f32 %v4976_v33, %v4530_v43  ;;  %v3785_v57 = vpop.f32.mrf.mxu1  ;;  %v3424_v43 = vld [vmem:[#allocation2 + $0x242] sm:$0xff]  ;;  %v3336_v18 = vadd.f32 %v12816_v16, %v15061_v44  ;;  %v15063_v44 = vld [vmem:[#allocation12_spill] sm:$0xff] }
 0x478   : > { %v4982_v52 = vpop.f32.mrf.mxu3 }
 0x479   : > { %10450 = vmatmul.msk.f32.gmra.mxu2 %vm276_vm1, %v4021_v31  ;;  %v12914_v54 = vpop.f32.mrf.mxu0 }
 0x47a   : > { %10377 = vmatmul.msk.f32.gmra.mxu1 %vm276_vm1, %v3423_v55  ;;  %v3933_v55 = vadd.f32 %v3785_v57, %v3335_v10  ;;  %v12944_v57 = vld [vmem:[#allocation2 + $0x2a1] sm:$0xff] }
 0x47c   : > { %v4381_v45 = vpop.f32.mrf.mxu2  ;;  %10311 = vmatmul.msk.f32.gmra.mxu0 %vm276_vm1, %v12916_v56 }
 0x47d   : > { %10526 = vmatmul.msk.f32.gmra.mxu3 %vm276_vm1, %v12860_v60  ;;  %v4531_v33 = vadd.f32 %v4381_v45, %v3932_v32  ;;  %v4023_v32 = vld [vmem:[#allocation2 + $0x260] sm:$0xff] }
 0x47f   : > { %v12923_v29 = vadd.f32 %v4979_v14, %v4531_v33  ;;  %v3788_v41 = vpop.f32.mrf.mxu1  ;;  %v3425_v33 = vld [vmem:[#allocation2 + $0x24a] sm:$0xff] }
 0x480   : > { %v4985_v31 = vpop.f32.mrf.mxu3 }
 0x481   : > { %10451 = vmatmul.msk.f32.gmra.mxu2 %vm276_vm1, %v4022_v40  ;;  %v12928_v26 = vpop.f32.mrf.mxu0 }
 0x482   : > { %10378 = vmatmul.msk.f32.gmra.mxu1 %vm276_vm1, %v3424_v43  ;;  %v3934_v43 = vadd.f32 %v3788_v41, %v3336_v18  ;;  %v12958_v41 = vld [vmem:[#allocation2 + $0x2a9] sm:$0xff] }
 0x484   : > { %v4384_v60 = vpop.f32.mrf.mxu2  ;;  %10312 = vmatmul.msk.f32.gmra.mxu0 %vm276_vm1, %v12930_v42 }
 0x485   : > { %10527 = vmatmul.msk.f32.gmra.mxu3 %vm276_vm1, %v12874_v13  ;;  %v4532_v14 = vadd.f32 %v4384_v60, %v3933_v55  ;;  %v4024_v55 = vld [vmem:[#allocation2 + $0x268] sm:$0xff] }
 0x487   : > { %v12937_v45 = vadd.f32 %v4982_v52, %v4532_v14  ;;  %v3791_v58 = vpop.f32.mrf.mxu1  ;;  %v3426_v14 = vld [vmem:[#allocation2 + $0x252] sm:$0xff] }
 0x488   : > { %v4988_v40 = vpop.f32.mrf.mxu3 }
 0x489   : > { %15060 = vst [vmem:[#allocation9_spill] sm:$0xff] %v12937_v45  ;;  %10452 = vmatmul.msk.f32.gmra.mxu2 %vm276_vm1, %v4023_v32  ;;  %v12942_v10 = vpop.f32.mrf.mxu0  ;;  %v3337_v45 = vadd.f32 %v12830_v4, %v15063_v44  ;;  %v15065_v44 = vld [vmem:[#allocation13_spill] sm:$0xff] }
 0x48a   : > { %10379 = vmatmul.msk.f32.gmra.mxu1 %vm276_vm1, %v3425_v33 }
 0x48b   : > { %v3935_v33 = vadd.f32 %v3791_v58, %v3337_v45  ;;  %v12972_v58 = vld [vmem:[#allocation2 + $0x2b1] sm:$0xff] }
 0x48c   : > { %v4387_v13 = vpop.f32.mrf.mxu2  ;;  %10313 = vmatmul.msk.f32.gmra.mxu0 %vm276_vm1, %v12944_v57 }
 0x48d   : > { %10528 = vmatmul.msk.f32.gmra.mxu3 %vm276_vm1, %v12888_v30  ;;  %v4533_v52 = vadd.f32 %v4387_v13, %v3934_v43  ;;  %v4025_v43 = vld [vmem:[#allocation2 + $0x270] sm:$0xff] }
 0x48f   : > { %v12951_v60 = vadd.f32 %v4985_v31, %v4533_v52  ;;  %v3794_v16 = vpop.f32.mrf.mxu1  ;;  %v3427_v52 = vld [vmem:[#allocation2 + $0x262] sm:$0xff] }
 0x490   : > { %v4991_v32 = vpop.f32.mrf.mxu3 }
 0x491   : > { %15062 = vst [vmem:[#allocation10_spill] sm:$0xff] %v12951_v60  ;;  %10453 = vmatmul.msk.f32.gmra.mxu2 %vm276_vm1, %v4024_v55  ;;  %v12956_v18 = vpop.f32.mrf.mxu0  ;;  %v3338_v60 = vadd.f32 %v12844_v61, %v15065_v44  ;;  %v15067_v44 = vld [vmem:[#allocation14_spill] sm:$0xff] }
 0x492   : > { %10380 = vmatmul.msk.f32.gmra.mxu1 %vm276_vm1, %v3426_v14 }
 0x493   : > { %v3936_v14 = vadd.f32 %v3794_v16, %v3338_v60  ;;  %v12986_v16 = vld [vmem:[#allocation2 + $0x2c1] sm:$0xff] }
 0x494   : > { %v4390_v30 = vpop.f32.mrf.mxu2  ;;  %10314 = vmatmul.msk.f32.gmra.mxu0 %vm276_vm1, %v12958_v41 }
 0x495   : > { %10529 = vmatmul.msk.f32.gmra.mxu3 %vm276_vm1, %v12902_v48  ;;  %v4534_v31 = vadd.f32 %v4390_v30, %v3935_v33  ;;  %v4026_v33 = vld [vmem:[#allocation2 + $0x280] sm:$0xff] }
 0x497   : > { %v12965_v13 = vadd.f32 %v4988_v40, %v4534_v31  ;;  %v3797_v4 = vpop.f32.mrf.mxu1  ;;  %v3428_v31 = vld [vmem:[#allocation2 + $0x26a] sm:$0xff] }
 0x498   : > { %v4994_v55 = vpop.f32.mrf.mxu3 }
 0x499   : > { %15064 = vst [vmem:[#allocation11_spill] sm:$0xff] %v12965_v13  ;;  %10454 = vmatmul.msk.f32.gmra.mxu2 %vm276_vm1, %v4025_v43  ;;  %v12970_v45 = vpop.f32.mrf.mxu0  ;;  %v3339_v13 = vadd.f32 %v12858_v22, %v15067_v44  ;;  %v15068_v44 = vld [vmem:[#allocation15_spill] sm:$0xff] }
 0x49a   : > { %10381 = vmatmul.msk.f32.gmra.mxu1 %vm276_vm1, %v3427_v52 }
 0x49b   : > { %v3937_v52 = vadd.f32 %v3797_v4, %v3339_v13  ;;  %v13000_v4 = vld [vmem:[#allocation2 + $0x2c9] sm:$0xff] }
 0x49c   : > { %v4393_v48 = vpop.f32.mrf.mxu2  ;;  %10315 = vmatmul.msk.f32.gmra.mxu0 %vm276_vm1, %v12972_v58 }
 0x49d   : > { %10530 = vmatmul.msk.f32.gmra.mxu3 %vm276_vm1, %v12916_v56  ;;  %v4535_v40 = vadd.f32 %v4393_v48, %v3936_v14  ;;  %v4027_v14 = vld [vmem:[#allocation2 + $0x288] sm:$0xff] }
 0x49f   : > { %v12979_v30 = vadd.f32 %v4991_v32, %v4535_v40  ;;  %v3800_v61 = vpop.f32.mrf.mxu1  ;;  %v3429_v40 = vld [vmem:[#allocation2 + $0x272] sm:$0xff] }
 0x4a0   : > { %v4997_v43 = vpop.f32.mrf.mxu3 }
 0x4a1   : > { %15066 = vst [vmem:[#allocation12_spill] sm:$0xff] %v12979_v30  ;;  %10455 = vmatmul.msk.f32.gmra.mxu2 %vm276_vm1, %v4026_v33  ;;  %v12984_v60 = vpop.f32.mrf.mxu0  ;;  %v3340_v30 = vadd.f32 %v12872_v8, %v15068_v44  ;;  %v15070_v44 = vld [vmem:[#allocation16_spill] sm:$0xff] }
 0x4a2   : > { %10382 = vmatmul.msk.f32.gmra.mxu1 %vm276_vm1, %v3428_v31 }
 0x4a3   : > { %v3938_v31 = vadd.f32 %v3800_v61, %v3340_v30  ;;  %v13014_v61 = vld [vmem:[#allocation2 + $0x2d1] sm:$0xff] }
 0x4a4   : > { %v4396_v56 = vpop.f32.mrf.mxu2  ;;  %10316 = vmatmul.msk.f32.gmra.mxu0 %vm276_vm1, %v12986_v16 }
 0x4a5   : > { %10531 = vmatmul.msk.f32.gmra.mxu3 %vm276_vm1, %v12930_v42  ;;  %v4536_v32 = vadd.f32 %v4396_v56, %v3937_v52  ;;  %v4028_v52 = vld [vmem:[#allocation2 + $0x290] sm:$0xff] }
 0x4a7   : > { %v12993_v48 = vadd.f32 %v4994_v55, %v4536_v32  ;;  %v3803_v22 = vpop.f32.mrf.mxu1  ;;  %v3430_v32 = vld [vmem:[#allocation2 + $0x282] sm:$0xff] }
 0x4a8   : > { %v5000_v33 = vpop.f32.mrf.mxu3 }
 0x4a9   : > { %10456 = vmatmul.msk.f32.gmra.mxu2 %vm276_vm1, %v4027_v14  ;;  %v12998_v13 = vpop.f32.mrf.mxu0 }
 0x4aa   : > { %15069 = vst [vmem:[#allocation13_spill] sm:$0xff] %v12998_v13  ;;  %10383 = vmatmul.msk.f32.gmra.mxu1 %vm276_vm1, %v3429_v40  ;;  %v3341_v13 = vadd.f32 %v12886_v6, %v15070_v44 }
 0x4ac   : > { %v4399_v42 = vpop.f32.mrf.mxu2  ;;  %10317 = vmatmul.msk.f32.gmra.mxu0 %vm276_vm1, %v13000_v4  ;;  %v3939_v40 = vadd.f32 %v3803_v22, %v3341_v13  ;;  %v13028_v22 = vld [vmem:[#allocation2 + $0x2e1] sm:$0xff] }
 0x4ad   : > { %10532 = vmatmul.msk.f32.gmra.mxu3 %vm276_vm1, %v12944_v57  ;;  %v4537_v55 = vadd.f32 %v4399_v42, %v3938_v31  ;;  %v4029_v31 = vld [vmem:[#allocation2 + $0x2a0] sm:$0xff] }
 0x4af   : > { %v13007_v56 = vadd.f32 %v4997_v43, %v4537_v55  ;;  %v3806_v8 = vpop.f32.mrf.mxu1  ;;  %v3431_v55 = vld [vmem:[#allocation2 + $0x28a] sm:$0xff] }
 0x4b0   : > { %v5003_v14 = vpop.f32.mrf.mxu3 }
 0x4b1   : > { %10457 = vmatmul.msk.f32.gmra.mxu2 %vm276_vm1, %v4028_v52  ;;  %v13012_v30 = vpop.f32.mrf.mxu0  ;;  %v15072_v52 = vld [vmem:[#allocation17_spill] sm:$0xff] }
 0x4b2   : > { %15071 = vst [vmem:[#allocation14_spill] sm:$0xff] %v13012_v30  ;;  %10384 = vmatmul.msk.f32.gmra.mxu1 %vm276_vm1, %v3430_v32  ;;  %v3342_v44 = vadd.f32 %v12900_v27, %v15072_v52 }
 0x4b4   : > { %v4402_v57 = vpop.f32.mrf.mxu2  ;;  %10318 = vmatmul.msk.f32.gmra.mxu0 %vm276_vm1, %v13014_v61  ;;  %v3940_v30 = vadd.f32 %v3806_v8, %v3342_v44  ;;  %v13042_v8 = vld [vmem:[#allocation2 + $0x2e9] sm:$0xff] }
 0x4b5   : > { %10533 = vmatmul.msk.f32.gmra.mxu3 %vm276_vm1, %v12958_v41  ;;  %v4538_v43 = vadd.f32 %v4402_v57, %v3939_v40  ;;  %v4030_v40 = vld [vmem:[#allocation2 + $0x2a8] sm:$0xff]  ;;  %v3432_v57 = vld [vmem:[#allocation2 + $0x292] sm:$0xff] }
 0x4b7   : > { %v13021_v42 = vadd.f32 %v5000_v33, %v4538_v43  ;;  %v3809_v6 = vpop.f32.mrf.mxu1 }
 0x4b8   : > { %v5006_v13 = vpop.f32.mrf.mxu3 }
 0x4b9   : > { %10458 = vmatmul.msk.f32.gmra.mxu2 %vm276_vm1, %v4029_v31  ;;  %v13026_v32 = vpop.f32.mrf.mxu0  ;;  %v15074_v31 = vld [vmem:[#allocation18_spill] sm:$0xff] }
 0x4ba   : > { %15073 = vst [vmem:[#allocation15_spill] sm:$0xff] %v13026_v32  ;;  %10385 = vmatmul.msk.f32.gmra.mxu1 %vm276_vm1, %v3431_v55  ;;  %v3343_v52 = vadd.f32 %v12914_v54, %v15074_v31 }
 0x4bc   : > { %v4405_v41 = vpop.f32.mrf.mxu2  ;;  %10319 = vmatmul.msk.f32.gmra.mxu0 %vm276_vm1, %v13028_v22  ;;  %v3941_v44 = vadd.f32 %v3809_v6, %v3343_v52  ;;  %v13056_v6 = vld [vmem:[#allocation2 + $0x2f1] sm:$0xff] }
 0x4bd   : > { %10534 = vmatmul.msk.f32.gmra.mxu3 %vm276_vm1, %v12972_v58  ;;  %v4539_v33 = vadd.f32 %v4405_v41, %v3940_v30  ;;  %v4031_v30 = vld [vmem:[#allocation2 + $0x2b0] sm:$0xff]  ;;  %v3433_v41 = vld [vmem:[#allocation2 + $0x2a2] sm:$0xff] }
 0x4bf   : > { %v13035_v27 = vadd.f32 %v5003_v14, %v4539_v33  ;;  %v3812_v43 = vpop.f32.mrf.mxu1  ;;  %v15076_v33 = vld [vmem:[#allocation19_spill] sm:$0xff] }
 0x4c0   : > { %v5009_v58 = vpop.f32.mrf.mxu3 }
 0x4c1   : > { %10459 = vmatmul.msk.f32.gmra.mxu2 %vm276_vm1, %v4030_v40  ;;  %v13040_v55 = vpop.f32.mrf.mxu0  ;;  %v3344_v40 = vadd.f32 %v12928_v26, %v15076_v33 }
 0x4c2   : > { %15075 = vst [vmem:[#allocation16_spill] sm:$0xff] %v13040_v55  ;;  %10386 = vmatmul.msk.f32.gmra.mxu1 %vm276_vm1, %v3432_v57 }
 0x4c3   : > { %v3942_v52 = vadd.f32 %v3812_v43, %v3344_v40  ;;  %v2844_v43 = vld [vmem:[#allocation2 + $0x301] sm:$0xff] }
 0x4c4   : > { %v4408_v32 = vpop.f32.mrf.mxu2  ;;  %10320 = vmatmul.msk.f32.gmra.mxu0 %vm276_vm1, %v13042_v8 }
 0x4c5   : > { %10535 = vmatmul.msk.f32.gmra.mxu3 %vm276_vm1, %v12986_v16  ;;  %v4540_v14 = vadd.f32 %v4408_v32, %v3941_v44  ;;  %v4032_v32 = vld [vmem:[#allocation2 + $0x2c0] sm:$0xff]  ;;  %v3434_v44 = vld [vmem:[#allocation2 + $0x2aa] sm:$0xff] }
 0x4c7   : > { %v13049_v54 = vadd.f32 %v5006_v13, %v4540_v14  ;;  %v3815_v31 = vpop.f32.mrf.mxu1  ;;  %v15078_v14 = vld [vmem:[#allocation20_spill] sm:$0xff] }
 0x4c8   : > { %v5012_v26 = vpop.f32.mrf.mxu3 }
 0x4c9   : > { %10460 = vmatmul.msk.f32.gmra.mxu2 %vm276_vm1, %v4031_v30  ;;  %v13054_v57 = vpop.f32.mrf.mxu0  ;;  %v3345_v30 = vadd.f32 %v12942_v10, %v15078_v14  ;;  %v3435_v10 = vld [vmem:[#allocation2 + $0x2b2] sm:$0xff] }
 0x4ca   : > { %15077 = vst [vmem:[#allocation17_spill] sm:$0xff] %v13054_v57  ;;  %10387 = vmatmul.msk.f32.gmra.mxu1 %vm276_vm1, %v3433_v41 }
 0x4cb   : > { %v3943_v33 = vadd.f32 %v3815_v31, %v3345_v30  ;;  %v2845_v31 = vld [vmem:[#allocation2 + $0x309] sm:$0xff] }
 0x4cc   : > { %v4411_v55 = vpop.f32.mrf.mxu2  ;;  %10321 = vmatmul.msk.f32.gmra.mxu0 %vm276_vm1, %v13056_v6 }
 0x4cd   : > { %10536 = vmatmul.msk.f32.gmra.mxu3 %vm276_vm1, %v13000_v4  ;;  %v4541_v16 = vadd.f32 %v4411_v55, %v3942_v52  ;;  %v4033_v55 = vld [vmem:[#allocation2 + $0x2c8] sm:$0xff] }
 0x4cf   : > { %v13063_v13 = vadd.f32 %v5009_v58, %v4541_v16  ;;  %v3818_v57 = vpop.f32.mrf.mxu1  ;;  %v15079_v16 = vld [vmem:[#allocation21_spill] sm:$0xff] }
 0x4d0   : > { %v5015_v52 = vpop.f32.mrf.mxu3 }
 0x4d1   : > { %10461 = vmatmul.msk.f32.gmra.mxu2 %vm276_vm1, %v4032_v32  ;;  %v13068_v41 = vpop.f32.mrf.mxu0  ;;  %v3346_v32 = vadd.f32 %v12956_v18, %v15079_v16  ;;  %v3436_v18 = vld [vmem:[#allocation2 + $0x2c2] sm:$0xff] }
 0x4d2   : > { %10388 = vmatmul.msk.f32.gmra.mxu1 %vm276_vm1, %v3434_v44 }
 0x4d3   : > { %v3944_v14 = vadd.f32 %v3818_v57, %v3346_v32  ;;  %v2846_v57 = vld [vmem:[#allocation2 + $0x311] sm:$0xff] }
 0x4d4   : > { %v4414_v40 = vpop.f32.mrf.mxu2  ;;  %10322 = vmatmul.msk.f32.gmra.mxu0 %vm276_vm1, %v2844_v43 }
 0x4d5   : > { %10537 = vmatmul.msk.f32.gmra.mxu3 %vm276_vm1, %v13014_v61  ;;  %v4542_v4 = vadd.f32 %v4414_v40, %v3943_v33  ;;  %v4034_v33 = vld [vmem:[#allocation2 + $0x2d0] sm:$0xff] }
 0x4d7   : > { %v13074_v58 = vadd.f32 %v5012_v26, %v4542_v4  ;;  %v3821_v26 = vpop.f32.mrf.mxu1  ;;  %v15081_v4 = vld [vmem:[#allocation22_spill] sm:$0xff] }
 0x4d9   : > { %10462 = vmatmul.msk.f32.gmra.mxu2 %vm276_vm1, %v4033_v55  ;;  %v13079_v44 = vpop.f32.mrf.mxu0  ;;  %v3347_v55 = vadd.f32 %v12970_v45, %v15081_v4  ;;  %v3437_v45 = vld [vmem:[#allocation2 + $0x2ca] sm:$0xff] }
 0x4da   : > { %15080 = vst [vmem:[#allocation18_spill] sm:$0xff] %v13079_v44  ;;  %10389 = vmatmul.msk.f32.gmra.mxu1 %vm276_vm1, %v3435_v10  ;;  %v5018_v10 = vpop.f32.mrf.mxu3 }
 0x4db   : > { %v3945_v32 = vadd.f32 %v3821_v26, %v3347_v55  ;;  %v5168_v26 = vld [vmem:[#allocation2 + $0x42] sm:$0xff] }
 0x4dc   : > { %v4417_v30 = vpop.f32.mrf.mxu2  ;;  %10323 = vmatmul.msk.f32.gmra.mxu0 %vm276_vm1, %v2845_v31 }
 0x4dd   : > { %10538 = vmatmul.msk.f32.gmra.mxu3 %vm276_vm1, %v13028_v22  ;;  %v4543_v61 = vadd.f32 %v4417_v30, %v3944_v14 }
 0x4df   : > { %v13085_v40 = vadd.f32 %v5015_v52, %v4543_v61  ;;  %v4035_v52 = vld [vmem:[#allocation2 + $0x2e0] sm:$0xff]  ;;  %v3824_v30 = vpop.f32.mrf.mxu1  ;;  %v15083_v61 = vld [vmem:[#allocation23_spill] sm:$0xff] }
 0x4e1   : > { %10463 = vmatmul.msk.f32.gmra.mxu2 %vm276_vm1, %v4034_v33  ;;  %v13090_v16 = vpop.f32.mrf.mxu0  ;;  %v3348_v33 = vadd.f32 %v12984_v60, %v15083_v61  ;;  %v3438_v60 = vld [vmem:[#allocation2 + $0x2d2] sm:$0xff]  ;;  %v3440_v61 = vld [vmem:[#allocation2 + $0x2ea] sm:$0xff] }
 0x4e2   : > { %15082 = vst [vmem:[#allocation19_spill] sm:$0xff] %v13090_v16  ;;  %10390 = vmatmul.msk.f32.gmra.mxu1 %vm276_vm1, %v3436_v18  ;;  %v5021_v16 = vpop.f32.mrf.mxu3 }
 0x4e3   : > { %v3946_v18 = vadd.f32 %v3824_v30, %v3348_v33  ;;  %v4038_v30 = vld [vmem:[#allocation2 + $0x300] sm:$0xff] }
 0x4e4   : > { %v4420_v44 = vpop.f32.mrf.mxu2  ;;  %10324 = vmatmul.msk.f32.gmra.mxu0 %vm276_vm1, %v2846_v57 }
 0x4e5   : > { %10539 = vmatmul.msk.f32.gmra.mxu3 %vm276_vm1, %v13042_v8  ;;  %v4544_v22 = vadd.f32 %v4420_v44, %v3945_v32  ;;  %v4036_v44 = vld [vmem:[#allocation2 + $0x2e8] sm:$0xff] }
 0x4e7   : > { %v13096_v14 = vadd.f32 %v5018_v10, %v4544_v22  ;;  %v5169_v22 = vld [vmem:[#allocation2 + $0x4a] sm:$0xff] }
 0x4e9   : > { %10464 = vmatmul.msk.f32.gmra.mxu2 %vm276_vm1, %v4035_v52  ;;  %v13101_v4 = vpop.f32.mrf.mxu0  ;;  %v4037_v52 = vld [vmem:[#allocation2 + $0x2f0] sm:$0xff] }
 0x4ea   : > { %10391 = vmatmul.msk.f32.gmra.mxu1 %vm276_vm1, %v3437_v45  ;;  %v3439_v45 = vld [vmem:[#allocation2 + $0x2e2] sm:$0xff] }
 0x4ec   : > { %v4423_v55 = vpop.f32.mrf.mxu2  ;;  %10549 = vmatmul.msk.f32.vlgmr.msra.gmra.mxu0 %vm276_vm1, %v5168_v26  ;;  %v4039_v26 = vld [vmem:[#allocation2 + $0x308] sm:$0xff] }
 0x4ed   : > { %10540 = vmatmul.msk.f32.gmra.mxu3 %vm276_vm1, %v13056_v6  ;;  %v4545_v8 = vadd.f32 %v4423_v55, %v3946_v18  ;;  %v3441_v18 = vld [vmem:[#allocation2 + $0x2f2] sm:$0xff] }
 0x4ef   : > { %v13107_v10 = vadd.f32 %v5021_v16, %v4545_v8  ;;  %v5170_v16 = vld [vmem:[#allocation2 + $0x52] sm:$0xff]  ;;  %v4639_v8 = vld [vmem:[#allocation2 + $0x321] sm:$0xff] }
 0x4f1   : > { %10465 = vmatmul.msk.f32.gmra.mxu2 %vm276_vm1, %v4036_v44  ;;  %v13110_v32 = vpop.f32.mrf.mxu0  ;;  %v4040_v44 = vld [vmem:[#allocation2 + $0x310] sm:$0xff] }
 0x4f2   : > { %10392 = vmatmul.msk.f32.gmra.mxu1 %vm276_vm1, %v3438_v60  ;;  %v3442_v60 = vld [vmem:[#allocation2 + $0x302] sm:$0xff] }
 0x4f4   : > { %10550 = vmatmul.msk.f32.gmra.mxu0 %vm276_vm1, %v5169_v22 }
 0x4f5   : > { %10541 = vmatmul.msk.f32.gmra.mxu3 %vm276_vm1, %v2844_v43  ;;  %v5171_v43 = vld [vmem:[#allocation2 + $0x62] sm:$0xff] }
 0x4f9   : > { %10466 = vmatmul.msk.f32.gmra.mxu2 %vm276_vm1, %v4037_v52  ;;  %v13116_v6 = vpop.f32.mrf.mxu0  ;;  %v4640_v52 = vld [vmem:[#allocation2 + $0x329] sm:$0xff] }
 0x4fa   : > { %10393 = vmatmul.msk.f32.gmra.mxu1 %vm276_vm1, %v3439_v45  ;;  %v4041_v45 = vld [vmem:[#allocation2 + $0x320] sm:$0xff] }
 0x4fc   : > { %10551 = vmatmul.msk.f32.gmra.mxu0 %vm276_vm1, %v5170_v16  ;;  %v3443_v16 = vld [vmem:[#allocation2 + $0x30a] sm:$0xff] }
 0x4fd   : > { %10542 = vmatmul.msk.f32.gmra.mxu3 %vm276_vm1, %v2845_v31  ;;  %v5172_v31 = vld [vmem:[#allocation2 + $0x6a] sm:$0xff] }
 0x501   : > { %10467 = vmatmul.msk.f32.gmra.mxu2 %vm276_vm1, %v4038_v30  ;;  %v13122_v33 = vpop.f32.mrf.mxu0 }
 0x502   : > { %10394 = vmatmul.msk.f32.gmra.mxu1 %vm276_vm1, %v3440_v61  ;;  %v5174_v61 = vld [vmem:[#allocation2 + $0x82] sm:$0xff] }
 0x504   : > { %10552 = vmatmul.msk.f32.gmra.mxu0 %vm276_vm1, %v5171_v43  ;;  %v4641_v43 = vld [vmem:[#allocation2 + $0x331] sm:$0xff] }
 0x505   : > { %10543 = vmatmul.msk.f32.gmra.mxu3 %vm276_vm1, %v2846_v57  ;;  %v5173_v57 = vld [vmem:[#allocation2 + $0x72] sm:$0xff] }
 0x509   : > { %10468 = vmatmul.msk.f32.gmra.mxu2 %vm276_vm1, %v4039_v26  ;;  %v13128_v55 = vpop.f32.mrf.mxu0  ;;  %v4042_v26 = vld [vmem:[#allocation2 + $0x328] sm:$0xff] }
 0x50a   : > { %10395 = vmatmul.msk.f32.gmra.mxu1 %vm276_vm1, %v3441_v18  ;;  %v3444_v18 = vld [vmem:[#allocation2 + $0x312] sm:$0xff] }
 0x50c   : > { %10553 = vmatmul.msk.f32.gmra.mxu0 %vm276_vm1, %v5172_v31 }
 0x50d   : > { %10544 = vmatmul.msk.f32.gmra.mxu3 %vm276_vm1, %v4639_v8  ;;  %v5175_v8 = vld [vmem:[#allocation2 + $0x8a] sm:$0xff] }
 0x511   : > { %10469 = vmatmul.msk.f32.gmra.mxu2 %vm276_vm1, %v4040_v44  ;;  %v13134_v22 = vpop.f32.mrf.mxu0  ;;  %v4043_v44 = vld [vmem:[#allocation2 + $0x330] sm:$0xff] }
 0x512   : > { %10396 = vmatmul.msk.f32.gmra.mxu1 %vm276_vm1, %v3442_v60 }
 0x514   : > { %10554 = vmatmul.msk.f32.gmra.mxu0 %vm276_vm1, %v5173_v57  ;;  %v5176_v57 = vld [vmem:[#allocation2 + $0x92] sm:$0xff] }
 0x515   : > { %10545 = vmatmul.msk.f32.gmra.mxu3 %vm276_vm1, %v4640_v52 }
 0x519   : > { %10470 = vmatmul.msk.f32.gmra.mxu2 %vm276_vm1, %v4041_v45  ;;  %v13140_v30 = vpop.f32.mrf.mxu0  ;;  %v5177_v45 = vld [vmem:[#allocation2 + $0xa2] sm:$0xff] }
 0x51a   : > { %15084 = vst [vmem:[#allocation20_spill] sm:$0xff] %v13140_v30  ;;  %10397 = vmatmul.msk.f32.gmra.mxu1 %vm276_vm1, %v3443_v16 }
 0x51c   : > { %10555 = vmatmul.msk.f32.gmra.mxu0 %vm276_vm1, %v5174_v61  ;;  %v5178_v61 = vld [vmem:[#allocation2 + $0xaa] sm:$0xff] }
 0x51d   : > { %10546 = vmatmul.msk.f32.gmra.mxu3 %vm276_vm1, %v4641_v43 }
 0x521   : > { %10471 = vmatmul.msk.f32.gmra.mxu2 %vm276_vm1, %v4042_v26  ;;  %v13146_v31 = vpop.f32.mrf.mxu0  ;;  %v5179_v26 = vld [vmem:[#allocation2 + $0xb2] sm:$0xff] }
 0x522   : > { %15085 = vst [vmem:[#allocation21_spill] sm:$0xff] %v13146_v31  ;;  %10398 = vmatmul.msk.f32.gmra.mxu1 %vm276_vm1, %v3444_v18 }
 0x524   : > { %10556 = vmatmul.msk.f32.gmra.mxu0 %vm276_vm1, %v5175_v8  ;;  %v5180_v8 = vld [vmem:[#allocation2 + $0xc2] sm:$0xff] }
 0x529   : > { %10472 = vmatmul.msk.f32.gmra.mxu2 %vm276_vm1, %v4043_v44  ;;  %v13151_v60 = vpop.f32.mrf.mxu0 }
 0x52a   : > { %15086 = vst [vmem:[#allocation22_spill] sm:$0xff] %v13151_v60  ;;  %v5185_v60 = vld [vmem:[#allocation2 + $0xf2] sm:$0xff] }
 0x52c   : > { %10557 = vmatmul.msk.f32.gmra.mxu0 %vm276_vm1, %v5176_v57  ;;  %v5181_v57 = vld [vmem:[#allocation2 + $0xca] sm:$0xff] }
 0x531   : > { %v13154_v52 = vpop.f32.mrf.mxu0 }
 0x532   : > { %15087 = vst [vmem:[#allocation23_spill] sm:$0xff] %v13154_v52 }
 0x534   : > { %10558 = vmatmul.msk.f32.gmra.mxu0 %vm276_vm1, %v5177_v45 }
 0x539   : > { %v13157_v16 = vpop.f32.mrf.mxu0 }
 0x53a   : > { %15088 = vst [vmem:[#allocation48_spill] sm:$0xff] %v13157_v16  ;;  %v5182_v16 = vld [vmem:[#allocation2 + $0xd2] sm:$0xff] }
 0x53c   : > { %10559 = vmatmul.msk.f32.gmra.mxu0 %vm276_vm1, %v5178_v61 }
 0x541   : > { %v13160_v43 = vpop.f32.mrf.mxu0 }
 0x542   : > { %15089 = vst [vmem:[#allocation49_spill] sm:$0xff] %v13160_v43  ;;  %v5183_v43 = vld [vmem:[#allocation2 + $0xe2] sm:$0xff] }
 0x544   : > { %10560 = vmatmul.msk.f32.gmra.mxu0 %vm276_vm1, %v5179_v26  ;;  %v13178_v26 = vld [vmem:[%s14972_s2] ss:$0 sm:$0xff] }
 0x549   : > { %v13163_v18 = vpop.f32.mrf.mxu0 }
 0x54a   : > { %15090 = vst [vmem:[#allocation50_spill] sm:$0xff] %v13163_v18 }
 0x54c   : > { %10561 = vmatmul.msk.f32.gmra.mxu0 %vm276_vm1, %v5180_v8  ;;  %v6365_v8 = vld [vmem:[%s14973_s3 + $0x18] sm:$0x1] }
 0x54d   : > { %10644 = vmatpush.msk.msrb.mxu2 %vm6529_vm3, %v6365_v8 }
 0x551   : > { %v13166_v44 = vpop.f32.mrf.mxu0 }
 0x552   : > { %15091 = vst [vmem:[#allocation51_spill] sm:$0xff] %v13166_v44  ;;  %v10624_v44 = vld [vmem:[%s14973_s3 + $0x38] sm:$0x1] }
 0x553   : > { %10625 = vmatpush.msk.msrb.mxu1 %vm6529_vm3, %v10624_v44 }
 0x554   : > { %10562 = vmatmul.msk.f32.gmra.mxu0 %vm276_vm1, %v5181_v57  ;;  %v10666_v57 = vld [vmem:[%s14973_s3 + $0x58] sm:$0x1] }
 0x555   : > { %10667 = vmatpush.msk.msra.mxu3 %vm6529_vm3, %v10666_v57 }
 0x559   : > { %v13169_v45 = vpop.f32.mrf.mxu0 }
 0x55a   : > { %15092 = vst [vmem:[#allocation52_spill] sm:$0xff] %v13169_v45  ;;  %v5184_v45 = vld [vmem:[#allocation2 + $0xea] sm:$0xff] }
 0x55c   : > { %10563 = vmatmul.msk.f32.gmra.mxu0 %vm276_vm1, %v5182_v16 }
 0x561   : > { %v13172_v61 = vpop.f32.mrf.mxu0 }
 0x562   : > { %15093 = vst [vmem:[#allocation53_spill] sm:$0xff] %v13172_v61 }
 0x564   : > { %10564 = vmatmul.msk.f32.gmra.mxu0 %vm276_vm1, %v5183_v43 }
 0x569   : > { %v5478_v16 = vpop.f32.mrf.mxu0 }
 0x56a   : > { %v5694_v43 = vadd.f32 %v5478_v16, %v12461_v38 }
 0x56c   : > { %v5770_v61 = vadd.f32 %v13178_v26, %v5694_v43  ;;  %10565 = vmatmul.msk.f32.gmra.mxu0 %vm276_vm1, %v5184_v45  ;;  %v5186_v45 = vld [vmem:[#allocation2 + $0x102] sm:$0xff] }
 0x56e   : > { %v5842_v18 = vmax.f32 %v5770_v61, 0.0 }
 0x570   : > { %5914 = vst [vmem:[#allocation3] sm:$0xff] %v5842_v18  ;;  %v6366_v18 = vld [vmem:[#allocation4 + $0x1] sm:$0xff] }
 0x571   : > { %v5481_v52 = vpop.f32.mrf.mxu0  ;;  %v6414_v61 = vrot.slane %v6366_v18, 4  ;;  %6431 = vst [vmem:[#allocation1] ss:$2 sm:$0xff] %v6366_v18 }
 0x572   : > { %v5695_v8 = vadd.f32 %v5481_v52, %v12475_v37  ;;  %v5187_v37 = vld [vmem:[#allocation2 + $0x10a] sm:$0xff] }
 0x573   : > { %6433 = vst [vmem:[#allocation1 + $0x1] ss:$2 sm:$0xff] %v6414_v61 }
 0x574   : > { %v5771_v57 = vadd.f32 %v13178_v26, %v5695_v8  ;;  %10566 = vmatmul.msk.f32.gmra.mxu0 %vm276_vm1, %v5185_v60  ;;  %v6367_v8 = vld [vmem:[#allocation4 + $0x9] sm:$0xf] }
 0x575   : > { %6435 = vst [vmem:[#allocation1 + $0x10] ss:$2 sm:$0xff] %v6367_v8 }
 0x576   : > { %v5843_v38 = vmax.f32 %v5771_v57, 0.0  ;;  %v10622_v57 = vld [vmem:[%s14973_s3 + $0x28] sm:$0xff] }
 0x578   : > { %5915 = vst [vmem:[#allocation3 + $0x8] sm:$0xff] %v5843_v38  ;;  %v5188_v38 = vld [vmem:[#allocation2 + $0x112] sm:$0xff] }
 0x579   : > { %v5484_v16 = vpop.f32.mrf.mxu0 }
 0x57a   : > { %v5696_v43 = vadd.f32 %v5484_v16, %v12489_v5  ;;  %v10623_v5 = vld [vmem:[%s14973_s3 + $0x30] sm:$0xff]  ;;  %v6446_v16 = vld.sshfl [vmem:[#allocation1] sm:$0xff pattern:$0x75316420] }
 0x57b   : > { %6546 = vmatpush.msrb.mxu1 %v10623_v5 }
 0x57c   : > { %v5772_v31 = vadd.f32 %v13178_v26, %v5696_v43  ;;  %10567 = vmatmul.msk.f32.gmra.mxu0 %vm276_vm1, %v5186_v45  ;;  %v13213_v45 = vpop.f32.mrf.mxu1 }
 0x57d   : > { %6547 = vmatpush.msrb.mxu1 %v10622_v57 }
 0x57e   : > { %v5844_v44 = vmax.f32 %v5772_v31, 0.0 }
 0x57f   : > { %v6014_v8 = vld [vmem:[#allocation3] ss:$2 sm:$0xff]  ;;  %v6062_v5 = vld [vmem:[#allocation3 + $0x1] ss:$2 sm:$0xff] }
 0x580   : > { %5916 = vst [vmem:[#allocation3 + $0x10] sm:$0xff] %v5844_v44 }
 0x581   : > { %v5487_v30 = vpop.f32.mrf.mxu0 }
 0x582   : > { %v5697_v52 = vadd.f32 %v5487_v30, %v12503_v3  ;;  %v10621_v3 = vld [vmem:[%s14973_s3 + $0x20] sm:$0xff] }
 0x583   : > { %6548 = vmatpush.msrb.mxu1 %v10621_v3  ;;  %v6205_v3 = vmax.f32 %v6014_v8, %v6062_v5 }
 0x584   : > { %v5773_v60 = vadd.f32 %v13178_v26, %v5697_v52  ;;  %10568 = vmatmul.msk.f32.gmra.mxu0 %vm276_vm1, %v5187_v37  ;;  %10626 = vmatmul.msk.f32.vlgmr.msrb.gmra.mxu1 %vm6492_vm4, %v6446_v16  ;;  %v5189_v37 = vld [vmem:[#allocation2 + $0x122] sm:$0xff] }
 0x586   : > { %v5845_v31 = vmax.f32 %v5773_v60, 0.0 }
 0x588   : > { %5917 = vst [vmem:[#allocation3 + $0x18] sm:$0xff] %v5845_v31 }
 0x589   : > { %v5490_v30 = vpop.f32.mrf.mxu0 }
 0x58a   : > { %v5698_v43 = vadd.f32 %v5490_v30, %v12517_v12 }
 0x58c   : > { %v5774_v44 = vadd.f32 %v13178_v26, %v5698_v43  ;;  %10569 = vmatmul.msk.f32.gmra.mxu0 %vm276_vm1, %v5188_v38  ;;  %v5190_v38 = vld [vmem:[#allocation2 + $0x12a] sm:$0xff] }
 0x58e   : > { %v5846_v18 = vmax.f32 %v5774_v44, 0.0 }
 0x590   : > { %5918 = vst [vmem:[#allocation3 + $0x20] sm:$0xff] %v5846_v18  ;;  %v6016_v18 = vld [vmem:[#allocation3 + $0x10] ss:$2 sm:$0xf] }
 0x591   : > { %v5493_v61 = vpop.f32.mrf.mxu0 }
 0x592   : > { %v5699_v52 = vadd.f32 %v5493_v61, %v12531_v53 }
 0x594   : > { %v5775_v60 = vadd.f32 %v13178_v26, %v5699_v52  ;;  %10570 = vmatmul.msk.f32.gmra.mxu0 %vm276_vm1, %v5189_v37  ;;  %v6064_v37 = vld [vmem:[#allocation3 + $0x11] ss:$2 sm:$0xf] }
 0x595   : > { %v6206_v5 = vmax.f32 %v6016_v18, %v6064_v37 }
 0x596   : > { %v5847_v31 = vmax.f32 %v5775_v60, 0.0 }
 0x597   : > { %v6110_v12 = vld [vmem:[#allocation3 + $0x18] ss:$2 sm:$0xff]  ;;  %v6158_v57 = vld [vmem:[#allocation3 + $0x19] ss:$2 sm:$0xff] }
 0x598   : > { %v6229_v30 = vmax.f32 %v6110_v12, %v6158_v57  ;;  %5919 = vst [vmem:[#allocation3 + $0x28] sm:$0xff] %v5847_v31  ;;  %v5191_v12 = vld [vmem:[#allocation2 + $0x132] sm:$0xff] }
 0x599   : > { %v5496_v16 = vpop.f32.mrf.mxu0 }
 0x59a   : > { %v13222_v43 = vmax.f32 %v6205_v3, %v6229_v30  ;;  %v5700_v44 = vadd.f32 %v5496_v16, %v12545_v39 }
 0x59c   : > { %6278 = vst [vmem:[#allocation4 + $0x11] sm:$0xff] %v13222_v43  ;;  %v14979_v53 = vrot.slane %v13222_v43, 4  ;;  %v5776_v61 = vadd.f32 %v13178_v26, %v5700_v44  ;;  %10571 = vmatmul.msk.f32.gmra.mxu0 %vm276_vm1, %v5190_v38  ;;  %v13235_v38 = vpop.f32.mrf.mxu1 }
 0x59d   : > { %6437 = vst [vmem:[#allocation1 + $0x11] ss:$2 sm:$0xff] %v13222_v43 }
 0x59e   : > { %6439 = vst [vmem:[#allocation1 + $0x20] ss:$2 sm:$0xff] %v14979_v53  ;;  %v5848_v52 = vmax.f32 %v5776_v61, 0.0  ;;  %v5192_v61 = vld [vmem:[#allocation2 + $0x142] sm:$0xff] }
 0x59f   : > { %v6112_v60 = vld [vmem:[#allocation3 + $0x28] ss:$2 sm:$0xf]  ;;  %v6160_v8 = vld [vmem:[#allocation3 + $0x29] ss:$2 sm:$0xf] }
 0x5a0   : > { %v6230_v39 = vmax.f32 %v6112_v60, %v6160_v8  ;;  %5920 = vst [vmem:[#allocation3 + $0x30] sm:$0xff] %v5848_v52 }
 0x5a1   : > { %v5499_v31 = vpop.f32.mrf.mxu0 }
 0x5a2   : > { %v6254_v57 = vmax.f32 %v6206_v5, %v6230_v39  ;;  %v5701_v3 = vadd.f32 %v5499_v31, %v12559_v19  ;;  %v5193_v5 = vld [vmem:[#allocation2 + $0x14a] sm:$0xff] }
 0x5a4   : > { %v6447_v30 = vld.sshfl [vmem:[#allocation1 + $0x10] sm:$0xff pattern:$0x75316420]  ;;  %6279 = vst [vmem:[#allocation4 + $0x19] sm:$0xf] %v6254_v57  ;;  %v5777_v16 = vadd.f32 %v13178_v26, %v5701_v3  ;;  %10572 = vmatmul.msk.f32.gmra.mxu0 %vm276_vm1, %v5191_v12  ;;  %v13242_v12 = vpop.f32.mrf.mxu1 }
 0x5a5   : > { %10627 = vmatmul.msk.f32.gmra.mxu1 %vm6492_vm4, %v6447_v30  ;;  %v5194_v30 = vld [vmem:[#allocation2 + $0x152] sm:$0xff] }
 0x5a6   : > { %v5849_v44 = vmax.f32 %v5777_v16, 0.0 }
 0x5a8   : > { %5921 = vst [vmem:[#allocation3 + $0x38] sm:$0xff] %v5849_v44 }
 0x5a9   : > { %v5502_v18 = vpop.f32.mrf.mxu0 }
 0x5aa   : > { %v5702_v37 = vadd.f32 %v5502_v18, %v12573_v28 }
 0x5ab   : > { %v6369_v52 = vld [vmem:[#allocation4 + $0x19] sm:$0xf] }
 0x5ac   : > { %6441 = vst [vmem:[#allocation1 + $0x21] ss:$2 sm:$0xff] %v6369_v52  ;;  %v5778_v19 = vadd.f32 %v13178_v26, %v5702_v37  ;;  %10573 = vmatmul.msk.f32.gmra.mxu0 %vm276_vm1, %v5192_v61  ;;  %v5195_v61 = vld [vmem:[#allocation2 + $0x162] sm:$0xff] }
 0x5ae   : > { %v5850_v60 = vmax.f32 %v5778_v19, 0.0 }
 0x5af   : > { %v6018_v19 = vld [vmem:[#allocation3 + $0x30] ss:$2 sm:$0xff] }
 0x5b0   : > { %5922 = vst [vmem:[#allocation3 + $0x40] sm:$0xff] %v5850_v60  ;;  %v6066_v60 = vld [vmem:[#allocation3 + $0x31] ss:$2 sm:$0xff] }
 0x5b1   : > { %v5505_v8 = vpop.f32.mrf.mxu0 }
 0x5b2   : > { %v5703_v39 = vadd.f32 %v5505_v8, %v12587_v24 }
 0x5b3   : > { %v6448_v31 = vld.sshfl [vmem:[#allocation1 + $0x20] sm:$0xff pattern:$0x75316420] }
 0x5b4   : > { %v5779_v57 = vadd.f32 %v13178_v26, %v5703_v39  ;;  %10574 = vmatmul.msk.f32.gmra.mxu0 %vm276_vm1, %v5193_v5  ;;  %10628 = vmatmul.msk.f32.gmra.mxu1 %vm6492_vm4, %v6448_v31 }
 0x5b6   : > { %v5851_v28 = vmax.f32 %v5779_v57, 0.0 }
 0x5b8   : > { %5923 = vst [vmem:[#allocation3 + $0x48] sm:$0xff] %v5851_v28  ;;  %v5196_v28 = vld [vmem:[#allocation2 + $0x16a] sm:$0xff] }
 0x5b9   : > { %v5508_v3 = vpop.f32.mrf.mxu0 }
 0x5ba   : > { %v5704_v16 = vadd.f32 %v5508_v3, %v12601_v46  ;;  %v6207_v46 = vmax.f32 %v6018_v19, %v6066_v60 }
 0x5bc   : > { %v5780_v44 = vadd.f32 %v13178_v26, %v5704_v16  ;;  %10575 = vmatmul.msk.f32.gmra.mxu0 %vm276_vm1, %v5194_v30  ;;  %v6020_v16 = vld [vmem:[#allocation3 + $0x40] ss:$2 sm:$0xf] }
 0x5be   : > { %v5852_v24 = vmax.f32 %v5780_v44, 0.0 }
 0x5c0   : > { %5924 = vst [vmem:[#allocation3 + $0x50] sm:$0xff] %v5852_v24  ;;  %v6068_v24 = vld [vmem:[#allocation3 + $0x41] ss:$2 sm:$0xf] }
 0x5c1   : > { %v5511_v18 = vpop.f32.mrf.mxu0 }
 0x5c2   : > { %v5705_v37 = vadd.f32 %v5511_v18, %v12615_v63 }
 0x5c4   : > { %v5781_v52 = vadd.f32 %v13178_v26, %v5705_v37  ;;  %10576 = vmatmul.msk.f32.gmra.mxu0 %vm276_vm1, %v5195_v61 }
 0x5c6   : > { %v5853_v8 = vmax.f32 %v5781_v52, 0.0  ;;  %v6208_v52 = vmax.f32 %v6020_v16, %v6068_v24 }
 0x5c7   : > { %v6114_v5 = vld [vmem:[#allocation3 + $0x48] ss:$2 sm:$0xff]  ;;  %v6162_v39 = vld [vmem:[#allocation3 + $0x49] ss:$2 sm:$0xff] }
 0x5c8   : > { %v6231_v31 = vmax.f32 %v6114_v5, %v6162_v39  ;;  %5925 = vst [vmem:[#allocation3 + $0x58] sm:$0xff] %v5853_v8 }
 0x5c9   : > { %v5514_v57 = vpop.f32.mrf.mxu0 }
 0x5ca   : > { %v6255_v3 = vmax.f32 %v6207_v46, %v6231_v31  ;;  %v5706_v30 = vadd.f32 %v5514_v57, %v12629_v23  ;;  %v5197_v23 = vld [vmem:[#allocation2 + $0x172] sm:$0xff]  ;;  %v13262_v31 = vpop.f32.mrf.mxu1 }
 0x5cc   : > { %6280 = vst [vmem:[#allocation4 + $0x21] sm:$0xff] %v6255_v3  ;;  %v13254_v63 = vrot.slane %v6255_v3, 4  ;;  %v5782_v44 = vadd.f32 %v13178_v26, %v5706_v30  ;;  %10577 = vmatmul.msk.f32.gmra.mxu0 %vm276_vm1, %v5196_v28 }
 0x5cd   : > { %6443 = vst [vmem:[#allocation1 + $0x30] ss:$2 sm:$0xff] %v6255_v3  ;;  %v5198_v3 = vld [vmem:[#allocation2 + $0x182] sm:$0xff] }
 0x5ce   : > { %15094 = vst [vmem:[#allocation54_spill] sm:$0xff] %v13254_v63  ;;  %v5854_v18 = vmax.f32 %v5782_v44, 0.0 }
 0x5cf   : > { %6445 = vst [vmem:[#allocation1 + $0x31] ss:$2 sm:$0xff] %v13254_v63  ;;  %v6116_v61 = vld [vmem:[#allocation3 + $0x58] ss:$2 sm:$0xf] }
 0x5d0   : > { %v6164_v37 = vld [vmem:[#allocation3 + $0x59] ss:$2 sm:$0xf]  ;;  %5926 = vst [vmem:[#allocation3 + $0x60] sm:$0xff] %v5854_v18  ;;  %v5199_v18 = vld [vmem:[#allocation2 + $0x18a] sm:$0xff] }
 0x5d1   : > { %v6232_v19 = vmax.f32 %v6116_v61, %v6164_v37  ;;  %v5517_v60 = vpop.f32.mrf.mxu0 }
 0x5d2   : > { %v5707_v5 = vadd.f32 %v5517_v60, %v12643_v35 }
 0x5d3   : > { %v6256_v8 = vmax.f32 %v6208_v52, %v6232_v19 }
 0x5d4   : > { %v5783_v39 = vadd.f32 %v13178_v26, %v5707_v5  ;;  %10578 = vmatmul.msk.f32.gmra.mxu0 %vm276_vm1, %v5197_v23 }
 0x5d5   : > { %6281 = vst [vmem:[#allocation4 + $0x29] sm:$0xf] %v6256_v8 }
 0x5d6   : > { %v6449_v46 = vld.sshfl [vmem:[#allocation1 + $0x30] sm:$0xff pattern:$0x75316420]  ;;  %v5855_v57 = vmax.f32 %v5783_v39, 0.0 }
 0x5d7   : > { %10629 = vmatmul.msk.f32.gmra.mxu1 %vm6492_vm4, %v6449_v46  ;;  %v5201_v39 = vld [vmem:[#allocation2 + $0x1a2] sm:$0xff] }
 0x5d8   : > { %5927 = vst [vmem:[#allocation3 + $0x68] sm:$0xff] %v5855_v57 }
 0x5d9   : > { %v5520_v28 = vpop.f32.mrf.mxu0 }
 0x5da   : > { %v5708_v30 = vadd.f32 %v5520_v28, %v12657_v17  ;;  %v5200_v17 = vld [vmem:[#allocation2 + $0x192] sm:$0xff] }
 0x5dc   : > { %v6371_v16 = vld [vmem:[#allocation4 + $0x29] sm:$0xf]  ;;  %v5784_v35 = vadd.f32 %v13178_v26, %v5708_v30  ;;  %10579 = vmatmul.msk.f32.gmra.mxu0 %vm276_vm1, %v5198_v3 }
 0x5dd   : > { %6450 = vst [vmem:[#allocation1] ss:$2 sm:$0xff] %v6371_v16 }
 0x5de   : > { %v5856_v44 = vmax.f32 %v5784_v35, 0.0 }
 0x5df   : > { %v6022_v57 = vld [vmem:[#allocation3 + $0x60] ss:$2 sm:$0xff]  ;;  %v6070_v28 = vld [vmem:[#allocation3 + $0x61] ss:$2 sm:$0xff] }
 0x5e0   : > { %5928 = vst [vmem:[#allocation3 + $0x70] sm:$0xff] %v5856_v44 }
 0x5e1   : > { %v5523_v24 = vpop.f32.mrf.mxu0 }
 0x5e2   : > { %v5709_v61 = vadd.f32 %v5523_v24, %v12671_v50  ;;  %v5202_v24 = vld [vmem:[#allocation2 + $0x1aa] sm:$0xff] }
 0x5e4   : > { %v5785_v37 = vadd.f32 %v13178_v26, %v5709_v61  ;;  %10580 = vmatmul.msk.f32.gmra.mxu0 %vm276_vm1, %v5199_v18  ;;  %v6364_v18 = vld [vmem:[%s14973_s3 + $0x10] sm:$0xff] }
 0x5e5   : > { %6717 = vmatpush.msrb.mxu2 %v6364_v18 }
 0x5e6   : > { %v5857_v52 = vmax.f32 %v5785_v37, 0.0 }
 0x5e8   : > { %5929 = vst [vmem:[#allocation3 + $0x78] sm:$0xff] %v5857_v52  ;;  %v6024_v52 = vld [vmem:[#allocation3 + $0x70] ss:$2 sm:$0xf] }
 0x5e9   : > { %v5526_v19 = vpop.f32.mrf.mxu0 }
 0x5ea   : > { %v5710_v60 = vadd.f32 %v5526_v19, %v12685_v15  ;;  %v6209_v15 = vmax.f32 %v6022_v57, %v6070_v28 }
 0x5ec   : > { %v5786_v23 = vadd.f32 %v13178_v26, %v5710_v60  ;;  %10581 = vmatmul.msk.f32.gmra.mxu0 %vm276_vm1, %v5200_v17  ;;  %v6072_v60 = vld [vmem:[#allocation3 + $0x71] ss:$2 sm:$0xf] }
 0x5ee   : > { %v5858_v8 = vmax.f32 %v5786_v23, 0.0 }
 0x5f0   : > { %5930 = vst [vmem:[#allocation3 + $0x80] sm:$0xff] %v5858_v8 }
 0x5f1   : > { %v5529_v5 = vpop.f32.mrf.mxu0 }
 0x5f2   : > { %v5711_v50 = vadd.f32 %v5529_v5, %v12699_v2  ;;  %v10665_v2 = vld [vmem:[%s14973_s3 + $0x50] sm:$0xff] }
 0x5f3   : > { %6953 = vmatpush.msra.mxu3 %v10665_v2 }
 0x5f4   : > { %v5787_v46 = vadd.f32 %v13178_v26, %v5711_v50  ;;  %10582 = vmatmul.msk.f32.gmra.mxu0 %vm276_vm1, %v5201_v39  ;;  %v6210_v39 = vmax.f32 %v6024_v52, %v6072_v60 }
 0x5f6   : > { %v5859_v3 = vmax.f32 %v5787_v46, 0.0  ;;  %v5203_v46 = vld [vmem:[#allocation2 + $0x1b2] sm:$0xff] }
 0x5f7   : > { %v6118_v30 = vld [vmem:[#allocation3 + $0x78] ss:$2 sm:$0xff]  ;;  %v6166_v16 = vld [vmem:[#allocation3 + $0x79] ss:$2 sm:$0xff] }
 0x5f8   : > { %v6233_v35 = vmax.f32 %v6118_v30, %v6166_v16  ;;  %5931 = vst [vmem:[#allocation3 + $0x88] sm:$0xff] %v5859_v3  ;;  %v13292_v16 = vpop.f32.mrf.mxu1 }
 0x5f9   : > { %v5532_v44 = vpop.f32.mrf.mxu0 }
 0x5fa   : > { %v6257_v61 = vmax.f32 %v6209_v15, %v6233_v35  ;;  %v5712_v37 = vadd.f32 %v5532_v44, %v12713_v25  ;;  %v5204_v44 = vld [vmem:[#allocation2 + $0x1c2] sm:$0xff] }
 0x5fc   : > { %6282 = vst [vmem:[#allocation4 + $0x31] sm:$0xff] %v6257_v61  ;;  %v13284_v19 = vrot.slane %v6257_v61, 4  ;;  %v5788_v17 = vadd.f32 %v13178_v26, %v5712_v37  ;;  %10583 = vmatmul.msk.f32.gmra.mxu0 %vm276_vm1, %v5202_v24  ;;  %v5205_v37 = vld [vmem:[#allocation2 + $0x1ca] sm:$0xff] }
 0x5fd   : > { %6451 = vst [vmem:[#allocation1 + $0x1] ss:$2 sm:$0xff] %v6257_v61 }
 0x5fe   : > { %6452 = vst [vmem:[#allocation1 + $0x10] ss:$2 sm:$0xff] %v13284_v19  ;;  %v5860_v23 = vmax.f32 %v5788_v17, 0.0 }
 0x5ff   : > { %v6120_v8 = vld [vmem:[#allocation3 + $0x88] ss:$2 sm:$0xf]  ;;  %v6168_v5 = vld [vmem:[#allocation3 + $0x89] ss:$2 sm:$0xf] }
 0x600   : > { %v6234_v50 = vmax.f32 %v6120_v8, %v6168_v5  ;;  %5932 = vst [vmem:[#allocation3 + $0x90] sm:$0xff] %v5860_v23  ;;  %v13299_v60 = vpop.f32.mrf.mxu1  ;;  %v5206_v5 = vld [vmem:[#allocation2 + $0x1d2] sm:$0xff] }
 0x601   : > { %v5535_v25 = vpop.f32.mrf.mxu0 }
 0x602   : > { %v6258_v57 = vmax.f32 %v6210_v39, %v6234_v50  ;;  %v5713_v28 = vadd.f32 %v5535_v25, %v12727_v11 }
 0x604   : > { %v6458_v3 = vld.sshfl [vmem:[#allocation1] sm:$0xff pattern:$0x75316420]  ;;  %6283 = vst [vmem:[#allocation4 + $0x39] sm:$0xf] %v6258_v57  ;;  %v5789_v30 = vadd.f32 %v13178_v26, %v5713_v28  ;;  %10584 = vmatmul.msk.f32.gmra.mxu0 %vm276_vm1, %v5203_v46  ;;  %v5207_v46 = vld [vmem:[#allocation2 + $0x1e2] sm:$0xff] }
 0x605   : > { %10630 = vmatmul.msk.f32.gmra.mxu1 %vm6492_vm4, %v6458_v3 }
 0x606   : > { %v5861_v15 = vmax.f32 %v5789_v30, 0.0 }
 0x608   : > { %5933 = vst [vmem:[#allocation3 + $0x98] sm:$0xff] %v5861_v15 }
 0x609   : > { %v5538_v35 = vpop.f32.mrf.mxu0 }
 0x60a   : > { %v5714_v24 = vadd.f32 %v5538_v35, %v12741_v51 }
 0x60b   : > { %v6373_v18 = vld [vmem:[#allocation4 + $0x39] sm:$0xf] }
 0x60c   : > { %6453 = vst [vmem:[#allocation1 + $0x11] ss:$2 sm:$0xff] %v6373_v18  ;;  %v5790_v11 = vadd.f32 %v13178_v26, %v5714_v24  ;;  %10585 = vmatmul.msk.f32.gmra.mxu0 %vm276_vm1, %v5204_v44 }
 0x60e   : > { %v5862_v2 = vmax.f32 %v5790_v11, 0.0  ;;  %v5208_v11 = vld [vmem:[#allocation2 + $0x1ea] sm:$0xff] }
 0x60f   : > { %v6026_v3 = vld [vmem:[#allocation3 + $0x90] ss:$2 sm:$0xff]  ;;  %v6074_v30 = vld [vmem:[#allocation3 + $0x91] ss:$2 sm:$0xff] }
 0x610   : > { %5934 = vst [vmem:[#allocation3 + $0xa0] sm:$0xff] %v5862_v2 }
 0x611   : > { %v5541_v61 = vpop.f32.mrf.mxu0 }
 0x612   : > { %v5715_v52 = vadd.f32 %v5541_v61, %v12755_v62 }
 0x613   : > { %v6459_v17 = vld.sshfl [vmem:[#allocation1 + $0x10] sm:$0xff pattern:$0x75316420] }
 0x614   : > { %v5791_v23 = vadd.f32 %v13178_v26, %v5715_v52  ;;  %10586 = vmatmul.msk.f32.gmra.mxu0 %vm276_vm1, %v5205_v37  ;;  %10631 = vmatmul.msk.f32.gmra.mxu1 %vm6492_vm4, %v6459_v17 }
 0x616   : > { %v5863_v51 = vmax.f32 %v5791_v23, 0.0 }
 0x617   : > { %v6028_v37 = vld [vmem:[#allocation3 + $0xa0] ss:$2 sm:$0xf]  ;;  %v6076_v17 = vld [vmem:[#allocation3 + $0xa1] ss:$2 sm:$0xf] }
 0x618   : > { %5935 = vst [vmem:[#allocation3 + $0xa8] sm:$0xff] %v5863_v51 }
 0x619   : > { %v5544_v8 = vpop.f32.mrf.mxu0 }
 0x61a   : > { %v5716_v39 = vadd.f32 %v5544_v8, %v12769_v9  ;;  %v6211_v9 = vmax.f32 %v6026_v3, %v6074_v30 }
 0x61c   : > { %v5792_v50 = vadd.f32 %v13178_v26, %v5716_v39  ;;  %10587 = vmatmul.msk.f32.gmra.mxu0 %vm276_vm1, %v5206_v5  ;;  %v6212_v5 = vmax.f32 %v6028_v37, %v6076_v17 }
 0x61e   : > { %v5864_v62 = vmax.f32 %v5792_v50, 0.0 }
 0x620   : > { %5936 = vst [vmem:[#allocation3 + $0xb0] sm:$0xff] %v5864_v62 }
 0x621   : > { %v5547_v25 = vpop.f32.mrf.mxu0 }
 0x622   : > { %v5717_v57 = vadd.f32 %v5547_v25, %v12783_v21 }
 0x624   : > { %v5793_v28 = vadd.f32 %v13178_v26, %v5717_v57  ;;  %10588 = vmatmul.msk.f32.gmra.mxu0 %vm276_vm1, %v5207_v46 }
 0x626   : > { %v5865_v15 = vmax.f32 %v5793_v28, 0.0  ;;  %v13319_v28 = vpop.f32.mrf.mxu1 }
 0x627   : > { %v6122_v35 = vld [vmem:[#allocation3 + $0xa8] ss:$2 sm:$0xff]  ;;  %v6170_v44 = vld [vmem:[#allocation3 + $0xa9] ss:$2 sm:$0xff] }
 0x628   : > { %v6235_v24 = vmax.f32 %v6122_v35, %v6170_v44  ;;  %5937 = vst [vmem:[#allocation3 + $0xb8] sm:$0xff] %v5865_v15  ;;  %v5210_v15 = vld [vmem:[#allocation2 + $0x202] sm:$0xff] }
 0x629   : > { %v5550_v18 = vpop.f32.mrf.mxu0 }
 0x62a   : > { %v6259_v2 = vmax.f32 %v6211_v9, %v6235_v24  ;;  %v5718_v61 = vadd.f32 %v5550_v18, %v12797_v34  ;;  %v5209_v34 = vld [vmem:[#allocation2 + $0x1f2] sm:$0xff]  ;;  %v5211_v18 = vld [vmem:[#allocation2 + $0x20a] sm:$0xff] }
 0x62c   : > { %6284 = vst [vmem:[#allocation4 + $0x41] sm:$0xff] %v6259_v2  ;;  %v13311_v21 = vrot.slane %v6259_v2, 4  ;;  %v5794_v52 = vadd.f32 %v13178_v26, %v5718_v61  ;;  %10589 = vmatmul.msk.f32.gmra.mxu0 %vm276_vm1, %v5208_v11 }
 0x62d   : > { %6454 = vst [vmem:[#allocation1 + $0x20] ss:$2 sm:$0xff] %v6259_v2 }
 0x62e   : > { %6455 = vst [vmem:[#allocation1 + $0x21] ss:$2 sm:$0xff] %v13311_v21  ;;  %v5866_v23 = vmax.f32 %v5794_v52, 0.0 }
 0x62f   : > { %v6124_v51 = vld [vmem:[#allocation3 + $0xb8] ss:$2 sm:$0xf]  ;;  %v6172_v8 = vld [vmem:[#allocation3 + $0xb9] ss:$2 sm:$0xf] }
 0x630   : > { %v6236_v39 = vmax.f32 %v6124_v51, %v6172_v8  ;;  %5938 = vst [vmem:[#allocation3 + $0xc0] sm:$0xff] %v5866_v23  ;;  %v5213_v8 = vld [vmem:[#allocation2 + $0x222] sm:$0xff] }
 0x631   : > { %v5553_v50 = vpop.f32.mrf.mxu0 }
 0x632   : > { %v6260_v62 = vmax.f32 %v6212_v5, %v6236_v39  ;;  %v5719_v25 = vadd.f32 %v5553_v50, %v12811_v47 }
 0x634   : > { %6285 = vst [vmem:[#allocation4 + $0x49] sm:$0xf] %v6260_v62  ;;  %v5795_v46 = vadd.f32 %v13178_v26, %v5719_v25  ;;  %10590 = vmatmul.msk.f32.gmra.mxu0 %vm276_vm1, %v5209_v34 }
 0x635   : > { %v6460_v57 = vld.sshfl [vmem:[#allocation1 + $0x20] sm:$0xff pattern:$0x75316420] }
 0x636   : > { %v5867_v3 = vmax.f32 %v5795_v46, 0.0  ;;  %10632 = vmatmul.msk.f32.gmra.mxu1 %vm6492_vm4, %v6460_v57 }
 0x638   : > { %5939 = vst [vmem:[#allocation3 + $0xc8] sm:$0xff] %v5867_v3  ;;  %v5214_v3 = vld [vmem:[#allocation2 + $0x22a] sm:$0xff] }
 0x639   : > { %v5556_v30 = vpop.f32.mrf.mxu0 }
 0x63a   : > { %v5720_v35 = vadd.f32 %v5556_v30, %v12825_v59  ;;  %v5212_v59 = vld [vmem:[#allocation2 + $0x212] sm:$0xff] }
 0x63b   : > { %v6375_v44 = vld [vmem:[#allocation4 + $0x49] sm:$0xf] }
 0x63c   : > { %6456 = vst [vmem:[#allocation1 + $0x30] ss:$2 sm:$0xff] %v6375_v44  ;;  %v5796_v47 = vadd.f32 %v13178_v26, %v5720_v35  ;;  %10591 = vmatmul.msk.f32.gmra.mxu0 %vm276_vm1, %v5210_v15 }
 0x63e   : > { %v5868_v9 = vmax.f32 %v5796_v47, 0.0 }
 0x63f   : > { %v6030_v39 = vld [vmem:[#allocation3 + $0xc0] ss:$2 sm:$0xff]  ;;  %v6078_v50 = vld [vmem:[#allocation3 + $0xc1] ss:$2 sm:$0xff] }
 0x640   : > { %5940 = vst [vmem:[#allocation3 + $0xd0] sm:$0xff] %v5868_v9 }
 0x641   : > { %v5559_v24 = vpop.f32.mrf.mxu0 }
 0x642   : > { %v5721_v11 = vadd.f32 %v5559_v24, %v12839_v7 }
 0x644   : > { %v5797_v2 = vadd.f32 %v13178_v26, %v5721_v11  ;;  %10592 = vmatmul.msk.f32.gmra.mxu0 %vm276_vm1, %v5211_v18 }
 0x646   : > { %v5869_v61 = vmax.f32 %v5797_v2, 0.0 }
 0x647   : > { %v6032_v35 = vld [vmem:[#allocation3 + $0xd0] ss:$2 sm:$0xf]  ;;  %v6080_v47 = vld [vmem:[#allocation3 + $0xd1] ss:$2 sm:$0xf] }
 0x648   : > { %5941 = vst [vmem:[#allocation3 + $0xd8] sm:$0xff] %v5869_v61  ;;  %v6214_v11 = vmax.f32 %v6032_v35, %v6080_v47 }
 0x649   : > { %v5562_v37 = vpop.f32.mrf.mxu0 }
 0x64a   : > { %v5722_v52 = vadd.f32 %v5562_v37, %v12853_v20  ;;  %v6213_v20 = vmax.f32 %v6030_v39, %v6078_v50 }
 0x64c   : > { %v5798_v17 = vadd.f32 %v13178_v26, %v5722_v52  ;;  %10593 = vmatmul.msk.f32.gmra.mxu0 %vm276_vm1, %v5212_v59 }
 0x64e   : > { %v5870_v23 = vmax.f32 %v5798_v17, 0.0 }
 0x650   : > { %5942 = vst [vmem:[#allocation3 + $0xe0] sm:$0xff] %v5870_v23  ;;  %v13343_v23 = vpop.f32.mrf.mxu1 }
 0x651   : > { %v5565_v51 = vpop.f32.mrf.mxu0 }
 0x652   : > { %v5723_v7 = vadd.f32 %v5565_v51, %v12867_v36 }
 0x654   : > { %v5799_v5 = vadd.f32 %v13178_v26, %v5723_v7  ;;  %10594 = vmatmul.msk.f32.gmra.mxu0 %vm276_vm1, %v5213_v8  ;;  %v5216_v7 = vld [vmem:[#allocation2 + $0x242] sm:$0xff] }
 0x656   : > { %v5871_v34 = vmax.f32 %v5799_v5, 0.0 }
 0x657   : > { %v6126_v62 = vld [vmem:[#allocation3 + $0xd8] ss:$2 sm:$0xff]  ;;  %v6174_v25 = vld [vmem:[#allocation3 + $0xd9] ss:$2 sm:$0xff] }
 0x658   : > { %v6237_v46 = vmax.f32 %v6126_v62, %v6174_v25  ;;  %5943 = vst [vmem:[#allocation3 + $0xe8] sm:$0xff] %v5871_v34  ;;  %v5217_v62 = vld [vmem:[#allocation2 + $0x24a] sm:$0xff] }
 0x659   : > { %v5568_v57 = vpop.f32.mrf.mxu0 }
 0x65a   : > { %v6261_v30 = vmax.f32 %v6213_v20, %v6237_v46  ;;  %v5724_v15 = vadd.f32 %v5568_v57, %v12881_v49  ;;  %v5215_v49 = vld [vmem:[#allocation2 + $0x232] sm:$0xff]  ;;  %v13350_v46 = vpop.f32.mrf.mxu1 }
 0x65c   : > { %6286 = vst [vmem:[#allocation4 + $0x51] sm:$0xff] %v6261_v30  ;;  %v13335_v36 = vrot.slane %v6261_v30, 4  ;;  %v5800_v44 = vadd.f32 %v13178_v26, %v5724_v15  ;;  %10595 = vmatmul.msk.f32.gmra.mxu0 %vm276_vm1, %v5214_v3  ;;  %v15096_v15 = vld [vmem:[#allocation9_spill] sm:$0xff] }
 0x65d   : > { %6457 = vst [vmem:[#allocation1 + $0x31] ss:$2 sm:$0xff] %v6261_v30  ;;  %v5218_v30 = vld [vmem:[#allocation2 + $0x252] sm:$0xff] }
 0x65e   : > { %15095 = vst [vmem:[#allocation55_spill] sm:$0xff] %v13335_v36  ;;  %v5872_v9 = vmax.f32 %v5800_v44, 0.0 }
 0x65f   : > { %6462 = vst [vmem:[#allocation1] ss:$2 sm:$0xff] %v13335_v36  ;;  %v6128_v24 = vld [vmem:[#allocation3 + $0xe8] ss:$2 sm:$0xf] }
 0x660   : > { %v6176_v18 = vld [vmem:[#allocation3 + $0xe9] ss:$2 sm:$0xf]  ;;  %5944 = vst [vmem:[#allocation3 + $0xf0] sm:$0xff] %v5872_v9 }
 0x661   : > { %v6238_v2 = vmax.f32 %v6128_v24, %v6176_v18  ;;  %v5571_v61 = vpop.f32.mrf.mxu0  ;;  %v5219_v9 = vld [vmem:[#allocation2 + $0x262] sm:$0xff]  ;;  %v15097_v24 = vld [vmem:[#allocation10_spill] sm:$0xff] }
 0x662   : > { %v5725_v59 = vadd.f32 %v5571_v61, %v12895_v0 }
 0x663   : > { %v6262_v37 = vmax.f32 %v6214_v11, %v6238_v2 }
 0x664   : > { %v6461_v52 = vld.sshfl [vmem:[#allocation1 + $0x30] sm:$0xff pattern:$0x75316420]  ;;  %v5801_v17 = vadd.f32 %v13178_v26, %v5725_v59  ;;  %10596 = vmatmul.msk.f32.gmra.mxu0 %vm276_vm1, %v5215_v49 }
 0x665   : > { %6287 = vst [vmem:[#allocation4 + $0x59] sm:$0xf] %v6262_v37  ;;  %10633 = vmatmul.msk.f32.gmra.mxu1 %vm6492_vm4, %v6461_v52 }
 0x666   : > { %v5873_v51 = vmax.f32 %v5801_v17, 0.0 }
 0x668   : > { %5945 = vst [vmem:[#allocation3 + $0xf8] sm:$0xff] %v5873_v51 }
 0x669   : > { %v5574_v8 = vpop.f32.mrf.mxu0 }
 0x66a   : > { %v5726_v5 = vadd.f32 %v5574_v8, %v12909_v1  ;;  %v5220_v8 = vld [vmem:[#allocation2 + $0x26a] sm:$0xff] }
 0x66c   : > { %v6377_v39 = vld [vmem:[#allocation4 + $0x59] sm:$0xf]  ;;  %v5802_v0 = vadd.f32 %v13178_v26, %v5726_v5  ;;  %10597 = vmatmul.msk.f32.gmra.mxu0 %vm276_vm1, %v5216_v7  ;;  %v6363_v7 = vld [vmem:[%s14973_s3 + $0x8] sm:$0xff] }
 0x66d   : > { %6463 = vst [vmem:[#allocation1 + $0x1] ss:$2 sm:$0xff] %v6377_v39  ;;  %v10664_v5 = vld [vmem:[%s14973_s3 + $0x48] sm:$0xff]  ;;  %6718 = vmatpush.msrb.mxu2 %v6363_v7 }
 0x66e   : > { %v5874_v50 = vmax.f32 %v5802_v0, 0.0  ;;  %v15098_v0 = vld [vmem:[#allocation11_spill] sm:$0xff]  ;;  %6954 = vmatpush.msra.mxu3 %v10664_v5 }
 0x66f   : > { %v6034_v2 = vld [vmem:[#allocation3 + $0xf0] ss:$2 sm:$0xff]  ;;  %v6082_v61 = vld [vmem:[#allocation3 + $0xf1] ss:$2 sm:$0xff] }
 0x670   : > { %5946 = vst [vmem:[#allocation3 + $0x100] sm:$0xff] %v5874_v50  ;;  %v6215_v52 = vmax.f32 %v6034_v2, %v6082_v61 }
 0x671   : > { %v5577_v34 = vpop.f32.mrf.mxu0 }
 0x672   : > { %v5727_v25 = vadd.f32 %v5577_v34, %v12923_v29 }
 0x674   : > { %v6470_v20 = vld.sshfl [vmem:[#allocation1] sm:$0xff pattern:$0x75316420]  ;;  %v5803_v57 = vadd.f32 %v13178_v26, %v5727_v25  ;;  %10598 = vmatmul.msk.f32.gmra.mxu0 %vm276_vm1, %v5217_v62 }
 0x675   : > { %10634 = vmatmul.msk.f32.gmra.mxu1 %vm6492_vm4, %v6470_v20 }
 0x676   : > { %v5875_v1 = vmax.f32 %v5803_v57, 0.0 }
 0x677   : > { %v6036_v34 = vld [vmem:[#allocation3 + $0x100] ss:$2 sm:$0xf]  ;;  %v6084_v20 = vld [vmem:[#allocation3 + $0x101] ss:$2 sm:$0xf] }
 0x678   : > { %5947 = vst [vmem:[#allocation3 + $0x108] sm:$0xff] %v5875_v1 }
 0x679   : > { %v5580_v3 = vpop.f32.mrf.mxu0 }
 0x67a   : > { %v5728_v35 = vadd.f32 %v5580_v3, %v15096_v15 }
 0x67c   : > { %v5804_v44 = vadd.f32 %v13178_v26, %v5728_v35  ;;  %10599 = vmatmul.msk.f32.gmra.mxu0 %vm276_vm1, %v5218_v30  ;;  %v6216_v30 = vmax.f32 %v6036_v34, %v6084_v20 }
 0x67e   : > { %v5876_v29 = vmax.f32 %v5804_v44, 0.0  ;;  %v5221_v44 = vld [vmem:[#allocation2 + $0x272] sm:$0xff] }
 0x680   : > { %5948 = vst [vmem:[#allocation3 + $0x110] sm:$0xff] %v5876_v29 }
 0x681   : > { %v5583_v47 = vpop.f32.mrf.mxu0 }
 0x682   : > { %v5729_v18 = vadd.f32 %v5583_v47, %v15097_v24  ;;  %v15099_v47 = vld [vmem:[#allocation12_spill] sm:$0xff] }
 0x684   : > { %v5805_v11 = vadd.f32 %v13178_v26, %v5729_v18  ;;  %10600 = vmatmul.msk.f32.gmra.mxu0 %vm276_vm1, %v5219_v9 }
 0x686   : > { %v5877_v49 = vmax.f32 %v5805_v11, 0.0  ;;  %v13376_v11 = vpop.f32.mrf.mxu1 }
 0x687   : > { %v6130_v37 = vld [vmem:[#allocation3 + $0x108] ss:$2 sm:$0xff]  ;;  %v6178_v59 = vld [vmem:[#allocation3 + $0x109] ss:$2 sm:$0xff] }
 0x688   : > { %v6239_v17 = vmax.f32 %v6130_v37, %v6178_v59  ;;  %5949 = vst [vmem:[#allocation3 + $0x118] sm:$0xff] %v5877_v49  ;;  %v5222_v49 = vld [vmem:[#allocation2 + $0x282] sm:$0xff] }
 0x689   : > { %v5586_v51 = vpop.f32.mrf.mxu0 }
 0x68a   : > { %v6263_v39 = vmax.f32 %v6215_v52, %v6239_v17  ;;  %v5730_v50 = vadd.f32 %v5586_v51, %v15098_v0 }
 0x68c   : > { %6288 = vst [vmem:[#allocation4 + $0x61] sm:$0xff] %v6263_v39  ;;  %v13368_v62 = vrot.slane %v6263_v39, 4  ;;  %v5806_v25 = vadd.f32 %v13178_v26, %v5730_v50  ;;  %10601 = vmatmul.msk.f32.gmra.mxu0 %vm276_vm1, %v5220_v8  ;;  %v5223_v8 = vld [vmem:[#allocation2 + $0x28a] sm:$0xff] }
 0x68d   : > { %6464 = vst [vmem:[#allocation1 + $0x10] ss:$2 sm:$0xff] %v6263_v39 }
 0x68e   : > { %6465 = vst [vmem:[#allocation1 + $0x11] ss:$2 sm:$0xff] %v13368_v62  ;;  %v5878_v57 = vmax.f32 %v5806_v25, 0.0 }
 0x68f   : > { %v6132_v1 = vld [vmem:[#allocation3 + $0x118] ss:$2 sm:$0xf]  ;;  %v6180_v3 = vld [vmem:[#allocation3 + $0x119] ss:$2 sm:$0xf] }
 0x690   : > { %v6240_v15 = vmax.f32 %v6132_v1, %v6180_v3  ;;  %5950 = vst [vmem:[#allocation3 + $0x120] sm:$0xff] %v5878_v57  ;;  %v5225_v57 = vld [vmem:[#allocation2 + $0x2a2] sm:$0xff]  ;;  %v13389_v1 = vpop.f32.mrf.mxu2 }
 0x691   : > { %v5589_v35 = vpop.f32.mrf.mxu0 }
 0x692   : > { %v6264_v29 = vmax.f32 %v6216_v30, %v6240_v15  ;;  %v5731_v9 = vadd.f32 %v5589_v35, %v15099_v47 }
 0x694   : > { %6289 = vst [vmem:[#allocation4 + $0x69] sm:$0xf] %v6264_v29  ;;  %v5807_v24 = vadd.f32 %v13178_v26, %v5731_v9  ;;  %10602 = vmatmul.msk.f32.gmra.mxu0 %vm276_vm1, %v5221_v44  ;;  %v13393_v29 = vpop.f32.mrf.mxu3 }
 0x695   : > { %v6471_v18 = vld.sshfl [vmem:[#allocation1 + $0x10] sm:$0xff pattern:$0x75316420] }
 0x696   : > { %v5879_v2 = vmax.f32 %v5807_v24, 0.0  ;;  %10635 = vmatmul.msk.f32.gmra.mxu1 %vm6492_vm4, %v6471_v18  ;;  %v5226_v18 = vld [vmem:[#allocation2 + $0x2aa] sm:$0xff] }
 0x698   : > { %5951 = vst [vmem:[#allocation3 + $0x128] sm:$0xff] %v5879_v2 }
 0x699   : > { %v5592_v61 = vpop.f32.mrf.mxu0 }
 0x69a   : > { %v5732_v37 = vadd.f32 %v5592_v61, %v12993_v48  ;;  %v5224_v48 = vld [vmem:[#allocation2 + $0x292] sm:$0xff] }
 0x69b   : > { %v6379_v59 = vld [vmem:[#allocation4 + $0x69] sm:$0xf] }
 0x69c   : > { %6466 = vst [vmem:[#allocation1 + $0x20] ss:$2 sm:$0xff] %v6379_v59  ;;  %v5808_v52 = vadd.f32 %v13178_v26, %v5732_v37  ;;  %10603 = vmatmul.msk.f32.gmra.mxu0 %vm276_vm1, %v5222_v49 }
 0x69e   : > { %v5880_v17 = vmax.f32 %v5808_v52, 0.0  ;;  %v13400_v52 = vpop.f32.mrf.mxu2 }
 0x69f   : > { %v6038_v30 = vld [vmem:[#allocation3 + $0x120] ss:$2 sm:$0xff]  ;;  %v6086_v15 = vld [vmem:[#allocation3 + $0x121] ss:$2 sm:$0xff] }
 0x6a0   : > { %5952 = vst [vmem:[#allocation3 + $0x130] sm:$0xff] %v5880_v17  ;;  %v6217_v47 = vmax.f32 %v6038_v30, %v6086_v15 }
 0x6a1   : > { %v5595_v51 = vpop.f32.mrf.mxu0 }
 0x6a2   : > { %v5733_v7 = vadd.f32 %v5595_v51, %v13007_v56 }
 0x6a4   : > { %v5809_v5 = vadd.f32 %v13178_v26, %v5733_v7  ;;  %10604 = vmatmul.msk.f32.gmra.mxu0 %vm276_vm1, %v5223_v8 }
 0x6a6   : > { %v5881_v39 = vmax.f32 %v5809_v5, 0.0 }
 0x6a7   : > { %v6040_v61 = vld [vmem:[#allocation3 + $0x130] ss:$2 sm:$0xf]  ;;  %v6088_v59 = vld [vmem:[#allocation3 + $0x131] ss:$2 sm:$0xf] }
 0x6a8   : > { %5953 = vst [vmem:[#allocation3 + $0x138] sm:$0xff] %v5881_v39  ;;  %v6218_v7 = vmax.f32 %v6040_v61, %v6088_v59  ;;  %v5227_v39 = vld [vmem:[#allocation2 + $0x2b2] sm:$0xff] }
 0x6a9   : > { %v5598_v0 = vpop.f32.mrf.mxu0 }
 0x6aa   : > { %v5734_v50 = vadd.f32 %v5598_v0, %v13021_v42  ;;  %v13403_v0 = vpop.f32.mrf.mxu3 }
 0x6ac   : > { %v5810_v34 = vadd.f32 %v13178_v26, %v5734_v50  ;;  %10605 = vmatmul.msk.f32.gmra.mxu0 %vm276_vm1, %v5224_v48 }
 0x6ae   : > { %v5882_v25 = vmax.f32 %v5810_v34, 0.0  ;;  %v13409_v34 = vld [vmem:[%s14972_s2] ss:$0 sm:$0xff] }
 0x6b0   : > { %5954 = vst [vmem:[#allocation3 + $0x140] sm:$0xff] %v5882_v25 }
 0x6b1   : > { %v5601_v20 = vpop.f32.mrf.mxu0 }
 0x6b2   : > { %v5735_v56 = vadd.f32 %v5601_v20, %v13035_v27  ;;  %v13413_v20 = vpop.f32.mrf.mxu1 }
 0x6b4   : > { %v5811_v3 = vadd.f32 %v13178_v26, %v5735_v56  ;;  %10606 = vmatmul.msk.f32.gmra.mxu0 %vm276_vm1, %v5225_v57  ;;  %v13416_v56 = vpop.f32.mrf.mxu2 }
 0x6b6   : > { %v5883_v35 = vmax.f32 %v5811_v3, 0.0  ;;  %v5228_v3 = vld [vmem:[#allocation2 + $0x2c2] sm:$0xff] }
 0x6b7   : > { %v6134_v42 = vld [vmem:[#allocation3 + $0x138] ss:$2 sm:$0xff]  ;;  %v6182_v44 = vld [vmem:[#allocation3 + $0x139] ss:$2 sm:$0xff] }
 0x6b8   : > { %v6241_v9 = vmax.f32 %v6134_v42, %v6182_v44  ;;  %5955 = vst [vmem:[#allocation3 + $0x148] sm:$0xff] %v5883_v35  ;;  %v13419_v35 = vpop.f32.mrf.mxu3 }
 0x6b9   : > { %v5604_v24 = vpop.f32.mrf.mxu0 }
 0x6ba   : > { %v6265_v2 = vmax.f32 %v6217_v47, %v6241_v9  ;;  %v5736_v27 = vadd.f32 %v5604_v24, %v13049_v54  ;;  %v5229_v9 = vld [vmem:[#allocation2 + $0x2ca] sm:$0xff] }
 0x6bc   : > { %6290 = vst [vmem:[#allocation4 + $0x71] sm:$0xff] %v6265_v2  ;;  %v13396_v49 = vrot.slane %v6265_v2, 4  ;;  %v5812_v37 = vadd.f32 %v13178_v26, %v5736_v27  ;;  %10607 = vmatmul.msk.f32.gmra.mxu0 %vm276_vm1, %v5226_v18  ;;  %v13423_v24 = vpop.f32.mrf.mxu2  ;;  %v13426_v27 = vpop.f32.mrf.mxu1 }
 0x6bd   : > { %6467 = vst [vmem:[#allocation1 + $0x21] ss:$2 sm:$0xff] %v6265_v2 }
 0x6be   : > { %15100 = vst [vmem:[#allocation9_spill] sm:$0xff] %v13396_v49  ;;  %v5884_v17 = vmax.f32 %v5812_v37, 0.0 }
 0x6bf   : > { %6468 = vst [vmem:[#allocation1 + $0x30] ss:$2 sm:$0xff] %v13396_v49  ;;  %v6136_v51 = vld [vmem:[#allocation3 + $0x148] ss:$2 sm:$0xf] }
 0x6c0   : > { %v6184_v8 = vld [vmem:[#allocation3 + $0x149] ss:$2 sm:$0xf]  ;;  %5956 = vst [vmem:[#allocation3 + $0x150] sm:$0xff] %v5884_v17  ;;  %v13431_v61 = vpop.f32.mrf.mxu3  ;;  %v5230_v17 = vld [vmem:[#allocation2 + $0x2d2] sm:$0xff] }
 0x6c1   : > { %v6242_v5 = vmax.f32 %v6136_v51, %v6184_v8  ;;  %v5607_v54 = vpop.f32.mrf.mxu0 }
 0x6c2   : > { %v5737_v26 = vadd.f32 %v5607_v54, %v13063_v13  ;;  %v15102_v54 = vld [vmem:[#allocation13_spill] sm:$0xff] }
 0x6c3   : > { %v6266_v48 = vmax.f32 %v6218_v7, %v6242_v5  ;;  %v15101_v5 = vld [vmem:[#allocation24_spill] sm:$0xff] }
 0x6c4   : > { %v6472_v50 = vld.sshfl [vmem:[#allocation1 + $0x20] sm:$0xff pattern:$0x75316420]  ;;  %v5813_v25 = vadd.f32 %v13409_v34, %v5737_v26  ;;  %10608 = vmatmul.msk.f32.gmra.mxu0 %vm276_vm1, %v5227_v39  ;;  %v13434_v8 = vpop.f32.mrf.mxu2  ;;  %v3349_v39 = vadd.f32 %v15102_v54, %v15101_v5 }
 0x6c5   : > { %6291 = vst [vmem:[#allocation4 + $0x79] sm:$0xf] %v6266_v48  ;;  %10636 = vmatmul.msk.f32.gmra.mxu1 %vm6492_vm4, %v6472_v50  ;;  %v5231_v50 = vld [vmem:[#allocation2 + $0x2e2] sm:$0xff] }
 0x6c6   : > { %v5885_v57 = vmax.f32 %v5813_v25, 0.0  ;;  %v3947_v25 = vadd.f32 %v13213_v45, %v3349_v39 }
 0x6c8   : > { %5957 = vst [vmem:[#allocation3 + $0x158] sm:$0xff] %v5885_v57  ;;  %v13440_v48 = vpop.f32.mrf.mxu3 }
 0x6c9   : > { %v5610_v13 = vpop.f32.mrf.mxu0 }
 0x6ca   : > { %v5738_v30 = vadd.f32 %v5610_v13, %v13074_v58 }
 0x6cc   : > { %v6381_v15 = vld [vmem:[#allocation4 + $0x79] sm:$0xf]  ;;  %v5814_v42 = vadd.f32 %v13409_v34, %v5738_v30  ;;  %10609 = vmatmul.msk.f32.gmra.mxu0 %vm276_vm1, %v5228_v3 }
 0x6cd   : > { %6469 = vst [vmem:[#allocation1 + $0x31] ss:$2 sm:$0xff] %v6381_v15  ;;  %v13447_v15 = vpop.f32.mrf.mxu2 }
 0x6ce   : > { %v5886_v44 = vmax.f32 %v5814_v42, 0.0 }
 0x6cf   : > { %v6042_v3 = vld [vmem:[#allocation3 + $0x150] ss:$2 sm:$0xff]  ;;  %v6090_v30 = vld [vmem:[#allocation3 + $0x151] ss:$2 sm:$0xff] }
 0x6d0   : > { %5958 = vst [vmem:[#allocation3 + $0x160] sm:$0xff] %v5886_v44 }
 0x6d1   : > { %v5613_v47 = vpop.f32.mrf.mxu0 }
 0x6d2   : > { %v5739_v18 = vadd.f32 %v5613_v47, %v13085_v40 }
 0x6d4   : > { %v6473_v2 = vld.sshfl [vmem:[#allocation1 + $0x30] sm:$0xff pattern:$0x75316420]  ;;  %v5815_v58 = vadd.f32 %v13409_v34, %v5739_v18  ;;  %10610 = vmatmul.msk.f32.gmra.mxu0 %vm276_vm1, %v5229_v9 }
 0x6d5   : > { %10637 = vmatmul.msk.f32.gmra.mxu1 %vm6492_vm4, %v6473_v2  ;;  %v15103_v9 = vld [vmem:[#allocation25_spill] sm:$0xff]  ;;  %v15104_v18 = vld [vmem:[#allocation14_spill] sm:$0xff] }
 0x6d6   : > { %v5887_v37 = vmax.f32 %v5815_v58, 0.0  ;;  %v3350_v2 = vadd.f32 %v15104_v18, %v15103_v9  ;;  %v6219_v58 = vmax.f32 %v6042_v3, %v6090_v30 }
 0x6d7   : > { %v6044_v5 = vld [vmem:[#allocation3 + $0x160] ss:$2 sm:$0xf] }
 0x6d8   : > { %5959 = vst [vmem:[#allocation3 + $0x168] sm:$0xff] %v5887_v37  ;;  %v5232_v37 = vld [vmem:[#allocation2 + $0x2ea] sm:$0xff] }
 0x6d9   : > { %v5616_v59 = vpop.f32.mrf.mxu0 }
 0x6da   : > { %v5740_v51 = vadd.f32 %v5616_v59, %v13096_v14  ;;  %v4546_v14 = vadd.f32 %v13389_v1, %v3947_v25  ;;  %v3948_v59 = vadd.f32 %v13235_v38, %v3350_v2  ;;  %v15106_v25 = vld [vmem:[#allocation26_spill] sm:$0xff] }
 0x6dc   : > { %v5816_v40 = vadd.f32 %v13409_v34, %v5740_v51  ;;  %10611 = vmatmul.msk.f32.gmra.mxu0 %vm276_vm1, %v5230_v17  ;;  %v5144_v45 = vadd.f32 %v13393_v29, %v4546_v14  ;;  %v13453_v17 = vpop.f32.mrf.mxu3  ;;  %v6092_v29 = vld [vmem:[#allocation3 + $0x161] ss:$2 sm:$0xf] }
 0x6dd   : > { %v6220_v3 = vmax.f32 %v6044_v5, %v6092_v29 }
 0x6de   : > { %v5888_v7 = vmax.f32 %v5816_v40, 0.0 }
 0x6e0   : > { %5960 = vst [vmem:[#allocation3 + $0x170] sm:$0xff] %v5888_v7  ;;  %v4547_v7 = vadd.f32 %v13400_v52, %v3948_v59  ;;  %v15109_v59 = vld [vmem:[#allocation16_spill] sm:$0xff] }
 0x6e1   : > { %v5619_v26 = vpop.f32.mrf.mxu0 }
 0x6e2   : > { %v5741_v57 = vadd.f32 %v5619_v26, %v13107_v10  ;;  %v5145_v52 = vadd.f32 %v13403_v0, %v4547_v7 }
 0x6e4   : > { %v5817_v13 = vadd.f32 %v13409_v34, %v5741_v57  ;;  %10612 = vmatmul.msk.f32.gmra.mxu0 %vm276_vm1, %v5231_v50  ;;  %v15107_v57 = vld [vmem:[#allocation15_spill] sm:$0xff] }
 0x6e5   : > { %v3351_v14 = vadd.f32 %v15107_v57, %v15106_v25  ;;  %v15110_v57 = vld [vmem:[#allocation28_spill] sm:$0xff] }
 0x6e6   : > { %v5889_v42 = vmax.f32 %v5817_v13, 0.0  ;;  %v13464_v13 = vpop.f32.mrf.mxu2 }
 0x6e7   : > { %v6138_v44 = vld [vmem:[#allocation3 + $0x168] ss:$2 sm:$0xff]  ;;  %v6186_v47 = vld [vmem:[#allocation3 + $0x169] ss:$2 sm:$0xff] }
 0x6e8   : > { %v6243_v10 = vmax.f32 %v6138_v44, %v6186_v47  ;;  %5961 = vst [vmem:[#allocation3 + $0x178] sm:$0xff] %v5889_v42  ;;  %v5233_v44 = vld [vmem:[#allocation2 + $0x2f2] sm:$0xff]  ;;  %v3949_v47 = vadd.f32 %v13242_v12, %v3351_v14 }
 0x6e9   : > { %v5622_v1 = vpop.f32.mrf.mxu0 }
 0x6ea   : > { %v6267_v51 = vmax.f32 %v6219_v58, %v6243_v10  ;;  %v5742_v40 = vadd.f32 %v5622_v1, %v5144_v45  ;;  %v4548_v2 = vadd.f32 %v13416_v56, %v3949_v47  ;;  %v13468_v45 = vpop.f32.mrf.mxu3  ;;  %v13472_v10 = vpop.f32.mrf.mxu1 }
 0x6ec   : > { %6292 = vst [vmem:[#allocation4 + $0x81] sm:$0xff] %v6267_v51  ;;  %v13456_v54 = vrot.slane %v6267_v51, 4  ;;  %v5818_v39 = vadd.f32 %v13409_v34, %v5742_v40  ;;  %10613 = vmatmul.msk.f32.gmra.mxu0 %vm276_vm1, %v5232_v37  ;;  %v15108_v37 = vld [vmem:[#allocation27_spill] sm:$0xff]  ;;  %v5234_v40 = vld [vmem:[#allocation2 + $0x302] sm:$0xff] }
 0x6ed   : > { %6474 = vst [vmem:[#allocation1] ss:$2 sm:$0xff] %v6267_v51  ;;  %v3352_v12 = vadd.f32 %v15109_v59, %v15108_v37  ;;  %v5146_v51 = vadd.f32 %v13419_v35, %v4548_v2  ;;  %v15111_v35 = vld [vmem:[#allocation17_spill] sm:$0xff] }
 0x6ee   : > { %15105 = vst [vmem:[#allocation10_spill] sm:$0xff] %v13456_v54  ;;  %v5890_v26 = vmax.f32 %v5818_v39, 0.0  ;;  %v4447_v5 = vpop.f32.mrf.mxu2  ;;  %v3353_v14 = vadd.f32 %v15111_v35, %v15110_v57 }
 0x6ef   : > { %6475 = vst [vmem:[#allocation1 + $0x1] ss:$2 sm:$0xff] %v13456_v54  ;;  %v6140_v38 = vld [vmem:[#allocation3 + $0x178] ss:$2 sm:$0xf]  ;;  %v3950_v7 = vadd.f32 %v13262_v31, %v3352_v12 }
 0x6f0   : > { %v6188_v50 = vld [vmem:[#allocation3 + $0x179] ss:$2 sm:$0xf]  ;;  %5962 = vst [vmem:[#allocation3 + $0x180] sm:$0xff] %v5890_v26 }
 0x6f1   : > { %v6244_v30 = vmax.f32 %v6140_v38, %v6188_v50  ;;  %v5625_v42 = vpop.f32.mrf.mxu0  ;;  %v4549_v26 = vadd.f32 %v13423_v24, %v3950_v7 }
 0x6f2   : > { %v5743_v18 = vadd.f32 %v5625_v42, %v5145_v52  ;;  %v13482_v50 = vpop.f32.mrf.mxu3 }
 0x6f3   : > { %v6268_v9 = vmax.f32 %v6220_v3, %v6244_v30  ;;  %v5147_v52 = vadd.f32 %v13431_v61, %v4549_v26  ;;  %v5235_v3 = vld [vmem:[#allocation2 + $0x30a] sm:$0xff]  ;;  %v3951_v30 = vadd.f32 %v13292_v16, %v3353_v14  ;;  %v5236_v16 = vld [vmem:[#allocation2 + $0x312] sm:$0xff] }
 0x6f4   : > { %v5819_v58 = vadd.f32 %v13409_v34, %v5743_v18  ;;  %10614 = vmatmul.msk.f32.gmra.mxu0 %vm276_vm1, %v5233_v44  ;;  %v15112_v18 = vld [vmem:[#allocation29_spill] sm:$0xff] }
 0x6f5   : > { %6293 = vst [vmem:[#allocation4 + $0x89] sm:$0xf] %v6268_v9  ;;  %v4550_v24 = vadd.f32 %v13434_v8, %v3951_v30  ;;  %v3354_v2 = vadd.f32 %v13068_v41, %v15112_v18  ;;  %v15113_v41 = vld [vmem:[#allocation30_spill] sm:$0xff] }
 0x6f6   : > { %v6482_v0 = vld.sshfl [vmem:[#allocation1] sm:$0xff pattern:$0x75316420]  ;;  %v5891_v1 = vmax.f32 %v5819_v58, 0.0  ;;  %v13489_v44 = vpop.f32.mrf.mxu2 }
 0x6f7   : > { %10638 = vmatmul.msk.f32.gmra.mxu1 %vm6492_vm4, %v6482_v0  ;;  %v5148_v61 = vadd.f32 %v13440_v48, %v4550_v24 }
 0x6f8   : > { %5963 = vst [vmem:[#allocation3 + $0x188] sm:$0xff] %v5891_v1  ;;  %v3952_v1 = vadd.f32 %v13299_v60, %v3354_v2 }
 0x6f9   : > { %v5628_v56 = vpop.f32.mrf.mxu0 }
 0x6fa   : > { %v5744_v39 = vadd.f32 %v5628_v56, %v5146_v51  ;;  %v13496_v58 = vpop.f32.mrf.mxu3  ;;  %v4551_v37 = vadd.f32 %v13447_v15, %v3952_v1  ;;  %v15114_v56 = vld [vmem:[#allocation18_spill] sm:$0xff] }
 0x6fb   : > { %v3355_v48 = vadd.f32 %v15114_v56, %v15113_v41 }
 0x6fc   : > { %v6383_v29 = vld [vmem:[#allocation4 + $0x89] sm:$0xf]  ;;  %v5820_v38 = vadd.f32 %v13409_v34, %v5744_v39  ;;  %10615 = vmatmul.msk.f32.gmra.mxu0 %vm276_vm1, %v5234_v40  ;;  %v5149_v40 = vadd.f32 %v13453_v17, %v4551_v37  ;;  %v15115_v17 = vld [vmem:[#allocation31_spill] sm:$0xff] }
 0x6fd   : > { %6476 = vst [vmem:[#allocation1 + $0x10] ss:$2 sm:$0xff] %v6383_v29  ;;  %v5237_v39 = vld [vmem:[#allocation2 + $0x322] sm:$0xff]  ;;  %v3953_v60 = vadd.f32 %v13319_v28, %v3355_v48 }
 0x6fe   : > { %v5892_v25 = vmax.f32 %v5820_v38, 0.0  ;;  %v13502_v12 = vpop.f32.mrf.mxu2  ;;  %v6319_v49 = vld [vmem:[#allocation4 + $0x88] sm:$0xf] }
 0x6ff   : > { %v4552_v26 = vadd.f32 %v13464_v13, %v3953_v60  ;;  %v6094_v57 = vld [vmem:[#allocation3 + $0x181] ss:$2 sm:$0xff] }
 0x700   : > { %5964 = vst [vmem:[#allocation3 + $0x190] sm:$0xff] %v5892_v25  ;;  %v6046_v25 = vld [vmem:[#allocation3 + $0x180] ss:$2 sm:$0xff] }
 0x701   : > { %v5631_v31 = vpop.f32.mrf.mxu0  ;;  %v5150_v30 = vadd.f32 %v13468_v45, %v4552_v26 }
 0x702   : > { %v5745_v42 = vadd.f32 %v5631_v31, %v5147_v52  ;;  %v13508_v29 = vpop.f32.mrf.mxu3  ;;  %v15116_v31 = vld [vmem:[#allocation19_spill] sm:$0xff] }
 0x704   : > { %v5821_v47 = vadd.f32 %v13409_v34, %v5745_v42  ;;  %10616 = vmatmul.msk.f32.gmra.mxu0 %vm276_vm1, %v5235_v3  ;;  %v3356_v3 = vadd.f32 %v15116_v31, %v15115_v17  ;;  %v6221_v42 = vmax.f32 %v6046_v25, %v6094_v57 }
 0x706   : > { %v5893_v9 = vmax.f32 %v5821_v47, 0.0  ;;  %v13516_v28 = vpop.f32.mrf.mxu2  ;;  %v5238_v47 = vld [vmem:[#allocation2 + $0x32a] sm:$0xff] }
 0x708   : > { %5965 = vst [vmem:[#allocation3 + $0x198] sm:$0xff] %v5893_v9  ;;  %v3954_v9 = vadd.f32 %v13343_v23, %v3356_v3 }
 0x709   : > { %v5634_v0 = vpop.f32.mrf.mxu0 }
 0x70a   : > { %v5746_v8 = vadd.f32 %v5634_v0, %v5148_v61  ;;  %v4553_v61 = vadd.f32 %v4447_v5, %v3954_v9  ;;  %v13519_v0 = vpop.f32.mrf.mxu3  ;;  %v15119_v9 = vld [vmem:[#allocation34_spill] sm:$0xff] }
 0x70c   : > { %v5822_v59 = vadd.f32 %v13409_v34, %v5746_v8  ;;  %10617 = vmatmul.msk.f32.gmra.mxu0 %vm276_vm1, %v5236_v16  ;;  %v6048_v16 = vld [vmem:[#allocation3 + $0x190] ss:$2 sm:$0xf]  ;;  %v6096_v8 = vld [vmem:[#allocation3 + $0x191] ss:$2 sm:$0xf]  ;;  %v5151_v41 = vadd.f32 %v13482_v50, %v4553_v61 }
 0x70d   : > { %v6222_v56 = vmax.f32 %v6048_v16, %v6096_v8 }
 0x70e   : > { %v5894_v51 = vmax.f32 %v5822_v59, 0.0  ;;  %v4459_v60 = vpop.f32.mrf.mxu2 }
 0x710   : > { %5966 = vst [vmem:[#allocation3 + $0x1a0] sm:$0xff] %v5894_v51  ;;  %v15117_v51 = vld [vmem:[#allocation32_spill] sm:$0xff] }
 0x711   : > { %v5637_v7 = vpop.f32.mrf.mxu0  ;;  %v3357_v5 = vadd.f32 %v13101_v4, %v15117_v51  ;;  %v13533_v4 = vpop.f32.mrf.mxu1 }
 0x712   : > { %v5747_v15 = vadd.f32 %v5637_v7, %v5149_v40  ;;  %v5239_v7 = vld [vmem:[#allocation2 + $0x332] sm:$0xff]  ;;  %v5057_v50 = vpop.f32.mrf.mxu3 }
 0x714   : > { %v5823_v38 = vadd.f32 %v13409_v34, %v5747_v15  ;;  %10618 = vmatmul.msk.f32.gmra.mxu0 %vm276_vm1, %v5237_v39  ;;  %v3955_v39 = vadd.f32 %v13350_v46, %v3357_v5  ;;  %v13559_v5 = vld [vmem:[#allocation4 + $0x40] sm:$0xff] }
 0x716   : > { %v5895_v35 = vmax.f32 %v5823_v38, 0.0  ;;  %v4554_v38 = vadd.f32 %v13489_v44, %v3955_v39 }
 0x717   : > { %v6142_v14 = vld [vmem:[#allocation3 + $0x198] ss:$2 sm:$0xff]  ;;  %v6190_v52 = vld [vmem:[#allocation3 + $0x199] ss:$2 sm:$0xff] }
 0x718   : > { %v6245_v24 = vmax.f32 %v6142_v14, %v6190_v52  ;;  %5967 = vst [vmem:[#allocation3 + $0x1a8] sm:$0xff] %v5895_v35  ;;  %v15118_v14 = vld [vmem:[#allocation33_spill] sm:$0xff]  ;;  %v5152_v52 = vadd.f32 %v13496_v58, %v4554_v38 }
 0x719   : > { %v5640_v13 = vpop.f32.mrf.mxu0  ;;  %v3358_v46 = vadd.f32 %v13110_v32, %v15118_v14  ;;  %v3359_v32 = vadd.f32 %v13116_v6, %v15119_v9  ;;  %v13550_v8 = vpop.f32.mrf.mxu1 }
 0x71a   : > { %v6269_v18 = vmax.f32 %v6221_v42, %v6245_v24  ;;  %v5748_v2 = vadd.f32 %v5640_v13, %v5150_v30  ;;  %v4462_v42 = vpop.f32.mrf.mxu2  ;;  %v13542_v13 = vld [vmem:[#allocation4 + $0x10] sm:$0xff] }
 0x71b   : > { %v3956_v44 = vadd.f32 %v13376_v11, %v3358_v46  ;;  %v3957_v11 = vadd.f32 %v13413_v20, %v3359_v32  ;;  %v14980_v61 = vrot.slane %v13542_v13, 4  ;;  %v15120_v20 = vld [vmem:[#allocation35_spill] sm:$0xff]  ;;  %v6315_v46 = vld [vmem:[#allocation4 + $0x68] sm:$0xf] }
 0x71c   : > { %6294 = vst [vmem:[#allocation4 + $0x91] sm:$0xff] %v6269_v18  ;;  %v13521_v1 = vrot.slane %v6269_v18, 4  ;;  %v5824_v45 = vadd.f32 %v13409_v34, %v5748_v2  ;;  %10619 = vmatmul.msk.f32.gmra.mxu0 %vm276_vm1, %v5238_v47 }
 0x71d   : > { %6477 = vst [vmem:[#allocation1 + $0x11] ss:$2 sm:$0xff] %v6269_v18  ;;  %v4555_v30 = vadd.f32 %v13502_v12, %v3956_v44  ;;  %v5060_v18 = vpop.f32.mrf.mxu3 }
 0x71e   : > { %6478 = vst [vmem:[#allocation1 + $0x20] ss:$2 sm:$0xff] %v13521_v1  ;;  %v5896_v37 = vmax.f32 %v5824_v45, 0.0  ;;  %v4556_v45 = vadd.f32 %v13516_v28, %v3957_v11 }
 0x71f   : > { %v6144_v59 = vld [vmem:[#allocation3 + $0x1a8] ss:$2 sm:$0xf]  ;;  %v6192_v23 = vld [vmem:[#allocation3 + $0x1a9] ss:$2 sm:$0xf]  ;;  %v5153_v58 = vadd.f32 %v13508_v29, %v4555_v30 }
 0x720   : > { %v6246_v48 = vmax.f32 %v6144_v59, %v6192_v23  ;;  %5968 = vst [vmem:[#allocation3 + $0x1b0] sm:$0xff] %v5896_v37  ;;  %v6305_v37 = vld [vmem:[#allocation4 + $0x18] sm:$0xf]  ;;  %v3360_v23 = vadd.f32 %v13122_v33, %v15120_v20  ;;  %v5154_v51 = vadd.f32 %v13519_v0, %v4556_v45 }
 0x721   : > { %v5643_v40 = vpop.f32.mrf.mxu0  ;;  %v15121_v0 = vld [vmem:[#allocation36_spill] sm:$0xff] }
 0x722   : > { %v6270_v15 = vmax.f32 %v6222_v56, %v6246_v48  ;;  %v5749_v26 = vadd.f32 %v5643_v40, %v5151_v41  ;;  %v4465_v29 = vpop.f32.mrf.mxu2  ;;  %v3958_v41 = vadd.f32 %v13426_v27, %v3360_v23 }
 0x724   : > { %v6483_v25 = vld.sshfl [vmem:[#allocation1 + $0x10] sm:$0xff pattern:$0x75316420]  ;;  %6295 = vst [vmem:[#allocation4 + $0x99] sm:$0xf] %v6270_v15  ;;  %v5825_v57 = vadd.f32 %v13409_v34, %v5749_v26  ;;  %10620 = vmatmul.msk.f32.gmra.mxu0 %vm276_vm1, %v5239_v7  ;;  %v4557_v40 = vadd.f32 %v4459_v60, %v3958_v41  ;;  %v13563_v7 = vrot.slane %v13559_v5, 4  ;;  %v3361_v26 = vadd.f32 %v13128_v55, %v15121_v0 }
 0x725   : > { %10639 = vmatmul.msk.f32.gmra.mxu1 %vm6492_vm4, %v6483_v25  ;;  %v5063_v56 = vpop.f32.mrf.mxu3  ;;  %v15124_v41 = vld [vmem:[#allocation38_spill] sm:$0xff] }
 0x726   : > { %v5897_v35 = vmax.f32 %v5825_v57, 0.0  ;;  %v5155_v38 = vadd.f32 %v5057_v50, %v4557_v40  ;;  %v3959_v60 = vadd.f32 %v13472_v10, %v3361_v26  ;;  %v15122_v10 = vld [vmem:[#allocation37_spill] sm:$0xff] }
 0x728   : > { %5969 = vst [vmem:[#allocation3 + $0x1b8] sm:$0xff] %v5897_v35  ;;  %v4558_v35 = vadd.f32 %v4462_v42, %v3959_v60  ;;  %v3362_v42 = vadd.f32 %v13134_v22, %v15122_v10 }
 0x729   : > { %v5646_v17 = vpop.f32.mrf.mxu0 }
 0x72a   : > { %v5750_v31 = vadd.f32 %v5646_v17, %v5152_v52  ;;  %v4468_v27 = vpop.f32.mrf.mxu2 }
 0x72b   : > { %v6385_v3 = vld [vmem:[#allocation4 + $0x99] sm:$0xf] }
 0x72c   : > { %6479 = vst [vmem:[#allocation1 + $0x21] ss:$2 sm:$0xff] %v6385_v3  ;;  %v5826_v24 = vadd.f32 %v13409_v34, %v5750_v31  ;;  %v13578_v3 = vld [vmem:[#allocation4 + $0x70] sm:$0xff]  ;;  %v6321_v20 = vld [vmem:[#allocation4 + $0x98] sm:$0xf] }
 0x72d   : > { %v13573_v14 = vpop.f32.mrf.mxu3 }
 0x72e   : > { %v5898_v47 = vmax.f32 %v5826_v24, 0.0  ;;  %v5156_v24 = vadd.f32 %v5060_v18, %v4558_v35 }
 0x72f   : > { %v6050_v52 = vld [vmem:[#allocation3 + $0x1b0] ss:$2 sm:$0xff]  ;;  %v6098_v31 = vld [vmem:[#allocation3 + $0x1b1] ss:$2 sm:$0xff] }
 0x730   : > { %5970 = vst [vmem:[#allocation3 + $0x1c0] sm:$0xff] %v5898_v47  ;;  %v3872_v47 = vpop.f32.mrf.mxu1  ;;  %v6223_v9 = vmax.f32 %v6050_v52, %v6098_v31 }
 0x731   : > { %v5649_v2 = vpop.f32.mrf.mxu0 }
 0x732   : > { %v5751_v12 = vadd.f32 %v5649_v2, %v5153_v58  ;;  %v3960_v2 = vadd.f32 %v13533_v4, %v3362_v42  ;;  %v4471_v11 = vpop.f32.mrf.mxu2  ;;  %v15128_v42 = vld [vmem:[#allocation21_spill] sm:$0xff] }
 0x733   : > { %v6484_v16 = vld.sshfl [vmem:[#allocation1 + $0x20] sm:$0xff pattern:$0x75316420] }
 0x734   : > { %6612 = vst [vmem:[#allocation1 + $0x20] ss:$2 sm:$0xff] %v14980_v61  ;;  %v5827_v6 = vadd.f32 %v13409_v34, %v5751_v12  ;;  %10640 = vmatmul.msk.f32.gmra.mxu1 %vm6492_vm4, %v6484_v16  ;;  %v13584_v12 = vld [vmem:[#allocation4 + $0x90] sm:$0xff] }
 0x735   : > { %6614 = vst [vmem:[#allocation1 + $0x21] ss:$2 sm:$0xff] %v6305_v37  ;;  %v4559_v37 = vadd.f32 %v4465_v29, %v3960_v2  ;;  %v13590_v18 = vrot.slane %v13584_v12, 4 }
 0x736   : > { %v5899_v59 = vmax.f32 %v5827_v6, 0.0 }
 0x737   : > { %v6052_v6 = vld [vmem:[#allocation3 + $0x1c0] ss:$2 sm:$0xf]  ;;  %v6100_v23 = vld [vmem:[#allocation3 + $0x1c1] ss:$2 sm:$0xf] }
 0x738   : > { %5971 = vst [vmem:[#allocation3 + $0x1c8] sm:$0xff] %v5899_v59  ;;  %v6224_v0 = vmax.f32 %v6052_v6, %v6100_v23  ;;  %v3875_v60 = vpop.f32.mrf.mxu1  ;;  %v13619_v23 = vld [vmem:[#allocation4 + $0x42] sm:$0xff] }
 0x739   : > { %v5652_v28 = vpop.f32.mrf.mxu0  ;;  %15129 = vst [vmem:[#allocation24_spill] sm:$0xff] %v13619_v23 }
 0x73a   : > { %v5752_v48 = vadd.f32 %v5652_v28, %v5154_v51  ;;  %v5069_v51 = vpop.f32.mrf.mxu3  ;;  %v4474_v31 = vpop.f32.mrf.mxu2 }
 0x73c   : > { %v13565_v39 = vld.sshfl [vmem:[#allocation1 + $0x20] sm:$0xff pattern:$0x75316420]  ;;  %v5828_v15 = vadd.f32 %v13409_v34, %v5752_v48 }
 0x73d   : > { %6627 = vst [vmem:[#allocation1 + $0x20] ss:$2 sm:$0xff] %v13559_v5  ;;  %v15125_v48 = vld [vmem:[#allocation20_spill] sm:$0xff] }
 0x73e   : > { %6628 = vst [vmem:[#allocation1 + $0x21] ss:$2 sm:$0xff] %v13563_v7  ;;  %v5900_v33 = vmax.f32 %v5828_v15, 0.0  ;;  %v3363_v40 = vadd.f32 %v15125_v48, %v15124_v41  ;;  %v5157_v15 = vadd.f32 %v5063_v56, %v4559_v37  ;;  %v13623_v41 = vld [vmem:[#allocation4 + $0x50] sm:$0xff] }
 0x73f   : > { %15130 = vst [vmem:[#allocation13_spill] sm:$0xff] %v13623_v41 }
 0x740   : > { %5972 = vst [vmem:[#allocation3 + $0x1d0] sm:$0xff] %v5900_v33  ;;  %v3878_v6 = vpop.f32.mrf.mxu1 }
 0x741   : > { %v5655_v25 = vpop.f32.mrf.mxu0 }
 0x742   : > { %v5753_v57 = vadd.f32 %v5655_v25, %v5155_v38  ;;  %v3961_v25 = vadd.f32 %v13550_v8, %v3363_v40  ;;  %v15131_v40 = vld [vmem:[#allocation40_spill] sm:$0xff] }
 0x744   : > { %v5829_v17 = vadd.f32 %v13409_v34, %v5753_v57  ;;  %v13599_v57 = vld [vmem:[#allocation4 + $0x20] sm:$0xff] }
 0x745   : > { %v13576_v44 = vld.sshfl [vmem:[#allocation1 + $0x20] sm:$0xff pattern:$0x75316420]  ;;  %v13605_v56 = vrot.slane %v13599_v57, 4 }
 0x746   : > { %6639 = vst [vmem:[#allocation1 + $0x20] ss:$2 sm:$0xff] %v6315_v46  ;;  %v5901_v55 = vmax.f32 %v5829_v17, 0.0  ;;  %v13601_v46 = vld [vmem:[#allocation4 + $0x12] sm:$0xff]  ;;  %v4560_v17 = vadd.f32 %v4468_v27, %v3961_v25 }
 0x747   : > { %6640 = vst [vmem:[#allocation1 + $0x21] ss:$2 sm:$0xff] %v13578_v3  ;;  %v6146_v50 = vld [vmem:[#allocation3 + $0x1c8] ss:$2 sm:$0xff]  ;;  %v6194_v30 = vld [vmem:[#allocation3 + $0x1c9] ss:$2 sm:$0xff] }
 0x748   : > { %v6247_v32 = vmax.f32 %v6146_v50, %v6194_v30  ;;  %5973 = vst [vmem:[#allocation3 + $0x1d8] sm:$0xff] %v5901_v55  ;;  %v14978_v30 = vrot.slane %v13601_v46, 4  ;;  %v15127_v27 = vld [vmem:[#allocation39_spill] sm:$0xff] }
 0x749   : > { %v5658_v58 = vpop.f32.mrf.mxu0  ;;  %15126 = vst [vmem:[#allocation12_spill] sm:$0xff] %v13605_v56 }
 0x74a   : > { %v6271_v16 = vmax.f32 %v6223_v9, %v6247_v32  ;;  %v5754_v45 = vadd.f32 %v5658_v58, %v5156_v24  ;;  %v3364_v24 = vadd.f32 %v15128_v42, %v15127_v27  ;;  %v5158_v9 = vadd.f32 %v13573_v14, %v4560_v17  ;;  %v5072_v32 = vpop.f32.mrf.mxu3  ;;  %v6778_v58 = vld [vmem:[#allocation4 + $0x1a] sm:$0xf]  ;;  %v6311_v14 = vld [vmem:[#allocation4 + $0x48] sm:$0xf]  ;;  %v15135_v42 = vld [vmem:[#allocation23_spill] sm:$0xff] }
 0x74b   : > { %v15134_v27 = vld [vmem:[#allocation41_spill] sm:$0xff] }
 0x74c   : > { %6296 = vst [vmem:[#allocation4 + $0xa1] sm:$0xff] %v6271_v16  ;;  %v13586_v59 = vrot.slane %v6271_v16, 4  ;;  %v5830_v22 = vadd.f32 %v13409_v34, %v5754_v45 }
 0x74d   : > { %6480 = vst [vmem:[#allocation1 + $0x30] ss:$2 sm:$0xff] %v6271_v16  ;;  %v3962_v16 = vadd.f32 %v3872_v47, %v3364_v24  ;;  %v15132_v47 = vld [vmem:[#allocation22_spill] sm:$0xff]  ;;  %v3366_v24 = vadd.f32 %v15135_v42, %v15134_v27 }
 0x74e   : > { %15123 = vst [vmem:[#allocation11_spill] sm:$0xff] %v13586_v59  ;;  %v13592_v4 = vld.sshfl [vmem:[#allocation1 + $0x20] sm:$0xff pattern:$0x75316420]  ;;  %v5902_v28 = vmax.f32 %v5830_v22, 0.0 }
 0x74f   : > { %6481 = vst [vmem:[#allocation1 + $0x31] ss:$2 sm:$0xff] %v13586_v59  ;;  %v6148_v29 = vld [vmem:[#allocation3 + $0x1d8] ss:$2 sm:$0xf]  ;;  %v4561_v37 = vadd.f32 %v4471_v11, %v3962_v16  ;;  %v13628_v11 = vrot.slane %v13619_v23, 4 }
 0x750   : > { %6651 = vst [vmem:[#allocation1 + $0x20] ss:$2 sm:$0xff] %v13590_v18  ;;  %v6196_v33 = vld [vmem:[#allocation3 + $0x1d9] ss:$2 sm:$0xf] }
 0x751   : > { %6652 = vst [vmem:[#allocation1 + $0x21] ss:$2 sm:$0xff] %v6321_v20  ;;  %v6248_v26 = vmax.f32 %v6148_v29, %v6196_v33  ;;  %v5661_v38 = vpop.f32.mrf.mxu0  ;;  %v5159_v33 = vadd.f32 %v5069_v51, %v4561_v37  ;;  %v3881_v51 = vpop.f32.mrf.mxu1  ;;  %v13646_v37 = vld [vmem:[#allocation4 + $0x72] sm:$0xff] }
 0x752   : > { %5974 = vst [vmem:[#allocation3 + $0x1e0] sm:$0xff] %v5902_v28  ;;  %v5755_v35 = vadd.f32 %v5661_v38, %v5157_v15  ;;  %v4477_v28 = vpop.f32.mrf.mxu2  ;;  %v3365_v15 = vadd.f32 %v15132_v47, %v15131_v40  ;;  %v5075_v25 = vpop.f32.mrf.mxu3  ;;  %v13652_v40 = vld [vmem:[#allocation4 + $0x92] sm:$0xff] }
 0x753   : > { %v6272_v52 = vmax.f32 %v6224_v0, %v6248_v26  ;;  %15133 = vst [vmem:[#allocation25_spill] sm:$0xff] %v13628_v11 }
 0x754   : > { %v5831_v55 = vadd.f32 %v13409_v34, %v5755_v35  ;;  %v3963_v38 = vadd.f32 %v3875_v60, %v3365_v15  ;;  %15136 = vst [vmem:[#allocation14_spill] sm:$0xff] %v13646_v37  ;;  %v10663_v15 = vld [vmem:[%s14973_s3 + $0x40] sm:$0xff] }
 0x755   : > { %6297 = vst [vmem:[#allocation4 + $0xa9] sm:$0xf] %v6272_v52  ;;  %6955 = vmatpush.msra.mxu3 %v10663_v15  ;;  %v15142_v15 = vld [vmem:[#allocation43_spill] sm:$0xff] }
 0x756   : > { %v6485_v50 = vld.sshfl [vmem:[#allocation1 + $0x30] sm:$0xff pattern:$0x75316420]  ;;  %v5903_v8 = vmax.f32 %v5831_v55, 0.0  ;;  %v4562_v52 = vadd.f32 %v4474_v31, %v3963_v38  ;;  %v13637_v55 = vrot.slane %v13578_v3, 4 }
 0x757   : > { %6616 = vst [vmem:[#allocation1 + $0x30] ss:$2 sm:$0xff] %v13599_v57  ;;  %10641 = vmatmul.msk.f32.gmra.mxu1 %vm6492_vm4, %v6485_v50  ;;  %v6788_v50 = vld [vmem:[#allocation4 + $0x6a] sm:$0xf] }
 0x758   : > { %v13610_v10 = vld.sshfl [vmem:[#allocation1 + $0x20] sm:$0xff pattern:$0x75316420]  ;;  %6618 = vst [vmem:[#allocation1 + $0x31] ss:$2 sm:$0xff] %v13605_v56 }
 0x759   : > { %6848 = vst [vmem:[#allocation1 + $0x20] ss:$2 sm:$0xff] %v14978_v30  ;;  %v5664_v2 = vpop.f32.mrf.mxu0 }
 0x75a   : > { %6850 = vst [vmem:[#allocation1 + $0x21] ss:$2 sm:$0xff] %v6778_v58  ;;  %v5756_v45 = vadd.f32 %v5664_v2, %v5158_v9  ;;  %v5160_v9 = vadd.f32 %v5072_v32, %v4562_v52  ;;  %v4480_v60 = vpop.f32.mrf.mxu2  ;;  %v6317_v58 = vld [vmem:[#allocation4 + $0x78] sm:$0xf] }
 0x75b   : > { %5975 = vst [vmem:[#allocation3 + $0x1e8] sm:$0xff] %v5903_v8 }
 0x75c   : > { %v6387_v22 = vld [vmem:[#allocation4 + $0xa9] sm:$0xf]  ;;  %v5832_v20 = vadd.f32 %v13409_v34, %v5756_v45  ;;  %v3964_v45 = vadd.f32 %v3878_v6, %v3366_v24  ;;  %v6362_v6 = vld [vmem:[%s14973_s3] sm:$0xff] }
 0x75d   : > { %6486 = vst [vmem:[#allocation1] ss:$2 sm:$0xff] %v6387_v22  ;;  %6719 = vmatpush.msrb.mxu2 %v6362_v6 }
 0x75e   : > { %v5904_v48 = vmax.f32 %v5832_v20, 0.0  ;;  %v4563_v20 = vadd.f32 %v4477_v28, %v3964_v45 }
 0x75f   : > { %v13621_v29 = vld.sshfl [vmem:[#allocation1 + $0x30] sm:$0xff pattern:$0x75316420] }
 0x760   : > { %6629 = vst [vmem:[#allocation1 + $0x30] ss:$2 sm:$0xff] %v6311_v14  ;;  %v5078_v14 = vpop.f32.mrf.mxu3  ;;  %v5161_v38 = vadd.f32 %v5075_v25, %v4563_v20 }
 0x761   : > { %v13630_v0 = vld.sshfl [vmem:[#allocation1 + $0x20] sm:$0xff pattern:$0x75316420]  ;;  %6630 = vst [vmem:[#allocation1 + $0x31] ss:$2 sm:$0xff] %v13623_v41  ;;  %v5667_v26 = vpop.f32.mrf.mxu0 }
 0x762   : > { %6863 = vst [vmem:[#allocation1 + $0x20] ss:$2 sm:$0xff] %v13619_v23  ;;  %v5757_v35 = vadd.f32 %v5667_v26, %v5159_v33  ;;  %v15137_v33 = vld [vmem:[#allocation42_spill] sm:$0xff]  ;;  %v15138_v26 = vld [vmem:[#allocation48_spill] sm:$0xff]  ;;  %v4483_v24 = vpop.f32.mrf.mxu2 }
 0x763   : > { %6864 = vst [vmem:[#allocation1 + $0x21] ss:$2 sm:$0xff] %v13628_v11  ;;  %v3367_v28 = vadd.f32 %v15138_v26, %v15137_v33  ;;  %v6054_v45 = vld [vmem:[#allocation3 + $0x1e0] ss:$2 sm:$0xff]  ;;  %v13706_v11 = vld [vmem:[#allocation4 + $0x52] sm:$0xff] }
 0x764   : > { %5976 = vst [vmem:[#allocation3 + $0x1f0] sm:$0xff] %v5904_v48  ;;  %v5833_v17 = vadd.f32 %v13409_v34, %v5757_v35  ;;  %v13650_v48 = vld [vmem:[#allocation4 + $0xa0] sm:$0xff]  ;;  %v3884_v35 = vpop.f32.mrf.mxu1  ;;  %v7042_v23 = vld [vmem:[#allocation4 + $0x78] sm:$0xf] }
 0x765   : > { %v13663_v52 = vrot.slane %v13650_v48, 4  ;;  %v3965_v42 = vadd.f32 %v3881_v51, %v3367_v28  ;;  %v15143_v33 = vld [vmem:[#allocation49_spill] sm:$0xff]  ;;  %15149 = vst [vmem:[#allocation29_spill] sm:$0xff] %v13706_v11 }
 0x766   : > { %v5905_v2 = vmax.f32 %v5833_v17, 0.0  ;;  %v3368_v26 = vadd.f32 %v15143_v33, %v15142_v15  ;;  %v15146_v33 = vld [vmem:[#allocation44_spill] sm:$0xff] }
 0x767   : > { %15139 = vst [vmem:[#allocation26_spill] sm:$0xff] %v13663_v52 }
 0x768   : > { %v13639_v8 = vld.sshfl [vmem:[#allocation1 + $0x30] sm:$0xff pattern:$0x75316420]  ;;  %5977 = vst [vmem:[#allocation3 + $0x1f8] sm:$0xff] %v5905_v2  ;;  %v4564_v2 = vadd.f32 %v4480_v60, %v3965_v42  ;;  %v5081_v20 = vpop.f32.mrf.mxu3 }
 0x769   : > { %6641 = vst [vmem:[#allocation1 + $0x30] ss:$2 sm:$0xff] %v13637_v55  ;;  %v5670_v31 = vpop.f32.mrf.mxu0 }
 0x76a   : > { %v13644_v16 = vld.sshfl [vmem:[#allocation1 + $0x20] sm:$0xff pattern:$0x75316420]  ;;  %6642 = vst [vmem:[#allocation1 + $0x31] ss:$2 sm:$0xff] %v6317_v58  ;;  %v5758_v22 = vadd.f32 %v5670_v31, %v5160_v9  ;;  %v5162_v28 = vadd.f32 %v5078_v14, %v4564_v2  ;;  %v4486_v2 = vpop.f32.mrf.mxu2 }
 0x76b   : > { %6875 = vst [vmem:[#allocation1 + $0x20] ss:$2 sm:$0xff] %v6788_v50  ;;  %v13668_v50 = vrot.slane %v13652_v40, 4  ;;  %v6794_v58 = vld [vmem:[#allocation4 + $0x9a] sm:$0xf] }
 0x76c   : > { %6876 = vst [vmem:[#allocation1 + $0x21] ss:$2 sm:$0xff] %v13646_v37  ;;  %v5834_v32 = vadd.f32 %v13409_v34, %v5758_v22  ;;  %v6102_v22 = vld [vmem:[#allocation3 + $0x1e1] ss:$2 sm:$0xff]  ;;  %v3887_v30 = vpop.f32.mrf.mxu1 }
 0x76d   : > { %15140 = vst [vmem:[#allocation15_spill] sm:$0xff] %v13668_v50 }
 0x76e   : > { %v5906_v47 = vmax.f32 %v5834_v32, 0.0  ;;  %v13676_v32 = vld [vmem:[#allocation4 + $0x22] sm:$0xff] }
 0x76f   : > { %15141 = vst [vmem:[#allocation27_spill] sm:$0xff] %v13676_v32  ;;  %v13681_v60 = vrot.slane %v13676_v32, 4 }
 0x770   : > { %5978 = vst [vmem:[#allocation3 + $0x200] sm:$0xff] %v5906_v47 }
 0x771   : > { %v13665_v17 = vld.sshfl [vmem:[#allocation1 + $0x30] sm:$0xff pattern:$0x75316420]  ;;  %v5673_v27 = vpop.f32.mrf.mxu0  ;;  %15144 = vst [vmem:[#allocation16_spill] sm:$0xff] %v13681_v60 }
 0x772   : > { %6653 = vst [vmem:[#allocation1 + $0x30] ss:$2 sm:$0xff] %v13650_v48  ;;  %v5759_v25 = vadd.f32 %v5673_v27, %v5161_v38  ;;  %v6225_v38 = vmax.f32 %v6054_v45, %v6102_v22  ;;  %v7032_v45 = vld [vmem:[#allocation4 + $0x28] sm:$0xf] }
 0x773   : > { %v13671_v9 = vld.sshfl [vmem:[#allocation1 + $0x20] sm:$0xff pattern:$0x75316420]  ;;  %6654 = vst [vmem:[#allocation1 + $0x31] ss:$2 sm:$0xff] %v13663_v52 }
 0x774   : > { %6887 = vst [vmem:[#allocation1 + $0x20] ss:$2 sm:$0xff] %v13668_v50  ;;  %v5835_v31 = vadd.f32 %v13409_v34, %v5759_v25 }
 0x775   : > { %6888 = vst [vmem:[#allocation1 + $0x21] ss:$2 sm:$0xff] %v6794_v58  ;;  %v3966_v58 = vadd.f32 %v3884_v35, %v3368_v26 }
 0x776   : > { %v5907_v47 = vmax.f32 %v5835_v31, 0.0 }
 0x777   : > { %v6150_v51 = vld [vmem:[#allocation3 + $0x1f8] ss:$2 sm:$0xff]  ;;  %v6198_v6 = vld [vmem:[#allocation3 + $0x1f9] ss:$2 sm:$0xff]  ;;  %v4565_v14 = vadd.f32 %v4483_v24, %v3966_v58  ;;  %v15147_v24 = vld [vmem:[#allocation50_spill] sm:$0xff] }
 0x778   : > { %v6249_v27 = vmax.f32 %v6150_v51, %v6198_v6  ;;  %5979 = vst [vmem:[#allocation3 + $0x208] sm:$0xff] %v5907_v47  ;;  %v6056_v47 = vld [vmem:[#allocation3 + $0x1f0] ss:$2 sm:$0xf]  ;;  %v3369_v26 = vadd.f32 %v15147_v24, %v15146_v33 }
 0x779   : > { %v5676_v25 = vpop.f32.mrf.mxu0  ;;  %v6104_v51 = vld [vmem:[#allocation3 + $0x1f1] ss:$2 sm:$0xf] }
 0x77a   : > { %v13683_v42 = vld.sshfl [vmem:[#allocation1 + $0x30] sm:$0xff pattern:$0x75316420]  ;;  %v13686_v31 = vmax.f32 %v6225_v38, %v6249_v27  ;;  %v5760_v53 = vadd.f32 %v5676_v25, %v5162_v28  ;;  %v5163_v28 = vadd.f32 %v5081_v20, %v4565_v14  ;;  %v5084_v38 = vpop.f32.mrf.mxu3  ;;  %v3967_v58 = vadd.f32 %v3887_v30, %v3369_v26  ;;  %v3890_v14 = vpop.f32.mrf.mxu1 }
 0x77b   : > { %6852 = vst [vmem:[#allocation1 + $0x30] ss:$2 sm:$0xff] %v13676_v32  ;;  %v6226_v33 = vmax.f32 %v6056_v47, %v6104_v51  ;;  %v15151_v47 = vld [vmem:[#allocation51_spill] sm:$0xff] }
 0x77c   : > { %v13688_v61 = vld.sshfl [vmem:[#allocation1 + $0x20] sm:$0xff pattern:$0x75316420]  ;;  %6854 = vst [vmem:[#allocation1 + $0x31] ss:$2 sm:$0xff] %v13681_v60  ;;  %v13693_v22 = vrot.slane %v13686_v31, 4  ;;  %v5836_v35 = vadd.f32 %v13409_v34, %v5760_v53  ;;  %v4566_v20 = vadd.f32 %v4486_v2, %v3967_v58 }
 0x77d   : > { %15145 = vst [vmem:[#allocation28_spill] sm:$0xff] %v13688_v61  ;;  %v15150_v2 = vld [vmem:[#allocation45_spill] sm:$0xff] }
 0x77e   : > { %7102 = vst [vmem:[#allocation1 + $0x20] ss:$2 sm:$0xff] %v13605_v56  ;;  %v5908_v6 = vmax.f32 %v5836_v35, 0.0  ;;  %v13704_v35 = vrot.slane %v13623_v41, 4  ;;  %v3370_v51 = vadd.f32 %v15151_v47, %v15150_v2  ;;  %v5164_v58 = vadd.f32 %v5084_v38, %v4566_v20  ;;  %v15155_v2 = vld [vmem:[#allocation52_spill] sm:$0xff] }
 0x77f   : > { %7104 = vst [vmem:[#allocation1 + $0x21] ss:$2 sm:$0xff] %v7032_v45  ;;  %v6152_v15 = vld [vmem:[#allocation3 + $0x208] ss:$2 sm:$0xf] }
 0x780   : > { %6298 = vst [vmem:[#allocation4 + $0xb1] sm:$0xff] %v13686_v31  ;;  %v6200_v27 = vld [vmem:[#allocation3 + $0x209] ss:$2 sm:$0xf]  ;;  %v3968_v32 = vadd.f32 %v3890_v14, %v3370_v51  ;;  %v13731_v51 = vld [vmem:[#allocation4 + $0x30] sm:$0xff] }
 0x781   : > { %6487 = vst [vmem:[#allocation1 + $0x1] ss:$2 sm:$0xff] %v13686_v31  ;;  %v6250_v25 = vmax.f32 %v6152_v15, %v6200_v27  ;;  %v5679_v53 = vpop.f32.mrf.mxu0  ;;  %v6784_v45 = vld [vmem:[#allocation4 + $0x4a] sm:$0xf] }
 0x782   : > { %6488 = vst [vmem:[#allocation1 + $0x10] ss:$2 sm:$0xff] %v13693_v22  ;;  %v5761_v50 = vadd.f32 %v5679_v53, %v5163_v28  ;;  %v4489_v28 = vpop.f32.mrf.mxu2  ;;  %v3893_v20 = vpop.f32.mrf.mxu1  ;;  %v6307_v14 = vld [vmem:[#allocation4 + $0x28] sm:$0xf] }
 0x783   : > { %5980 = vst [vmem:[#allocation3 + $0x210] sm:$0xff] %v5908_v6  ;;  %v13701_v56 = vld.sshfl [vmem:[#allocation1 + $0x30] sm:$0xff pattern:$0x75316420]  ;;  %v10907_v6 = vld [vmem:[#allocation4] sm:$0xff]  ;;  %v6274_v26 = vmax.f32 %v6226_v33, %v6250_v25 }
 0x784   : > { %15148 = vst [vmem:[#allocation17_spill] sm:$0xff] %v13704_v35  ;;  %v6350_v15 = vrot.slane %v10907_v6, 4  ;;  %v5837_v30 = vadd.f32 %v13409_v34, %v5761_v50  ;;  %v5087_v50 = vpop.f32.mrf.mxu3 }
 0x785   : > { %6865 = vst [vmem:[#allocation1 + $0x30] ss:$2 sm:$0xff] %v6784_v45 }
 0x786   : > { %v13708_v24 = vld.sshfl [vmem:[#allocation1 + $0x20] sm:$0xff pattern:$0x75316420]  ;;  %6866 = vst [vmem:[#allocation1 + $0x31] ss:$2 sm:$0xff] %v13706_v11  ;;  %v5909_v53 = vmax.f32 %v5837_v30, 0.0 }
 0x787   : > { %7117 = vst [vmem:[#allocation1 + $0x20] ss:$2 sm:$0xff] %v13623_v41  ;;  %v13718_v41 = vrot.slane %v13646_v37, 4  ;;  %v6790_v30 = vld [vmem:[#allocation4 + $0x7a] sm:$0xf] }
 0x788   : > { %7118 = vst [vmem:[#allocation1 + $0x21] ss:$2 sm:$0xff] %v13704_v35  ;;  %v6490_v27 = vld.sshfl [vmem:[#allocation1] sm:$0xff pattern:$0x75316420] }
 0x789   : > { %6604 = vst [vmem:[#allocation1] ss:$2 sm:$0xff] %v10907_v6  ;;  %10642 = vmatmul.msk.f32.gmra.mxu1 %vm6492_vm4, %v6490_v27  ;;  %v5682_v45 = vpop.f32.mrf.mxu0  ;;  %v4567_v6 = vadd.f32 %v4489_v28, %v3968_v32 }
 0x78a   : > { %6606 = vst [vmem:[#allocation1 + $0x1] ss:$2 sm:$0xff] %v6350_v15  ;;  %v5762_v25 = vadd.f32 %v5682_v45, %v5164_v58  ;;  %v13726_v15 = vld [vmem:[#allocation4 + $0x80] sm:$0xff]  ;;  %v4492_v47 = vpop.f32.mrf.mxu2 }
 0x78b   : > { %6299 = vst [vmem:[#allocation4 + $0xb9] sm:$0xf] %v6274_v26  ;;  %v5165_v28 = vadd.f32 %v5087_v50, %v4567_v6 }
 0x78c   : > { %15152 = vst [vmem:[#allocation30_spill] sm:$0xff] %v13718_v41  ;;  %v5838_v27 = vadd.f32 %v13409_v34, %v5762_v25  ;;  %v13734_v25 = vld [vmem:[#allocation4 + $0xa2] sm:$0xff]  ;;  %v5090_v61 = vpop.f32.mrf.mxu3 }
 0x78d   : > { %5981 = vst [vmem:[#allocation3 + $0x218] sm:$0xff] %v5909_v53  ;;  %v13720_v33 = vld.sshfl [vmem:[#allocation1 + $0x30] sm:$0xff pattern:$0x75316420]  ;;  %v13738_v50 = vrot.slane %v13734_v25, 4 }
 0x78e   : > { %6877 = vst [vmem:[#allocation1 + $0x30] ss:$2 sm:$0xff] %v13718_v41  ;;  %v15154_v53 = vld [vmem:[#allocation46_spill] sm:$0xff]  ;;  %v5910_v45 = vmax.f32 %v5838_v27, 0.0 }
 0x78f   : > { %v13724_v38 = vld.sshfl [vmem:[#allocation1 + $0x20] sm:$0xff pattern:$0x75316420]  ;;  %6878 = vst [vmem:[#allocation1 + $0x31] ss:$2 sm:$0xff] %v6790_v30  ;;  %v3371_v32 = vadd.f32 %v15155_v2, %v15154_v53  ;;  %v3896_v2 = vpop.f32.mrf.mxu1 }
 0x790   : > { %15153 = vst [vmem:[#allocation18_spill] sm:$0xff] %v13726_v15  ;;  %v6303_v53 = vld [vmem:[#allocation4 + $0x8] sm:$0xf] }
 0x791   : > { %7129 = vst [vmem:[#allocation1 + $0x20] ss:$2 sm:$0xff] %v7042_v23  ;;  %v6619_v26 = vld.sshfl [vmem:[#allocation1] sm:$0xff pattern:$0x75316420]  ;;  %v5685_v23 = vpop.f32.mrf.mxu0  ;;  %v3969_v30 = vadd.f32 %v3893_v20, %v3371_v32 }
 0x792   : > { %7130 = vst [vmem:[#allocation1 + $0x21] ss:$2 sm:$0xff] %v13726_v15  ;;  %v6389_v58 = vld [vmem:[#allocation4 + $0xb9] sm:$0xf]  ;;  %10645 = vmatmul.msk.f32.vlgmr.msrb.gmra.mxu2 %vm6492_vm4, %v6619_v26  ;;  %v5763_v41 = vadd.f32 %v5685_v23, %v5165_v28  ;;  %v7048_v20 = vld [vmem:[#allocation4 + $0xa8] sm:$0xf] }
 0x793   : > { %15156 = vst [vmem:[#allocation31_spill] sm:$0xff] %v13731_v51  ;;  %v4568_v37 = vadd.f32 %v4492_v47, %v3969_v30  ;;  %v6313_v26 = vld [vmem:[#allocation4 + $0x58] sm:$0xf]  ;;  %v4495_v30 = vpop.f32.mrf.mxu2 }
 0x794   : > { %6623 = vst [vmem:[#allocation1] ss:$2 sm:$0xff] %v6307_v14  ;;  %v5839_v27 = vadd.f32 %v13409_v34, %v5763_v41  ;;  %v15160_v47 = vld [vmem:[#allocation47_spill] sm:$0xff] }
 0x795   : > { %15157 = vst [vmem:[#allocation19_spill] sm:$0xff] %v13734_v25  ;;  %v5166_v32 = vadd.f32 %v5090_v61, %v4568_v37  ;;  %v13756_v37 = vrot.slane %v13731_v51, 4 }
 0x796   : > { %6624 = vst [vmem:[#allocation1 + $0x1] ss:$2 sm:$0xff] %v13731_v51  ;;  %v13740_v6 = vld.sshfl [vmem:[#allocation1 + $0x30] sm:$0xff pattern:$0x75316420]  ;;  %v5911_v41 = vmax.f32 %v5839_v27, 0.0 }
 0x797   : > { %6489 = vst [vmem:[#allocation1 + $0x11] ss:$2 sm:$0xff] %v6389_v58  ;;  %v15161_v58 = vld [vmem:[#allocation53_spill] sm:$0xff]  ;;  %v10908_v27 = vld [vmem:[%s14972_s2] ss:$0 sm:$0xff] }
 0x798   : > { %15158 = vst [vmem:[#allocation32_spill] sm:$0xff] %v13738_v50 }
 0x799   : > { %5982 = vst [vmem:[#allocation3 + $0x220] sm:$0xff] %v5910_v45  ;;  %v13744_v14 = vld.sshfl [vmem:[#allocation1 + $0x20] sm:$0xff pattern:$0x75316420]  ;;  %v3372_v45 = vadd.f32 %v15161_v58, %v15160_v47  ;;  %v5688_v23 = vpop.f32.mrf.mxu0  ;;  %v5093_v47 = vpop.f32.mrf.mxu3 }
 0x79a   : > { %6889 = vst [vmem:[#allocation1 + $0x30] ss:$2 sm:$0xff] %v13734_v25 }
 0x79b   : > { %15159 = vst [vmem:[#allocation33_spill] sm:$0xff] %v13744_v14  ;;  %v3970_v25 = vadd.f32 %v3896_v2, %v3372_v45  ;;  %v7286_v2 = vld [vmem:[#allocation4 + $0x29] sm:$0xf] }
 0x79c   : > { %6890 = vst [vmem:[#allocation1 + $0x31] ss:$2 sm:$0xff] %v13738_v50 }
 0x79d   : > { %7141 = vst [vmem:[#allocation1 + $0x20] ss:$2 sm:$0xff] %v13663_v52  ;;  %v13748_v28 = vld.sshfl [vmem:[#allocation1] sm:$0xff pattern:$0x75316420]  ;;  %v5764_v52 = vadd.f32 %v5688_v23, %v5166_v32  ;;  %v4569_v61 = vadd.f32 %v4495_v30, %v3970_v25  ;;  %v13769_v32 = vrot.slane %v13726_v15, 4 }
 0x79e   : > { %7142 = vst [vmem:[#allocation1 + $0x21] ss:$2 sm:$0xff] %v7048_v20  ;;  %v6491_v34 = vld.sshfl [vmem:[#allocation1 + $0x10] sm:$0xff pattern:$0x75316420] }
 0x79f   : > { %6635 = vst [vmem:[#allocation1] ss:$2 sm:$0xff] %v13704_v35  ;;  %10643 = vmatmul.msk.f32.gmra.mxu1 %vm6492_vm4, %v6491_v34  ;;  %v5167_v25 = vadd.f32 %v5093_v47, %v4569_v61  ;;  %v6309_v23 = vld [vmem:[#allocation4 + $0x38] sm:$0xf]  ;;  %v13779_v47 = vld [vmem:[#allocation4 + $0x60] sm:$0xff] }
 0x7a0   : > { %6636 = vst [vmem:[#allocation1 + $0x1] ss:$2 sm:$0xff] %v6313_v26  ;;  %v5840_v26 = vadd.f32 %v10908_v27, %v5764_v52  ;;  %v7038_v30 = vld [vmem:[#allocation4 + $0x58] sm:$0xf]  ;;  %v7044_v35 = vld [vmem:[#allocation4 + $0x88] sm:$0xf] }
 0x7a1   : > { %6608 = vst [vmem:[#allocation1 + $0x10] ss:$2 sm:$0xff] %v6303_v53  ;;  %v5691_v45 = vpop.f32.mrf.mxu0 }
 0x7a2   : > { %6610 = vst [vmem:[#allocation1 + $0x11] ss:$2 sm:$0xff] %v13542_v13  ;;  %v5912_v34 = vmax.f32 %v5840_v26, 0.0 }
 0x7a3   : > { %v13758_v20 = vld.sshfl [vmem:[#allocation1 + $0x30] sm:$0xff pattern:$0x75316420]  ;;  %5983 = vst [vmem:[#allocation3 + $0x228] sm:$0xff] %v5911_v41  ;;  %v5765_v41 = vadd.f32 %v5691_v45, %v5167_v25  ;;  %v10909_v25 = vld [vmem:[#allocation4 + $0x51] sm:$0xff] }
 0x7a4   : > { %15162 = vst [vmem:[#allocation34_spill] sm:$0xff] %v13758_v20  ;;  %v10910_v20 = vld [vmem:[#allocation4 + $0x81] sm:$0xff] }
 0x7a5   : > { %7106 = vst [vmem:[#allocation1 + $0x30] ss:$2 sm:$0xff] %v13731_v51  ;;  %v13765_v53 = vld.sshfl [vmem:[#allocation1 + $0x20] sm:$0xff pattern:$0x75316420] }
 0x7a6   : > { %7108 = vst [vmem:[#allocation1 + $0x31] ss:$2 sm:$0xff] %v13756_v37 }
 0x7a7   : > { %15163 = vst [vmem:[#allocation35_spill] sm:$0xff] %v13765_v53  ;;  %v13771_v58 = vld.sshfl [vmem:[#allocation1] sm:$0xff pattern:$0x75316420] }
 0x7a8   : > { %7356 = vst [vmem:[#allocation1 + $0x20] ss:$2 sm:$0xff] %v13254_v63  ;;  %v6323_v63 = vld [vmem:[#allocation4 + $0xa8] sm:$0xf] }
 0x7a9   : > { %15164 = vst [vmem:[#allocation36_spill] sm:$0xff] %v13769_v32  ;;  %v6620_v52 = vld.sshfl [vmem:[#allocation1 + $0x10] sm:$0xff pattern:$0x75316420] }
 0x7aa   : > { %7358 = vst [vmem:[#allocation1 + $0x21] ss:$2 sm:$0xff] %v7286_v2  ;;  %10646 = vmatmul.msk.f32.gmra.mxu2 %vm6492_vm4, %v6620_v52  ;;  %v5841_v2 = vadd.f32 %v10908_v27, %v5765_v41  ;;  %v13787_v52 = vld [vmem:[#allocation4 + $0xb0] sm:$0xff] }
 0x7ab   : > { %6647 = vst [vmem:[#allocation1] ss:$2 sm:$0xff] %v13726_v15  ;;  %v7296_v15 = vld [vmem:[#allocation4 + $0x79] sm:$0xf] }
 0x7ac   : > { %6648 = vst [vmem:[#allocation1 + $0x1] ss:$2 sm:$0xff] %v13769_v32 }
 0x7ad   : > { %6625 = vst [vmem:[#allocation1 + $0x10] ss:$2 sm:$0xff] %v13756_v37  ;;  %v13777_v61 = vld.sshfl [vmem:[#allocation1 + $0x30] sm:$0xff pattern:$0x75316420] }
 0x7ae   : > { %6626 = vst [vmem:[#allocation1 + $0x11] ss:$2 sm:$0xff] %v6309_v23  ;;  %v5913_v23 = vmax.f32 %v5841_v2, 0.0  ;;  %v6106_v2 = vld [vmem:[#allocation3 + $0x211] ss:$2 sm:$0xff] }
 0x7af   : > { %5984 = vst [vmem:[#allocation3 + $0x230] sm:$0xff] %v5912_v34  ;;  %v13790_v34 = vrot.slane %v13779_v47, 4 }
 0x7b0   : > { %7119 = vst [vmem:[#allocation1 + $0x30] ss:$2 sm:$0xff] %v7038_v30 }
 0x7b1   : > { %7120 = vst [vmem:[#allocation1 + $0x31] ss:$2 sm:$0xff] %v13779_v47  ;;  %v13782_v26 = vld.sshfl [vmem:[#allocation1 + $0x20] sm:$0xff pattern:$0x75316420] }
 0x7b2   : > { %15165 = vst [vmem:[#allocation37_spill] sm:$0xff] %v13782_v26  ;;  %10647 = vmatmul.msk.f32.gmra.mxu2 %vm6492_vm4, %v13565_v39 }
 0x7b3   : > { %7371 = vst [vmem:[#allocation1 + $0x20] ss:$2 sm:$0xff] %v10909_v25  ;;  %v13785_v45 = vld.sshfl [vmem:[#allocation1] sm:$0xff pattern:$0x75316420]  ;;  %v6775_v25 = vld [vmem:[#allocation4 + $0x2] sm:$0xff] }
 0x7b4   : > { %7372 = vst [vmem:[#allocation1 + $0x21] ss:$2 sm:$0xff] %v13335_v36  ;;  %v6058_v36 = vld [vmem:[#allocation3 + $0x210] ss:$2 sm:$0xff]  ;;  %v6823_v53 = vrot.slane %v6775_v25, 4 }
 0x7b5   : > { %15166 = vst [vmem:[#allocation38_spill] sm:$0xff] %v13787_v52  ;;  %v13793_v27 = vld.sshfl [vmem:[#allocation1 + $0x10] sm:$0xff pattern:$0x75316420]  ;;  %v6227_v39 = vmax.f32 %v6058_v36, %v6106_v2 }
 0x7b6   : > { %6659 = vst [vmem:[#allocation1] ss:$2 sm:$0xff] %v6323_v63  ;;  %v6154_v41 = vld [vmem:[#allocation3 + $0x228] ss:$2 sm:$0xff]  ;;  %v6202_v30 = vld [vmem:[#allocation3 + $0x229] ss:$2 sm:$0xff] }
 0x7b7   : > { %6660 = vst [vmem:[#allocation1 + $0x1] ss:$2 sm:$0xff] %v13787_v52  ;;  %v6251_v51 = vmax.f32 %v6154_v41, %v6202_v30  ;;  %v6060_v41 = vld [vmem:[#allocation3 + $0x220] ss:$2 sm:$0xf] }
 0x7b8   : > { %6637 = vst [vmem:[#allocation1 + $0x10] ss:$2 sm:$0xff] %v13779_v47  ;;  %v13799_v63 = vld.sshfl [vmem:[#allocation1 + $0x30] sm:$0xff pattern:$0x75316420] }
 0x7b9   : > { %6638 = vst [vmem:[#allocation1 + $0x11] ss:$2 sm:$0xff] %v13790_v34  ;;  %v6108_v30 = vld [vmem:[#allocation3 + $0x221] ss:$2 sm:$0xf] }
 0x7ba   : > { %15167 = vst [vmem:[#allocation20_spill] sm:$0xff] %v13799_v63  ;;  %v13806_v63 = vmax.f32 %v6227_v39, %v6251_v51  ;;  %10648 = vmatmul.msk.f32.gmra.mxu2 %vm6492_vm4, %v13621_v29  ;;  %v13826_v39 = vld [vmem:[#allocation4 + $0x32] sm:$0xff] }
 0x7bb   : > { %5985 = vst [vmem:[#allocation3 + $0x238] sm:$0xff] %v5913_v23  ;;  %v13802_v14 = vld.sshfl [vmem:[#allocation1 + $0x20] sm:$0xff pattern:$0x75316420] }
 0x7bc   : > { %7131 = vst [vmem:[#allocation1 + $0x30] ss:$2 sm:$0xff] %v13769_v32 }
 0x7bd   : > { %7132 = vst [vmem:[#allocation1 + $0x31] ss:$2 sm:$0xff] %v7044_v35 }
 0x7be   : > { %7383 = vst [vmem:[#allocation1 + $0x20] ss:$2 sm:$0xff] %v7296_v15  ;;  %v13804_v26 = vld.sshfl [vmem:[#allocation1] sm:$0xff pattern:$0x75316420]  ;;  %v13814_v15 = vrot.slane %v13787_v52, 4 }
 0x7bf   : > { %7384 = vst [vmem:[#allocation1 + $0x21] ss:$2 sm:$0xff] %v10910_v20 }
 0x7c0   : > { %6840 = vst [vmem:[#allocation1] ss:$2 sm:$0xff] %v6775_v25  ;;  %v13810_v23 = vld.sshfl [vmem:[#allocation1 + $0x10] sm:$0xff pattern:$0x75316420]  ;;  %v6228_v25 = vmax.f32 %v6060_v41, %v6108_v30 }
 0x7c1   : > { %6842 = vst [vmem:[#allocation1 + $0x1] ss:$2 sm:$0xff] %v6823_v53  ;;  %v7302_v53 = vld [vmem:[#allocation4 + $0xa9] sm:$0xf] }
 0x7c2   : > { %6649 = vst [vmem:[#allocation1 + $0x10] ss:$2 sm:$0xff] %v6319_v49  ;;  %v6156_v35 = vld [vmem:[#allocation3 + $0x238] ss:$2 sm:$0xf]  ;;  %10649 = vmatmul.msk.f32.gmra.mxu2 %vm6492_vm4, %v13748_v28 }
 0x7c3   : > { %6650 = vst [vmem:[#allocation1 + $0x11] ss:$2 sm:$0xff] %v13584_v12  ;;  %v6204_v36 = vld [vmem:[#allocation3 + $0x239] ss:$2 sm:$0xf] }
 0x7c4   : > { %v13816_v20 = vld.sshfl [vmem:[#allocation1 + $0x30] sm:$0xff pattern:$0x75316420]  ;;  %6300 = vst [vmem:[#allocation4 + $0xc1] sm:$0xff] %v13806_v63  ;;  %v6252_v29 = vmax.f32 %v6156_v35, %v6204_v36  ;;  %v6325_v36 = vld [vmem:[#allocation4 + $0xb8] sm:$0xf] }
 0x7c5   : > { %7143 = vst [vmem:[#allocation1 + $0x30] ss:$2 sm:$0xff] %v13787_v52  ;;  %v6780_v49 = vld [vmem:[#allocation4 + $0x2a] sm:$0xf]  ;;  %v13880_v52 = vld [vmem:[#allocation4 + $0x62] sm:$0xff] }
 0x7c6   : > { %v13820_v51 = vld.sshfl [vmem:[#allocation1 + $0x20] sm:$0xff pattern:$0x75316420]  ;;  %7144 = vst [vmem:[#allocation1 + $0x31] ss:$2 sm:$0xff] %v13814_v15  ;;  %v6276_v32 = vmax.f32 %v6228_v25, %v6252_v29  ;;  %v13839_v29 = vrot.slane %v13706_v11, 4 }
 0x7c7   : > { %15168 = vst [vmem:[#allocation39_spill] sm:$0xff] %v13820_v51  ;;  %v7540_v30 = vld [vmem:[#allocation4 + $0x2a] sm:$0xf] }
 0x7c8   : > { %7395 = vst [vmem:[#allocation1 + $0x20] ss:$2 sm:$0xff] %v13586_v59  ;;  %v6855_v2 = vld.sshfl [vmem:[#allocation1] sm:$0xff pattern:$0x75316420] }
 0x7c9   : > { %7396 = vst [vmem:[#allocation1 + $0x21] ss:$2 sm:$0xff] %v7302_v53  ;;  %10668 = vmatmul.msk.f32.vlgmr.msra.gmra.mxu3 %vm6492_vm4, %v6855_v2  ;;  %v10911_v53 = vld [vmem:[#allocation4 + $0x31] sm:$0xff] }
 0x7ca   : > { %15169 = vst [vmem:[#allocation21_spill] sm:$0xff] %v13826_v39  ;;  %v13830_v35 = vld.sshfl [vmem:[#allocation1 + $0x10] sm:$0xff pattern:$0x75316420]  ;;  %10650 = vmatmul.msk.f32.gmra.mxu2 %vm6492_vm4, %v13793_v27 }
 0x7cb   : > { %6859 = vst [vmem:[#allocation1] ss:$2 sm:$0xff] %v6780_v49  ;;  %v6776_v49 = vld [vmem:[#allocation4 + $0xa] sm:$0xf]  ;;  %v13856_v27 = vld [vmem:[#allocation4 + $0x61] sm:$0xff] }
 0x7cc   : > { %6860 = vst [vmem:[#allocation1 + $0x1] ss:$2 sm:$0xff] %v13826_v39 }
 0x7cd   : > { %6661 = vst [vmem:[#allocation1 + $0x10] ss:$2 sm:$0xff] %v13814_v15  ;;  %v13833_v41 = vld.sshfl [vmem:[#allocation1 + $0x30] sm:$0xff pattern:$0x75316420] }
 0x7ce   : > { %6662 = vst [vmem:[#allocation1 + $0x11] ss:$2 sm:$0xff] %v6325_v36  ;;  %v7292_v36 = vld [vmem:[#allocation4 + $0x59] sm:$0xf] }
 0x7cf   : > { %15170 = vst [vmem:[#allocation40_spill] sm:$0xff] %v13833_v41  ;;  %v6796_v41 = vld [vmem:[#allocation4 + $0xaa] sm:$0xf] }
 0x7d0   : > { %6301 = vst [vmem:[#allocation4 + $0xc9] sm:$0xf] %v6276_v32  ;;  %v13835_v28 = vld.sshfl [vmem:[#allocation1 + $0x20] sm:$0xff pattern:$0x75316420] }
 0x7d1   : > { %7360 = vst [vmem:[#allocation1 + $0x30] ss:$2 sm:$0xff] %v10911_v53  ;;  %v6786_v32 = vld [vmem:[#allocation4 + $0x5a] sm:$0xf] }
 0x7d2   : > { %15171 = vst [vmem:[#allocation22_spill] sm:$0xff] %v13835_v28  ;;  %10651 = vmatmul.msk.f32.gmra.mxu2 %vm6492_vm4, %v13576_v44  ;;  %v6782_v28 = vld [vmem:[#allocation4 + $0x3a] sm:$0xf] }
 0x7d3   : > { %7362 = vst [vmem:[#allocation1 + $0x31] ss:$2 sm:$0xff] %v13284_v19  ;;  %v13844_v25 = vld.sshfl [vmem:[#allocation1] sm:$0xff pattern:$0x75316420] }
 0x7d4   : > { %15172 = vst [vmem:[#allocation41_spill] sm:$0xff] %v13839_v29 }
 0x7d5   : > { %7610 = vst [vmem:[#allocation1 + $0x20] ss:$2 sm:$0xff] %v13681_v60  ;;  %v13847_v2 = vld.sshfl [vmem:[#allocation1 + $0x10] sm:$0xff pattern:$0x75316420] }
 0x7d6   : > { %7612 = vst [vmem:[#allocation1 + $0x21] ss:$2 sm:$0xff] %v7540_v30  ;;  %v13852_v60 = vld [vmem:[#allocation4 + $0x82] sm:$0xff] }
 0x7d7   : > { %6871 = vst [vmem:[#allocation1] ss:$2 sm:$0xff] %v13839_v29  ;;  %v13863_v30 = vrot.slane %v13852_v60, 4 }
 0x7d8   : > { %6872 = vst [vmem:[#allocation1 + $0x1] ss:$2 sm:$0xff] %v6786_v32  ;;  %v13869_v32 = vrot.slane %v13826_v39, 4 }
 0x7d9   : > { %6844 = vst [vmem:[#allocation1 + $0x10] ss:$2 sm:$0xff] %v6776_v49 }
 0x7da   : > { %6846 = vst [vmem:[#allocation1 + $0x11] ss:$2 sm:$0xff] %v13601_v46  ;;  %v13850_v53 = vld.sshfl [vmem:[#allocation1 + $0x30] sm:$0xff pattern:$0x75316420]  ;;  %10652 = vmatmul.msk.f32.gmra.mxu2 %vm6492_vm4, %v13639_v8 }
 0x7db   : > { %15173 = vst [vmem:[#allocation23_spill] sm:$0xff] %v13852_v60  ;;  %v10688_v8 = vld [vmem:[%s14973_s3 + $0x70] sm:$0xff] }
 0x7dc   : > { %7373 = vst [vmem:[#allocation1 + $0x30] ss:$2 sm:$0xff] %v7292_v36 }
 0x7dd   : > { %v13854_v59 = vld.sshfl [vmem:[#allocation1 + $0x20] sm:$0xff pattern:$0x75316420]  ;;  %7374 = vst [vmem:[#allocation1 + $0x31] ss:$2 sm:$0xff] %v13856_v27 }
 0x7de   : > { %7625 = vst [vmem:[#allocation1 + $0x20] ss:$2 sm:$0xff] %v13706_v11  ;;  %v7550_v11 = vld [vmem:[#allocation4 + $0x7a] sm:$0xf] }
 0x7df   : > { %15174 = vst [vmem:[#allocation42_spill] sm:$0xff] %v13863_v30  ;;  %v13866_v49 = vld.sshfl [vmem:[#allocation1] sm:$0xff pattern:$0x75316420] }
 0x7e0   : > { %7626 = vst [vmem:[#allocation1 + $0x21] ss:$2 sm:$0xff] %v13839_v29  ;;  %v7298_v29 = vld [vmem:[#allocation4 + $0x89] sm:$0xf] }
 0x7e1   : > { %6883 = vst [vmem:[#allocation1] ss:$2 sm:$0xff] %v13852_v60  ;;  %v6856_v36 = vld.sshfl [vmem:[#allocation1 + $0x10] sm:$0xff pattern:$0x75316420] }
 0x7e2   : > { %6884 = vst [vmem:[#allocation1 + $0x1] ss:$2 sm:$0xff] %v13863_v30  ;;  %10669 = vmatmul.msk.f32.gmra.mxu3 %vm6492_vm4, %v6856_v36  ;;  %10653 = vmatmul.msk.f32.gmra.mxu2 %vm6492_vm4, %v13771_v58 }
 0x7e3   : > { %6861 = vst [vmem:[#allocation1 + $0x10] ss:$2 sm:$0xff] %v13869_v32 }
 0x7e4   : > { %6862 = vst [vmem:[#allocation1 + $0x11] ss:$2 sm:$0xff] %v6782_v28  ;;  %v13875_v44 = vld.sshfl [vmem:[#allocation1 + $0x30] sm:$0xff pattern:$0x75316420] }
 0x7e5   : > { %7385 = vst [vmem:[#allocation1 + $0x30] ss:$2 sm:$0xff] %v13456_v54  ;;  %v10689_v28 = vld [vmem:[%s14973_s3 + $0x78] sm:$0x1]  ;;  %v13895_v54 = vrot.slane %v13880_v52, 4 }
 0x7e6   : > { %7386 = vst [vmem:[#allocation1 + $0x31] ss:$2 sm:$0xff] %v7298_v29  ;;  %10690 = vmatpush.msk.msra.mxu1 %vm6529_vm3, %v10689_v28  ;;  %v13897_v29 = vld [vmem:[#allocation4 + $0xb2] sm:$0xff]  ;;  %v10687_v28 = vld [vmem:[%s14973_s3 + $0x68] sm:$0xff] }
 0x7e7   : > { %v13882_v51 = vld.sshfl [vmem:[#allocation1 + $0x20] sm:$0xff pattern:$0x75316420]  ;;  %15176 = vst [vmem:[#allocation43_spill] sm:$0xff] %v13897_v29 }
 0x7e8   : > { %15175 = vst [vmem:[#allocation48_spill] sm:$0xff] %v13882_v51  ;;  %7207 = vmatpush.msra.mxu1 %v10688_v8  ;;  %v7556_v8 = vld [vmem:[#allocation4 + $0xaa] sm:$0xf] }
 0x7e9   : > { %7637 = vst [vmem:[#allocation1 + $0x20] ss:$2 sm:$0xff] %v7550_v11  ;;  %v13888_v36 = vld.sshfl [vmem:[#allocation1] sm:$0xff pattern:$0x75316420] }
 0x7ea   : > { %7638 = vst [vmem:[#allocation1 + $0x21] ss:$2 sm:$0xff] %v13852_v60  ;;  %10670 = vmatmul.msk.f32.gmra.mxu3 %vm6492_vm4, %v13630_v0  ;;  %7208 = vmatpush.msra.mxu1 %v10687_v28  ;;  %v6792_v51 = vld [vmem:[#allocation4 + $0x8a] sm:$0xf] }
 0x7eb   : > { %6895 = vst [vmem:[#allocation1] ss:$2 sm:$0xff] %v6796_v41  ;;  %v6868_v11 = vld.sshfl [vmem:[#allocation1 + $0x10] sm:$0xff pattern:$0x75316420]  ;;  %v10686_v41 = vld [vmem:[%s14973_s3 + $0x60] sm:$0xff]  ;;  %10654 = vmatmul.msk.f32.gmra.mxu2 %vm6492_vm4, %v13810_v23 }
 0x7ec   : > { %6896 = vst [vmem:[#allocation1 + $0x1] ss:$2 sm:$0xff] %v13897_v29  ;;  %7209 = vmatpush.msra.mxu1 %v10686_v41 }
 0x7ed   : > { %6873 = vst [vmem:[#allocation1 + $0x10] ss:$2 sm:$0xff] %v13880_v52  ;;  %v13910_v60 = vld.sshfl [vmem:[#allocation1 + $0x30] sm:$0xff pattern:$0x75316420] }
 0x7ee   : > { %6874 = vst [vmem:[#allocation1 + $0x11] ss:$2 sm:$0xff] %v13895_v54 }
 0x7ef   : > { %7397 = vst [vmem:[#allocation1 + $0x30] ss:$2 sm:$0xff] %v13686_v31  ;;  %v15177_v31 = vrot.slane %v13542_v13, 4 }
 0x7f0   : > { %7398 = vst [vmem:[#allocation1 + $0x31] ss:$2 sm:$0xff] %v13693_v22 }
 0x7f1   : > { %v13915_v0 = vld.sshfl [vmem:[#allocation1 + $0x20] sm:$0xff pattern:$0x75316420] }
 0x7f2   : > { %7649 = vst [vmem:[#allocation1 + $0x20] ss:$2 sm:$0xff] %v13738_v50  ;;  %10671 = vmatmul.msk.f32.gmra.mxu3 %vm6492_vm4, %v13701_v56  ;;  %v7034_v56 = vld [vmem:[#allocation4 + $0x38] sm:$0xf] }
 0x7f3   : > { %7650 = vst [vmem:[#allocation1 + $0x21] ss:$2 sm:$0xff] %v7556_v8  ;;  %v13919_v28 = vld.sshfl [vmem:[#allocation1] sm:$0xff pattern:$0x75316420]  ;;  %10655 = vmatmul.msk.f32.gmra.mxu2 %vm6492_vm4, %v13592_v4 }
 0x7f4   : > { %7094 = vst [vmem:[#allocation1] ss:$2 sm:$0xff] %v13542_v13  ;;  %v7795_v50 = vld [vmem:[#allocation4 + $0x38] sm:$0xf] }
 0x7f5   : > { %v13924_v58 = vld.sshfl [vmem:[#allocation1 + $0x10] sm:$0xff pattern:$0x75316420]  ;;  %7096 = vst [vmem:[#allocation1 + $0x1] ss:$2 sm:$0xff] %v15177_v31 }
 0x7f6   : > { %6885 = vst [vmem:[#allocation1 + $0x10] ss:$2 sm:$0xff] %v6792_v51  ;;  %v13941_v51 = vrot.slane %v13897_v29, 4  ;;  %v6798_v31 = vld [vmem:[#allocation4 + $0xba] sm:$0xf] }
 0x7f7   : > { %6886 = vst [vmem:[#allocation1 + $0x11] ss:$2 sm:$0xff] %v13652_v40  ;;  %v13931_v41 = vld.sshfl [vmem:[#allocation1 + $0x30] sm:$0xff pattern:$0x75316420] }
 0x7f8   : > { %7614 = vst [vmem:[#allocation1 + $0x30] ss:$2 sm:$0xff] %v13826_v39  ;;  %v7040_v39 = vld [vmem:[#allocation4 + $0x68] sm:$0xf] }
 0x7f9   : > { %7616 = vst [vmem:[#allocation1 + $0x31] ss:$2 sm:$0xff] %v13869_v32 }
 0x7fa   : > { %v13934_v8 = vld.sshfl [vmem:[#allocation1 + $0x20] sm:$0xff pattern:$0x75316420]  ;;  %10672 = vmatmul.msk.f32.gmra.mxu3 %vm6492_vm4, %v13844_v25 }
 0x7fb   : > { %15178 = vst [vmem:[#allocation49_spill] sm:$0xff] %v13934_v8  ;;  %10656 = vmatmul.msk.f32.gmra.mxu2 %vm6492_vm4, %v13665_v17 }
 0x7fc   : > { %7865 = vst [vmem:[#allocation1 + $0x20] ss:$2 sm:$0xff] %v13756_v37  ;;  %v7109_v13 = vld.sshfl [vmem:[#allocation1] sm:$0xff pattern:$0x75316420] }
 0x7fd   : > { %7867 = vst [vmem:[#allocation1 + $0x21] ss:$2 sm:$0xff] %v7795_v50  ;;  %10691 = vmatmul.msk.f32.vlgmr.msra.gmra.mxu1 %vm6492_vm4, %v7109_v13  ;;  %v7546_v50 = vld [vmem:[#allocation4 + $0x5a] sm:$0xf] }
 0x7fe   : > { %7113 = vst [vmem:[#allocation1] ss:$2 sm:$0xff] %v7034_v56  ;;  %v13944_v23 = vld.sshfl [vmem:[#allocation1 + $0x10] sm:$0xff pattern:$0x75316420] }
 0x7ff   : > { %7114 = vst [vmem:[#allocation1 + $0x1] ss:$2 sm:$0xff] %v13559_v5  ;;  %v7030_v13 = vld [vmem:[#allocation4 + $0x18] sm:$0xf] }
 0x800   : > { %6897 = vst [vmem:[#allocation1 + $0x10] ss:$2 sm:$0xff] %v13941_v51  ;;  %v13950_v37 = vld.sshfl [vmem:[#allocation1 + $0x30] sm:$0xff pattern:$0x75316420] }
 0x801   : > { %6898 = vst [vmem:[#allocation1 + $0x11] ss:$2 sm:$0xff] %v6798_v31  ;;  %v7805_v31 = vld [vmem:[#allocation4 + $0x88] sm:$0xf] }
 0x802   : > { %7627 = vst [vmem:[#allocation1 + $0x30] ss:$2 sm:$0xff] %v7546_v50  ;;  %10673 = vmatmul.msk.f32.gmra.mxu3 %vm6492_vm4, %v6868_v11  ;;  %v7036_v50 = vld [vmem:[#allocation4 + $0x48] sm:$0xf] }
 0x803   : > { %7628 = vst [vmem:[#allocation1 + $0x31] ss:$2 sm:$0xff] %v13880_v52  ;;  %10657 = vmatmul.msk.f32.gmra.mxu2 %vm6492_vm4, %v13785_v45  ;;  %v7050_v45 = vld [vmem:[#allocation4 + $0xb8] sm:$0xf] }
 0x804   : > { %v13953_v25 = vld.sshfl [vmem:[#allocation1 + $0x20] sm:$0xff pattern:$0x75316420] }
 0x805   : > { %7880 = vst [vmem:[#allocation1 + $0x20] ss:$2 sm:$0xff] %v13779_v47  ;;  %v7552_v47 = vld [vmem:[#allocation4 + $0x8a] sm:$0xf] }
 0x806   : > { %v13957_v56 = vld.sshfl [vmem:[#allocation1] sm:$0xff pattern:$0x75316420]  ;;  %7881 = vst [vmem:[#allocation1 + $0x21] ss:$2 sm:$0xff] %v13790_v34 }
 0x807   : > { %7125 = vst [vmem:[#allocation1] ss:$2 sm:$0xff] %v13790_v34 }
 0x808   : > { %v13961_v4 = vld.sshfl [vmem:[#allocation1 + $0x10] sm:$0xff pattern:$0x75316420]  ;;  %7126 = vst [vmem:[#allocation1 + $0x1] ss:$2 sm:$0xff] %v7040_v39 }
 0x809   : > { %7098 = vst [vmem:[#allocation1 + $0x10] ss:$2 sm:$0xff] %v7030_v13  ;;  %v13984_v13 = vpop.f32.mrf.mxu1 }
 0x80a   : > { %7100 = vst [vmem:[#allocation1 + $0x11] ss:$2 sm:$0xff] %v13599_v57  ;;  %v13966_v11 = vld.sshfl [vmem:[#allocation1 + $0x30] sm:$0xff pattern:$0x75316420]  ;;  %10674 = vmatmul.msk.f32.gmra.mxu3 %vm6492_vm4, %v13644_v16 }
 0x80b   : > { %7639 = vst [vmem:[#allocation1 + $0x30] ss:$2 sm:$0xff] %v13863_v30  ;;  %10658 = vmatmul.msk.f32.gmra.mxu2 %vm6492_vm4, %v13830_v35 }
 0x80c   : > { %7640 = vst [vmem:[#allocation1 + $0x31] ss:$2 sm:$0xff] %v7552_v47  ;;  %v7811_v47 = vld [vmem:[#allocation4 + $0xb8] sm:$0xf] }
 0x80d   : > { %v13971_v34 = vld.sshfl [vmem:[#allocation1 + $0x20] sm:$0xff pattern:$0x75316420] }
 0x80e   : > { %7892 = vst [vmem:[#allocation1 + $0x20] ss:$2 sm:$0xff] %v7805_v31 }
 0x80f   : > { %v13973_v39 = vld.sshfl [vmem:[#allocation1] sm:$0xff pattern:$0x75316420]  ;;  %7893 = vst [vmem:[#allocation1 + $0x21] ss:$2 sm:$0xff] %v13584_v12 }
 0x810   : > { %7137 = vst [vmem:[#allocation1] ss:$2 sm:$0xff] %v13584_v12 }
 0x811   : > { %v7110_v17 = vld.sshfl [vmem:[#allocation1 + $0x10] sm:$0xff pattern:$0x75316420]  ;;  %7138 = vst [vmem:[#allocation1 + $0x1] ss:$2 sm:$0xff] %v13590_v18 }
 0x812   : > { %7115 = vst [vmem:[#allocation1 + $0x10] ss:$2 sm:$0xff] %v13563_v7  ;;  %10692 = vmatmul.msk.f32.gmra.mxu1 %vm6492_vm4, %v7110_v17  ;;  %10675 = vmatmul.msk.f32.gmra.mxu3 %vm6492_vm4, %v13720_v33  ;;  %v13997_v17 = vld [vmem:[#allocation4 + $0xc0] sm:$0xff] }
 0x813   : > { %7116 = vst [vmem:[#allocation1 + $0x11] ss:$2 sm:$0xff] %v7036_v50  ;;  %v13982_v16 = vld.sshfl [vmem:[#allocation1 + $0x30] sm:$0xff pattern:$0x75316420]  ;;  %10659 = vmatmul.msk.f32.gmra.mxu2 %vm6492_vm4, %v13610_v10 }
 0x814   : > { %7651 = vst [vmem:[#allocation1 + $0x30] ss:$2 sm:$0xff] %v13897_v29  ;;  %v10913_v29 = vld [vmem:[#allocation4 + $0x11] sm:$0xff] }
 0x815   : > { %7652 = vst [vmem:[#allocation1 + $0x31] ss:$2 sm:$0xff] %v13941_v51 }
 0x816   : > { %v13990_v12 = vld.sshfl [vmem:[#allocation1 + $0x20] sm:$0xff pattern:$0x75316420] }
 0x817   : > { %15179 = vst [vmem:[#allocation44_spill] sm:$0xff] %v13990_v12 }
 0x818   : > { %7904 = vst [vmem:[#allocation1 + $0x20] ss:$2 sm:$0xff] %v13814_v15  ;;  %v13993_v31 = vld.sshfl [vmem:[#allocation1] sm:$0xff pattern:$0x75316420]  ;;  %v14009_v15 = vpop.f32.mrf.mxu1 }
 0x819   : > { %7905 = vst [vmem:[#allocation1 + $0x21] ss:$2 sm:$0xff] %v7811_v47  ;;  %v7046_v47 = vld [vmem:[#allocation4 + $0x98] sm:$0xf] }
 0x81a   : > { %7149 = vst [vmem:[#allocation1] ss:$2 sm:$0xff] %v7050_v45  ;;  %v7122_v50 = vld.sshfl [vmem:[#allocation1 + $0x10] sm:$0xff pattern:$0x75316420]  ;;  %10693 = vmatmul.msk.f32.gmra.mxu1 %vm6492_vm4, %v13708_v24  ;;  %10676 = vmatmul.msk.f32.gmra.mxu3 %vm6492_vm4, %v13866_v49 }
 0x81b   : > { %7150 = vst [vmem:[#allocation1 + $0x1] ss:$2 sm:$0xff] %v13997_v17  ;;  %v8049_v45 = vld [vmem:[#allocation4 + $0x39] sm:$0xf]  ;;  %10660 = vmatmul.msk.f32.gmra.mxu2 %vm6492_vm4, %v13683_v42 }
 0x81c   : > { %7127 = vst [vmem:[#allocation1 + $0x10] ss:$2 sm:$0xff] %v13578_v3  ;;  %v14004_v33 = vld.sshfl [vmem:[#allocation1 + $0x30] sm:$0xff pattern:$0x75316420] }
 0x81d   : > { %7128 = vst [vmem:[#allocation1 + $0x11] ss:$2 sm:$0xff] %v13637_v55 }
 0x81e   : > { %15180 = vst [vmem:[#allocation50_spill] sm:$0xff] %v14004_v33  ;;  %v10733_v33 = vld [vmem:[%s14973_s3 + $0xa8] sm:$0xff] }
 0x81f   : > { %7869 = vst [vmem:[#allocation1 + $0x30] ss:$2 sm:$0xff] %v13559_v5 }
 0x820   : > { %7871 = vst [vmem:[#allocation1 + $0x31] ss:$2 sm:$0xff] %v13563_v7  ;;  %v14012_v35 = vld.sshfl [vmem:[#allocation1 + $0x20] sm:$0xff pattern:$0x75316420]  ;;  %v15182_v7 = vrot.slane %v13222_v43, 4  ;;  %v14030_v49 = vpop.f32.mrf.mxu1 }
 0x821   : > { %15181 = vst [vmem:[#allocation45_spill] sm:$0xff] %v14012_v35  ;;  %v7288_v43 = vld [vmem:[#allocation4 + $0x39] sm:$0xf]  ;;  %v7294_v35 = vld [vmem:[#allocation4 + $0x69] sm:$0xf] }
 0x822   : > { %8119 = vst [vmem:[#allocation1 + $0x20] ss:$2 sm:$0xff] %v13284_v19  ;;  %v14017_v24 = vld.sshfl [vmem:[#allocation1] sm:$0xff pattern:$0x75316420]  ;;  %10694 = vmatmul.msk.f32.gmra.mxu1 %vm6492_vm4, %v13777_v61  ;;  %10677 = vmatmul.msk.f32.gmra.mxu3 %vm6492_vm4, %v13924_v58  ;;  %v7088_v58 = vrot.slane %v13997_v17, 4 }
 0x823   : > { %8121 = vst [vmem:[#allocation1 + $0x21] ss:$2 sm:$0xff] %v8049_v45  ;;  %v7801_v19 = vld [vmem:[#allocation4 + $0x68] sm:$0xf]  ;;  %10661 = vmatmul.msk.f32.gmra.mxu2 %vm6492_vm4, %v13804_v26  ;;  %v7284_v26 = vld [vmem:[#allocation4 + $0x19] sm:$0xf] }
 0x824   : > { %7348 = vst [vmem:[#allocation1] ss:$2 sm:$0xff] %v10913_v29  ;;  %v14021_v5 = vld.sshfl [vmem:[#allocation1 + $0x10] sm:$0xff pattern:$0x75316420] }
 0x825   : > { %7350 = vst [vmem:[#allocation1 + $0x1] ss:$2 sm:$0xff] %v15182_v7  ;;  %v10712_v7 = vld [vmem:[%s14973_s3 + $0x98] sm:$0x1] }
 0x826   : > { %7139 = vst [vmem:[#allocation1 + $0x10] ss:$2 sm:$0xff] %v7046_v47  ;;  %v10914_v47 = vld [vmem:[#allocation4 + $0x41] sm:$0xff]  ;;  %10713 = vmatpush.msk.msra.mxu2 %vm6529_vm3, %v10712_v7 }
 0x827   : > { %7140 = vst [vmem:[#allocation1 + $0x11] ss:$2 sm:$0xff] %v13650_v48  ;;  %v14028_v10 = vld.sshfl [vmem:[#allocation1 + $0x30] sm:$0xff pattern:$0x75316420] }
 0x828   : > { %7882 = vst [vmem:[#allocation1 + $0x30] ss:$2 sm:$0xff] %v7801_v19  ;;  %v14046_v42 = vpop.f32.mrf.mxu1  ;;  %v14056_v19 = vpop.f32.mrf.mxu2 }
 0x829   : > { %7883 = vst [vmem:[#allocation1 + $0x31] ss:$2 sm:$0xff] %v13578_v3  ;;  %v7052_v3 = vld [vmem:[#allocation4 + $0xc8] sm:$0xf] }
 0x82a   : > { %v14035_v61 = vld.sshfl [vmem:[#allocation1 + $0x20] sm:$0xff pattern:$0x75316420]  ;;  %10695 = vmatmul.msk.f32.gmra.mxu1 %vm6492_vm4, %v13957_v56  ;;  %10678 = vmatmul.msk.f32.gmra.mxu3 %vm6492_vm4, %v13671_v9 }
 0x82b   : > { %15183 = vst [vmem:[#allocation51_spill] sm:$0xff] %v14035_v61  ;;  %v7807_v56 = vld [vmem:[#allocation4 + $0x98] sm:$0xf]  ;;  %10662 = vmatmul.msk.f32.gmra.mxu2 %vm6492_vm4, %v13847_v2 }
 0x82c   : > { %8134 = vst [vmem:[#allocation1 + $0x20] ss:$2 sm:$0xff] %v13856_v27  ;;  %v7363_v29 = vld.sshfl [vmem:[#allocation1] sm:$0xff pattern:$0x75316420] }
 0x82d   : > { %8135 = vst [vmem:[#allocation1 + $0x21] ss:$2 sm:$0xff] %v13368_v62  ;;  %v8315_v61 = vld [vmem:[#allocation4 + $0x9a] sm:$0xf] }
 0x82e   : > { %7367 = vst [vmem:[#allocation1] ss:$2 sm:$0xff] %v7288_v43  ;;  %v14042_v45 = vld.sshfl [vmem:[#allocation1 + $0x10] sm:$0xff pattern:$0x75316420] }
 0x82f   : > { %7368 = vst [vmem:[#allocation1 + $0x1] ss:$2 sm:$0xff] %v10914_v47  ;;  %v8059_v43 = vld [vmem:[#allocation4 + $0x89] sm:$0xf] }
 0x830   : > { %7151 = vst [vmem:[#allocation1 + $0x10] ss:$2 sm:$0xff] %v7088_v58  ;;  %v14048_v27 = vld.sshfl [vmem:[#allocation1 + $0x30] sm:$0xff pattern:$0x75316420]  ;;  %v14075_v7 = vpop.f32.mrf.mxu1 }
 0x831   : > { %7152 = vst [vmem:[#allocation1 + $0x11] ss:$2 sm:$0xff] %v7052_v3 }
 0x832   : > { %7894 = vst [vmem:[#allocation1 + $0x30] ss:$2 sm:$0xff] %v13590_v18  ;;  %10696 = vmatmul.msk.f32.gmra.mxu1 %vm6492_vm4, %v7122_v50  ;;  %v10711_v18 = vld [vmem:[%s14973_s3 + $0x90] sm:$0xff]  ;;  %v10710_v50 = vld [vmem:[%s14973_s3 + $0x88] sm:$0xff]  ;;  %10679 = vmatmul.msk.f32.gmra.mxu3 %vm6492_vm4, %v13740_v6  ;;  %v14090_v6 = vpop.f32.mrf.mxu2 }
 0x833   : > { %7895 = vst [vmem:[#allocation1 + $0x31] ss:$2 sm:$0xff] %v7807_v56  ;;  %7461 = vmatpush.msra.mxu2 %v10711_v18  ;;  %v10916_v18 = vld [vmem:[#allocation4 + $0x91] sm:$0xff] }
 0x834   : > { %v14060_v9 = vld.sshfl [vmem:[#allocation1 + $0x20] sm:$0xff pattern:$0x75316420] }
 0x835   : > { %15184 = vst [vmem:[#allocation46_spill] sm:$0xff] %v14060_v9  ;;  %7462 = vmatpush.msra.mxu2 %v10710_v50  ;;  %v7290_v50 = vld [vmem:[#allocation4 + $0x49] sm:$0xf] }
 0x836   : > { %v14062_v3 = vld.sshfl [vmem:[#allocation1] sm:$0xff pattern:$0x75316420]  ;;  %8146 = vst [vmem:[#allocation1 + $0x20] ss:$2 sm:$0xff] %v8059_v43  ;;  %v14077_v43 = vld [vmem:[#allocation4 + $0x21] sm:$0xff] }
 0x837   : > { %7379 = vst [vmem:[#allocation1] ss:$2 sm:$0xff] %v13368_v62  ;;  %v10709_v62 = vld [vmem:[%s14973_s3 + $0x80] sm:$0xff] }
 0x838   : > { %7380 = vst [vmem:[#allocation1 + $0x1] ss:$2 sm:$0xff] %v7294_v35  ;;  %v14068_v56 = vld.sshfl [vmem:[#allocation1 + $0x10] sm:$0xff pattern:$0x75316420]  ;;  %7463 = vmatpush.msra.mxu2 %v10709_v62  ;;  %v14097_v9 = vpop.f32.mrf.mxu1 }
 0x839   : > { %7352 = vst [vmem:[#allocation1 + $0x10] ss:$2 sm:$0xff] %v7284_v26  ;;  %10714 = vmatmul.msk.f32.vlgmr.msra.gmra.mxu2 %vm6492_vm4, %v7363_v29 }
 0x83a   : > { %7354 = vst [vmem:[#allocation1 + $0x11] ss:$2 sm:$0xff] %v14077_v43  ;;  %v14085_v35 = vld.sshfl [vmem:[#allocation1 + $0x30] sm:$0xff pattern:$0x75316420]  ;;  %10697 = vmatmul.msk.f32.gmra.mxu1 %vm6492_vm4, %v13724_v38  ;;  %10680 = vmatmul.msk.f32.gmra.mxu3 %vm6492_vm4, %v13888_v36  ;;  %v14108_v62 = vpop.f32.mrf.mxu2 }
 0x83b   : > { %15185 = vst [vmem:[#allocation52_spill] sm:$0xff] %v14085_v35  ;;  %v8065_v36 = vld [vmem:[#allocation4 + $0xb9] sm:$0xf]  ;;  %v15193_v35 = vrot.slane %v13601_v46, 4 }
 0x83c   : > { %8147 = vst [vmem:[#allocation1 + $0x21] ss:$2 sm:$0xff] %v10916_v18 }
 0x83d   : > { %7906 = vst [vmem:[#allocation1 + $0x30] ss:$2 sm:$0xff] %v13997_v17 }
 0x83e   : > { %7907 = vst [vmem:[#allocation1 + $0x31] ss:$2 sm:$0xff] %v7088_v58  ;;  %v15188_v58 = vld [vmem:[#allocation20_spill] sm:$0xff] }
 0x83f   : > { %v14092_v26 = vld.sshfl [vmem:[#allocation1] sm:$0xff pattern:$0x75316420] }
 0x840   : > { %7391 = vst [vmem:[#allocation1] ss:$2 sm:$0xff] %v10916_v18  ;;  %v7304_v18 = vld [vmem:[#allocation4 + $0xb9] sm:$0xf]  ;;  %v14115_v29 = vpop.f32.mrf.mxu1 }
 0x841   : > { %7392 = vst [vmem:[#allocation1 + $0x1] ss:$2 sm:$0xff] %v13521_v1  ;;  %v7364_v2 = vld.sshfl [vmem:[#allocation1 + $0x10] sm:$0xff pattern:$0x75316420] }
 0x842   : > { %7369 = vst [vmem:[#allocation1 + $0x10] ss:$2 sm:$0xff] %v13311_v21  ;;  %10698 = vmatmul.msk.f32.gmra.mxu1 %vm6492_vm4, %v15188_v58  ;;  %10681 = vmatmul.msk.f32.gmra.mxu3 %vm6492_vm4, %v13944_v23  ;;  %v14126_v23 = vpop.f32.mrf.mxu2 }
 0x843   : > { %v14100_v17 = vld.sshfl [vmem:[#allocation1 + $0x20] sm:$0xff pattern:$0x75316420]  ;;  %7370 = vst [vmem:[#allocation1 + $0x11] ss:$2 sm:$0xff] %v7290_v50  ;;  %10715 = vmatmul.msk.f32.gmra.mxu2 %vm6492_vm4, %v7364_v2  ;;  %v15189_v50 = vld [vmem:[#allocation9_spill] sm:$0xff] }
 0x844   : > { %15186 = vst [vmem:[#allocation47_spill] sm:$0xff] %v14100_v17  ;;  %v15192_v17 = vld [vmem:[#allocation28_spill] sm:$0xff] }
 0x845   : > { %v14103_v38 = vld.sshfl [vmem:[#allocation1 + $0x30] sm:$0xff pattern:$0x75316420]  ;;  %8158 = vst [vmem:[#allocation1 + $0x20] ss:$2 sm:$0xff] %v13693_v22 }
 0x846   : > { %15187 = vst [vmem:[#allocation53_spill] sm:$0xff] %v14103_v38 }
 0x847   : > { %8123 = vst [vmem:[#allocation1 + $0x30] ss:$2 sm:$0xff] %v10914_v47  ;;  %v10917_v47 = vld [vmem:[#allocation4 + $0x71] sm:$0xff] }
 0x848   : > { %8125 = vst [vmem:[#allocation1 + $0x31] ss:$2 sm:$0xff] %v13311_v21  ;;  %v14111_v30 = vld.sshfl [vmem:[#allocation1] sm:$0xff pattern:$0x75316420]  ;;  %v14135_v38 = vpop.f32.mrf.mxu1 }
 0x849   : > { %8159 = vst [vmem:[#allocation1 + $0x21] ss:$2 sm:$0xff] %v8065_v36  ;;  %v8055_v21 = vld [vmem:[#allocation4 + $0x69] sm:$0xf] }
 0x84a   : > { %7403 = vst [vmem:[#allocation1] ss:$2 sm:$0xff] %v7304_v18  ;;  %v14118_v22 = vld.sshfl [vmem:[#allocation1 + $0x10] sm:$0xff pattern:$0x75316420]  ;;  %10699 = vmatmul.msk.f32.gmra.mxu1 %vm6492_vm4, %v13973_v39  ;;  %10682 = vmatmul.msk.f32.gmra.mxu3 %vm6492_vm4, %v15192_v17 }
 0x84b   : > { %7404 = vst [vmem:[#allocation1 + $0x1] ss:$2 sm:$0xff] %v13806_v63  ;;  %v8303_v18 = vld [vmem:[#allocation4 + $0x3a] sm:$0xf]  ;;  %v14144_v17 = vld [vmem:[#allocation4 + $0xa1] sm:$0xff] }
 0x84c   : > { %7381 = vst [vmem:[#allocation1 + $0x10] ss:$2 sm:$0xff] %v10917_v47  ;;  %v7300_v39 = vld [vmem:[#allocation4 + $0x99] sm:$0xf] }
 0x84d   : > { %7382 = vst [vmem:[#allocation1 + $0x11] ss:$2 sm:$0xff] %v15189_v50 }
 0x84f   : > { %v14124_v58 = vld.sshfl [vmem:[#allocation1 + $0x30] sm:$0xff pattern:$0x75316420] }
 0x850   : > { %15190 = vst [vmem:[#allocation20_spill] sm:$0xff] %v14124_v58  ;;  %v14128_v36 = vld.sshfl [vmem:[#allocation1 + $0x20] sm:$0xff pattern:$0x75316420]  ;;  %v8313_v58 = vld [vmem:[#allocation4 + $0x8a] sm:$0xf] }
 0x851   : > { %8136 = vst [vmem:[#allocation1 + $0x30] ss:$2 sm:$0xff] %v8055_v21 }
 0x852   : > { %15191 = vst [vmem:[#allocation9_spill] sm:$0xff] %v14128_v36  ;;  %v14133_v2 = vld.sshfl [vmem:[#allocation1] sm:$0xff pattern:$0x75316420]  ;;  %10700 = vmatmul.msk.f32.gmra.mxu1 %vm6492_vm4, %v14021_v5  ;;  %v7342_v5 = vrot.slane %v13806_v63, 4 }
 0x853   : > { %8137 = vst [vmem:[#allocation1 + $0x31] ss:$2 sm:$0xff] %v10917_v47  ;;  %v15194_v47 = vld [vmem:[#allocation37_spill] sm:$0xff]  ;;  %v8061_v36 = vld [vmem:[#allocation4 + $0x99] sm:$0xf] }
 0x854   : > { %8373 = vst [vmem:[#allocation1 + $0x20] ss:$2 sm:$0xff] %v13869_v32  ;;  %v14140_v21 = vld.sshfl [vmem:[#allocation1 + $0x10] sm:$0xff pattern:$0x75316420]  ;;  %10716 = vmatmul.msk.f32.gmra.mxu2 %vm6492_vm4, %v15194_v47  ;;  %v14149_v32 = vpop.f32.mrf.mxu2  ;;  %v14159_v47 = vpop.f32.mrf.mxu1 }
 0x855   : > { %8375 = vst [vmem:[#allocation1 + $0x21] ss:$2 sm:$0xff] %v8303_v18 }
 0x856   : > { %7602 = vst [vmem:[#allocation1] ss:$2 sm:$0xff] %v13601_v46  ;;  %v15196_v46 = vld [vmem:[#allocation34_spill] sm:$0xff] }
 0x857   : > { %7604 = vst [vmem:[#allocation1 + $0x1] ss:$2 sm:$0xff] %v15193_v35  ;;  %10683 = vmatmul.msk.f32.gmra.mxu3 %vm6492_vm4, %v15196_v46  ;;  %v7306_v46 = vld [vmem:[#allocation4 + $0xc9] sm:$0xf] }
 0x858   : > { %7393 = vst [vmem:[#allocation1 + $0x10] ss:$2 sm:$0xff] %v7300_v39  ;;  %v7542_v39 = vld [vmem:[#allocation4 + $0x3a] sm:$0xf] }
 0x859   : > { %7394 = vst [vmem:[#allocation1 + $0x11] ss:$2 sm:$0xff] %v14144_v17 }
 0x85a   : > { %v14151_v18 = vld.sshfl [vmem:[#allocation1 + $0x30] sm:$0xff pattern:$0x75316420] }
 0x85b   : > { %15195 = vst [vmem:[#allocation28_spill] sm:$0xff] %v14151_v18 }
 0x85c   : > { %8148 = vst [vmem:[#allocation1 + $0x30] ss:$2 sm:$0xff] %v13521_v1  ;;  %v14156_v35 = vld.sshfl [vmem:[#allocation1 + $0x20] sm:$0xff pattern:$0x75316420]  ;;  %10717 = vmatmul.msk.f32.gmra.mxu2 %vm6492_vm4, %v13850_v53  ;;  %v10734_v53 = vld [vmem:[%s14973_s3 + $0xb0] sm:$0xff] }
 0x85d   : > { %8149 = vst [vmem:[#allocation1 + $0x31] ss:$2 sm:$0xff] %v8061_v36  ;;  %v15198_v1 = vld [vmem:[#allocation24_spill] sm:$0xff] }
 0x85e   : > { %15197 = vst [vmem:[#allocation37_spill] sm:$0xff] %v14156_v35  ;;  %v14161_v12 = vld.sshfl [vmem:[#allocation1] sm:$0xff pattern:$0x75316420]  ;;  %v15199_v35 = vld [vmem:[#allocation33_spill] sm:$0xff] }
 0x85f   : > { %8388 = vst [vmem:[#allocation1 + $0x20] ss:$2 sm:$0xff] %v13880_v52  ;;  %v10735_v52 = vld [vmem:[%s14973_s3 + $0xb8] sm:$0x1]  ;;  %10701 = vmatmul.msk.f32.gmra.mxu1 %vm6492_vm4, %v15199_v35  ;;  %10684 = vmatmul.msk.f32.gmra.mxu3 %vm6492_vm4, %v13919_v28  ;;  %v7548_v28 = vld [vmem:[#allocation4 + $0x6a] sm:$0xf] }
 0x860   : > { %8389 = vst [vmem:[#allocation1 + $0x21] ss:$2 sm:$0xff] %v13895_v54  ;;  %v14168_v36 = vld.sshfl [vmem:[#allocation1 + $0x10] sm:$0xff pattern:$0x75316420]  ;;  %10736 = vmatpush.msk.msrb.mxu3 %vm6529_vm3, %v10735_v52  ;;  %v10732_v52 = vld [vmem:[%s14973_s3 + $0xa0] sm:$0xff] }
 0x861   : > { %7621 = vst [vmem:[#allocation1] ss:$2 sm:$0xff] %v7542_v39  ;;  %v14179_v39 = vpop.f32.mrf.mxu2 }
 0x862   : > { %7622 = vst [vmem:[#allocation1 + $0x1] ss:$2 sm:$0xff] %v15198_v1  ;;  %7715 = vmatpush.msrb.mxu3 %v10734_v53 }
 0x863   : > { %7405 = vst [vmem:[#allocation1 + $0x10] ss:$2 sm:$0xff] %v7342_v5 }
 0x864   : > { %7406 = vst [vmem:[#allocation1 + $0x11] ss:$2 sm:$0xff] %v7306_v46  ;;  %v14181_v18 = vld.sshfl [vmem:[#allocation1 + $0x30] sm:$0xff pattern:$0x75316420]  ;;  %v14191_v46 = vpop.f32.mrf.mxu1  ;;  %7716 = vmatpush.msrb.mxu3 %v10733_v33  ;;  %10718 = vmatmul.msk.f32.gmra.mxu2 %vm6492_vm4, %v14062_v3  ;;  %v6725_v3 = vadd.f32 %v14090_v6, %v14009_v15  ;;  %v15206_v6 = vld [vmem:[#allocation15_spill] sm:$0xff] }
 0x865   : > { %15200 = vst [vmem:[#allocation34_spill] sm:$0xff] %v14181_v18  ;;  %v14198_v18 = vpop.f32.mrf.mxu3 }
 0x866   : > { %8160 = vst [vmem:[#allocation1 + $0x30] ss:$2 sm:$0xff] %v13806_v63  ;;  %v7538_v63 = vld [vmem:[#allocation4 + $0x1a] sm:$0xf]  ;;  %7717 = vmatpush.msrb.mxu3 %v10732_v52  ;;  %v15204_v52 = vld [vmem:[#allocation25_spill] sm:$0xff] }
 0x867   : > { %8161 = vst [vmem:[#allocation1 + $0x31] ss:$2 sm:$0xff] %v7342_v5  ;;  %v14189_v35 = vld.sshfl [vmem:[#allocation1 + $0x20] sm:$0xff pattern:$0x75316420]  ;;  %10702 = vmatmul.msk.f32.gmra.mxu1 %vm6492_vm4, %v13816_v20  ;;  %10685 = vmatmul.msk.f32.gmra.mxu3 %vm6492_vm4, %v13961_v4 }
 0x868   : > { %15201 = vst [vmem:[#allocation24_spill] sm:$0xff] %v14189_v35  ;;  %v15202_v5 = vld [vmem:[#allocation27_spill] sm:$0xff] }
 0x869   : > { %8400 = vst [vmem:[#allocation1 + $0x20] ss:$2 sm:$0xff] %v8313_v58  ;;  %v14196_v53 = vld.sshfl [vmem:[#allocation1] sm:$0xff pattern:$0x75316420]  ;;  %v14208_v58 = vpop.f32.mrf.mxu2 }
 0x86a   : > { %8401 = vst [vmem:[#allocation1 + $0x21] ss:$2 sm:$0xff] %v13652_v40 }
 0x86b   : > { %7633 = vst [vmem:[#allocation1] ss:$2 sm:$0xff] %v13895_v54  ;;  %v14204_v33 = vld.sshfl [vmem:[#allocation1 + $0x10] sm:$0xff pattern:$0x75316420] }
 0x86c   : > { %7634 = vst [vmem:[#allocation1 + $0x1] ss:$2 sm:$0xff] %v7548_v28  ;;  %v14216_v54 = vpop.f32.mrf.mxu1  ;;  %10719 = vmatmul.msk.f32.gmra.mxu2 %vm6492_vm4, %v14118_v22 }
 0x86d   : > { %7606 = vst [vmem:[#allocation1 + $0x10] ss:$2 sm:$0xff] %v7538_v63  ;;  %v8319_v63 = vld [vmem:[#allocation4 + $0xba] sm:$0xf]  ;;  %v6960_v28 = vpop.f32.mrf.mxu3 }
 0x86e   : > { %7608 = vst [vmem:[#allocation1 + $0x11] ss:$2 sm:$0xff] %v15202_v5  ;;  %v14211_v35 = vld.sshfl [vmem:[#allocation1 + $0x30] sm:$0xff pattern:$0x75316420]  ;;  %v14228_v4 = vadd.f32 %v6960_v28, %v6725_v3 }
 0x86f   : > { %15203 = vst [vmem:[#allocation33_spill] sm:$0xff] %v14211_v35  ;;  %10703 = vmatmul.msk.f32.gmra.mxu1 %vm6492_vm4, %v13993_v31  ;;  %10737 = vmatmul.msk.f32.vlgmr.msrb.gmra.mxu3 %vm6492_vm4, %v14161_v12  ;;  %v7558_v31 = vld [vmem:[#allocation4 + $0xba] sm:$0xf]  ;;  %v15208_v28 = vld [vmem:[#allocation14_spill] sm:$0xff] }
 0x870   : > { %8377 = vst [vmem:[#allocation1 + $0x30] ss:$2 sm:$0xff] %v15198_v1  ;;  %v10804_v12 = vld [vmem:[%s14973_s3 + $0x118] sm:$0x1] }
 0x871   : > { %8379 = vst [vmem:[#allocation1 + $0x31] ss:$2 sm:$0xff] %v15204_v52  ;;  %v14221_v20 = vld.sshfl [vmem:[#allocation1 + $0x20] sm:$0xff pattern:$0x75316420]  ;;  %v14234_v1 = vpop.f32.mrf.mxu2  ;;  %10805 = vmatpush.msk.msra.mxu3 %vm6529_vm3, %v10804_v12  ;;  %v6731_v12 = vadd.f32 %v14126_v23, %v14046_v42 }
 0x872   : > { %15205 = vst [vmem:[#allocation27_spill] sm:$0xff] %v14221_v20  ;;  %v7544_v20 = vld [vmem:[#allocation4 + $0x4a] sm:$0xf]  ;;  %v15211_v42 = vld [vmem:[#allocation35_spill] sm:$0xff] }
 0x873   : > { %8412 = vst [vmem:[#allocation1 + $0x20] ss:$2 sm:$0xff] %v13941_v51  ;;  %v14226_v35 = vld.sshfl [vmem:[#allocation1] sm:$0xff pattern:$0x75316420] }
 0x874   : > { %8413 = vst [vmem:[#allocation1 + $0x21] ss:$2 sm:$0xff] %v8319_v63  ;;  %v8309_v51 = vld [vmem:[#allocation4 + $0x6a] sm:$0xf]  ;;  %v14241_v3 = vpop.f32.mrf.mxu1  ;;  %10720 = vmatmul.msk.f32.gmra.mxu2 %vm6492_vm4, %v13802_v14 }
 0x875   : > { %7645 = vst [vmem:[#allocation1] ss:$2 sm:$0xff] %v13652_v40  ;;  %v7618_v15 = vld.sshfl [vmem:[#allocation1 + $0x10] sm:$0xff pattern:$0x75316420]  ;;  %v6728_v40 = vadd.f32 %v14108_v62, %v14030_v49  ;;  %v6963_v63 = vpop.f32.mrf.mxu3 }
 0x876   : > { %7646 = vst [vmem:[#allocation1 + $0x1] ss:$2 sm:$0xff] %v15206_v6  ;;  %v10758_v49 = vld [vmem:[%s14973_s3 + $0xd8] sm:$0x1]  ;;  %v10780_v14 = vld [vmem:[%s14973_s3 + $0xf0] sm:$0xff] }
 0x877   : > { %7623 = vst [vmem:[#allocation1 + $0x10] ss:$2 sm:$0xff] %v15204_v52  ;;  %v10781_v52 = vld [vmem:[%s14973_s3 + $0xf8] sm:$0x1]  ;;  %v14257_v62 = vadd.f32 %v6963_v63, %v6728_v40  ;;  %10704 = vmatmul.msk.f32.gmra.mxu1 %vm6492_vm4, %v14042_v45  ;;  %v10803_v45 = vld [vmem:[%s14973_s3 + $0x110] sm:$0xff]  ;;  %10738 = vmatmul.msk.f32.gmra.mxu3 %vm6492_vm4, %v7618_v15  ;;  %v10755_v15 = vld [vmem:[%s14973_s3 + $0xc0] sm:$0xff] }
 0x878   : > { %7624 = vst [vmem:[#allocation1 + $0x11] ss:$2 sm:$0xff] %v7544_v20  ;;  %v14239_v22 = vld.sshfl [vmem:[#allocation1 + $0x30] sm:$0xff pattern:$0x75316420]  ;;  %10782 = vmatpush.msk.msrb.mxu2 %vm6529_vm3, %v10781_v52  ;;  %10759 = vmatpush.msk.msrb.mxu1 %vm6529_vm3, %v10758_v49 }
 0x879   : > { %15207 = vst [vmem:[#allocation25_spill] sm:$0xff] %v14239_v22  ;;  %v7559_v22 = vld [vmem:[#allocation4 + $0xc2] sm:$0xff]  ;;  %v14272_v40 = vpop.f32.mrf.mxu2  ;;  %8478 = vmatpush.msra.mxu3 %v10803_v45  ;;  %v15209_v52 = vld [vmem:[#allocation30_spill] sm:$0xff] }
 0x87a   : > { %8390 = vst [vmem:[#allocation1 + $0x30] ss:$2 sm:$0xff] %v8309_v51  ;;  %v10757_v51 = vld [vmem:[%s14973_s3 + $0xd0] sm:$0xff]  ;;  %8224 = vmatpush.msrb.mxu2 %v10780_v14 }
 0x87b   : > { %8391 = vst [vmem:[#allocation1 + $0x31] ss:$2 sm:$0xff] %v15208_v28  ;;  %7970 = vmatpush.msrb.mxu1 %v10757_v51  ;;  %v7554_v51 = vld [vmem:[#allocation4 + $0x9a] sm:$0xf] }
 0x87c   : > { %10721 = vmatmul.msk.f32.gmra.mxu2 %vm6492_vm4, %v13875_v44 }
 0x87d   : > { %v14259_v20 = vld.sshfl [vmem:[#allocation1] sm:$0xff pattern:$0x75316420]  ;;  %v6966_v8 = vpop.f32.mrf.mxu3 }
 0x87e   : > { %7657 = vst [vmem:[#allocation1] ss:$2 sm:$0xff] %v7558_v31  ;;  %v14282_v31 = vpop.f32.mrf.mxu1  ;;  %v14297_v14 = vadd.f32 %v6966_v8, %v6731_v12  ;;  %v15213_v8 = vld [vmem:[#allocation19_spill] sm:$0xff]  ;;  %v7596_v12 = vrot.slane %v7559_v22, 4 }
 0x87f   : > { %v14277_v63 = vld.sshfl [vmem:[#allocation1 + $0x10] sm:$0xff pattern:$0x75316420]  ;;  %7658 = vst [vmem:[#allocation1 + $0x1] ss:$2 sm:$0xff] %v7559_v22  ;;  %10705 = vmatmul.msk.f32.gmra.mxu1 %vm6492_vm4, %v15211_v42  ;;  %10739 = vmatmul.msk.f32.gmra.mxu3 %vm6492_vm4, %v13854_v59 }
 0x880   : > { %7635 = vst [vmem:[#allocation1 + $0x10] ss:$2 sm:$0xff] %v15208_v28  ;;  %v10756_v28 = vld [vmem:[%s14973_s3 + $0xc8] sm:$0xff]  ;;  %v7797_v42 = vld [vmem:[#allocation4 + $0x48] sm:$0xf] }
 0x881   : > { %7636 = vst [vmem:[#allocation1 + $0x11] ss:$2 sm:$0xff] %v15209_v52  ;;  %7971 = vmatpush.msrb.mxu1 %v10756_v28  ;;  %v14303_v44 = vpop.f32.mrf.mxu2 }
 0x882   : > { %v14286_v49 = vld.sshfl [vmem:[#allocation1 + $0x30] sm:$0xff pattern:$0x75316420] }
 0x883   : > { %15210 = vst [vmem:[#allocation15_spill] sm:$0xff] %v14286_v49  ;;  %7972 = vmatpush.msrb.mxu1 %v10755_v15  ;;  %v15212_v49 = vld [vmem:[#allocation12_spill] sm:$0xff] }
 0x884   : > { %8402 = vst [vmem:[#allocation1 + $0x30] ss:$2 sm:$0xff] %v15206_v6  ;;  %v6734_v6 = vadd.f32 %v14149_v32, %v14075_v7  ;;  %10722 = vmatmul.msk.f32.gmra.mxu2 %vm6492_vm4, %v14092_v26  ;;  %v15215_v26 = vld [vmem:[#allocation13_spill] sm:$0xff]  ;;  %v7560_v32 = vld [vmem:[#allocation4 + $0xca] sm:$0xf] }
 0x885   : > { %8403 = vst [vmem:[#allocation1 + $0x31] ss:$2 sm:$0xff] %v8315_v61  ;;  %v6969_v28 = vpop.f32.mrf.mxu3 }
 0x886   : > { %v14301_v23 = vld.sshfl [vmem:[#allocation1] sm:$0xff pattern:$0x75316420]  ;;  %v14312_v61 = vpop.f32.mrf.mxu1  ;;  %v14320_v15 = vadd.f32 %v6969_v28, %v6734_v6 }
 0x887   : > { %7857 = vst [vmem:[#allocation1] ss:$2 sm:$0xff] %v13599_v57  ;;  %10740 = vmatmul.msk.f32.gmra.mxu3 %vm6492_vm4, %v13950_v37 }
 0x888   : > { %v14306_v45 = vld.sshfl [vmem:[#allocation1 + $0x10] sm:$0xff pattern:$0x75316420]  ;;  %7859 = vst [vmem:[#allocation1 + $0x1] ss:$2 sm:$0xff] %v15212_v49  ;;  %v15214_v49 = vld [vmem:[#allocation40_spill] sm:$0xff] }
 0x889   : > { %7647 = vst [vmem:[#allocation1 + $0x10] ss:$2 sm:$0xff] %v7554_v51  ;;  %10706 = vmatmul.msk.f32.gmra.mxu1 %vm6492_vm4, %v15214_v49  ;;  %v14324_v59 = vpop.f32.mrf.mxu2 }
 0x88a   : > { %7648 = vst [vmem:[#allocation1 + $0x11] ss:$2 sm:$0xff] %v15213_v8 }
 0x88c   : > { %v14318_v57 = vld.sshfl [vmem:[#allocation1 + $0x30] sm:$0xff pattern:$0x75316420]  ;;  %10723 = vmatmul.msk.f32.gmra.mxu2 %vm6492_vm4, %v14140_v21  ;;  %v6740_v21 = vadd.f32 %v14208_v58, %v14115_v29  ;;  %v6743_v58 = vadd.f32 %v14234_v1, %v14135_v38  ;;  %v15220_v38 = vld [vmem:[#allocation48_spill] sm:$0xff] }
 0x88d   : > { %8414 = vst [vmem:[#allocation1 + $0x30] ss:$2 sm:$0xff] %v7559_v22  ;;  %v6737_v22 = vadd.f32 %v14179_v39, %v14097_v9  ;;  %v6972_v28 = vpop.f32.mrf.mxu3  ;;  %v7813_v1 = vld [vmem:[#allocation4 + $0xc8] sm:$0xf] }
 0x88e   : > { %8415 = vst [vmem:[#allocation1 + $0x31] ss:$2 sm:$0xff] %v7596_v12  ;;  %v14331_v6 = vpop.f32.mrf.mxu1 }
 0x88f   : > { %v7872_v51 = vld.sshfl [vmem:[#allocation1] sm:$0xff pattern:$0x75316420]  ;;  %v14337_v49 = vadd.f32 %v6972_v28, %v6737_v22  ;;  %10741 = vmatmul.msk.f32.gmra.mxu3 %vm6492_vm4, %v14196_v53 }
 0x890   : > { %7876 = vst [vmem:[#allocation1] ss:$2 sm:$0xff] %v7797_v42  ;;  %v15217_v22 = vld [vmem:[#allocation31_spill] sm:$0xff] }
 0x891   : > { %v14326_v7 = vld.sshfl [vmem:[#allocation1 + $0x10] sm:$0xff pattern:$0x75316420]  ;;  %7877 = vst [vmem:[#allocation1 + $0x1] ss:$2 sm:$0xff] %v15215_v26  ;;  %10707 = vmatmul.msk.f32.gmra.mxu1 %vm6492_vm4, %v14017_v24  ;;  %v14341_v37 = vpop.f32.mrf.mxu2 }
 0x892   : > { %7659 = vst [vmem:[#allocation1 + $0x10] ss:$2 sm:$0xff] %v7596_v12  ;;  %v7793_v12 = vld [vmem:[#allocation4 + $0x28] sm:$0xf]  ;;  %v7803_v26 = vld [vmem:[#allocation4 + $0x78] sm:$0xf] }
 0x893   : > { %7660 = vst [vmem:[#allocation1 + $0x11] ss:$2 sm:$0xff] %v7560_v32  ;;  %v15216_v32 = vld [vmem:[#allocation39_spill] sm:$0xff] }
 0x894   : > { %10724 = vmatmul.msk.f32.gmra.mxu2 %vm6492_vm4, %v15216_v32  ;;  %v15219_v32 = vld [vmem:[#allocation17_spill] sm:$0xff] }
 0x895   : > { %v6975_v24 = vpop.f32.mrf.mxu3 }
 0x896   : > { %v14350_v39 = vpop.f32.mrf.mxu1  ;;  %v14357_v28 = vadd.f32 %v6975_v24, %v6740_v21  ;;  %v15218_v21 = vld [vmem:[#allocation26_spill] sm:$0xff] }
 0x897   : > { %10742 = vmatmul.msk.f32.gmra.mxu3 %vm6492_vm4, %v14277_v63  ;;  %v7799_v63 = vld [vmem:[#allocation4 + $0x58] sm:$0xf] }
 0x898   : > { %v14343_v42 = vld.sshfl [vmem:[#allocation1] sm:$0xff pattern:$0x75316420] }
 0x899   : > { %7888 = vst [vmem:[#allocation1] ss:$2 sm:$0xff] %v13637_v55  ;;  %10708 = vmatmul.msk.f32.gmra.mxu1 %vm6492_vm4, %v14068_v56  ;;  %v14361_v55 = vpop.f32.mrf.mxu2  ;;  %v10779_v56 = vld [vmem:[%s14973_s3 + $0xe8] sm:$0xff] }
 0x89a   : > { %v14348_v9 = vld.sshfl [vmem:[#allocation1 + $0x10] sm:$0xff pattern:$0x75316420]  ;;  %7889 = vst [vmem:[#allocation1 + $0x1] ss:$2 sm:$0xff] %v7803_v26  ;;  %8225 = vmatpush.msrb.mxu2 %v10779_v56 }
 0x89b   : > { %7861 = vst [vmem:[#allocation1 + $0x10] ss:$2 sm:$0xff] %v7793_v12 }
 0x89c   : > { %7863 = vst [vmem:[#allocation1 + $0x11] ss:$2 sm:$0xff] %v15217_v22  ;;  %10725 = vmatmul.msk.f32.gmra.mxu2 %vm6492_vm4, %v13910_v60 }
 0x89d   : > { %v6978_v12 = vpop.f32.mrf.mxu3 }
 0x89e   : > { %v14367_v29 = vpop.f32.mrf.mxu1  ;;  %v14378_v24 = vadd.f32 %v6978_v12, %v6743_v58  ;;  %v6746_v58 = vadd.f32 %v14272_v40, %v14159_v47  ;;  %v15222_v47 = vld [vmem:[#allocation36_spill] sm:$0xff] }
 0x89f   : > { %10743 = vmatmul.msk.f32.gmra.mxu3 %vm6492_vm4, %v15220_v38 }
 0x8a1   : > { %v14365_v53 = vld.sshfl [vmem:[#allocation1] sm:$0xff pattern:$0x75316420]  ;;  %10760 = vmatmul.msk.f32.vlgmr.msrb.gmra.mxu1 %vm6492_vm4, %v7872_v51  ;;  %v14385_v60 = vpop.f32.mrf.mxu2 }
 0x8a2   : > { %7900 = vst [vmem:[#allocation1] ss:$2 sm:$0xff] %v13650_v48  ;;  %v10802_v48 = vld [vmem:[%s14973_s3 + $0x108] sm:$0xff] }
 0x8a3   : > { %v7873_v26 = vld.sshfl [vmem:[#allocation1 + $0x10] sm:$0xff pattern:$0x75316420]  ;;  %7901 = vst [vmem:[#allocation1 + $0x1] ss:$2 sm:$0xff] %v15218_v21  ;;  %8479 = vmatpush.msra.mxu3 %v10802_v48 }
 0x8a4   : > { %7878 = vst [vmem:[#allocation1 + $0x10] ss:$2 sm:$0xff] %v15219_v32  ;;  %10726 = vmatmul.msk.f32.gmra.mxu2 %vm6492_vm4, %v14111_v30  ;;  %v15221_v32 = vld [vmem:[#allocation18_spill] sm:$0xff]  ;;  %v6749_v30 = vadd.f32 %v14303_v44, %v14191_v46 }
 0x8a5   : > { %7879 = vst [vmem:[#allocation1 + $0x11] ss:$2 sm:$0xff] %v7799_v63  ;;  %v6981_v51 = vpop.f32.mrf.mxu3  ;;  %v10919_v63 = vld [vmem:[#allocation4] sm:$0xff]  ;;  %v15224_v44 = vld [vmem:[#allocation38_spill] sm:$0xff] }
 0x8a6   : > { %v14389_v22 = vpop.f32.mrf.mxu1  ;;  %v14397_v56 = vadd.f32 %v6981_v51, %v6746_v58  ;;  %v15223_v51 = vld [vmem:[#allocation54_spill] sm:$0xff] }
 0x8a7   : > { %10744 = vmatmul.msk.f32.gmra.mxu3 %vm6492_vm4, %v13966_v11 }
 0x8a9   : > { %10761 = vmatmul.msk.f32.gmra.mxu1 %vm6492_vm4, %v7873_v26  ;;  %v14403_v48 = vpop.f32.mrf.mxu2  ;;  %v7809_v26 = vld [vmem:[#allocation4 + $0xa8] sm:$0xf] }
 0x8aa   : > { %v14393_v12 = vld.sshfl [vmem:[#allocation1] sm:$0xff pattern:$0x75316420] }
 0x8ab   : > { %7912 = vst [vmem:[#allocation1] ss:$2 sm:$0xff] %v7813_v1 }
 0x8ac   : > { %v14399_v21 = vld.sshfl [vmem:[#allocation1 + $0x10] sm:$0xff pattern:$0x75316420]  ;;  %7913 = vst [vmem:[#allocation1 + $0x1] ss:$2 sm:$0xff] %v10919_v63  ;;  %10727 = vmatmul.msk.f32.gmra.mxu2 %vm6492_vm4, %v14168_v36  ;;  %v6752_v36 = vadd.f32 %v14324_v59, %v14216_v54  ;;  %v6755_v59 = vadd.f32 %v14341_v37, %v14241_v3 }
 0x8ad   : > { %7890 = vst [vmem:[#allocation1 + $0x10] ss:$2 sm:$0xff] %v15221_v32  ;;  %v6984_v38 = vpop.f32.mrf.mxu3 }
 0x8ae   : > { %7891 = vst [vmem:[#allocation1 + $0x11] ss:$2 sm:$0xff] %v15222_v47  ;;  %v7211_v40 = vpop.f32.mrf.mxu1  ;;  %v14414_v58 = vadd.f32 %v6984_v38, %v6749_v30  ;;  %v15225_v47 = vld [vmem:[#allocation22_spill] sm:$0xff] }
 0x8af   : > { %10745 = vmatmul.msk.f32.gmra.mxu3 %vm6492_vm4, %v14226_v35  ;;  %v8051_v30 = vld [vmem:[#allocation4 + $0x49] sm:$0xf] }
 0x8b1   : > { %10762 = vmatmul.msk.f32.gmra.mxu1 %vm6492_vm4, %v13953_v25  ;;  %v14422_v46 = vpop.f32.mrf.mxu2  ;;  %v7851_v25 = vrot.slane %v10919_v63, 4 }
 0x8b3   : > { %v14412_v1 = vld.sshfl [vmem:[#allocation1] sm:$0xff pattern:$0x75316420] }
 0x8b4   : > { %8111 = vst [vmem:[#allocation1] ss:$2 sm:$0xff] %v14077_v43  ;;  %10728 = vmatmul.msk.f32.gmra.mxu2 %vm6492_vm4, %v15225_v47  ;;  %v6722_v47 = vadd.f32 %v14056_v19, %v13984_v13 }
 0x8b5   : > { %8113 = vst [vmem:[#allocation1 + $0x1] ss:$2 sm:$0xff] %v15223_v51  ;;  %v14420_v11 = vld.sshfl [vmem:[#allocation1 + $0x10] sm:$0xff pattern:$0x75316420]  ;;  %v6987_v43 = vpop.f32.mrf.mxu3 }
 0x8b6   : > { %7902 = vst [vmem:[#allocation1 + $0x10] ss:$2 sm:$0xff] %v7809_v26  ;;  %v7214_v32 = vpop.f32.mrf.mxu1  ;;  %v14431_v38 = vadd.f32 %v6987_v43, %v6752_v36  ;;  %v7815_v26 = vld [vmem:[#allocation4 + $0xd8] sm:$0xf] }
 0x8b7   : > { %7903 = vst [vmem:[#allocation1 + $0x11] ss:$2 sm:$0xff] %v15224_v44  ;;  %v10920_v44 = vld [vmem:[#allocation4 + $0x51] sm:$0xff]  ;;  %10746 = vmatmul.msk.f32.gmra.mxu3 %vm6492_vm4, %v14306_v45 }
 0x8b8   : > { %v10801_v45 = vld [vmem:[%s14973_s3 + $0x100] sm:$0xff] }
 0x8b9   : > { %10763 = vmatmul.msk.f32.gmra.mxu1 %vm6492_vm4, %v14028_v10  ;;  %v14437_v35 = vpop.f32.mrf.mxu2  ;;  %v10778_v10 = vld [vmem:[%s14973_s3 + $0xe0] sm:$0xff]  ;;  %8480 = vmatpush.msra.mxu3 %v10801_v45 }
 0x8ba   : > { %8226 = vmatpush.msrb.mxu2 %v10778_v10  ;;  %v8053_v10 = vld [vmem:[#allocation4 + $0x59] sm:$0xf] }
 0x8bc   : > { %v14433_v51 = vld.sshfl [vmem:[#allocation1] sm:$0xff pattern:$0x75316420]  ;;  %10729 = vmatmul.msk.f32.gmra.mxu2 %vm6492_vm4, %v13931_v41  ;;  %v8047_v41 = vld [vmem:[#allocation4 + $0x29] sm:$0xf] }
 0x8bd   : > { %8130 = vst [vmem:[#allocation1] ss:$2 sm:$0xff] %v8051_v30  ;;  %v6990_v63 = vpop.f32.mrf.mxu3  ;;  %v8057_v30 = vld [vmem:[#allocation4 + $0x79] sm:$0xf] }
 0x8be   : > { %8131 = vst [vmem:[#allocation1 + $0x1] ss:$2 sm:$0xff] %v10920_v44  ;;  %v14439_v54 = vld.sshfl [vmem:[#allocation1 + $0x10] sm:$0xff pattern:$0x75316420]  ;;  %v7217_v36 = vpop.f32.mrf.mxu1  ;;  %v14450_v43 = vadd.f32 %v6990_v63, %v6755_v59  ;;  %v7011_v44 = vadd.f32 %v14198_v18, %v6722_v47  ;;  %v15226_v18 = vld [vmem:[#allocation55_spill] sm:$0xff] }
 0x8bf   : > { %7914 = vst [vmem:[#allocation1 + $0x10] ss:$2 sm:$0xff] %v7851_v25  ;;  %10747 = vmatmul.msk.f32.gmra.mxu3 %vm6492_vm4, %v13915_v0 }
 0x8c0   : > { %7915 = vst [vmem:[#allocation1 + $0x11] ss:$2 sm:$0xff] %v7815_v26  ;;  %v6758_v26 = vadd.f32 %v14361_v55, %v14282_v31  ;;  %v7265_v19 = vadd.f32 %v7211_v40, %v7011_v44  ;;  %v15227_v40 = vld [vmem:[#allocation11_spill] sm:$0xff] }
 0x8c1   : > { %10764 = vmatmul.msk.f32.gmra.mxu1 %vm6492_vm4, %v14343_v42  ;;  %v14459_v37 = vpop.f32.mrf.mxu2  ;;  %v10921_v42 = vld [vmem:[#allocation4 + $0x31] sm:$0xff] }
 0x8c4   : > { %10730 = vmatmul.msk.f32.gmra.mxu2 %vm6492_vm4, %v14133_v2  ;;  %v6761_v2 = vadd.f32 %v14385_v60, %v14312_v61 }
 0x8c5   : > { %v14457_v3 = vld.sshfl [vmem:[#allocation1] sm:$0xff pattern:$0x75316420] }
 0x8c6   : > { %8142 = vst [vmem:[#allocation1] ss:$2 sm:$0xff] %v15189_v50  ;;  %v6993_v50 = vpop.f32.mrf.mxu3  ;;  %v7220_v59 = vpop.f32.mrf.mxu1 }
 0x8c7   : > { %v14464_v25 = vld.sshfl [vmem:[#allocation1 + $0x10] sm:$0xff pattern:$0x75316420]  ;;  %8143 = vst [vmem:[#allocation1 + $0x1] ss:$2 sm:$0xff] %v8057_v30  ;;  %v14473_v13 = vadd.f32 %v6993_v50, %v6758_v26  ;;  %10748 = vmatmul.msk.f32.gmra.mxu3 %vm6492_vm4, %v13982_v16  ;;  %v7266_v16 = vadd.f32 %v7214_v32, %v14228_v4  ;;  %v8068_v30 = vld [vmem:[#allocation4 + $0xd1] sm:$0xff]  ;;  %v6767_v50 = vadd.f32 %v14422_v46, %v14350_v39 }
 0x8c8   : > { %8115 = vst [vmem:[#allocation1 + $0x10] ss:$2 sm:$0xff] %v8047_v41  ;;  %v15229_v39 = vld [vmem:[#allocation16_spill] sm:$0xff] }
 0x8c9   : > { %8117 = vst [vmem:[#allocation1 + $0x11] ss:$2 sm:$0xff] %v10921_v42  ;;  %10765 = vmatmul.msk.f32.gmra.mxu1 %vm6492_vm4, %v14399_v21  ;;  %v7465_v0 = vpop.f32.mrf.mxu2  ;;  %v10922_v42 = vld [vmem:[#allocation4 + $0x81] sm:$0xff] }
 0x8ca   : > { %v14477_v63 = vadd.f32 %v7465_v0, %v7265_v19 }
 0x8cc   : > { %10731 = vmatmul.msk.f32.gmra.mxu2 %vm6492_vm4, %v14204_v33  ;;  %v8067_v33 = vld [vmem:[#allocation4 + $0xc9] sm:$0xf] }
 0x8ce   : > { %v14482_v31 = vld.sshfl [vmem:[#allocation1] sm:$0xff pattern:$0x75316420]  ;;  %v6996_v55 = vpop.f32.mrf.mxu3  ;;  %v7223_v61 = vpop.f32.mrf.mxu1 }
 0x8cf   : > { %8154 = vst [vmem:[#allocation1] ss:$2 sm:$0xff] %v14144_v17  ;;  %v14489_v21 = vadd.f32 %v6996_v55, %v6761_v2  ;;  %10749 = vmatmul.msk.f32.gmra.mxu3 %vm6492_vm4, %v14259_v20  ;;  %v6764_v17 = vadd.f32 %v14403_v48, %v14331_v6  ;;  %v7267_v20 = vadd.f32 %v7217_v36, %v14257_v62  ;;  %v10923_v36 = vld [vmem:[#allocation4 + $0xb1] sm:$0xff]  ;;  %v8069_v2 = vld [vmem:[#allocation4 + $0xd9] sm:$0xf] }
 0x8d0   : > { %v8127_v45 = vld.sshfl [vmem:[#allocation1 + $0x10] sm:$0xff pattern:$0x75316420]  ;;  %8155 = vst [vmem:[#allocation1 + $0x1] ss:$2 sm:$0xff] %v15227_v40  ;;  %v6770_v55 = vadd.f32 %v14437_v35, %v14367_v29  ;;  %v15231_v40 = vld [vmem:[#allocation51_spill] sm:$0xff] }
 0x8d1   : > { %8132 = vst [vmem:[#allocation1 + $0x10] ss:$2 sm:$0xff] %v15226_v18  ;;  %10766 = vmatmul.msk.f32.gmra.mxu1 %vm6492_vm4, %v13971_v34  ;;  %v7468_v41 = vpop.f32.mrf.mxu2  ;;  %v15228_v34 = vld [vmem:[#allocation10_spill] sm:$0xff]  ;;  %v15230_v18 = vld [vmem:[#allocation49_spill] sm:$0xff] }
 0x8d2   : > { %8133 = vst [vmem:[#allocation1 + $0x11] ss:$2 sm:$0xff] %v8053_v10  ;;  %v14495_v47 = vadd.f32 %v7468_v41, %v7266_v16  ;;  %v7268_v10 = vadd.f32 %v7220_v59, %v14297_v14  ;;  %v7269_v16 = vadd.f32 %v7223_v61, %v14320_v15  ;;  %v15232_v35 = vld [vmem:[#allocation29_spill] sm:$0xff]  ;;  %v15234_v15 = vld [vmem:[#allocation20_spill] sm:$0xff] }
 0x8d4   : > { %10783 = vmatmul.msk.f32.vlgmr.msrb.gmra.mxu2 %vm6492_vm4, %v14433_v51  ;;  %v8063_v51 = vld [vmem:[#allocation4 + $0xa9] sm:$0xf] }
 0x8d6   : > { %v6999_v4 = vpop.f32.mrf.mxu3  ;;  %v7226_v44 = vpop.f32.mrf.mxu1 }
 0x8d7   : > { %v14506_v32 = vld.sshfl [vmem:[#allocation1] sm:$0xff pattern:$0x75316420]  ;;  %v14508_v26 = vadd.f32 %v6999_v4, %v6764_v17  ;;  %10750 = vmatmul.msk.f32.gmra.mxu3 %vm6492_vm4, %v14326_v7 }
 0x8d8   : > { %8166 = vst [vmem:[#allocation1] ss:$2 sm:$0xff] %v8067_v33 }
 0x8d9   : > { %v14499_v60 = vld.sshfl [vmem:[#allocation1 + $0x10] sm:$0xff pattern:$0x75316420]  ;;  %10767 = vmatmul.msk.f32.gmra.mxu1 %vm6492_vm4, %v14048_v27  ;;  %8167 = vst [vmem:[#allocation1 + $0x1] ss:$2 sm:$0xff] %v8068_v30  ;;  %v7471_v6 = vpop.f32.mrf.mxu2 }
 0x8da   : > { %8144 = vst [vmem:[#allocation1 + $0x10] ss:$2 sm:$0xff] %v10922_v42  ;;  %v14513_v48 = vadd.f32 %v7471_v6, %v7267_v20  ;;  %v6773_v42 = vadd.f32 %v14459_v37, %v14389_v22  ;;  %v15235_v20 = vld [vmem:[#allocation44_spill] sm:$0xff] }
 0x8db   : > { %8145 = vst [vmem:[#allocation1 + $0x11] ss:$2 sm:$0xff] %v15228_v34  ;;  %v7270_v34 = vadd.f32 %v7226_v44, %v14337_v49  ;;  %v8311_v37 = vld [vmem:[#allocation4 + $0x7a] sm:$0xf] }
 0x8dc   : > { %10784 = vmatmul.msk.f32.gmra.mxu2 %vm6492_vm4, %v8127_v45  ;;  %v8105_v45 = vrot.slane %v8068_v30, 4  ;;  %v15233_v30 = vld [vmem:[#allocation50_spill] sm:$0xff] }
 0x8de   : > { %v7002_v0 = vpop.f32.mrf.mxu3 }
 0x8df   : > { %v14522_v62 = vadd.f32 %v7002_v0, %v6767_v50  ;;  %10751 = vmatmul.msk.f32.gmra.mxu3 %vm6492_vm4, %v15230_v18  ;;  %v15236_v0 = vld [vmem:[#allocation21_spill] sm:$0xff] }
 0x8e0   : > { %v14524_v27 = vld.sshfl [vmem:[#allocation1] sm:$0xff pattern:$0x75316420] }
 0x8e1   : > { %10768 = vmatmul.msk.f32.gmra.mxu1 %vm6492_vm4, %v14365_v53  ;;  %8365 = vst [vmem:[#allocation1] ss:$2 sm:$0xff] %v15202_v5  ;;  %v7474_v7 = vpop.f32.mrf.mxu2  ;;  %v8305_v53 = vld [vmem:[#allocation4 + $0x4a] sm:$0xf]  ;;  %v7229_v5 = vpop.f32.mrf.mxu1 }
 0x8e2   : > { %v14519_v19 = vld.sshfl [vmem:[#allocation1 + $0x10] sm:$0xff pattern:$0x75316420]  ;;  %8367 = vst [vmem:[#allocation1 + $0x1] ss:$2 sm:$0xff] %v15229_v39  ;;  %v14531_v46 = vadd.f32 %v7474_v7, %v7268_v10  ;;  %v7271_v44 = vadd.f32 %v7229_v5, %v14357_v28  ;;  %v15237_v10 = vld [vmem:[#allocation52_spill] sm:$0xff] }
 0x8e3   : > { %8156 = vst [vmem:[#allocation1 + $0x10] ss:$2 sm:$0xff] %v8063_v51  ;;  %v15239_v28 = vld [vmem:[#allocation32_spill] sm:$0xff] }
 0x8e4   : > { %8157 = vst [vmem:[#allocation1 + $0x11] ss:$2 sm:$0xff] %v10923_v36  ;;  %10785 = vmatmul.msk.f32.gmra.mxu2 %vm6492_vm4, %v15231_v40 }
 0x8e6   : > { %v7005_v59 = vpop.f32.mrf.mxu3 }
 0x8e7   : > { %v14544_v41 = vadd.f32 %v7005_v59, %v6770_v55  ;;  %10752 = vmatmul.msk.f32.gmra.mxu3 %vm6492_vm4, %v15233_v30 }
 0x8e9   : > { %10769 = vmatmul.msk.f32.gmra.mxu1 %vm6492_vm4, %v14420_v11  ;;  %v8380_v33 = vld.sshfl [vmem:[#allocation1] sm:$0xff pattern:$0x75316420]  ;;  %v7477_v17 = vpop.f32.mrf.mxu2  ;;  %v8301_v11 = vld [vmem:[#allocation4 + $0x2a] sm:$0xf]  ;;  %v7232_v51 = vpop.f32.mrf.mxu1 }
 0x8ea   : > { %8384 = vst [vmem:[#allocation1] ss:$2 sm:$0xff] %v8305_v53  ;;  %v14546_v29 = vadd.f32 %v7477_v17, %v7269_v16  ;;  %v7272_v55 = vadd.f32 %v7232_v51, %v14378_v24  ;;  %v15240_v16 = vld [vmem:[#allocation23_spill] sm:$0xff]  ;;  %v15241_v17 = vld [vmem:[#allocation42_spill] sm:$0xff]  ;;  %v15245_v51 = vld [vmem:[#allocation45_spill] sm:$0xff] }
 0x8eb   : > { %v14539_v14 = vld.sshfl [vmem:[#allocation1 + $0x10] sm:$0xff pattern:$0x75316420]  ;;  %8385 = vst [vmem:[#allocation1 + $0x1] ss:$2 sm:$0xff] %v15232_v35 }
 0x8ec   : > { %8168 = vst [vmem:[#allocation1 + $0x10] ss:$2 sm:$0xff] %v8105_v45  ;;  %10786 = vmatmul.msk.f32.gmra.mxu2 %vm6492_vm4, %v15234_v15  ;;  %v8307_v45 = vld [vmem:[#allocation4 + $0x5a] sm:$0xf]  ;;  %v8317_v15 = vld [vmem:[#allocation4 + $0xaa] sm:$0xf] }
 0x8ed   : > { %8169 = vst [vmem:[#allocation1 + $0x11] ss:$2 sm:$0xff] %v8069_v2 }
 0x8ee   : > { %v7008_v61 = vpop.f32.mrf.mxu3 }
 0x8ef   : > { %v14560_v6 = vadd.f32 %v7008_v61, %v6773_v42  ;;  %10753 = vmatmul.msk.f32.gmra.mxu3 %vm6492_vm4, %v14301_v23  ;;  %v15243_v61 = vld [vmem:[#allocation43_spill] sm:$0xff] }
 0x8f1   : > { %10770 = vmatmul.msk.f32.gmra.mxu1 %vm6492_vm4, %v15235_v20  ;;  %v7480_v50 = vpop.f32.mrf.mxu2 }
 0x8f2   : > { %v14563_v22 = vld.sshfl [vmem:[#allocation1] sm:$0xff pattern:$0x75316420]  ;;  %v14565_v36 = vadd.f32 %v7480_v50, %v7270_v34 }
 0x8f3   : > { %8396 = vst [vmem:[#allocation1] ss:$2 sm:$0xff] %v15209_v52  ;;  %v15238_v52 = vld [vmem:[#allocation41_spill] sm:$0xff]  ;;  %v15244_v34 = vld [vmem:[#allocation28_spill] sm:$0xff] }
 0x8f4   : > { %v14555_v4 = vld.sshfl [vmem:[#allocation1 + $0x10] sm:$0xff pattern:$0x75316420]  ;;  %8397 = vst [vmem:[#allocation1 + $0x1] ss:$2 sm:$0xff] %v8311_v37  ;;  %10787 = vmatmul.msk.f32.gmra.mxu2 %vm6492_vm4, %v14457_v3  ;;  %v7235_v3 = vpop.f32.mrf.mxu1 }
 0x8f5   : > { %8369 = vst [vmem:[#allocation1 + $0x10] ss:$2 sm:$0xff] %v8301_v11  ;;  %v7273_v35 = vadd.f32 %v7235_v3, %v14397_v56  ;;  %v15246_v37 = vld [vmem:[#allocation37_spill] sm:$0xff] }
 0x8f6   : > { %8371 = vst [vmem:[#allocation1 + $0x11] ss:$2 sm:$0xff] %v15236_v0  ;;  %v7719_v49 = vpop.f32.mrf.mxu3 }
 0x8f7   : > { %v14576_v7 = vadd.f32 %v7719_v49, %v14477_v63  ;;  %10754 = vmatmul.msk.f32.gmra.mxu3 %vm6492_vm4, %v14348_v9  ;;  %v14596_v9 = vld [vmem:[#allocation4 + $0xd2] sm:$0xff] }
 0x8f9   : > { %10771 = vmatmul.msk.f32.gmra.mxu1 %vm6492_vm4, %v15237_v10  ;;  %v7483_v18 = vpop.f32.mrf.mxu2  ;;  %v15247_v10 = vld [vmem:[#allocation53_spill] sm:$0xff] }
 0x8fa   : > { %v14579_v2 = vadd.f32 %v7483_v18, %v7271_v44  ;;  %v15248_v18 = vld [vmem:[#allocation25_spill] sm:$0xff] }
 0x8fb   : > { %v14581_v23 = vld.sshfl [vmem:[#allocation1] sm:$0xff pattern:$0x75316420] }
 0x8fc   : > { %8408 = vst [vmem:[#allocation1] ss:$2 sm:$0xff] %v15213_v8  ;;  %10788 = vmatmul.msk.f32.gmra.mxu2 %vm6492_vm4, %v14499_v60  ;;  %v8321_v8 = vld [vmem:[#allocation4 + $0xca] sm:$0xf]  ;;  %v7238_v24 = vpop.f32.mrf.mxu1 }
 0x8fd   : > { %v8381_v39 = vld.sshfl [vmem:[#allocation1 + $0x10] sm:$0xff pattern:$0x75316420]  ;;  %8409 = vst [vmem:[#allocation1 + $0x1] ss:$2 sm:$0xff] %v15239_v28 }
 0x8fe   : > { %8386 = vst [vmem:[#allocation1 + $0x10] ss:$2 sm:$0xff] %v15238_v52  ;;  %v7722_v63 = vpop.f32.mrf.mxu3 }
 0x8ff   : > { %8387 = vst [vmem:[#allocation1 + $0x11] ss:$2 sm:$0xff] %v8307_v45  ;;  %v14593_v40 = vadd.f32 %v7722_v63, %v14495_v47  ;;  %10806 = vmatmul.msk.f32.vlgmr.msra.gmra.mxu3 %vm6492_vm4, %v8380_v33  ;;  %v15249_v63 = vld [vmem:[#allocation47_spill] sm:$0xff] }
 0x901   : > { %10772 = vmatmul.msk.f32.gmra.mxu1 %vm6492_vm4, %v14393_v12  ;;  %v7486_v53 = vpop.f32.mrf.mxu2  ;;  %v15242_v12 = vld [vmem:[#allocation46_spill] sm:$0xff] }
 0x902   : > { %v7526_v59 = vadd.f32 %v7486_v53, %v7272_v55  ;;  %v15250_v55 = vld [vmem:[#allocation34_spill] sm:$0xff] }
 0x904   : > { %v14599_v60 = vld.sshfl [vmem:[#allocation1] sm:$0xff pattern:$0x75316420]  ;;  %10789 = vmatmul.msk.f32.gmra.mxu2 %vm6492_vm4, %v15242_v12  ;;  %v7241_v56 = vpop.f32.mrf.mxu1 }
 0x905   : > { %8420 = vst [vmem:[#allocation1] ss:$2 sm:$0xff] %v8321_v8  ;;  %v7275_v44 = vadd.f32 %v7241_v56, %v14431_v38 }
 0x906   : > { %v8393_v5 = vld.sshfl [vmem:[#allocation1 + $0x10] sm:$0xff pattern:$0x75316420]  ;;  %8421 = vst [vmem:[#allocation1 + $0x1] ss:$2 sm:$0xff] %v14596_v9  ;;  %v7725_v47 = vpop.f32.mrf.mxu3 }
 0x907   : > { %8398 = vst [vmem:[#allocation1 + $0x10] ss:$2 sm:$0xff] %v15240_v16  ;;  %v14609_v30 = vadd.f32 %v7725_v47, %v14513_v48  ;;  %10807 = vmatmul.msk.f32.gmra.mxu3 %vm6492_vm4, %v8381_v39  ;;  %v15251_v16 = vld [vmem:[#allocation24_spill] sm:$0xff] }
 0x908   : > { %8399 = vst [vmem:[#allocation1 + $0x11] ss:$2 sm:$0xff] %v15241_v17 }
 0x909   : > { %10773 = vmatmul.msk.f32.gmra.mxu1 %vm6492_vm4, %v14439_v54  ;;  %v7489_v42 = vpop.f32.mrf.mxu2  ;;  %v7274_v54 = vadd.f32 %v7238_v24, %v14414_v58 }
 0x90a   : > { %v7527_v11 = vadd.f32 %v7489_v42, %v7273_v35  ;;  %v15252_v35 = vld [vmem:[#allocation15_spill] sm:$0xff] }
 0x90c   : > { %10790 = vmatmul.msk.f32.gmra.mxu2 %vm6492_vm4, %v15244_v34  ;;  %v7244_v39 = vpop.f32.mrf.mxu1 }
 0x90e   : > { %v7728_v20 = vpop.f32.mrf.mxu3 }
 0x90f   : > { %v14611_v33 = vld.sshfl [vmem:[#allocation1 + $0x10] sm:$0xff pattern:$0x75316420]  ;;  %v14621_v48 = vadd.f32 %v7728_v20, %v14531_v46  ;;  %10808 = vmatmul.msk.f32.gmra.mxu3 %vm6492_vm4, %v15246_v37 }
 0x910   : > { %8410 = vst [vmem:[#allocation1 + $0x10] ss:$2 sm:$0xff] %v8317_v15  ;;  %v15254_v20 = vld [vmem:[#allocation33_spill] sm:$0xff] }
 0x911   : > { %8411 = vst [vmem:[#allocation1 + $0x11] ss:$2 sm:$0xff] %v15243_v61  ;;  %10774 = vmatmul.msk.f32.gmra.mxu1 %vm6492_vm4, %v15245_v51  ;;  %v7492_v50 = vpop.f32.mrf.mxu2 }
 0x912   : > { %v7528_v0 = vadd.f32 %v7492_v50, %v7274_v54 }
 0x914   : > { %10791 = vmatmul.msk.f32.gmra.mxu2 %vm6492_vm4, %v14482_v31  ;;  %v7276_v31 = vadd.f32 %v7244_v39, %v14450_v43  ;;  %v14643_v28 = vpop.f32.mrf.mxu1 }
 0x916   : > { %v7731_v49 = vpop.f32.mrf.mxu3 }
 0x917   : > { %v14631_v58 = vadd.f32 %v7731_v49, %v14546_v29  ;;  %10809 = vmatmul.msk.f32.gmra.mxu3 %vm6492_vm4, %v15248_v18 }
 0x918   : > { %v8417_v39 = vld.sshfl [vmem:[#allocation1 + $0x10] sm:$0xff pattern:$0x75316420] }
 0x919   : > { %10775 = vmatmul.msk.f32.gmra.mxu1 %vm6492_vm4, %v15247_v10  ;;  %v7495_v46 = vpop.f32.mrf.mxu2  ;;  %v8359_v10 = vrot.slane %v14596_v9, 4  ;;  %v8419_v9 = vld.sshfl [vmem:[#allocation1 + $0x30] sm:$0xff pattern:$0x75316420] }
 0x91a   : > { %v7529_v45 = vadd.f32 %v7495_v46, %v7275_v44 }
 0x91b   : > { %8422 = vst [vmem:[#allocation1 + $0x10] ss:$2 sm:$0xff] %v8359_v10 }
 0x91c   : > { %10792 = vmatmul.msk.f32.gmra.mxu2 %vm6492_vm4, %v14519_v19 }
 0x91e   : > { %v7734_v52 = vpop.f32.mrf.mxu3 }
 0x91f   : > { %v14641_v38 = vadd.f32 %v7734_v52, %v14565_v36  ;;  %10810 = vmatmul.msk.f32.gmra.mxu3 %vm6492_vm4, %v14563_v22  ;;  %v14657_v36 = vpop.f32.mrf.mxu1  ;;  %v10824_v22 = vld [vmem:[%s14975_s5 + $0x4] sm:$0xf] }
 0x920   : > { %8798 = vmatpush.xpose.msra.mxu2 %v10824_v22  ;;  %v8418_v52 = vld.sshfl [vmem:[#allocation1 + $0x20] sm:$0xff pattern:$0x75316420] }
 0x921   : > { %10776 = vmatmul.msk.f32.gmra.mxu1 %vm6492_vm4, %v14412_v1  ;;  %v7498_v29 = vpop.f32.mrf.mxu2 }
 0x922   : > { %v7530_v3 = vadd.f32 %v7498_v29, %v7276_v31 }
 0x924   : > { %10793 = vmatmul.msk.f32.gmra.mxu2 %vm6492_vm4, %v15249_v63 }
 0x926   : > { %v7737_v19 = vpop.f32.mrf.mxu3 }
 0x927   : > { %v14652_v43 = vadd.f32 %v7737_v19, %v14579_v2  ;;  %10811 = vmatmul.msk.f32.gmra.mxu3 %vm6492_vm4, %v8393_v5  ;;  %v8752_v2 = vld [vmem:[%s14975_s5] sm:$0xf]  ;;  %v14678_v17 = vpop.f32.mrf.mxu1 }
 0x928   : > { %8768 = vmatpush.xpose.msra.mxu1 %v8752_v2  ;;  %v8424_v19 = vld.sshfl [vmem:[#allocation1] sm:$0xff pattern:$0x75316420] }
 0x929   : > { %10777 = vmatmul.msk.f32.gmra.mxu1 %vm6492_vm4, %v14464_v25  ;;  %v14654_v1 = vpop.f32.mrf.mxu2  ;;  %v10825_v25 = vld [vmem:[%s14975_s5 + $0x8] sm:$0xf] }
 0x92a   : > { %8828 = vmatpush.xpose.msrb.mxu3 %v10825_v25  ;;  %v14745_v25 = vld [vmem:[%s14974_s4] ss:$0 sm:$0xff] }
 0x92c   : > { %10794 = vmatmul.msk.f32.gmra.mxu2 %vm6492_vm4, %v15250_v55 }
 0x92e   : > { %v7740_v53 = vpop.f32.mrf.mxu3 }
 0x92f   : > { %v14670_v5 = vadd.f32 %v7740_v53, %v7526_v59  ;;  %10812 = vmatmul.msk.f32.gmra.mxu3 %vm6492_vm4, %v15251_v16  ;;  %v14690_v15 = vpop.f32.mrf.mxu1 }
 0x931   : > { %v14672_v8 = vpop.f32.mrf.mxu2 }
 0x934   : > { %10795 = vmatmul.msk.f32.gmra.mxu2 %vm6492_vm4, %v14506_v32  ;;  %v15253_v32 = vld [vmem:[#allocation9_spill] sm:$0xff] }
 0x936   : > { %v7743_v24 = vpop.f32.mrf.mxu3 }
 0x937   : > { %v14680_v12 = vadd.f32 %v7743_v24, %v7527_v11  ;;  %10813 = vmatmul.msk.f32.gmra.mxu3 %vm6492_vm4, %v15252_v35  ;;  %v14700_v56 = vpop.f32.mrf.mxu1 }
 0x939   : > { %v14682_v47 = vpop.f32.mrf.mxu2 }
 0x93c   : > { %10796 = vmatmul.msk.f32.gmra.mxu2 %vm6492_vm4, %v14539_v14 }
 0x93e   : > { %v7746_v59 = vpop.f32.mrf.mxu3 }
 0x93f   : > { %v14688_v42 = vadd.f32 %v7746_v59, %v7528_v0  ;;  %10814 = vmatmul.msk.f32.gmra.mxu3 %vm6492_vm4, %v14581_v23  ;;  %v15255_v23 = vld [vmem:[#allocation27_spill] sm:$0xff]  ;;  %v14712_v50 = vpop.f32.mrf.mxu1 }
 0x941   : > { %v14692_v61 = vpop.f32.mrf.mxu2 }
 0x944   : > { %10797 = vmatmul.msk.f32.gmra.mxu2 %vm6492_vm4, %v15253_v32 }
 0x946   : > { %v7749_v11 = vpop.f32.mrf.mxu3 }
 0x947   : > { %v14698_v34 = vadd.f32 %v7749_v11, %v7529_v45  ;;  %10815 = vmatmul.msk.f32.gmra.mxu3 %vm6492_vm4, %v14611_v33  ;;  %v7974_v33 = vpop.f32.mrf.mxu1 }
 0x948   : > { %v8028_v55 = vadd.f32 %v7974_v33, %v14576_v7 }
 0x949   : > { %v14704_v14 = vpop.f32.mrf.mxu2 }
 0x94c   : > { %10798 = vmatmul.msk.f32.gmra.mxu2 %vm6492_vm4, %v15254_v20 }
 0x94e   : > { %v7752_v54 = vpop.f32.mrf.mxu3 }
 0x94f   : > { %v14708_v51 = vadd.f32 %v7752_v54, %v7530_v3  ;;  %10816 = vmatmul.msk.f32.gmra.mxu3 %vm6492_vm4, %v15255_v23  ;;  %v7977_v46 = vpop.f32.mrf.mxu1 }
 0x950   : > { %v8029_v32 = vadd.f32 %v7977_v46, %v14593_v40 }
 0x951   : > { %v14716_v0 = vpop.f32.mrf.mxu2 }
 0x954   : > { %10799 = vmatmul.msk.f32.gmra.mxu2 %vm6492_vm4, %v14524_v27 }
 0x956   : > { %v14718_v37 = vpop.f32.mrf.mxu3 }
 0x957   : > { %10817 = vmatmul.msk.f32.gmra.mxu3 %vm6492_vm4, %v14318_v57  ;;  %v7980_v18 = vpop.f32.mrf.mxu1 }
 0x959   : > { %v8228_v44 = vpop.f32.mrf.mxu2 }
 0x95a   : > { %v8282_v22 = vadd.f32 %v8228_v44, %v8028_v55 }
 0x95c   : > { %10800 = vmatmul.msk.f32.gmra.mxu2 %vm6492_vm4, %v14555_v4  ;;  %v8323_v4 = vld [vmem:[#allocation4 + $0xda] sm:$0xf] }
 0x95d   : > { %8423 = vst [vmem:[#allocation1 + $0x11] ss:$2 sm:$0xff] %v8323_v4 }
 0x95e   : > { %v14724_v49 = vpop.f32.mrf.mxu3 }
 0x95f   : > { %10818 = vmatmul.msk.f32.gmra.mxu3 %vm6492_vm4, %v14599_v60  ;;  %v7983_v29 = vpop.f32.mrf.mxu1 }
 0x961   : > { %v8231_v45 = vpop.f32.mrf.mxu2 }
 0x962   : > { %v8283_v7 = vadd.f32 %v8231_v45, %v8029_v32 }
 0x964   : > { %v8425_v35 = vld.sshfl [vmem:[#allocation1 + $0x10] sm:$0xff pattern:$0x75316420] }
 0x966   : > { %v14729_v27 = vpop.f32.mrf.mxu3 }
 0x967   : > { %10819 = vmatmul.msk.f32.gmra.mxu3 %vm6492_vm4, %v8417_v39  ;;  %v7986_v2 = vpop.f32.mrf.mxu1  ;;  %v8030_v39 = vadd.f32 %v7980_v18, %v14609_v30  ;;  %v10826_v18 = vld [vmem:[%s14975_s5 + $0xc] sm:$0xf] }
 0x968   : > { %8858 = vmatpush.xpose.msrb.mxu1 %v10826_v18 }
 0x969   : > { %v8234_v31 = vpop.f32.mrf.mxu2 }
 0x96e   : > { %v14732_v57 = vpop.f32.mrf.mxu3 }
 0x96f   : > { %10820 = vmatmul.msk.f32.gmra.mxu3 %vm6492_vm4, %v8418_v52  ;;  %v7989_v33 = vpop.f32.mrf.mxu1  ;;  %v8284_v52 = vadd.f32 %v8234_v31, %v8030_v39 }
 0x971   : > { %v8237_v3 = vpop.f32.mrf.mxu2 }
 0x976   : > { %v14735_v60 = vpop.f32.mrf.mxu3 }
 0x977   : > { %10821 = vmatmul.msk.f32.gmra.mxu3 %vm6492_vm4, %v8419_v9  ;;  %v14753_v55 = vpop.f32.mrf.mxu1 }
 0x979   : > { %v8240_v24 = vpop.f32.mrf.mxu2 }
 0x97e   : > { %v14738_v63 = vpop.f32.mrf.mxu3 }
 0x97f   : > { %15256 = vst [vmem:[#allocation14_spill] sm:$0xff] %v14738_v63  ;;  %10822 = vmatmul.msk.f32.gmra.mxu3 %vm6492_vm4, %v8424_v19 }
 0x981   : > { %v8243_v10 = vpop.f32.mrf.mxu2 }
 0x986   : > { %v8482_v53 = vpop.f32.mrf.mxu3 }
 0x987   : > { %v8536_v16 = vadd.f32 %v8482_v53, %v8282_v22  ;;  %10823 = vmatmul.msk.f32.gmra.mxu3 %vm6492_vm4, %v8425_v35  ;;  %v8031_v22 = vadd.f32 %v7983_v29, %v14621_v48  ;;  %v10828_v48 = vld [vmem:[%s14975_s5 + $0x14] sm:$0xf] }
 0x988   : > { %8918 = vmatpush.xpose.msra.mxu3 %v10828_v48 }
 0x989   : > { %v8558_v59 = vadd.f32 %v14745_v25, %v8536_v16  ;;  %v14756_v16 = vpop.f32.mrf.mxu2  ;;  %v8285_v35 = vadd.f32 %v8237_v3, %v8031_v22 }
 0x98b   : > { %v8576_v11 = vmax.f32 %v8558_v59, 0.0  ;;  %v10827_v59 = vld [vmem:[%s14975_s5 + $0x10] sm:$0xf] }
 0x98c   : > { %8888 = vmatpush.xpose.msrb.mxu2 %v10827_v59 }
 0x98d   : > { %v8612_v20 = vrot.slane %v8576_v11, 4  ;;  %8630 = vst [vmem:[#allocation1] ss:$2 sm:$0xff] %v8576_v11  ;;  %v8032_v11 = vadd.f32 %v7986_v2, %v14631_v58 }
 0x98e   : > { %v8485_v54 = vpop.f32.mrf.mxu3 }
 0x98f   : > { %8632 = vst [vmem:[#allocation1 + $0x1] ss:$2 sm:$0xff] %v8612_v20  ;;  %v8537_v23 = vadd.f32 %v8485_v54, %v8283_v7  ;;  %v14769_v20 = vpop.f32.mrf.mxu1 }
 0x991   : > { %v8559_v44 = vadd.f32 %v14745_v25, %v8537_v23  ;;  %v8286_v23 = vadd.f32 %v8240_v24, %v8032_v11  ;;  %v14771_v39 = vpop.f32.mrf.mxu2 }
 0x993   : > { %v8577_v4 = vmax.f32 %v8559_v44, 0.0 }
 0x995   : > { %v8613_v9 = vrot.slane %v8577_v4, 4  ;;  %8634 = vst [vmem:[#allocation1 + $0x10] ss:$2 sm:$0xff] %v8577_v4 }
 0x996   : > { %v8488_v40 = vpop.f32.mrf.mxu3  ;;  %v8635_v46 = vld.sshfl [vmem:[#allocation1] sm:$0xff pattern:$0x75316420] }
 0x997   : > { %8638 = vst [vmem:[#allocation1 + $0x20] ss:$2 sm:$0xff] %v8613_v9  ;;  %v8538_v19 = vadd.f32 %v8488_v40, %v8284_v52  ;;  %v14775_v11 = vpop.f32.mrf.mxu1 }
 0x998   : > { %8719 = vst [vmem:[#allocation5] sm:$0xff] %v8635_v46 }
 0x999   : > { %v8560_v45 = vadd.f32 %v14745_v25, %v8538_v19 }
 0x99b   : > { %v8578_v53 = vmax.f32 %v8560_v45, 0.0  ;;  %v8033_v45 = vadd.f32 %v7989_v33, %v14641_v38 }
 0x99c   : > { %v8636_v32 = vld.sshfl [vmem:[#allocation1 + $0x10] sm:$0xff pattern:$0x75316420] }
 0x99d   : > { %v8614_v30 = vrot.slane %v8578_v53, 4  ;;  %8640 = vst [vmem:[#allocation1 + $0x21] ss:$2 sm:$0xff] %v8578_v53 }
 0x99e   : > { %v8491_v31 = vpop.f32.mrf.mxu3  ;;  %8720 = vst [vmem:[#allocation5 + $0x8] sm:$0xf] %v8636_v32 }
 0x99f   : > { %8642 = vst [vmem:[#allocation1 + $0x30] ss:$2 sm:$0xff] %v8614_v30  ;;  %v8539_v29 = vadd.f32 %v8491_v31, %v8285_v35  ;;  %v8744_v46 = vld [vmem:[#allocation5] sm:$0x1]  ;;  %v8745_v58 = vld [vmem:[#allocation5 + $0x1] sm:$0x1]  ;;  %v8287_v31 = vadd.f32 %v8243_v10, %v8033_v45  ;;  %v14777_v10 = vpop.f32.mrf.mxu2 }
 0x9a0   : > { %v8774_v2 = vld [vmem:[#allocation5 + $0x2] sm:$0x1]  ;;  %v8775_v19 = vld [vmem:[#allocation5 + $0x3] sm:$0x1]  ;;  %v8804_v24 = vld [vmem:[#allocation5 + $0x4] sm:$0x1]  ;;  %v8749_v48 = vmax.f32 %v8744_v46, %v8745_v58 }
 0x9a1   : > { %v8561_v3 = vadd.f32 %v14745_v25, %v8539_v29  ;;  %v8805_v53 = vld [vmem:[#allocation5 + $0x5] sm:$0x1]  ;;  %v8834_v58 = vld [vmem:[#allocation5 + $0x6] sm:$0x1]  ;;  %v8835_v45 = vld [vmem:[#allocation5 + $0x7] sm:$0x1] }
 0x9a3   : > { %v8579_v7 = vmax.f32 %v8561_v3, 0.0 }
 0x9a4   : > { %v8643_v54 = vld.sshfl [vmem:[#allocation1 + $0x20] sm:$0xff pattern:$0x75316420] }
 0x9a5   : > { %v8615_v44 = vrot.slane %v8579_v7, 4  ;;  %8721 = vst [vmem:[#allocation5 + $0x10] sm:$0xff] %v8643_v54  ;;  %v8778_v54 = vmax.f32 %v8774_v2, %v8775_v19 }
 0x9a6   : > { %v8494_v4 = vpop.f32.mrf.mxu3  ;;  %8645 = vst [vmem:[#allocation1] ss:$2 sm:$0xff] %v8579_v7  ;;  %v8644_v52 = vld.sshfl [vmem:[#allocation1 + $0x30] sm:$0xff pattern:$0x75316420] }
 0x9a7   : > { %v8540_v9 = vadd.f32 %v8494_v4, %v8286_v23  ;;  %8646 = vst [vmem:[#allocation1 + $0x1] ss:$2 sm:$0xff] %v8615_v44 }
 0x9a8   : > { %8722 = vst [vmem:[#allocation5 + $0x18] sm:$0xf] %v8644_v52  ;;  %v8808_v52 = vmax.f32 %v8804_v24, %v8805_v53  ;;  %v10830_v24 = vld [vmem:[%s14975_s5 + $0x1c] sm:$0xf]  ;;  %v10831_v53 = vld [vmem:[%s14975_s5 + $0x20] sm:$0xf] }
 0x9a9   : > { %v8562_v40 = vadd.f32 %v14745_v25, %v8540_v9 }
 0x9ab   : > { %v8580_v22 = vmax.f32 %v8562_v40, 0.0 }
 0x9ac   : > { %v8747_v35 = vld [vmem:[#allocation5 + $0x10] sm:$0x1]  ;;  %v8748_v30 = vld [vmem:[#allocation5 + $0x11] sm:$0x1]  ;;  %v8776_v18 = vld [vmem:[#allocation5 + $0x12] sm:$0x1] }
 0x9ad   : > { %v8616_v59 = vrot.slane %v8580_v22, 4  ;;  %v8750_v29 = vmax.f32 %v8747_v35, %v8748_v30  ;;  %v8777_v3 = vld [vmem:[#allocation5 + $0x13] sm:$0x1]  ;;  %v8806_v32 = vld [vmem:[#allocation5 + $0x14] sm:$0x1] }
 0x9ae   : > { %v8497_v7 = vpop.f32.mrf.mxu3  ;;  %v8779_v23 = vmax.f32 %v8776_v18, %v8777_v3  ;;  %v8807_v44 = vld [vmem:[#allocation5 + $0x15] sm:$0x1]  ;;  %v8836_v4 = vld [vmem:[#allocation5 + $0x16] sm:$0x1]  ;;  %v8837_v40 = vld [vmem:[#allocation5 + $0x17] sm:$0x1] }
 0x9af   : > { %v8541_v38 = vadd.f32 %v8497_v7, %v8287_v31  ;;  %v8751_v33 = vmax.f32 %v8749_v48, %v8750_v29  ;;  %8650 = vst [vmem:[#allocation1 + $0x20] ss:$2 sm:$0xff] %v8616_v59  ;;  %v8809_v9 = vmax.f32 %v8806_v32, %v8807_v44  ;;  %v8866_v63 = vld [vmem:[#allocation5 + $0x18] sm:$0x1]  ;;  %v8867_v35 = vld [vmem:[#allocation5 + $0x19] sm:$0x1]  ;;  %v8034_v59 = vadd.f32 %v14753_v55, %v14652_v43 }
 0x9b0   : > { %v8780_v46 = vmax.f32 %v8778_v54, %v8779_v23  ;;  %8647 = vst [vmem:[#allocation1 + $0x10] ss:$2 sm:$0xff] %v8580_v22  ;;  %v8896_v30 = vld [vmem:[#allocation5 + $0x1a] sm:$0x1]  ;;  %v10829_v18 = vld [vmem:[%s14975_s5 + $0x18] sm:$0xf]  ;;  %v8839_v29 = vmax.f32 %v8836_v4, %v8837_v40  ;;  %v8869_v7 = vmax.f32 %v8866_v63, %v8867_v35  ;;  %v14795_v35 = vpop.f32.mrf.mxu1 }
 0x9b1   : > { %v8563_v2 = vadd.f32 %v14745_v25, %v8541_v38  ;;  %8769 = vmatmul.f32.vlgmr.msra.gmra.mxu1 %v8751_v33  ;;  %v8810_v19 = vmax.f32 %v8808_v52, %v8809_v9  ;;  %v8897_v31 = vld [vmem:[#allocation5 + $0x1b] sm:$0x1]  ;;  %v8864_v3 = vld [vmem:[#allocation5 + $0x8] sm:$0x1]  ;;  %v8865_v32 = vld [vmem:[#allocation5 + $0x9] sm:$0x1]  ;;  %v8288_v44 = vadd.f32 %v14756_v16, %v8034_v59  ;;  %v8838_v33 = vmax.f32 %v8834_v58, %v8835_v45 }
 0x9b2   : > { %8799 = vmatmul.f32.vlgmr.msra.gmra.mxu2 %v8780_v46  ;;  %8950 = vmatpush.xpose.msra.mxu1 %v10829_v18  ;;  %v8648_v22 = vld.sshfl [vmem:[#allocation1] sm:$0xff pattern:$0x75316420]  ;;  %v8894_v54 = vld [vmem:[#allocation5 + $0xa] sm:$0x1]  ;;  %v8899_v52 = vmax.f32 %v8896_v30, %v8897_v31  ;;  %v8868_v46 = vmax.f32 %v8864_v3, %v8865_v32  ;;  %v8035_v18 = vadd.f32 %v14769_v20, %v14670_v5 }
 0x9b3   : > { %v8581_v48 = vmax.f32 %v8563_v2, 0.0  ;;  %8829 = vmatmul.f32.vlgmr.msrb.gmra.mxu3 %v8810_v19  ;;  %8980 = vmatpush.xpose.msra.mxu2 %v10830_v24  ;;  %8723 = vst [vmem:[#allocation5 + $0x20] sm:$0xff] %v8648_v22  ;;  %v8895_v23 = vld [vmem:[#allocation5 + $0xb] sm:$0x1]  ;;  %v10832_v43 = vld [vmem:[%s14975_s5 + $0x24] sm:$0xf]  ;;  %v8840_v4 = vmax.f32 %v8838_v33, %v8839_v29  ;;  %v14804_v19 = vpop.f32.mrf.mxu2 }
 0x9b4   : > { %9010 = vmatpush.xpose.msrb.mxu3 %v10831_v53  ;;  %v8898_v40 = vmax.f32 %v8894_v54, %v8895_v23  ;;  %v8870_v2 = vmax.f32 %v8868_v46, %v8869_v7  ;;  %v10833_v16 = vld [vmem:[%s14975_s5 + $0x28] sm:$0xf]  ;;  %v10834_v30 = vld [vmem:[%s14975_s5 + $0x2c] sm:$0xf]  ;;  %v8289_v31 = vadd.f32 %v14771_v39, %v8035_v18  ;;  %v8036_v23 = vadd.f32 %v14775_v11, %v14680_v12 }
 0x9b5   : > { %v8617_v38 = vrot.slane %v8581_v48, 4  ;;  %8651 = vst [vmem:[#allocation1 + $0x21] ss:$2 sm:$0xff] %v8581_v48 }
 0x9b6   : > { %v8500_v9 = vpop.f32.mrf.mxu3  ;;  %v8900_v45 = vmax.f32 %v8898_v40, %v8899_v52 }
 0x9b7   : > { %v8542_v55 = vadd.f32 %v8500_v9, %v8288_v44  ;;  %8652 = vst [vmem:[#allocation1 + $0x30] ss:$2 sm:$0xff] %v8617_v38  ;;  %v8649_v63 = vld.sshfl [vmem:[#allocation1 + $0x10] sm:$0xff pattern:$0x75316420] }
 0x9b8   : > { %8724 = vst [vmem:[#allocation5 + $0x28] sm:$0xf] %v8649_v63  ;;  %v14810_v7 = vpop.f32.mrf.mxu1 }
 0x9b9   : > { %v8564_v58 = vadd.f32 %v14745_v25, %v8542_v55  ;;  %8859 = vmatmul.f32.vlgmr.msrb.gmra.mxu1 %v8840_v4 }
 0x9ba   : > { %8889 = vmatmul.f32.vlgmr.msrb.gmra.mxu2 %v8870_v2  ;;  %9040 = vmatpush.xpose.msrb.mxu1 %v10832_v43  ;;  %v8925_v32 = vld [vmem:[#allocation5 + $0x20] sm:$0x1]  ;;  %v8926_v5 = vld [vmem:[#allocation5 + $0x21] sm:$0x1]  ;;  %v8956_v20 = vld [vmem:[#allocation5 + $0x22] sm:$0x1]  ;;  %v8290_v43 = vadd.f32 %v14777_v10, %v8036_v23 }
 0x9bb   : > { %v8582_v24 = vmax.f32 %v8564_v58, 0.0  ;;  %8919 = vmatmul.f32.vlgmr.msra.gmra.mxu3 %v8900_v45  ;;  %9070 = vmatpush.xpose.msrb.mxu2 %v10833_v16  ;;  %v8957_v54 = vld [vmem:[#allocation5 + $0x23] sm:$0x1]  ;;  %v8986_v44 = vld [vmem:[#allocation5 + $0x24] sm:$0x1]  ;;  %v14814_v33 = vpop.f32.mrf.mxu2  ;;  %v8930_v4 = vmax.f32 %v8925_v32, %v8926_v5 }
 0x9bc   : > { %v8653_v53 = vld.sshfl [vmem:[#allocation1 + $0x20] sm:$0xff pattern:$0x75316420]  ;;  %9100 = vmatpush.xpose.msra.mxu3 %v10834_v30  ;;  %v8987_v38 = vld [vmem:[#allocation5 + $0x25] sm:$0x1]  ;;  %v8960_v58 = vmax.f32 %v8956_v20, %v8957_v54 }
 0x9bd   : > { %v8618_v22 = vrot.slane %v8582_v24, 4  ;;  %8725 = vst [vmem:[#allocation5 + $0x30] sm:$0xff] %v8653_v53  ;;  %v9017_v10 = vld [vmem:[#allocation5 + $0x27] sm:$0x1]  ;;  %v10835_v20 = vld [vmem:[%s14975_s5 + $0x30] sm:$0xf] }
 0x9be   : > { %v8503_v59 = vpop.f32.mrf.mxu3  ;;  %8655 = vst [vmem:[#allocation1] ss:$2 sm:$0xff] %v8582_v24  ;;  %v8654_v48 = vld.sshfl [vmem:[#allocation1 + $0x30] sm:$0xff pattern:$0x75316420]  ;;  %v8990_v24 = vmax.f32 %v8986_v44, %v8987_v38  ;;  %v8037_v38 = vadd.f32 %v14795_v35, %v14688_v42 }
 0x9bf   : > { %v8543_v29 = vadd.f32 %v8503_v59, %v8289_v31  ;;  %8656 = vst [vmem:[#allocation1 + $0x1] ss:$2 sm:$0xff] %v8618_v22  ;;  %v10836_v54 = vld [vmem:[%s14975_s5 + $0x34] sm:$0xf]  ;;  %v10837_v23 = vld [vmem:[%s14975_s5 + $0x38] sm:$0xf] }
 0x9c0   : > { %8726 = vst [vmem:[#allocation5 + $0x38] sm:$0xf] %v8654_v48  ;;  %v9016_v48 = vld [vmem:[#allocation5 + $0x26] sm:$0x1] }
 0x9c1   : > { %v8565_v3 = vadd.f32 %v14745_v25, %v8543_v29 }
 0x9c3   : > { %v8583_v39 = vmax.f32 %v8565_v3, 0.0 }
 0x9c4   : > { %v8928_v52 = vld [vmem:[#allocation5 + $0x30] sm:$0x1]  ;;  %v8929_v9 = vld [vmem:[#allocation5 + $0x31] sm:$0x1]  ;;  %v8958_v46 = vld [vmem:[#allocation5 + $0x32] sm:$0x1] }
 0x9c5   : > { %v8619_v55 = vrot.slane %v8583_v39, 4  ;;  %v8931_v40 = vmax.f32 %v8928_v52, %v8929_v9  ;;  %v8959_v63 = vld [vmem:[#allocation5 + $0x33] sm:$0x1]  ;;  %v8988_v2 = vld [vmem:[#allocation5 + $0x34] sm:$0x1] }
 0x9c6   : > { %v8506_v16 = vpop.f32.mrf.mxu3  ;;  %v8961_v45 = vmax.f32 %v8958_v46, %v8959_v63  ;;  %v8989_v30 = vld [vmem:[#allocation5 + $0x35] sm:$0x1]  ;;  %v9018_v12 = vld [vmem:[#allocation5 + $0x36] sm:$0x1]  ;;  %v9019_v31 = vld [vmem:[#allocation5 + $0x37] sm:$0x1] }
 0x9c7   : > { %v8544_v11 = vadd.f32 %v8506_v16, %v8290_v43  ;;  %v8932_v18 = vmax.f32 %v8930_v4, %v8931_v40  ;;  %8660 = vst [vmem:[#allocation1 + $0x20] ss:$2 sm:$0xff] %v8619_v55  ;;  %v8991_v53 = vmax.f32 %v8988_v2, %v8989_v30  ;;  %v9048_v22 = vld [vmem:[#allocation5 + $0x38] sm:$0x1]  ;;  %v9049_v29 = vld [vmem:[#allocation5 + $0x39] sm:$0x1]  ;;  %v9021_v9 = vmax.f32 %v9018_v12, %v9019_v31  ;;  %v8007_v55 = vpop.f32.mrf.mxu1  ;;  %v8261_v30 = vpop.f32.mrf.mxu2 }
 0x9c8   : > { %v8962_v59 = vmax.f32 %v8960_v58, %v8961_v45  ;;  %8657 = vst [vmem:[#allocation1 + $0x10] ss:$2 sm:$0xff] %v8583_v39  ;;  %v9078_v3 = vld [vmem:[#allocation5 + $0x3a] sm:$0x1]  ;;  %v9079_v44 = vld [vmem:[#allocation5 + $0x3b] sm:$0x1]  ;;  %v9051_v4 = vmax.f32 %v9048_v22, %v9049_v29  ;;  %v8291_v2 = vadd.f32 %v14804_v19, %v8037_v38  ;;  %v9020_v58 = vmax.f32 %v9016_v48, %v9017_v10 }
 0x9c9   : > { %v8566_v32 = vadd.f32 %v14745_v25, %v8544_v11  ;;  %8951 = vmatmul.f32.vlgmr.msra.gmra.mxu1 %v8932_v18  ;;  %v8992_v5 = vmax.f32 %v8990_v24, %v8991_v53  ;;  %v8658_v39 = vld.sshfl [vmem:[#allocation1] sm:$0xff pattern:$0x75316420]  ;;  %v9046_v46 = vld [vmem:[#allocation5 + $0x28] sm:$0x1]  ;;  %v9081_v45 = vmax.f32 %v9078_v3, %v9079_v44  ;;  %v8038_v10 = vadd.f32 %v14810_v7, %v14698_v34 }
 0x9ca   : > { %8981 = vmatmul.f32.vlgmr.msra.gmra.mxu2 %v8962_v59  ;;  %9132 = vmatpush.xpose.msra.mxu1 %v10835_v20  ;;  %v9047_v43 = vld [vmem:[#allocation5 + $0x29] sm:$0x1]  ;;  %8727 = vst [vmem:[#allocation5 + $0x40] sm:$0xff] %v8658_v39  ;;  %v9076_v40 = vld [vmem:[#allocation5 + $0x2a] sm:$0x1]  ;;  %v9022_v18 = vmax.f32 %v9020_v58, %v9021_v9 }
 0x9cb   : > { %v8584_v52 = vmax.f32 %v8566_v32, 0.0  ;;  %9011 = vmatmul.f32.vlgmr.msrb.gmra.mxu3 %v8992_v5  ;;  %9162 = vmatpush.xpose.msra.mxu2 %v10836_v54  ;;  %v9077_v63 = vld [vmem:[#allocation5 + $0x2b] sm:$0x1]  ;;  %v9050_v35 = vmax.f32 %v9046_v46, %v9047_v43  ;;  %v10838_v12 = vld [vmem:[%s14975_s5 + $0x3c] sm:$0xf]  ;;  %v8292_v32 = vadd.f32 %v14814_v33, %v8038_v10  ;;  %v8039_v46 = vadd.f32 %v8007_v55, %v14708_v51 }
 0x9cc   : > { %9192 = vmatpush.xpose.msrb.mxu3 %v10837_v23  ;;  %v9080_v24 = vmax.f32 %v9076_v40, %v9077_v63  ;;  %v10839_v19 = vld [vmem:[%s14975_s5 + $0x40] sm:$0xf]  ;;  %v10840_v48 = vld [vmem:[%s14975_s5 + $0x44] sm:$0xf]  ;;  %v7277_v40 = vadd.f32 %v14643_v28, %v14473_v13 }
 0x9cd   : > { %v8620_v16 = vrot.slane %v8584_v52, 4  ;;  %8661 = vst [vmem:[#allocation1 + $0x21] ss:$2 sm:$0xff] %v8584_v52  ;;  %v9052_v31 = vmax.f32 %v9050_v35, %v9051_v4  ;;  %v8293_v58 = vadd.f32 %v8261_v30, %v8039_v46 }
 0x9ce   : > { %v8509_v42 = vpop.f32.mrf.mxu3  ;;  %v9082_v59 = vmax.f32 %v9080_v24, %v9081_v45 }
 0x9cf   : > { %v8545_v11 = vadd.f32 %v8509_v42, %v8291_v2  ;;  %8662 = vst [vmem:[#allocation1 + $0x30] ss:$2 sm:$0xff] %v8620_v16  ;;  %v8659_v53 = vld.sshfl [vmem:[#allocation1 + $0x10] sm:$0xff pattern:$0x75316420]  ;;  %v8010_v20 = vpop.f32.mrf.mxu1  ;;  %v14843_v39 = vpop.f32.mrf.mxu2 }
 0x9d0   : > { %8728 = vst [vmem:[#allocation5 + $0x48] sm:$0xf] %v8659_v53 }
 0x9d1   : > { %v8567_v22 = vadd.f32 %v14745_v25, %v8545_v11  ;;  %9041 = vmatmul.f32.vlgmr.msrb.gmra.mxu1 %v9022_v18  ;;  %v9107_v7 = vld [vmem:[#allocation5 + $0x40] sm:$0x1]  ;;  %v9108_v38 = vld [vmem:[#allocation5 + $0x41] sm:$0x1]  ;;  %v9138_v52 = vld [vmem:[#allocation5 + $0x42] sm:$0x1]  ;;  %v7531_v18 = vadd.f32 %v14654_v1, %v7277_v40  ;;  %v7278_v40 = vadd.f32 %v14657_v36, %v14489_v21 }
 0x9d2   : > { %9071 = vmatmul.f32.vlgmr.msrb.gmra.mxu2 %v9052_v31  ;;  %9222 = vmatpush.xpose.msrb.mxu1 %v10838_v12  ;;  %v9139_v9 = vld [vmem:[#allocation5 + $0x43] sm:$0x1]  ;;  %v9168_v43 = vld [vmem:[#allocation5 + $0x44] sm:$0x1]  ;;  %v9169_v4 = vld [vmem:[#allocation5 + $0x45] sm:$0x1]  ;;  %v9112_v42 = vmax.f32 %v9107_v7, %v9108_v38 }
 0x9d3   : > { %v8585_v29 = vmax.f32 %v8567_v22, 0.0  ;;  %9101 = vmatmul.f32.vlgmr.msra.gmra.mxu3 %v9082_v59  ;;  %9252 = vmatpush.xpose.msrb.mxu2 %v10839_v19  ;;  %v9142_v53 = vmax.f32 %v9138_v52, %v9139_v9  ;;  %v9172_v13 = vmax.f32 %v9168_v43, %v9169_v4  ;;  %v7785_v1 = vadd.f32 %v14718_v37, %v7531_v18  ;;  %v10843_v7 = vld [vmem:[%s14975_s5 + $0x50] sm:$0xf] }
 0x9d4   : > { %v8663_v3 = vld.sshfl [vmem:[#allocation1 + $0x20] sm:$0xff pattern:$0x75316420]  ;;  %9282 = vmatpush.xpose.msra.mxu3 %v10840_v48  ;;  %v7532_v18 = vadd.f32 %v14672_v8, %v7278_v40  ;;  %v10846_v8 = vld [vmem:[%s14975_s5 + $0x5c] sm:$0xf] }
 0x9d5   : > { %v8621_v5 = vrot.slane %v8585_v29, 4  ;;  %8729 = vst [vmem:[#allocation5 + $0x50] sm:$0xff] %v8663_v3  ;;  %v9199_v3 = vld [vmem:[#allocation5 + $0x47] sm:$0x1]  ;;  %v8040_v9 = vadd.f32 %v8010_v20, %v7785_v1 }
 0x9d6   : > { %v8512_v54 = vpop.f32.mrf.mxu3  ;;  %8665 = vst [vmem:[#allocation1] ss:$2 sm:$0xff] %v8585_v29  ;;  %v8664_v23 = vld.sshfl [vmem:[#allocation1 + $0x30] sm:$0xff pattern:$0x75316420] }
 0x9d7   : > { %v8546_v44 = vadd.f32 %v8512_v54, %v8292_v32  ;;  %8666 = vst [vmem:[#allocation1 + $0x1] ss:$2 sm:$0xff] %v8621_v5  ;;  %v8013_v30 = vpop.f32.mrf.mxu1  ;;  %v9198_v29 = vld [vmem:[#allocation5 + $0x46] sm:$0x1]  ;;  %v8267_v38 = vpop.f32.mrf.mxu2  ;;  %v9228_v43 = vld [vmem:[#allocation5 + $0x48] sm:$0x1] }
 0x9d8   : > { %8730 = vst [vmem:[#allocation5 + $0x58] sm:$0xf] %v8664_v23  ;;  %v9229_v4 = vld [vmem:[#allocation5 + $0x49] sm:$0x1] }
 0x9d9   : > { %v8568_v34 = vadd.f32 %v14745_v25, %v8546_v44  ;;  %v10841_v44 = vld [vmem:[%s14975_s5 + $0x48] sm:$0xf] }
 0x9db   : > { %v8586_v33 = vmax.f32 %v8568_v34, 0.0  ;;  %v10842_v34 = vld [vmem:[%s14975_s5 + $0x4c] sm:$0xf] }
 0x9dc   : > { %v9110_v63 = vld [vmem:[#allocation5 + $0x50] sm:$0x1]  ;;  %v9111_v2 = vld [vmem:[#allocation5 + $0x51] sm:$0x1]  ;;  %v9140_v16 = vld [vmem:[#allocation5 + $0x52] sm:$0x1] }
 0x9dd   : > { %v8622_v45 = vrot.slane %v8586_v33, 4  ;;  %v9113_v35 = vmax.f32 %v9110_v63, %v9111_v2  ;;  %v9141_v12 = vld [vmem:[#allocation5 + $0x53] sm:$0x1]  ;;  %v9170_v11 = vld [vmem:[#allocation5 + $0x54] sm:$0x1] }
 0x9de   : > { %v8515_v24 = vpop.f32.mrf.mxu3  ;;  %v9143_v51 = vmax.f32 %v9140_v16, %v9141_v12  ;;  %v9171_v55 = vld [vmem:[#allocation5 + $0x55] sm:$0x1]  ;;  %v9200_v31 = vld [vmem:[#allocation5 + $0x56] sm:$0x1]  ;;  %v9201_v59 = vld [vmem:[#allocation5 + $0x57] sm:$0x1]  ;;  %v9232_v12 = vmax.f32 %v9228_v43, %v9229_v4 }
 0x9df   : > { %v8547_v19 = vadd.f32 %v8515_v24, %v8293_v58  ;;  %v9114_v22 = vmax.f32 %v9112_v42, %v9113_v35  ;;  %8670 = vst [vmem:[#allocation1 + $0x20] ss:$2 sm:$0xff] %v8622_v45  ;;  %v9173_v28 = vmax.f32 %v9170_v11, %v9171_v55  ;;  %v9230_v48 = vld [vmem:[#allocation5 + $0x58] sm:$0x1]  ;;  %v9231_v32 = vld [vmem:[#allocation5 + $0x59] sm:$0x1]  ;;  %v8294_v58 = vadd.f32 %v14843_v39, %v8040_v9 }
 0x9e0   : > { %v9144_v10 = vmax.f32 %v9142_v53, %v9143_v51  ;;  %8667 = vst [vmem:[#allocation1 + $0x10] ss:$2 sm:$0xff] %v8586_v33  ;;  %v9260_v5 = vld [vmem:[#allocation5 + $0x5a] sm:$0x1]  ;;  %v9261_v52 = vld [vmem:[#allocation5 + $0x5b] sm:$0x1]  ;;  %v9203_v33 = vmax.f32 %v9200_v31, %v9201_v59  ;;  %v9233_v63 = vmax.f32 %v9230_v48, %v9231_v32  ;;  %v9202_v42 = vmax.f32 %v9198_v29, %v9199_v3  ;;  %v8270_v59 = vpop.f32.mrf.mxu2 }
 0x9e1   : > { %v8569_v54 = vadd.f32 %v14745_v25, %v8547_v19  ;;  %9133 = vmatmul.f32.vlgmr.msra.gmra.mxu1 %v9114_v22  ;;  %v9174_v23 = vmax.f32 %v9172_v13, %v9173_v28  ;;  %v8668_v37 = vld.sshfl [vmem:[#allocation1] sm:$0xff pattern:$0x75316420]  ;;  %v9258_v2 = vld [vmem:[#allocation5 + $0x4a] sm:$0x1]  ;;  %v9263_v20 = vmax.f32 %v9260_v5, %v9261_v52  ;;  %v7786_v55 = vadd.f32 %v14724_v49, %v7532_v18  ;;  %v8016_v22 = vpop.f32.mrf.mxu1 }
 0x9e2   : > { %9163 = vmatmul.f32.vlgmr.msra.gmra.mxu2 %v9144_v10  ;;  %9314 = vmatpush.xpose.msra.mxu1 %v10841_v44  ;;  %8731 = vst [vmem:[#allocation5 + $0x60] sm:$0xff] %v8668_v37  ;;  %v9259_v16 = vld [vmem:[#allocation5 + $0x4b] sm:$0x1]  ;;  %v10844_v11 = vld [vmem:[%s14975_s5 + $0x54] sm:$0xf]  ;;  %v9204_v21 = vmax.f32 %v9202_v42, %v9203_v33  ;;  %v9234_v51 = vmax.f32 %v9232_v12, %v9233_v63 }
 0x9e3   : > { %v8587_v46 = vmax.f32 %v8569_v54, 0.0  ;;  %9193 = vmatmul.f32.vlgmr.msrb.gmra.mxu3 %v9174_v23  ;;  %9344 = vmatpush.xpose.msra.mxu2 %v10842_v34  ;;  %v9262_v36 = vmax.f32 %v9258_v2, %v9259_v16  ;;  %v10845_v39 = vld [vmem:[%s14975_s5 + $0x58] sm:$0xf]  ;;  %v8041_v13 = vadd.f32 %v8013_v30, %v7786_v55  ;;  %v7279_v49 = vadd.f32 %v14678_v17, %v14508_v26 }
 0x9e4   : > { %9374 = vmatpush.xpose.msrb.mxu3 %v10843_v7  ;;  %v7280_v37 = vadd.f32 %v14690_v15, %v14522_v62 }
 0x9e5   : > { %v8623_v45 = vrot.slane %v8587_v46, 4  ;;  %8671 = vst [vmem:[#allocation1 + $0x21] ss:$2 sm:$0xff] %v8587_v46  ;;  %v9264_v19 = vmax.f32 %v9262_v36, %v9263_v20  ;;  %v8295_v10 = vadd.f32 %v8267_v38, %v8041_v13  ;;  %v7533_v5 = vadd.f32 %v14682_v47, %v7279_v49  ;;  %v10849_v13 = vld [vmem:[%s14975_s5 + $0x68] sm:$0xf] }
 0x9e6   : > { %v8518_v35 = vpop.f32.mrf.mxu3  ;;  %v7534_v16 = vadd.f32 %v14692_v61, %v7280_v37 }
 0x9e7   : > { %v8548_v24 = vadd.f32 %v8518_v35, %v8294_v58  ;;  %8672 = vst [vmem:[#allocation1 + $0x30] ss:$2 sm:$0xff] %v8623_v45  ;;  %v8669_v53 = vld.sshfl [vmem:[#allocation1 + $0x10] sm:$0xff pattern:$0x75316420]  ;;  %v7787_v30 = vadd.f32 %v14729_v27, %v7533_v5 }
 0x9e8   : > { %8732 = vst [vmem:[#allocation5 + $0x68] sm:$0xf] %v8669_v53  ;;  %v8273_v58 = vpop.f32.mrf.mxu2  ;;  %v7788_v61 = vadd.f32 %v14732_v57, %v7534_v16 }
 0x9e9   : > { %v8570_v31 = vadd.f32 %v14745_v25, %v8548_v24  ;;  %9223 = vmatmul.f32.vlgmr.msrb.gmra.mxu1 %v9204_v21  ;;  %v9289_v23 = vld [vmem:[#allocation5 + $0x60] sm:$0x1]  ;;  %v9290_v44 = vld [vmem:[#allocation5 + $0x61] sm:$0x1]  ;;  %v9320_v34 = vld [vmem:[#allocation5 + $0x62] sm:$0x1]  ;;  %v8042_v26 = vadd.f32 %v8016_v22, %v7787_v30  ;;  %v8019_v9 = vpop.f32.mrf.mxu1 }
 0x9ea   : > { %9253 = vmatmul.f32.vlgmr.msrb.gmra.mxu2 %v9234_v51  ;;  %9404 = vmatpush.xpose.msrb.mxu1 %v10844_v11  ;;  %v9321_v7 = vld [vmem:[#allocation5 + $0x63] sm:$0x1]  ;;  %v9350_v38 = vld [vmem:[#allocation5 + $0x64] sm:$0x1]  ;;  %v9351_v52 = vld [vmem:[#allocation5 + $0x65] sm:$0x1]  ;;  %v9294_v27 = vmax.f32 %v9289_v23, %v9290_v44 }
 0x9eb   : > { %v8588_v28 = vmax.f32 %v8570_v31, 0.0  ;;  %9283 = vmatmul.f32.vlgmr.msra.gmra.mxu3 %v9264_v19  ;;  %9434 = vmatpush.xpose.msrb.mxu2 %v10845_v39  ;;  %v8296_v43 = vadd.f32 %v8270_v59, %v8042_v26  ;;  %v9324_v42 = vmax.f32 %v9320_v34, %v9321_v7  ;;  %v9354_v15 = vmax.f32 %v9350_v38, %v9351_v52  ;;  %v9380_v53 = vld [vmem:[#allocation5 + $0x66] sm:$0x1]  ;;  %v9381_v51 = vld [vmem:[#allocation5 + $0x67] sm:$0x1] }
 0x9ec   : > { %v8673_v48 = vld.sshfl [vmem:[#allocation1 + $0x20] sm:$0xff pattern:$0x75316420]  ;;  %9464 = vmatpush.xpose.msra.mxu3 %v10846_v8  ;;  %v8043_v59 = vadd.f32 %v8019_v9, %v7788_v61  ;;  %v9384_v23 = vmax.f32 %v9380_v53, %v9381_v51 }
 0x9ed   : > { %v8624_v29 = vrot.slane %v8588_v28, 4  ;;  %8733 = vst [vmem:[#allocation5 + $0x70] sm:$0xff] %v8673_v48  ;;  %v10847_v8 = vld [vmem:[%s14975_s5 + $0x60] sm:$0xf]  ;;  %v10848_v22 = vld [vmem:[%s14975_s5 + $0x64] sm:$0xf] }
 0x9ee   : > { %v8521_v3 = vpop.f32.mrf.mxu3  ;;  %8675 = vst [vmem:[#allocation1] ss:$2 sm:$0xff] %v8588_v28  ;;  %v8674_v32 = vld.sshfl [vmem:[#allocation1 + $0x30] sm:$0xff pattern:$0x75316420]  ;;  %v8297_v30 = vadd.f32 %v8273_v58, %v8043_v59 }
 0x9ef   : > { %v8549_v1 = vadd.f32 %v8521_v3, %v8295_v10  ;;  %8676 = vst [vmem:[#allocation1 + $0x1] ss:$2 sm:$0xff] %v8624_v29  ;;  %v9410_v10 = vld [vmem:[#allocation5 + $0x68] sm:$0x1]  ;;  %v9411_v29 = vld [vmem:[#allocation5 + $0x69] sm:$0x1]  ;;  %v7281_v3 = vadd.f32 %v14700_v56, %v14544_v41 }
 0x9f0   : > { %8734 = vst [vmem:[#allocation5 + $0x78] sm:$0xf] %v8674_v32  ;;  %v9440_v5 = vld [vmem:[#allocation5 + $0x6a] sm:$0x1]  ;;  %v9414_v26 = vmax.f32 %v9410_v10, %v9411_v29  ;;  %v8276_v9 = vpop.f32.mrf.mxu2 }
 0x9f1   : > { %v8571_v54 = vadd.f32 %v14745_v25, %v8549_v1  ;;  %v9441_v1 = vld [vmem:[#allocation5 + $0x6b] sm:$0x1]  ;;  %v8022_v34 = vpop.f32.mrf.mxu1  ;;  %v7535_v38 = vadd.f32 %v14704_v14, %v7281_v3  ;;  %v10852_v14 = vld [vmem:[%s14975_s5 + $0x74] sm:$0xf] }
 0x9f2   : > { %v9444_v56 = vmax.f32 %v9440_v5, %v9441_v1  ;;  %v10855_v5 = vld [vmem:[%s14975_s5 + $0x80] sm:$0xf]  ;;  %v10853_v1 = vld [vmem:[%s14975_s5 + $0x78] sm:$0xf] }
 0x9f3   : > { %v8589_v17 = vmax.f32 %v8571_v54, 0.0 }
 0x9f4   : > { %v9292_v47 = vld [vmem:[#allocation5 + $0x70] sm:$0x1]  ;;  %v9293_v46 = vld [vmem:[#allocation5 + $0x71] sm:$0x1]  ;;  %v9322_v33 = vld [vmem:[#allocation5 + $0x72] sm:$0x1] }
 0x9f5   : > { %v8625_v4 = vrot.slane %v8589_v17, 4  ;;  %v9295_v40 = vmax.f32 %v9292_v47, %v9293_v46  ;;  %v9323_v63 = vld [vmem:[#allocation5 + $0x73] sm:$0x1]  ;;  %v9352_v2 = vld [vmem:[#allocation5 + $0x74] sm:$0x1] }
 0x9f6   : > { %v8524_v45 = vpop.f32.mrf.mxu3  ;;  %v9325_v20 = vmax.f32 %v9322_v33, %v9323_v63  ;;  %v9353_v35 = vld [vmem:[#allocation5 + $0x75] sm:$0x1]  ;;  %v9382_v12 = vld [vmem:[#allocation5 + $0x76] sm:$0x1]  ;;  %v9383_v24 = vld [vmem:[#allocation5 + $0x77] sm:$0x1]  ;;  %v7789_v33 = vadd.f32 %v14735_v60, %v7535_v38 }
 0x9f7   : > { %v8550_v11 = vadd.f32 %v8524_v45, %v8296_v43  ;;  %v9296_v62 = vmax.f32 %v9294_v27, %v9295_v40  ;;  %8680 = vst [vmem:[#allocation1 + $0x20] ss:$2 sm:$0xff] %v8625_v4  ;;  %v9355_v18 = vmax.f32 %v9352_v2, %v9353_v35  ;;  %v9412_v21 = vld [vmem:[#allocation5 + $0x78] sm:$0x1]  ;;  %v9413_v39 = vld [vmem:[#allocation5 + $0x79] sm:$0x1]  ;;  %v9385_v49 = vmax.f32 %v9382_v12, %v9383_v24 }
 0x9f8   : > { %v9326_v36 = vmax.f32 %v9324_v42, %v9325_v20  ;;  %8677 = vst [vmem:[#allocation1 + $0x10] ss:$2 sm:$0xff] %v8589_v17  ;;  %v9442_v55 = vld [vmem:[#allocation5 + $0x7a] sm:$0x1]  ;;  %v9443_v28 = vld [vmem:[#allocation5 + $0x7b] sm:$0x1]  ;;  %v9415_v32 = vmax.f32 %v9412_v21, %v9413_v39  ;;  %v8044_v27 = vadd.f32 %v8022_v34, %v7789_v33  ;;  %v7282_v2 = vadd.f32 %v14712_v50, %v14560_v6 }
 0x9f9   : > { %v8572_v31 = vadd.f32 %v14745_v25, %v8550_v11  ;;  %9315 = vmatmul.f32.vlgmr.msra.gmra.mxu1 %v9296_v62  ;;  %v9356_v19 = vmax.f32 %v9354_v15, %v9355_v18  ;;  %v8678_v57 = vld.sshfl [vmem:[#allocation1] sm:$0xff pattern:$0x75316420]  ;;  %v9445_v44 = vmax.f32 %v9442_v55, %v9443_v28  ;;  %v10850_v17 = vld [vmem:[%s14975_s5 + $0x6c] sm:$0xf]  ;;  %v9386_v41 = vmax.f32 %v9384_v23, %v9385_v49  ;;  %v8025_v35 = vpop.f32.mrf.mxu1  ;;  %v15257_v12 = vld [vmem:[#allocation14_spill] sm:$0xff]  ;;  %v8279_v18 = vpop.f32.mrf.mxu2 }
 0x9fa   : > { %9345 = vmatmul.f32.vlgmr.msra.gmra.mxu2 %v9326_v36  ;;  %9496 = vmatpush.xpose.msra.mxu1 %v10847_v8  ;;  %8735 = vst [vmem:[#allocation5 + $0x80] sm:$0xff] %v8678_v57  ;;  %v9416_v47 = vmax.f32 %v9414_v26, %v9415_v32  ;;  %v10851_v46 = vld [vmem:[%s14975_s5 + $0x70] sm:$0xf]  ;;  %v8298_v60 = vadd.f32 %v8276_v9, %v8044_v27 }
 0x9fb   : > { %v8590_v48 = vmax.f32 %v8572_v31, 0.0  ;;  %9375 = vmatmul.f32.vlgmr.msrb.gmra.mxu3 %v9356_v19  ;;  %9526 = vmatpush.xpose.msra.mxu2 %v10848_v22  ;;  %v9446_v4 = vmax.f32 %v9444_v56, %v9445_v44  ;;  %v7536_v42 = vadd.f32 %v14716_v0, %v7282_v2  ;;  %v10856_v2 = vld [vmem:[%s14975_s5 + $0x84] sm:$0xf] }
 0x9fc   : > { %9556 = vmatpush.xpose.msrb.mxu3 %v10849_v13 }
 0x9fd   : > { %v8626_v54 = vrot.slane %v8590_v48, 4  ;;  %8681 = vst [vmem:[#allocation1 + $0x21] ss:$2 sm:$0xff] %v8590_v48  ;;  %v7790_v11 = vadd.f32 %v15257_v12, %v7536_v42  ;;  %v10854_v48 = vld [vmem:[%s14975_s5 + $0x7c] sm:$0xf] }
 0x9fe   : > { %v8527_v7 = vpop.f32.mrf.mxu3  ;;  %v10857_v42 = vld [vmem:[%s14975_s5 + $0x88] sm:$0xf] }
 0x9ff   : > { %v8551_v52 = vadd.f32 %v8527_v7, %v8297_v30  ;;  %8682 = vst [vmem:[#allocation1 + $0x30] ss:$2 sm:$0xff] %v8626_v54  ;;  %v8679_v37 = vld.sshfl [vmem:[#allocation1 + $0x10] sm:$0xff pattern:$0x75316420]  ;;  %v8045_v21 = vadd.f32 %v8025_v35, %v7790_v11 }
 0xa00   : > { %8736 = vst [vmem:[#allocation5 + $0x88] sm:$0xf] %v8679_v37  ;;  %v10924_v7 = vld [vmem:[%s14974_s4] ss:$0 sm:$0xff]  ;;  %v10858_v35 = vld [vmem:[%s14975_s5 + $0x8c] sm:$0xf] }
 0xa01   : > { %v8573_v43 = vadd.f32 %v14745_v25, %v8551_v52  ;;  %9405 = vmatmul.f32.vlgmr.msrb.gmra.mxu1 %v9386_v41  ;;  %v9471_v15 = vld [vmem:[#allocation5 + $0x80] sm:$0x1]  ;;  %v9472_v24 = vld [vmem:[#allocation5 + $0x81] sm:$0x1]  ;;  %v9502_v6 = vld [vmem:[#allocation5 + $0x82] sm:$0x1]  ;;  %v8299_v61 = vadd.f32 %v8279_v18, %v8045_v21 }
 0xa02   : > { %9435 = vmatmul.f32.vlgmr.msrb.gmra.mxu2 %v9416_v47  ;;  %9586 = vmatpush.xpose.msrb.mxu1 %v10850_v17  ;;  %v9503_v50 = vld [vmem:[#allocation5 + $0x83] sm:$0x1]  ;;  %v9532_v53 = vld [vmem:[#allocation5 + $0x84] sm:$0x1]  ;;  %v9533_v51 = vld [vmem:[#allocation5 + $0x85] sm:$0x1]  ;;  %v9476_v19 = vmax.f32 %v9471_v15, %v9472_v24 }
 0xa03   : > { %v8591_v40 = vmax.f32 %v8573_v43, 0.0  ;;  %9465 = vmatmul.f32.vlgmr.msra.gmra.mxu3 %v9446_v4  ;;  %9616 = vmatpush.xpose.msrb.mxu2 %v10851_v46  ;;  %v9536_v29 = vmax.f32 %v9532_v53, %v9533_v51  ;;  %v9562_v54 = vld [vmem:[#allocation5 + $0x86] sm:$0x1]  ;;  %v9563_v23 = vld [vmem:[#allocation5 + $0x87] sm:$0x1] }
 0xa04   : > { %v8683_v63 = vld.sshfl [vmem:[#allocation1 + $0x20] sm:$0xff pattern:$0x75316420]  ;;  %9646 = vmatpush.xpose.msra.mxu3 %v10852_v14  ;;  %v9566_v27 = vmax.f32 %v9562_v54, %v9563_v23 }
 0xa05   : > { %v8627_v16 = vrot.slane %v8591_v40, 4  ;;  %8737 = vst [vmem:[#allocation5 + $0x90] sm:$0xff] %v8683_v63 }
 0xa06   : > { %v8530_v58 = vpop.f32.mrf.mxu3  ;;  %8685 = vst [vmem:[#allocation1] ss:$2 sm:$0xff] %v8591_v40  ;;  %v8684_v45 = vld.sshfl [vmem:[#allocation1 + $0x30] sm:$0xff pattern:$0x75316420] }
 0xa07   : > { %v8552_v20 = vadd.f32 %v8530_v58, %v8298_v60  ;;  %8686 = vst [vmem:[#allocation1 + $0x1] ss:$2 sm:$0xff] %v8627_v16  ;;  %v9592_v47 = vld [vmem:[#allocation5 + $0x88] sm:$0x1]  ;;  %v9593_v46 = vld [vmem:[#allocation5 + $0x89] sm:$0x1] }
 0xa08   : > { %8738 = vst [vmem:[#allocation5 + $0x98] sm:$0xf] %v8684_v45  ;;  %v9622_v43 = vld [vmem:[#allocation5 + $0x8a] sm:$0x1]  ;;  %v9623_v4 = vld [vmem:[#allocation5 + $0x8b] sm:$0x1]  ;;  %v9596_v63 = vmax.f32 %v9592_v47, %v9593_v46 }
 0xa09   : > { %v8574_v62 = vadd.f32 %v14745_v25, %v8552_v20  ;;  %v9506_v25 = vmax.f32 %v9502_v6, %v9503_v50  ;;  %v9626_v16 = vmax.f32 %v9622_v43, %v9623_v4 }
 0xa0b   : > { %v8592_v36 = vmax.f32 %v8574_v62, 0.0 }
 0xa0c   : > { %v9474_v39 = vld [vmem:[#allocation5 + $0x90] sm:$0x1]  ;;  %v9475_v55 = vld [vmem:[#allocation5 + $0x91] sm:$0x1]  ;;  %v9504_v0 = vld [vmem:[#allocation5 + $0x92] sm:$0x1] }
 0xa0d   : > { %v8628_v31 = vrot.slane %v8592_v36, 4  ;;  %v9477_v8 = vmax.f32 %v9474_v39, %v9475_v55  ;;  %v9505_v22 = vld [vmem:[#allocation5 + $0x93] sm:$0x1]  ;;  %v9534_v13 = vld [vmem:[#allocation5 + $0x94] sm:$0x1] }
 0xa0e   : > { %v8533_v28 = vpop.f32.mrf.mxu3  ;;  %v9507_v57 = vmax.f32 %v9504_v0, %v9505_v22  ;;  %v9535_v59 = vld [vmem:[#allocation5 + $0x95] sm:$0x1]  ;;  %v9564_v32 = vld [vmem:[#allocation5 + $0x96] sm:$0x1]  ;;  %v9565_v44 = vld [vmem:[#allocation5 + $0x97] sm:$0x1] }
 0xa0f   : > { %v8553_v49 = vadd.f32 %v8533_v28, %v8299_v61  ;;  %v9478_v10 = vmax.f32 %v9476_v19, %v9477_v8  ;;  %8690 = vst [vmem:[#allocation1 + $0x20] ss:$2 sm:$0xff] %v8628_v31  ;;  %v9537_v3 = vmax.f32 %v9534_v13, %v9535_v59  ;;  %v9594_v34 = vld [vmem:[#allocation5 + $0x98] sm:$0x1]  ;;  %v9595_v38 = vld [vmem:[#allocation5 + $0x99] sm:$0x1]  ;;  %v9567_v9 = vmax.f32 %v9564_v32, %v9565_v44 }
 0xa10   : > { %v9508_v30 = vmax.f32 %v9506_v25, %v9507_v57  ;;  %8687 = vst [vmem:[#allocation1 + $0x10] ss:$2 sm:$0xff] %v8592_v36  ;;  %v8688_v52 = vld.sshfl [vmem:[#allocation1] sm:$0xff pattern:$0x75316420]  ;;  %v9597_v33 = vmax.f32 %v9594_v34, %v9595_v38 }
 0xa11   : > { %v8575_v26 = vadd.f32 %v10924_v7, %v8553_v49  ;;  %9497 = vmatmul.f32.vlgmr.msra.gmra.mxu1 %v9478_v10  ;;  %v9538_v17 = vmax.f32 %v9536_v29, %v9537_v3  ;;  %v9624_v41 = vld [vmem:[#allocation5 + $0x9a] sm:$0x1]  ;;  %v9625_v56 = vld [vmem:[#allocation5 + $0x9b] sm:$0x1]  ;;  %8739 = vst [vmem:[#allocation5 + $0xa0] sm:$0xff] %v8688_v52  ;;  %v9568_v60 = vmax.f32 %v9566_v27, %v9567_v9 }
 0xa12   : > { %9527 = vmatmul.f32.vlgmr.msra.gmra.mxu2 %v9508_v30  ;;  %9678 = vmatpush.xpose.msra.mxu1 %v10853_v1  ;;  %v9627_v40 = vmax.f32 %v9624_v41, %v9625_v56  ;;  %v9598_v45 = vmax.f32 %v9596_v63, %v9597_v33  ;;  %v8743_v56 = vld [vmem:[%s14976_s6] sm:$0x1] }
 0xa13   : > { %v8593_v37 = vmax.f32 %v8575_v26, 0.0  ;;  %9557 = vmatmul.f32.vlgmr.msrb.gmra.mxu3 %v9538_v17  ;;  %9708 = vmatpush.xpose.msra.mxu2 %v10854_v48 }
 0xa14   : > { %9738 = vmatpush.xpose.msrb.mxu3 %v10855_v5  ;;  %v9628_v20 = vmax.f32 %v9626_v16, %v9627_v40 }
 0xa15   : > { %v8629_v14 = vrot.slane %v8593_v37, 4  ;;  %8691 = vst [vmem:[#allocation1 + $0x21] ss:$2 sm:$0xff] %v8593_v37 }
 0xa17   : > { %8692 = vst [vmem:[#allocation1 + $0x30] ss:$2 sm:$0xff] %v8629_v14  ;;  %v8689_v58 = vld.sshfl [vmem:[#allocation1 + $0x10] sm:$0xff pattern:$0x75316420] }
 0xa18   : > { %8740 = vst [vmem:[#allocation5 + $0xa8] sm:$0xf] %v8689_v58  ;;  %v9653_v62 = vld [vmem:[#allocation5 + $0xa0] sm:$0x1]  ;;  %v9654_v15 = vld [vmem:[#allocation5 + $0xa1] sm:$0x1] }
 0xa19   : > { %9587 = vmatmul.f32.vlgmr.msrb.gmra.mxu1 %v9568_v60  ;;  %v9684_v18 = vld [vmem:[#allocation5 + $0xa2] sm:$0x1]  ;;  %v9685_v24 = vld [vmem:[#allocation5 + $0xa3] sm:$0x1]  ;;  %v9714_v6 = vld [vmem:[#allocation5 + $0xa4] sm:$0x1]  ;;  %v9658_v51 = vmax.f32 %v9653_v62, %v9654_v15 }
 0xa1a   : > { %9617 = vmatmul.f32.vlgmr.msrb.gmra.mxu2 %v9598_v45  ;;  %9768 = vmatpush.xpose.msrb.mxu1 %v10856_v2  ;;  %v9715_v50 = vld [vmem:[#allocation5 + $0xa5] sm:$0x1]  ;;  %v9688_v31 = vmax.f32 %v9684_v18, %v9685_v24  ;;  %v9744_v3 = vld [vmem:[#allocation5 + $0xa6] sm:$0x1]  ;;  %v9745_v32 = vld [vmem:[#allocation5 + $0xa7] sm:$0x1] }
 0xa1b   : > { %9647 = vmatmul.f32.vlgmr.msra.gmra.mxu3 %v9628_v20  ;;  %9798 = vmatpush.xpose.msrb.mxu2 %v10857_v42  ;;  %v9718_v8 = vmax.f32 %v9714_v6, %v9715_v50  ;;  %v9748_v7 = vmax.f32 %v9744_v3, %v9745_v32 }
 0xa1c   : > { %v8693_v12 = vld.sshfl [vmem:[#allocation1 + $0x20] sm:$0xff pattern:$0x75316420]  ;;  %9828 = vmatpush.xpose.msra.mxu3 %v10858_v35 }
 0xa1d   : > { %8741 = vst [vmem:[#allocation5 + $0xb0] sm:$0xff] %v8693_v12 }
 0xa1e   : > { %v8694_v11 = vld.sshfl [vmem:[#allocation1 + $0x30] sm:$0xff pattern:$0x75316420] }
 0xa1f   : > { %8742 = vst [vmem:[#allocation5 + $0xb8] sm:$0xf] %v8694_v11  ;;  %v9774_v5 = vld [vmem:[#allocation5 + $0xa8] sm:$0x1]  ;;  %v9775_v30 = vld [vmem:[#allocation5 + $0xa9] sm:$0x1] }
 0xa20   : > { %v9804_v54 = vld [vmem:[#allocation5 + $0xaa] sm:$0x1]  ;;  %v9805_v23 = vld [vmem:[#allocation5 + $0xab] sm:$0x1]  ;;  %v9778_v26 = vmax.f32 %v9774_v5, %v9775_v30 }
 0xa21   : > { %v9808_v17 = vmax.f32 %v9804_v54, %v9805_v23 }
 0xa24   : > { %v9656_v21 = vld [vmem:[#allocation5 + $0xb0] sm:$0x1]  ;;  %v9657_v36 = vld [vmem:[#allocation5 + $0xb1] sm:$0x1]  ;;  %v9686_v53 = vld [vmem:[#allocation5 + $0xb2] sm:$0x1] }
 0xa25   : > { %v9659_v39 = vmax.f32 %v9656_v21, %v9657_v36  ;;  %v9687_v55 = vld [vmem:[#allocation5 + $0xb3] sm:$0x1]  ;;  %v9716_v0 = vld [vmem:[#allocation5 + $0xb4] sm:$0x1]  ;;  %v9717_v61 = vld [vmem:[#allocation5 + $0xb5] sm:$0x1] }
 0xa26   : > { %v9689_v19 = vmax.f32 %v9686_v53, %v9687_v55  ;;  %v9719_v22 = vmax.f32 %v9716_v0, %v9717_v61  ;;  %v9746_v57 = vld [vmem:[#allocation5 + $0xb6] sm:$0x1]  ;;  %v9747_v59 = vld [vmem:[#allocation5 + $0xb7] sm:$0x1]  ;;  %v9776_v48 = vld [vmem:[#allocation5 + $0xb8] sm:$0x1] }
 0xa27   : > { %v9660_v13 = vmax.f32 %v9658_v51, %v9659_v39  ;;  %v9777_v49 = vld [vmem:[#allocation5 + $0xb9] sm:$0x1]  ;;  %v9806_v10 = vld [vmem:[#allocation5 + $0xba] sm:$0x1]  ;;  %v9807_v29 = vld [vmem:[#allocation5 + $0xbb] sm:$0x1]  ;;  %v9749_v1 = vmax.f32 %v9746_v57, %v9747_v59 }
 0xa28   : > { %v9690_v28 = vmax.f32 %v9688_v31, %v9689_v19  ;;  %v9720_v25 = vmax.f32 %v9718_v8, %v9719_v22  ;;  %v9779_v44 = vmax.f32 %v9776_v48, %v9777_v49  ;;  %v9809_v34 = vmax.f32 %v9806_v10, %v9807_v29 }
 0xa29   : > { %9679 = vmatmul.f32.vlgmr.msra.gmra.mxu1 %v9660_v13  ;;  %v9750_v38 = vmax.f32 %v9748_v7, %v9749_v1 }
 0xa2a   : > { %9709 = vmatmul.f32.vlgmr.msra.gmra.mxu2 %v9690_v28  ;;  %9739 = vmatmul.f32.vlgmr.msrb.gmra.mxu3 %v9720_v25  ;;  %v9780_v52 = vmax.f32 %v9778_v26, %v9779_v44  ;;  %v9810_v41 = vmax.f32 %v9808_v17, %v9809_v34 }
 0xa2e   : > { %v8770_v37 = vpop.f32.mrf.mxu1 }
 0xa2f   : > { %v8773_v47 = vadd.f32 %v8770_v37, %v8743_v56 }
 0xa31   : > { %9769 = vmatmul.f32.vlgmr.msrb.gmra.mxu1 %v9750_v38 }
 0xa32   : > { %9799 = vmatmul.f32.vlgmr.msrb.gmra.mxu2 %v9780_v52  ;;  %9829 = vmatmul.f32.vlgmr.msra.gmra.mxu3 %v9810_v41 }
 0xa35   : > { %v8800_v9 = vpop.f32.mrf.mxu2 }
 0xa36   : > { %v8830_v46 = vpop.f32.mrf.mxu3  ;;  %v8803_v33 = vadd.f32 %v8800_v9, %v8773_v47  ;;  %v8860_v4 = vpop.f32.mrf.mxu1 }
 0xa38   : > { %v8833_v43 = vadd.f32 %v8830_v46, %v8803_v33 }
 0xa3a   : > { %v8863_v27 = vadd.f32 %v8860_v4, %v8833_v43 }
 0xa3d   : > { %v8890_v14 = vpop.f32.mrf.mxu2 }
 0xa3e   : > { %v8920_v40 = vpop.f32.mrf.mxu3  ;;  %v8893_v63 = vadd.f32 %v8890_v14, %v8863_v27 }
 0xa40   : > { %v8923_v60 = vadd.f32 %v8920_v40, %v8893_v63 }
 0xa46   : > { %v8952_v2 = vpop.f32.mrf.mxu1 }
 0xa47   : > { %v8955_v58 = vadd.f32 %v8952_v2, %v8923_v60 }
 0xa4d   : > { %v8982_v16 = vpop.f32.mrf.mxu2 }
 0xa4e   : > { %v9012_v45 = vpop.f32.mrf.mxu3  ;;  %v8985_v42 = vadd.f32 %v8982_v16, %v8955_v58  ;;  %v9042_v35 = vpop.f32.mrf.mxu1 }
 0xa50   : > { %v9015_v20 = vadd.f32 %v9012_v45, %v8985_v42 }
 0xa52   : > { %v9045_v11 = vadd.f32 %v9042_v35, %v9015_v20 }
 0xa55   : > { %v9072_v12 = vpop.f32.mrf.mxu2 }
 0xa56   : > { %v9102_v62 = vpop.f32.mrf.mxu3  ;;  %v9075_v15 = vadd.f32 %v9072_v12, %v9045_v11 }
 0xa58   : > { %v9105_v24 = vadd.f32 %v9102_v62, %v9075_v15 }
 0xa5e   : > { %v9134_v18 = vpop.f32.mrf.mxu1 }
 0xa5f   : > { %v9137_v50 = vadd.f32 %v9134_v18, %v9105_v24 }
 0xa65   : > { %v9164_v6 = vpop.f32.mrf.mxu2 }
 0xa66   : > { %v9194_v21 = vpop.f32.mrf.mxu3  ;;  %v9167_v36 = vadd.f32 %v9164_v6, %v9137_v50  ;;  %v9224_v51 = vpop.f32.mrf.mxu1 }
 0xa68   : > { %v9197_v53 = vadd.f32 %v9194_v21, %v9167_v36 }
 0xa6a   : > { %v9227_v55 = vadd.f32 %v9224_v51, %v9197_v53 }
 0xa6d   : > { %v9254_v39 = vpop.f32.mrf.mxu2 }
 0xa6e   : > { %v9284_v0 = vpop.f32.mrf.mxu3  ;;  %v9257_v61 = vadd.f32 %v9254_v39, %v9227_v55 }
 0xa70   : > { %v9287_v19 = vadd.f32 %v9284_v0, %v9257_v61 }
 0xa76   : > { %v9316_v31 = vpop.f32.mrf.mxu1 }
 0xa77   : > { %v9319_v22 = vadd.f32 %v9316_v31, %v9287_v19 }
 0xa7d   : > { %v9346_v8 = vpop.f32.mrf.mxu2 }
 0xa7e   : > { %v9376_v13 = vpop.f32.mrf.mxu3  ;;  %v9349_v28 = vadd.f32 %v9346_v8, %v9319_v22  ;;  %v9406_v57 = vpop.f32.mrf.mxu1 }
 0xa80   : > { %v9379_v25 = vadd.f32 %v9376_v13, %v9349_v28 }
 0xa82   : > { %v9409_v48 = vadd.f32 %v9406_v57, %v9379_v25 }
 0xa85   : > { %v9436_v59 = vpop.f32.mrf.mxu2 }
 0xa86   : > { %v9466_v49 = vpop.f32.mrf.mxu3  ;;  %v9439_v10 = vadd.f32 %v9436_v59, %v9409_v48 }
 0xa88   : > { %v9469_v3 = vadd.f32 %v9466_v49, %v9439_v10 }
 0xa8e   : > { %v9498_v29 = vpop.f32.mrf.mxu1 }
 0xa8f   : > { %v9501_v5 = vadd.f32 %v9498_v29, %v9469_v3 }
 0xa95   : > { %v9528_v32 = vpop.f32.mrf.mxu2 }
 0xa96   : > { %v9558_v1 = vpop.f32.mrf.mxu3  ;;  %v9531_v30 = vadd.f32 %v9528_v32, %v9501_v5  ;;  %v9588_v23 = vpop.f32.mrf.mxu1 }
 0xa98   : > { %v9561_v54 = vadd.f32 %v9558_v1, %v9531_v30 }
 0xa9a   : > { %v9591_v34 = vadd.f32 %v9588_v23, %v9561_v54 }
 0xa9d   : > { %v9618_v44 = vpop.f32.mrf.mxu2 }
 0xa9e   : > { %v9648_v7 = vpop.f32.mrf.mxu3  ;;  %v9621_v26 = vadd.f32 %v9618_v44, %v9591_v34 }
 0xaa0   : > { %v9651_v38 = vadd.f32 %v9648_v7, %v9621_v26 }
 0xaa6   : > { %v9680_v17 = vpop.f32.mrf.mxu1 }
 0xaa7   : > { %v9683_v52 = vadd.f32 %v9680_v17, %v9651_v38 }
 0xaad   : > { %v9710_v41 = vpop.f32.mrf.mxu2  ;;  %v9740_v56 = vpop.f32.mrf.mxu3 }
 0xaae   : > { %v9713_v37 = vadd.f32 %v9710_v41, %v9683_v52  ;;  %v9770_v47 = vpop.f32.mrf.mxu1 }
 0xab0   : > { %v9743_v9 = vadd.f32 %v9740_v56, %v9713_v37 }
 0xab2   : > { %v9773_v46 = vadd.f32 %v9770_v47, %v9743_v9 }
 0xab5   : > { %v9800_v33 = vpop.f32.mrf.mxu2  ;;  %v9830_v4 = vpop.f32.mrf.mxu3 }
 0xab6   : > { %v9803_v43 = vadd.f32 %v9800_v33, %v9773_v46 }
 0xab8   : > { %v9833_v14 = vadd.f32 %v9830_v4, %v9803_v43 }
 0xaba   : > { %9835 = vst.msk [vmem:[%s270_s14] sm:$0x1] %vm9834_vm5, %v9833_v14 }
 0xabb   : > { %10952 = shalt.err (!%p10949_p3)
}
 0xabc   : > { %10864 = dma.vmem_to_hbm [thread:$0]  (%p11068_p5), %s9848_s15, 16, %s9850_s16, %s9837_s17  }
 0xabd PF: > { %p10870_p4 = scmp.ge.s32.totalorder %s10987_s27, 2  ;;  %s9861_s29 = sand.u32 1, %s10975_s24  }
 0xabe   : > { %s9862_s8 = scalar_lea.sflag [#allocation7], %s9861_s29 }
 0xabf   : > { %p10867_p7 = pnand %p10870_p4, %p11072_p6 }
 0xac1   : > { %p10868_p8 = pneg %p10867_p7 }
 0xac3   : > { %10970 = dma.done.wait (%p10868_p8), %s9862_s8, 16  }
 0xac4   : > { %10972 = vsyncadd (%p10868_p8), %s9862_s8, 4294967280  ;;  %p17_p9 = scmp.ge.s32.totalorder %s11055_s30, 4   ;;  %s15258_s24 = smov %s10979_s25 }
 0xac5   : > { %s15259_s25 = smov %s10983_s26  ;;  %s15260_s26 = smov %s11066_s10 }
 0xac6   : > { %s15261_s27 = smov %s11055_s30  ;;  %19 = sbr.rel (!%p17_p9) target bundleno = 3 (0x3), region = 312 }
 0xacb   :  { %9867 = vsyncpa [#allocation7], 1 }
 0xacc   :  { %9869 = vsyncpa [#allocation7 + $0x1], 1 }

</bundles_post_ra>
